<compile_context>
chip_gen: v6e
topology: v6e:2x2x1
jax: 0.10.0
libtpu: 0.0.40
codegen_flags: <defaults>
</compile_context>

<pallas_src>
import functools

import jax
import jax.numpy as jnp
import numpy as np
from jax.experimental import pallas as pl
from jax.experimental.pallas import tpu as pltpu

EPS = 1e-5        # PyTorch BatchNorm default eps
PAD = 32          # flat-scratch halo for the 3x3 tap shifts (|shift| <= 29)
BN_COLS = 512     # hidden-column tile width streamed per MLP grid step
N_SPLITS = 2      # leading "parallel" MLP grid axis (v7x megacore split)


# --------------------------------------------------------------------------
# Pallas kernel 1: fused  conv3x3(8->8)+BN1  ->  conv3x3(8->4)+BN2
#   Layout: channel rows x flattened (b*H*W) lanes (lane-dense outputs).
#   Both im2cols are done in-kernel against a zero-haloed VMEM scratch:
#     tap(kh,kw) == window read at offset (kh-1)*W+(kw-1), masked where the
#     source pixel falls outside the image (exactly reproduces zero padding).
# --------------------------------------------------------------------------
def _conv_stage_kernel(x_ref, m_ref, w1_ref, s1_ref, t1_ref,
                       w2_ref, s2_ref, t2_ref, o_ref, buf_ref, *, width):
    B = x_ref.shape[0]
    hw = x_ref.shape[2]
    n = B * hw
    c1 = w1_ref.shape[1]   # conv1 out-channels (== in-channels -> buffer reuse)
    c2 = w2_ref.shape[1]   # conv2 out-channels
    offs = [(kh - 1) * width + (kw - 1) for kh in range(3) for kw in range(3)]

    # Stage the module input (channel-major rows, batch-flattened lanes) in a
    # zero-haloed buffer; the halo supplies the zeros for edge taps.
    buf_ref[...] = jnp.zeros(buf_ref.shape, buf_ref.dtype)
    for b in range(B):
        buf_ref[:, PAD + b * hw: PAD + (b + 1) * hw] = (
            x_ref[b].astype(jnp.bfloat16))

    def conv3x3(w_ref, cout):
        acc = jnp.zeros((cout, n), jnp.float32)
        for t, off in enumerate(offs):
            tap = buf_ref[:, PAD + off: PAD + off + n] * m_ref[t:t + 1, :]
            acc = acc + jnp.dot(w_ref[t], tap,
                                preferred_element_type=jnp.float32)
        return acc

    # conv1 + folded BN1, back into the same halo buffer (halo stays zero).
    y1 = conv3x3(w1_ref, c1) * s1_ref[...] + t1_ref[...]
    buf_ref[:, PAD: PAD + n] = y1.astype(jnp.bfloat16)

    # conv2 + folded BN2 -> bf16 output (feeds the MLP kernel directly).
    y2 = conv3x3(w2_ref, c2) * s2_ref[...] + t2_ref[...]
    o_ref[...] = y2.astype(o_ref.dtype)


def _conv_tap_masks(B, H, W):
    """(9, B*H*W) validity mask per 3x3 tap (1 inside the image, 0 = zero pad)."""
    m = np.zeros((9, H, W), np.float32)
    for kh in range(3):
        for kw in range(3):
            hs = np.arange(H) + kh - 1
            ws = np.arange(W) + kw - 1
            valid = (((hs >= 0) & (hs < H))[:, None]
                     & ((ws >= 0) & (ws < W))[None, :])
            m[kh * 3 + kw] = valid.astype(np.float32)
    return np.tile(m.reshape(9, H * W), (1, B))


def conv_stage(x_nchw, prep):
    B, cin, H, W = x_nchw.shape
    n = B * H * W
    cout2 = prep["w2_9"].shape[1]
    assert prep["w1_9"].shape[1] == cin, "conv1 must preserve channel count"

    masks = jnp.asarray(_conv_tap_masks(B, H, W), dtype=jnp.bfloat16)
    x_flat = x_nchw.reshape(B, cin, H * W)        # free bitcast reshape

    return pl.pallas_call(
        functools.partial(_conv_stage_kernel, width=W),
        out_shape=jax.ShapeDtypeStruct((cout2, n), jnp.bfloat16),
        grid_spec=pltpu.PrefetchScalarGridSpec(
            num_scalar_prefetch=0,
            grid=(1,),
            in_specs=[
                pl.BlockSpec((B, cin, H * W), lambda i: (0, 0, 0)),
                pl.BlockSpec((9, n), lambda i: (0, 0)),
                pl.BlockSpec(prep["w1_9"].shape, lambda i: (0, 0, 0)),
                pl.BlockSpec((cin, 1), lambda i: (0, 0)),
                pl.BlockSpec((cin, 1), lambda i: (0, 0)),
                pl.BlockSpec(prep["w2_9"].shape, lambda i: (0, 0, 0)),
                pl.BlockSpec((cout2, 1), lambda i: (0, 0)),
                pl.BlockSpec((cout2, 1), lambda i: (0, 0)),
            ],
            out_specs=pl.BlockSpec((cout2, n), lambda i: (0, 0)),
            scratch_shapes=[pltpu.VMEM((cin, n + 2 * PAD), jnp.bfloat16)],
        ),
        compiler_params=pltpu.CompilerParams(
            dimension_semantics=("arbitrary",)),
    )(x_flat, masks, prep["w1_9"], prep["s1"], prep["t1"],
      prep["w2_9"], prep["s2"], prep["t2"])


# --------------------------------------------------------------------------
# Pallas kernel 2: fused  Linear4(bf16) + BN4 + ReLU + Linear5 (raw partials)
#   Grid = (n_splits ["parallel"], n_j ["arbitrary"]).  Each step DMAs ONE
#   contiguous (4, 784, bn) bf16 slab of the pre-blocked w4, does 4
#   per-channel dots against the VMEM-resident (4, B, 784) conv output, and
#   accumulates the matching w5 row-tile product into a (B,10) f32 scratch.
#   Each split writes its raw partial; BN5 + bias are applied after summing
#   the partials outside (so the v7x 2-core split stays exact).
# --------------------------------------------------------------------------
def _fused_mlp_kernel(x_ref, w4_ref, s4_ref, b4_ref, w5_ref, o_ref, acc_ref):
    j = pl.program_id(1)

    @pl.when(j == 0)
    def _():
        acc_ref[...] = jnp.zeros_like(acc_ref)

    # Linear4 column tile: contract K = 4*784 as 4 per-channel dots (bf16 MXU,
    # f32 accumulation); x is already bf16, no per-step cast.
    h = jnp.dot(x_ref[0], w4_ref[0], preferred_element_type=jnp.float32)
    for c in range(1, x_ref.shape[0]):
        h = h + jnp.dot(x_ref[c], w4_ref[c], preferred_element_type=jnp.float32)

    # Folded BN4 (+ Linear4 bias) + ReLU.
    h = jnp.maximum(h * s4_ref[...] + b4_ref[...], 0.0)

    # Linear5 partial for this hidden tile.
    acc_ref[...] += jnp.dot(h, w5_ref[...], preferred_element_type=jnp.float32)

    @pl.when(j == pl.num_programs(1) - 1)
    def _():
        o_ref[...] = acc_ref[...]


def fused_linear_stack(x3, w4_blocked, s4, b4, w5, *, n_splits=N_SPLITS):
    C, B, hw = x3.shape                       # (4, B, 784) bf16
    n_tiles, c2, hw2, bn = w4_blocked.shape   # (n_tiles, 4, 784, bn) bf16
    Hd, NO = w5.shape                         # (1024, 10) f32
    assert c2 == C and hw2 == hw and n_tiles * bn == Hd
    assert n_tiles % n_splits == 0
    n_j = n_tiles // n_splits

    return pl.pallas_call(
        _fused_mlp_kernel,
        out_shape=jax.ShapeDtypeStruct((n_splits, B, NO), jnp.float32),
        grid_spec=pltpu.PrefetchScalarGridSpec(
            num_scalar_prefetch=0,
            grid=(n_splits, n_j),
            in_specs=[
                pl.BlockSpec((C, B, hw), lambda s, j: (0, 0, 0)),        # x3 resident
                pl.BlockSpec((None, C, hw, bn),                          # contiguous w4 slab
                             lambda s, j: (s * n_j + j, 0, 0, 0)),
                pl.BlockSpec((1, bn), lambda s, j: (0, s * n_j + j)),    # BN4 scale
                pl.BlockSpec((1, bn), lambda s, j: (0, s * n_j + j)),    # BN4 shift(+bias)
                pl.BlockSpec((bn, NO), lambda s, j: (s * n_j + j, 0)),   # w5 row tile
            ],
            out_specs=pl.BlockSpec((None, B, NO), lambda s, j: (s, 0, 0)),
            scratch_shapes=[pltpu.VMEM((B, NO), jnp.float32)],
        ),
        compiler_params=pltpu.CompilerParams(
            dimension_semantics=("parallel", "arbitrary"),
            vmem_limit_bytes=32 * 1024 * 1024),
    )(x3, w4_blocked, s4, b4, w5)


# --------------------------------------------------------------------------
# One-time parameter preprocessing: fold BN running stats + linear bias,
# reshape conv weights to per-tap matmul form (bf16), pre-block w4 into
# contiguous (n_tiles, 4, 784, bn) bf16 slabs.
# --------------------------------------------------------------------------
def fold_bn(gamma, beta, mean, var):
    scale = gamma / jnp.sqrt(var + EPS)
    shift = beta - mean * scale
    return scale, shift


def prepare_params(params, *, bn=BN_COLS):
    s1, t1 = fold_bn(*params["bn1"])
    s2, t2 = fold_bn(*params["bn2"])
    s4, t4 = fold_bn(*params["bn4"])
    s5, t5 = fold_bn(*params["bn5"])

    def conv_w9(w_hwio):          # (3,3,Cin,Cout) -> (9, Cout, Cin) bf16
        cin, cout = w_hwio.shape[2], w_hwio.shape[3]
        return (w_hwio.reshape(9, cin, cout).transpose(0, 2, 1)
                .astype(jnp.bfloat16))

    w4 = params["w4"]                                   # (4*784, 1024) f32
    K, Hd = w4.shape
    C, hw = 4, K // 4
    n_tiles = Hd // bn
    assert n_tiles * bn == Hd
    # Pre-blocked so each MLP grid step DMAs one contiguous HBM slab.
    w4_blocked = (w4.reshape(C, hw, n_tiles, bn)
                  .transpose(2, 0, 1, 3)
                  .astype(jnp.bfloat16))                # (n_tiles, 4, 784, bn)

    return {
        "w1_9": conv_w9(params["w1"]),
        "s1": s1.reshape(-1, 1), "t1": t1.reshape(-1, 1),
        "w2_9": conv_w9(params["w2"]),
        "s2": s2.reshape(-1, 1), "t2": t2.reshape(-1, 1),
        "w4_blocked": w4_blocked,
        "s4": s4.reshape(1, -1),
        "b4": (t4 + params["b4"] * s4).reshape(1, -1),   # Linear4 bias folded
        "w5": params["w5"],                              # tiny, keep f32
        "s5": s5.reshape(1, -1),
        "b5": (t5 + params["b5"] * s5).reshape(1, -1),   # Linear5 bias folded
    }


# --------------------------------------------------------------------------
# Full forward (Mnist_Classifier, num_step=0 -> layers[1:6])
# --------------------------------------------------------------------------
def mnist_classifier_forward(x_nchw, prep):
    B, _, H, W = x_nchw.shape

    y2_t = conv_stage(x_nchw, prep)               # (4, B*H*W) bf16
    x3 = y2_t.reshape(4, B, H * W)                # free bitcast reshape

    partials = fused_linear_stack(x3, prep["w4_blocked"],
                                  prep["s4"], prep["b4"], prep["w5"])
    # Combine per-core partials, then folded BN5 (+ Linear5 bias): tiny XLA op.
    return partials.sum(axis=0) * prep["s5"] + prep["b5"]


# --------------------------------------------------------------------------
# Pure-JAX references (no Pallas).
#   low_precision=True mirrors the kernel's precision policy (bf16 conv inputs
#   / activations / w4, f32 accumulation)  -> tight check.
#   low_precision=False is the original full-f32 module semantics -> loose check.
# --------------------------------------------------------------------------
def reference_forward(x_nchw, params, *, low_precision=True):
    cdt = jnp.bfloat16 if low_precision else jnp.float32

    def conv(h, w):
        return jax.lax.conv_general_dilated(
            h.astype(cdt), w.astype(cdt), window_strides=(1, 1),
            padding=((1, 1), (1, 1)),
            dimension_numbers=("NCHW", "HWIO", "NCHW"),
            preferred_element_type=jnp.float32)

    def bn(h, p, axis):
        g, b, m, v = p
        s = g / jnp.sqrt(v + EPS)
        t = b - m * s
        shape = [1] * h.ndim
        shape[axis] = -1
        return h * s.reshape(shape) + t.reshape(shape)

    h = bn(conv(x_nchw, params["w1"]), params["bn1"], 1)
    h = bn(conv(h, params["w2"]), params["bn2"], 1)
    B = h.shape[0]
    hf = h.reshape(B, -1).astype(cdt)
    z = jnp.dot(hf, params["w4"].astype(cdt),
                preferred_element_type=jnp.float32) + params["b4"]
    z = jnp.maximum(bn(z, params["bn4"], 1), 0.0)
    z = jnp.dot(z, params["w5"], preferred_element_type=jnp.float32) + params["b5"]
    return bn(z, params["bn5"], 1)


# --------------------------------------------------------------------------
# Deterministic synthetic parameters (module uses bias=False convs).
# --------------------------------------------------------------------------
def init_params(key):
    ks = jax.random.split(key, 10)

    def bn_params(k, c):
        k1, k2, k3, k4 = jax.random.split(k, 4)
        gamma = 1.0 + 0.1 * jax.random.normal(k1, (c,), jnp.float32)
        beta = 0.1 * jax.random.normal(k2, (c,), jnp.float32)
        mean = 0.1 * jax.random.normal(k3, (c,), jnp.float32)
        var = jax.random.uniform(k4, (c,), jnp.float32, 0.5, 1.5)
        return gamma, beta, mean, var

    return {
        # conv weights stored HWIO (3,3,Cin,Cout), no conv bias (bias=False)
        "w1": jax.random.normal(ks[0], (3, 3, 8, 8), jnp.float32) / jnp.sqrt(72.0),
        "bn1": bn_params(ks[1], 8),
        "w2": jax.random.normal(ks[2], (3, 3, 8, 4), jnp.float32) / jnp.sqrt(72.0),
        "bn2": bn_params(ks[3], 4),
        # linear weights stored (in, out);  y = x @ W + b
        "w4": jax.random.normal(ks[4], (3136, 1024), jnp.float32) / jnp.sqrt(3136.0),
        "b4": 0.1 * jax.random.normal(ks[5], (1024,), jnp.float32),
        "bn4": bn_params(ks[6], 1024),
        "w5": jax.random.normal(ks[7], (1024, 10), jnp.float32) / jnp.sqrt(1024.0),
        "b5": 0.1 * jax.random.normal(ks[8], (10,), jnp.float32),
        "bn5": bn_params(ks[9], 10),
    }


if __name__ == "__main__":
    key = jax.random.PRNGKey(0)
    kx, kp = jax.random.split(key)
    # num_step=0 drops layer0, so the module input is the 8-channel feature map
    # expected by layer1; spatial must be 28x28 for the 4*28*28 View/Linear.
    x = jax.random.normal(kx, (2, 8, 28, 28), jnp.float32)    # NCHW, like PyTorch
    params = init_params(kp)
    prep = prepare_params(params)            # one-time: BN folding, bf16, w4 blocking

    fwd = jax.jit(mnist_classifier_forward)
    out = jax.block_until_ready(fwd(x, prep))

    ref_matched = jax.block_until_ready(
        reference_forward(x, params, low_precision=True))     # bf16 policy
    ref_f32 = jax.block_until_ready(
        reference_forward(x, params, low_precision=False))    # pure f32 module

    assert out.shape == (2, 10), out.shape
    # Tight check vs. the precision-matched reference (verifies kernel math).
    np.testing.assert_allclose(np.asarray(out), np.asarray(ref_matched),
                               rtol=2e-3, atol=2e-3)
    # Loose sanity check vs. the original full-f32 module semantics
    # (bf16 conv/w4 precision policy causes ~1-2% drift).
    np.testing.assert_allclose(np.asarray(out), np.asarray(ref_f32),
                               rtol=7.5e-2, atol=7.5e-2)
    print("KERNEL_OK")
</pallas_src>

<mosaic_0001>
module attributes {stable_mosaic.version = 11 : i64} {
  func.func @_conv_stage_kernel(%arg0: i32, %arg1: memref<2x8x784xf32, #tpu.memory_space<vmem>>, %arg2: memref<9x1568xbf16, #tpu.memory_space<vmem>>, %arg3: memref<9x8x8xbf16, #tpu.memory_space<vmem>>, %arg4: memref<8x1xf32, #tpu.memory_space<vmem>>, %arg5: memref<8x1xf32, #tpu.memory_space<vmem>>, %arg6: memref<9x4x8xbf16, #tpu.memory_space<vmem>>, %arg7: memref<4x1xf32, #tpu.memory_space<vmem>>, %arg8: memref<4x1xf32, #tpu.memory_space<vmem>>, %arg9: memref<4x1568xbf16, #tpu.memory_space<vmem>>, %arg10: memref<8x1632xbf16, #tpu.memory_space<vmem>>) attributes {dimension_semantics = [#tpu.dimension_semantics<arbitrary>], iteration_bounds = array<i64: 1>, scalar_prefetch = 0 : i64, scratch_operands = 1 : i64, tpu.core_type = #tpu.core_type<tc>, window_params = [{pipeline_mode = #tpu.pipeline_mode<synchronous>, transform_indices = @transform_0, window_bounds = array<i64: 2, 8, 784>}, {pipeline_mode = #tpu.pipeline_mode<synchronous>, transform_indices = @transform_1, window_bounds = array<i64: 9, 1568>}, {pipeline_mode = #tpu.pipeline_mode<synchronous>, transform_indices = @transform_2, window_bounds = array<i64: 9, 8, 8>}, {pipeline_mode = #tpu.pipeline_mode<synchronous>, transform_indices = @transform_3, window_bounds = array<i64: 8, 1>}, {pipeline_mode = #tpu.pipeline_mode<synchronous>, transform_indices = @transform_4, window_bounds = array<i64: 8, 1>}, {pipeline_mode = #tpu.pipeline_mode<synchronous>, transform_indices = @transform_5, window_bounds = array<i64: 9, 4, 8>}, {pipeline_mode = #tpu.pipeline_mode<synchronous>, transform_indices = @transform_6, window_bounds = array<i64: 4, 1>}, {pipeline_mode = #tpu.pipeline_mode<synchronous>, transform_indices = @transform_7, window_bounds = array<i64: 4, 1>}, {pipeline_mode = #tpu.pipeline_mode<synchronous>, transform_indices = @transform_8, window_bounds = array<i64: 4, 1568>}]} {
    %cst = arith.constant 0.000000e+00 : bf16
    %0 = vector.broadcast %cst : bf16 to vector<8x1632xbf16>
    %c0 = arith.constant 0 : index
    %c0_0 = arith.constant 0 : index
    %1 = vector.load %arg10[%c0, %c0_0] : memref<8x1632xbf16, #tpu.memory_space<vmem>>, vector<8x1632xbf16>
    tpu.vector_store %arg10[%c0, %c0_0], %0 {strides = array<i32>} : memref<8x1632xbf16, #tpu.memory_space<vmem>>, vector<8x1632xbf16>,
    %c0_1 = arith.constant 0 : index
    %c0_2 = arith.constant 0 : index
    %c0_3 = arith.constant 0 : index
    %2 = vector.load %arg1[%c0_1, %c0_2, %c0_3] : memref<2x8x784xf32, #tpu.memory_space<vmem>>, vector<1x8x784xf32>
    %3 = vector.shape_cast %2 : vector<1x8x784xf32> to vector<8x784xf32>
    %4 = arith.truncf %3 : vector<8x784xf32> to vector<8x784xbf16>
    %c0_4 = arith.constant 0 : index
    %c32 = arith.constant 32 : index
    %5 = vector.load %arg10[%c0_4, %c32] : memref<8x1632xbf16, #tpu.memory_space<vmem>>, vector<8x784xbf16>
    tpu.vector_store %arg10[%c0_4, %c32], %4 {strides = array<i32>} : memref<8x1632xbf16, #tpu.memory_space<vmem>>, vector<8x784xbf16>,
    %c1 = arith.constant 1 : index
    %c0_5 = arith.constant 0 : index
    %c0_6 = arith.constant 0 : index
    %6 = vector.load %arg1[%c1, %c0_5, %c0_6] : memref<2x8x784xf32, #tpu.memory_space<vmem>>, vector<1x8x784xf32>
    %7 = vector.shape_cast %6 : vector<1x8x784xf32> to vector<8x784xf32>
    %8 = arith.truncf %7 : vector<8x784xf32> to vector<8x784xbf16>
    %c0_7 = arith.constant 0 : index
    %c816 = arith.constant 816 : index
    %9 = vector.load %arg10[%c0_7, %c816] : memref<8x1632xbf16, #tpu.memory_space<vmem>>, vector<8x784xbf16>
    tpu.vector_store %arg10[%c0_7, %c816], %8 {strides = array<i32>} : memref<8x1632xbf16, #tpu.memory_space<vmem>>, vector<8x784xbf16>,
    %cst_8 = arith.constant 0.000000e+00 : f32
    %10 = vector.broadcast %cst_8 : f32 to vector<8x1568xf32>
    %c0_9 = arith.constant 0 : index
    %c3 = arith.constant 3 : index
    %11 = vector.load %arg10[%c0_9, %c3] : memref<8x1632xbf16, #tpu.memory_space<vmem>>, vector<8x1568xbf16>
    %c0_10 = arith.constant 0 : index
    %c0_11 = arith.constant 0 : index
    %12 = vector.load %arg2[%c0_10, %c0_11] : memref<9x1568xbf16, #tpu.memory_space<vmem>>, vector<1x1568xbf16>
    %13 = vector.broadcast %12 : vector<1x1568xbf16> to vector<8x1568xbf16>
    %14 = arith.mulf %11, %13 : vector<8x1568xbf16>
    %c0_12 = arith.constant 0 : index
    %c0_13 = arith.constant 0 : index
    %c0_14 = arith.constant 0 : index
    %15 = vector.load %arg3[%c0_12, %c0_13, %c0_14] : memref<9x8x8xbf16, #tpu.memory_space<vmem>>, vector<1x8x8xbf16>
    %16 = vector.shape_cast %15 : vector<1x8x8xbf16> to vector<8x8xbf16>
    %cst_15 = arith.constant dense<0.000000e+00> : vector<8x1568xf32>
    %17 = tpu.matmul %16, %14, %cst_15 {dimension_numbers = #tpu.dot_dimension_numbers<[1], [0], [0], [1], [0, 0, 1, 1], [], []>} : vector<8x8xbf16>, vector<8x1568xbf16>, vector<8x1568xf32> -> vector<8x1568xf32>
    %18 = arith.addf %10, %17 : vector<8x1568xf32>
    %c0_16 = arith.constant 0 : index
    %c4 = arith.constant 4 : index
    %19 = vector.load %arg10[%c0_16, %c4] : memref<8x1632xbf16, #tpu.memory_space<vmem>>, vector<8x1568xbf16>
    %c1_17 = arith.constant 1 : index
    %c0_18 = arith.constant 0 : index
    %20 = vector.load %arg2[%c1_17, %c0_18] : memref<9x1568xbf16, #tpu.memory_space<vmem>>, vector<1x1568xbf16>
    %21 = vector.broadcast %20 : vector<1x1568xbf16> to vector<8x1568xbf16>
    %22 = arith.mulf %19, %21 : vector<8x1568xbf16>
    %c1_19 = arith.constant 1 : index
    %c0_20 = arith.constant 0 : index
    %c0_21 = arith.constant 0 : index
    %23 = vector.load %arg3[%c1_19, %c0_20, %c0_21] : memref<9x8x8xbf16, #tpu.memory_space<vmem>>, vector<1x8x8xbf16>
    %24 = vector.shape_cast %23 : vector<1x8x8xbf16> to vector<8x8xbf16>
    %cst_22 = arith.constant dense<0.000000e+00> : vector<8x1568xf32>
    %25 = tpu.matmul %24, %22, %cst_22 {dimension_numbers = #tpu.dot_dimension_numbers<[1], [0], [0], [1], [0, 0, 1, 1], [], []>} : vector<8x8xbf16>, vector<8x1568xbf16>, vector<8x1568xf32> -> vector<8x1568xf32>
    %26 = arith.addf %18, %25 : vector<8x1568xf32>
    %c0_23 = arith.constant 0 : index
    %c5 = arith.constant 5 : index
    %27 = vector.load %arg10[%c0_23, %c5] : memref<8x1632xbf16, #tpu.memory_space<vmem>>, vector<8x1568xbf16>
    %c2 = arith.constant 2 : index
    %c0_24 = arith.constant 0 : index
    %28 = vector.load %arg2[%c2, %c0_24] : memref<9x1568xbf16, #tpu.memory_space<vmem>>, vector<1x1568xbf16>
    %29 = vector.broadcast %28 : vector<1x1568xbf16> to vector<8x1568xbf16>
    %30 = arith.mulf %27, %29 : vector<8x1568xbf16>
    %c2_25 = arith.constant 2 : index
    %c0_26 = arith.constant 0 : index
    %c0_27 = arith.constant 0 : index
    %31 = vector.load %arg3[%c2_25, %c0_26, %c0_27] : memref<9x8x8xbf16, #tpu.memory_space<vmem>>, vector<1x8x8xbf16>
    %32 = vector.shape_cast %31 : vector<1x8x8xbf16> to vector<8x8xbf16>
    %cst_28 = arith.constant dense<0.000000e+00> : vector<8x1568xf32>
    %33 = tpu.matmul %32, %30, %cst_28 {dimension_numbers = #tpu.dot_dimension_numbers<[1], [0], [0], [1], [0, 0, 1, 1], [], []>} : vector<8x8xbf16>, vector<8x1568xbf16>, vector<8x1568xf32> -> vector<8x1568xf32>
    %34 = arith.addf %26, %33 : vector<8x1568xf32>
    %c0_29 = arith.constant 0 : index
    %c31 = arith.constant 31 : index
    %35 = vector.load %arg10[%c0_29, %c31] : memref<8x1632xbf16, #tpu.memory_space<vmem>>, vector<8x1568xbf16>
    %c3_30 = arith.constant 3 : index
    %c0_31 = arith.constant 0 : index
    %36 = vector.load %arg2[%c3_30, %c0_31] : memref<9x1568xbf16, #tpu.memory_space<vmem>>, vector<1x1568xbf16>
    %37 = vector.broadcast %36 : vector<1x1568xbf16> to vector<8x1568xbf16>
    %38 = arith.mulf %35, %37 : vector<8x1568xbf16>
    %c3_32 = arith.constant 3 : index
    %c0_33 = arith.constant 0 : index
    %c0_34 = arith.constant 0 : index
    %39 = vector.load %arg3[%c3_32, %c0_33, %c0_34] : memref<9x8x8xbf16, #tpu.memory_space<vmem>>, vector<1x8x8xbf16>
    %40 = vector.shape_cast %39 : vector<1x8x8xbf16> to vector<8x8xbf16>
    %cst_35 = arith.constant dense<0.000000e+00> : vector<8x1568xf32>
    %41 = tpu.matmul %40, %38, %cst_35 {dimension_numbers = #tpu.dot_dimension_numbers<[1], [0], [0], [1], [0, 0, 1, 1], [], []>} : vector<8x8xbf16>, vector<8x1568xbf16>, vector<8x1568xf32> -> vector<8x1568xf32>
    %42 = arith.addf %34, %41 : vector<8x1568xf32>
    %c0_36 = arith.constant 0 : index
    %c32_37 = arith.constant 32 : index
    %43 = vector.load %arg10[%c0_36, %c32_37] : memref<8x1632xbf16, #tpu.memory_space<vmem>>, vector<8x1568xbf16>
    %c4_38 = arith.constant 4 : index
    %c0_39 = arith.constant 0 : index
    %44 = vector.load %arg2[%c4_38, %c0_39] : memref<9x1568xbf16, #tpu.memory_space<vmem>>, vector<1x1568xbf16>
    %45 = vector.broadcast %44 : vector<1x1568xbf16> to vector<8x1568xbf16>
    %46 = arith.mulf %43, %45 : vector<8x1568xbf16>
    %c4_40 = arith.constant 4 : index
    %c0_41 = arith.constant 0 : index
    %c0_42 = arith.constant 0 : index
    %47 = vector.load %arg3[%c4_40, %c0_41, %c0_42] : memref<9x8x8xbf16, #tpu.memory_space<vmem>>, vector<1x8x8xbf16>
    %48 = vector.shape_cast %47 : vector<1x8x8xbf16> to vector<8x8xbf16>
    %cst_43 = arith.constant dense<0.000000e+00> : vector<8x1568xf32>
    %49 = tpu.matmul %48, %46, %cst_43 {dimension_numbers = #tpu.dot_dimension_numbers<[1], [0], [0], [1], [0, 0, 1, 1], [], []>} : vector<8x8xbf16>, vector<8x1568xbf16>, vector<8x1568xf32> -> vector<8x1568xf32>
    %50 = arith.addf %42, %49 : vector<8x1568xf32>
    %c0_44 = arith.constant 0 : index
    %c33 = arith.constant 33 : index
    %51 = vector.load %arg10[%c0_44, %c33] : memref<8x1632xbf16, #tpu.memory_space<vmem>>, vector<8x1568xbf16>
    %c5_45 = arith.constant 5 : index
    %c0_46 = arith.constant 0 : index
    %52 = vector.load %arg2[%c5_45, %c0_46] : memref<9x1568xbf16, #tpu.memory_space<vmem>>, vector<1x1568xbf16>
    %53 = vector.broadcast %52 : vector<1x1568xbf16> to vector<8x1568xbf16>
    %54 = arith.mulf %51, %53 : vector<8x1568xbf16>
    %c5_47 = arith.constant 5 : index
    %c0_48 = arith.constant 0 : index
    %c0_49 = arith.constant 0 : index
    %55 = vector.load %arg3[%c5_47, %c0_48, %c0_49] : memref<9x8x8xbf16, #tpu.memory_space<vmem>>, vector<1x8x8xbf16>
    %56 = vector.shape_cast %55 : vector<1x8x8xbf16> to vector<8x8xbf16>
    %cst_50 = arith.constant dense<0.000000e+00> : vector<8x1568xf32>
    %57 = tpu.matmul %56, %54, %cst_50 {dimension_numbers = #tpu.dot_dimension_numbers<[1], [0], [0], [1], [0, 0, 1, 1], [], []>} : vector<8x8xbf16>, vector<8x1568xbf16>, vector<8x1568xf32> -> vector<8x1568xf32>
    %58 = arith.addf %50, %57 : vector<8x1568xf32>
    %c0_51 = arith.constant 0 : index
    %c59 = arith.constant 59 : index
    %59 = vector.load %arg10[%c0_51, %c59] : memref<8x1632xbf16, #tpu.memory_space<vmem>>, vector<8x1568xbf16>
    %c6 = arith.constant 6 : index
    %c0_52 = arith.constant 0 : index
    %60 = vector.load %arg2[%c6, %c0_52] : memref<9x1568xbf16, #tpu.memory_space<vmem>>, vector<1x1568xbf16>
    %61 = vector.broadcast %60 : vector<1x1568xbf16> to vector<8x1568xbf16>
    %62 = arith.mulf %59, %61 : vector<8x1568xbf16>
    %c6_53 = arith.constant 6 : index
    %c0_54 = arith.constant 0 : index
    %c0_55 = arith.constant 0 : index
    %63 = vector.load %arg3[%c6_53, %c0_54, %c0_55] : memref<9x8x8xbf16, #tpu.memory_space<vmem>>, vector<1x8x8xbf16>
    %64 = vector.shape_cast %63 : vector<1x8x8xbf16> to vector<8x8xbf16>
    %cst_56 = arith.constant dense<0.000000e+00> : vector<8x1568xf32>
    %65 = tpu.matmul %64, %62, %cst_56 {dimension_numbers = #tpu.dot_dimension_numbers<[1], [0], [0], [1], [0, 0, 1, 1], [], []>} : vector<8x8xbf16>, vector<8x1568xbf16>, vector<8x1568xf32> -> vector<8x1568xf32>
    %66 = arith.addf %58, %65 : vector<8x1568xf32>
    %c0_57 = arith.constant 0 : index
    %c60 = arith.constant 60 : index
    %67 = vector.load %arg10[%c0_57, %c60] : memref<8x1632xbf16, #tpu.memory_space<vmem>>, vector<8x1568xbf16>
    %c7 = arith.constant 7 : index
    %c0_58 = arith.constant 0 : index
    %68 = vector.load %arg2[%c7, %c0_58] : memref<9x1568xbf16, #tpu.memory_space<vmem>>, vector<1x1568xbf16>
    %69 = vector.broadcast %68 : vector<1x1568xbf16> to vector<8x1568xbf16>
    %70 = arith.mulf %67, %69 : vector<8x1568xbf16>
    %c7_59 = arith.constant 7 : index
    %c0_60 = arith.constant 0 : index
    %c0_61 = arith.constant 0 : index
    %71 = vector.load %arg3[%c7_59, %c0_60, %c0_61] : memref<9x8x8xbf16, #tpu.memory_space<vmem>>, vector<1x8x8xbf16>
    %72 = vector.shape_cast %71 : vector<1x8x8xbf16> to vector<8x8xbf16>
    %cst_62 = arith.constant dense<0.000000e+00> : vector<8x1568xf32>
    %73 = tpu.matmul %72, %70, %cst_62 {dimension_numbers = #tpu.dot_dimension_numbers<[1], [0], [0], [1], [0, 0, 1, 1], [], []>} : vector<8x8xbf16>, vector<8x1568xbf16>, vector<8x1568xf32> -> vector<8x1568xf32>
    %74 = arith.addf %66, %73 : vector<8x1568xf32>
    %c0_63 = arith.constant 0 : index
    %c61 = arith.constant 61 : index
    %75 = vector.load %arg10[%c0_63, %c61] : memref<8x1632xbf16, #tpu.memory_space<vmem>>, vector<8x1568xbf16>
    %c8 = arith.constant 8 : index
    %c0_64 = arith.constant 0 : index
    %76 = vector.load %arg2[%c8, %c0_64] : memref<9x1568xbf16, #tpu.memory_space<vmem>>, vector<1x1568xbf16>
    %77 = vector.broadcast %76 : vector<1x1568xbf16> to vector<8x1568xbf16>
    %78 = arith.mulf %75, %77 : vector<8x1568xbf16>
    %c8_65 = arith.constant 8 : index
    %c0_66 = arith.constant 0 : index
    %c0_67 = arith.constant 0 : index
    %79 = vector.load %arg3[%c8_65, %c0_66, %c0_67] : memref<9x8x8xbf16, #tpu.memory_space<vmem>>, vector<1x8x8xbf16>
    %80 = vector.shape_cast %79 : vector<1x8x8xbf16> to vector<8x8xbf16>
    %cst_68 = arith.constant dense<0.000000e+00> : vector<8x1568xf32>
    %81 = tpu.matmul %80, %78, %cst_68 {dimension_numbers = #tpu.dot_dimension_numbers<[1], [0], [0], [1], [0, 0, 1, 1], [], []>} : vector<8x8xbf16>, vector<8x1568xbf16>, vector<8x1568xf32> -> vector<8x1568xf32>
    %82 = arith.addf %74, %81 : vector<8x1568xf32>
    %c0_69 = arith.constant 0 : index
    %c0_70 = arith.constant 0 : index
    %83 = vector.load %arg4[%c0_69, %c0_70] : memref<8x1xf32, #tpu.memory_space<vmem>>, vector<8x1xf32>
    %84 = vector.broadcast %83 : vector<8x1xf32> to vector<8x1568xf32>
    %85 = arith.mulf %82, %84 : vector<8x1568xf32>
    %c0_71 = arith.constant 0 : index
    %c0_72 = arith.constant 0 : index
    %86 = vector.load %arg5[%c0_71, %c0_72] : memref<8x1xf32, #tpu.memory_space<vmem>>, vector<8x1xf32>
    %87 = vector.broadcast %86 : vector<8x1xf32> to vector<8x1568xf32>
    %88 = arith.addf %85, %87 : vector<8x1568xf32>
    %89 = arith.truncf %88 : vector<8x1568xf32> to vector<8x1568xbf16>
    %c0_73 = arith.constant 0 : index
    %c32_74 = arith.constant 32 : index
    %90 = vector.load %arg10[%c0_73, %c32_74] : memref<8x1632xbf16, #tpu.memory_space<vmem>>, vector<8x1568xbf16>
    tpu.vector_store %arg10[%c0_73, %c32_74], %89 {strides = array<i32>} : memref<8x1632xbf16, #tpu.memory_space<vmem>>, vector<8x1568xbf16>,
    %cst_75 = arith.constant 0.000000e+00 : f32
    %91 = vector.broadcast %cst_75 : f32 to vector<4x1568xf32>
    %c0_76 = arith.constant 0 : index
    %c3_77 = arith.constant 3 : index
    %92 = vector.load %arg10[%c0_76, %c3_77] : memref<8x1632xbf16, #tpu.memory_space<vmem>>, vector<8x1568xbf16>
    %c0_78 = arith.constant 0 : index
    %c0_79 = arith.constant 0 : index
    %93 = vector.load %arg2[%c0_78, %c0_79] : memref<9x1568xbf16, #tpu.memory_space<vmem>>, vector<1x1568xbf16>
    %94 = vector.broadcast %93 : vector<1x1568xbf16> to vector<8x1568xbf16>
    %95 = arith.mulf %92, %94 : vector<8x1568xbf16>
    %c0_80 = arith.constant 0 : index
    %c0_81 = arith.constant 0 : index
    %c0_82 = arith.constant 0 : index
    %96 = vector.load %arg6[%c0_80, %c0_81, %c0_82] : memref<9x4x8xbf16, #tpu.memory_space<vmem>>, vector<1x4x8xbf16>
    %97 = vector.shape_cast %96 : vector<1x4x8xbf16> to vector<4x8xbf16>
    %cst_83 = arith.constant dense<0.000000e+00> : vector<4x1568xf32>
    %98 = tpu.matmul %97, %95, %cst_83 {dimension_numbers = #tpu.dot_dimension_numbers<[1], [0], [0], [1], [0, 0, 1, 1], [], []>} : vector<4x8xbf16>, vector<8x1568xbf16>, vector<4x1568xf32> -> vector<4x1568xf32>
    %99 = arith.addf %91, %98 : vector<4x1568xf32>
    %c0_84 = arith.constant 0 : index
    %c4_85 = arith.constant 4 : index
    %100 = vector.load %arg10[%c0_84, %c4_85] : memref<8x1632xbf16, #tpu.memory_space<vmem>>, vector<8x1568xbf16>
    %c1_86 = arith.constant 1 : index
    %c0_87 = arith.constant 0 : index
    %101 = vector.load %arg2[%c1_86, %c0_87] : memref<9x1568xbf16, #tpu.memory_space<vmem>>, vector<1x1568xbf16>
    %102 = vector.broadcast %101 : vector<1x1568xbf16> to vector<8x1568xbf16>
    %103 = arith.mulf %100, %102 : vector<8x1568xbf16>
    %c1_88 = arith.constant 1 : index
    %c0_89 = arith.constant 0 : index
    %c0_90 = arith.constant 0 : index
    %104 = vector.load %arg6[%c1_88, %c0_89, %c0_90] : memref<9x4x8xbf16, #tpu.memory_space<vmem>>, vector<1x4x8xbf16>
    %105 = vector.shape_cast %104 : vector<1x4x8xbf16> to vector<4x8xbf16>
    %cst_91 = arith.constant dense<0.000000e+00> : vector<4x1568xf32>
    %106 = tpu.matmul %105, %103, %cst_91 {dimension_numbers = #tpu.dot_dimension_numbers<[1], [0], [0], [1], [0, 0, 1, 1], [], []>} : vector<4x8xbf16>, vector<8x1568xbf16>, vector<4x1568xf32> -> vector<4x1568xf32>
    %107 = arith.addf %99, %106 : vector<4x1568xf32>
    %c0_92 = arith.constant 0 : index
    %c5_93 = arith.constant 5 : index
    %108 = vector.load %arg10[%c0_92, %c5_93] : memref<8x1632xbf16, #tpu.memory_space<vmem>>, vector<8x1568xbf16>
    %c2_94 = arith.constant 2 : index
    %c0_95 = arith.constant 0 : index
    %109 = vector.load %arg2[%c2_94, %c0_95] : memref<9x1568xbf16, #tpu.memory_space<vmem>>, vector<1x1568xbf16>
    %110 = vector.broadcast %109 : vector<1x1568xbf16> to vector<8x1568xbf16>
    %111 = arith.mulf %108, %110 : vector<8x1568xbf16>
    %c2_96 = arith.constant 2 : index
    %c0_97 = arith.constant 0 : index
    %c0_98 = arith.constant 0 : index
    %112 = vector.load %arg6[%c2_96, %c0_97, %c0_98] : memref<9x4x8xbf16, #tpu.memory_space<vmem>>, vector<1x4x8xbf16>
    %113 = vector.shape_cast %112 : vector<1x4x8xbf16> to vector<4x8xbf16>
    %cst_99 = arith.constant dense<0.000000e+00> : vector<4x1568xf32>
    %114 = tpu.matmul %113, %111, %cst_99 {dimension_numbers = #tpu.dot_dimension_numbers<[1], [0], [0], [1], [0, 0, 1, 1], [], []>} : vector<4x8xbf16>, vector<8x1568xbf16>, vector<4x1568xf32> -> vector<4x1568xf32>
    %115 = arith.addf %107, %114 : vector<4x1568xf32>
    %c0_100 = arith.constant 0 : index
    %c31_101 = arith.constant 31 : index
    %116 = vector.load %arg10[%c0_100, %c31_101] : memref<8x1632xbf16, #tpu.memory_space<vmem>>, vector<8x1568xbf16>
    %c3_102 = arith.constant 3 : index
    %c0_103 = arith.constant 0 : index
    %117 = vector.load %arg2[%c3_102, %c0_103] : memref<9x1568xbf16, #tpu.memory_space<vmem>>, vector<1x1568xbf16>
    %118 = vector.broadcast %117 : vector<1x1568xbf16> to vector<8x1568xbf16>
    %119 = arith.mulf %116, %118 : vector<8x1568xbf16>
    %c3_104 = arith.constant 3 : index
    %c0_105 = arith.constant 0 : index
    %c0_106 = arith.constant 0 : index
    %120 = vector.load %arg6[%c3_104, %c0_105, %c0_106] : memref<9x4x8xbf16, #tpu.memory_space<vmem>>, vector<1x4x8xbf16>
    %121 = vector.shape_cast %120 : vector<1x4x8xbf16> to vector<4x8xbf16>
    %cst_107 = arith.constant dense<0.000000e+00> : vector<4x1568xf32>
    %122 = tpu.matmul %121, %119, %cst_107 {dimension_numbers = #tpu.dot_dimension_numbers<[1], [0], [0], [1], [0, 0, 1, 1], [], []>} : vector<4x8xbf16>, vector<8x1568xbf16>, vector<4x1568xf32> -> vector<4x1568xf32>
    %123 = arith.addf %115, %122 : vector<4x1568xf32>
    %c0_108 = arith.constant 0 : index
    %c32_109 = arith.constant 32 : index
    %124 = vector.load %arg10[%c0_108, %c32_109] : memref<8x1632xbf16, #tpu.memory_space<vmem>>, vector<8x1568xbf16>
    %c4_110 = arith.constant 4 : index
    %c0_111 = arith.constant 0 : index
    %125 = vector.load %arg2[%c4_110, %c0_111] : memref<9x1568xbf16, #tpu.memory_space<vmem>>, vector<1x1568xbf16>
    %126 = vector.broadcast %125 : vector<1x1568xbf16> to vector<8x1568xbf16>
    %127 = arith.mulf %124, %126 : vector<8x1568xbf16>
    %c4_112 = arith.constant 4 : index
    %c0_113 = arith.constant 0 : index
    %c0_114 = arith.constant 0 : index
    %128 = vector.load %arg6[%c4_112, %c0_113, %c0_114] : memref<9x4x8xbf16, #tpu.memory_space<vmem>>, vector<1x4x8xbf16>
    %129 = vector.shape_cast %128 : vector<1x4x8xbf16> to vector<4x8xbf16>
    %cst_115 = arith.constant dense<0.000000e+00> : vector<4x1568xf32>
    %130 = tpu.matmul %129, %127, %cst_115 {dimension_numbers = #tpu.dot_dimension_numbers<[1], [0], [0], [1], [0, 0, 1, 1], [], []>} : vector<4x8xbf16>, vector<8x1568xbf16>, vector<4x1568xf32> -> vector<4x1568xf32>
    %131 = arith.addf %123, %130 : vector<4x1568xf32>
    %c0_116 = arith.constant 0 : index
    %c33_117 = arith.constant 33 : index
    %132 = vector.load %arg10[%c0_116, %c33_117] : memref<8x1632xbf16, #tpu.memory_space<vmem>>, vector<8x1568xbf16>
    %c5_118 = arith.constant 5 : index
    %c0_119 = arith.constant 0 : index
    %133 = vector.load %arg2[%c5_118, %c0_119] : memref<9x1568xbf16, #tpu.memory_space<vmem>>, vector<1x1568xbf16>
    %134 = vector.broadcast %133 : vector<1x1568xbf16> to vector<8x1568xbf16>
    %135 = arith.mulf %132, %134 : vector<8x1568xbf16>
    %c5_120 = arith.constant 5 : index
    %c0_121 = arith.constant 0 : index
    %c0_122 = arith.constant 0 : index
    %136 = vector.load %arg6[%c5_120, %c0_121, %c0_122] : memref<9x4x8xbf16, #tpu.memory_space<vmem>>, vector<1x4x8xbf16>
    %137 = vector.shape_cast %136 : vector<1x4x8xbf16> to vector<4x8xbf16>
    %cst_123 = arith.constant dense<0.000000e+00> : vector<4x1568xf32>
    %138 = tpu.matmul %137, %135, %cst_123 {dimension_numbers = #tpu.dot_dimension_numbers<[1], [0], [0], [1], [0, 0, 1, 1], [], []>} : vector<4x8xbf16>, vector<8x1568xbf16>, vector<4x1568xf32> -> vector<4x1568xf32>
    %139 = arith.addf %131, %138 : vector<4x1568xf32>
    %c0_124 = arith.constant 0 : index
    %c59_125 = arith.constant 59 : index
    %140 = vector.load %arg10[%c0_124, %c59_125] : memref<8x1632xbf16, #tpu.memory_space<vmem>>, vector<8x1568xbf16>
    %c6_126 = arith.constant 6 : index
    %c0_127 = arith.constant 0 : index
    %141 = vector.load %arg2[%c6_126, %c0_127] : memref<9x1568xbf16, #tpu.memory_space<vmem>>, vector<1x1568xbf16>
    %142 = vector.broadcast %141 : vector<1x1568xbf16> to vector<8x1568xbf16>
    %143 = arith.mulf %140, %142 : vector<8x1568xbf16>
    %c6_128 = arith.constant 6 : index
    %c0_129 = arith.constant 0 : index
    %c0_130 = arith.constant 0 : index
    %144 = vector.load %arg6[%c6_128, %c0_129, %c0_130] : memref<9x4x8xbf16, #tpu.memory_space<vmem>>, vector<1x4x8xbf16>
    %145 = vector.shape_cast %144 : vector<1x4x8xbf16> to vector<4x8xbf16>
    %cst_131 = arith.constant dense<0.000000e+00> : vector<4x1568xf32>
    %146 = tpu.matmul %145, %143, %cst_131 {dimension_numbers = #tpu.dot_dimension_numbers<[1], [0], [0], [1], [0, 0, 1, 1], [], []>} : vector<4x8xbf16>, vector<8x1568xbf16>, vector<4x1568xf32> -> vector<4x1568xf32>
    %147 = arith.addf %139, %146 : vector<4x1568xf32>
    %c0_132 = arith.constant 0 : index
    %c60_133 = arith.constant 60 : index
    %148 = vector.load %arg10[%c0_132, %c60_133] : memref<8x1632xbf16, #tpu.memory_space<vmem>>, vector<8x1568xbf16>
    %c7_134 = arith.constant 7 : index
    %c0_135 = arith.constant 0 : index
    %149 = vector.load %arg2[%c7_134, %c0_135] : memref<9x1568xbf16, #tpu.memory_space<vmem>>, vector<1x1568xbf16>
    %150 = vector.broadcast %149 : vector<1x1568xbf16> to vector<8x1568xbf16>
    %151 = arith.mulf %148, %150 : vector<8x1568xbf16>
    %c7_136 = arith.constant 7 : index
    %c0_137 = arith.constant 0 : index
    %c0_138 = arith.constant 0 : index
    %152 = vector.load %arg6[%c7_136, %c0_137, %c0_138] : memref<9x4x8xbf16, #tpu.memory_space<vmem>>, vector<1x4x8xbf16>
    %153 = vector.shape_cast %152 : vector<1x4x8xbf16> to vector<4x8xbf16>
    %cst_139 = arith.constant dense<0.000000e+00> : vector<4x1568xf32>
    %154 = tpu.matmul %153, %151, %cst_139 {dimension_numbers = #tpu.dot_dimension_numbers<[1], [0], [0], [1], [0, 0, 1, 1], [], []>} : vector<4x8xbf16>, vector<8x1568xbf16>, vector<4x1568xf32> -> vector<4x1568xf32>
    %155 = arith.addf %147, %154 : vector<4x1568xf32>
    %c0_140 = arith.constant 0 : index
    %c61_141 = arith.constant 61 : index
    %156 = vector.load %arg10[%c0_140, %c61_141] : memref<8x1632xbf16, #tpu.memory_space<vmem>>, vector<8x1568xbf16>
    %c8_142 = arith.constant 8 : index
    %c0_143 = arith.constant 0 : index
    %157 = vector.load %arg2[%c8_142, %c0_143] : memref<9x1568xbf16, #tpu.memory_space<vmem>>, vector<1x1568xbf16>
    %158 = vector.broadcast %157 : vector<1x1568xbf16> to vector<8x1568xbf16>
    %159 = arith.mulf %156, %158 : vector<8x1568xbf16>
    %c8_144 = arith.constant 8 : index
    %c0_145 = arith.constant 0 : index
    %c0_146 = arith.constant 0 : index
    %160 = vector.load %arg6[%c8_144, %c0_145, %c0_146] : memref<9x4x8xbf16, #tpu.memory_space<vmem>>, vector<1x4x8xbf16>
    %161 = vector.shape_cast %160 : vector<1x4x8xbf16> to vector<4x8xbf16>
    %cst_147 = arith.constant dense<0.000000e+00> : vector<4x1568xf32>
    %162 = tpu.matmul %161, %159, %cst_147 {dimension_numbers = #tpu.dot_dimension_numbers<[1], [0], [0], [1], [0, 0, 1, 1], [], []>} : vector<4x8xbf16>, vector<8x1568xbf16>, vector<4x1568xf32> -> vector<4x1568xf32>
    %163 = arith.addf %155, %162 : vector<4x1568xf32>
    %c0_148 = arith.constant 0 : index
    %c0_149 = arith.constant 0 : index
    %164 = vector.load %arg7[%c0_148, %c0_149] : memref<4x1xf32, #tpu.memory_space<vmem>>, vector<4x1xf32>
    %165 = vector.broadcast %164 : vector<4x1xf32> to vector<4x1568xf32>
    %166 = arith.mulf %163, %165 : vector<4x1568xf32>
    %c0_150 = arith.constant 0 : index
    %c0_151 = arith.constant 0 : index
    %167 = vector.load %arg8[%c0_150, %c0_151] : memref<4x1xf32, #tpu.memory_space<vmem>>, vector<4x1xf32>
    %168 = vector.broadcast %167 : vector<4x1xf32> to vector<4x1568xf32>
    %169 = arith.addf %166, %168 : vector<4x1568xf32>
    %170 = arith.truncf %169 : vector<4x1568xf32> to vector<4x1568xbf16>
    %c0_152 = arith.constant 0 : index
    %c0_153 = arith.constant 0 : index
    %171 = vector.load %arg9[%c0_152, %c0_153] : memref<4x1568xbf16, #tpu.memory_space<vmem>>, vector<4x1568xbf16>
    tpu.vector_store %arg9[%c0_152, %c0_153], %170 {strides = array<i32>} : memref<4x1568xbf16, #tpu.memory_space<vmem>>, vector<4x1568xbf16>,
    return
  }
  func.func @transform_0(%arg0: i32) -> (i32, i32, i32) {
    %c0_i32 = arith.constant 0 : i32
    %c0_i32_0 = arith.constant 0 : i32
    %c0_i32_1 = arith.constant 0 : i32
    %c0_i32_2 = arith.constant 0 : i32
    return %c0_i32, %c0_i32_0, %c0_i32_1 : i32, i32, i32
  }
  func.func @transform_1(%arg0: i32) -> (i32, i32) {
    %c0_i32 = arith.constant 0 : i32
    %c0_i32_0 = arith.constant 0 : i32
    %c0_i32_1 = arith.constant 0 : i32
    return %c0_i32, %c0_i32_0 : i32, i32
  }
  func.func @transform_2(%arg0: i32) -> (i32, i32, i32) {
    %c0_i32 = arith.constant 0 : i32
    %c0_i32_0 = arith.constant 0 : i32
    %c0_i32_1 = arith.constant 0 : i32
    %c0_i32_2 = arith.constant 0 : i32
    return %c0_i32, %c0_i32_0, %c0_i32_1 : i32, i32, i32
  }
  func.func @transform_3(%arg0: i32) -> (i32, i32) {
    %c0_i32 = arith.constant 0 : i32
    %c0_i32_0 = arith.constant 0 : i32
    %c0_i32_1 = arith.constant 0 : i32
    return %c0_i32, %c0_i32_0 : i32, i32
  }
  func.func @transform_4(%arg0: i32) -> (i32, i32) {
    %c0_i32 = arith.constant 0 : i32
    %c0_i32_0 = arith.constant 0 : i32
    %c0_i32_1 = arith.constant 0 : i32
    return %c0_i32, %c0_i32_0 : i32, i32
  }
  func.func @transform_5(%arg0: i32) -> (i32, i32, i32) {
    %c0_i32 = arith.constant 0 : i32
    %c0_i32_0 = arith.constant 0 : i32
    %c0_i32_1 = arith.constant 0 : i32
    %c0_i32_2 = arith.constant 0 : i32
    return %c0_i32, %c0_i32_0, %c0_i32_1 : i32, i32, i32
  }
  func.func @transform_6(%arg0: i32) -> (i32, i32) {
    %c0_i32 = arith.constant 0 : i32
    %c0_i32_0 = arith.constant 0 : i32
    %c0_i32_1 = arith.constant 0 : i32
    return %c0_i32, %c0_i32_0 : i32, i32
  }
  func.func @transform_7(%arg0: i32) -> (i32, i32) {
    %c0_i32 = arith.constant 0 : i32
    %c0_i32_0 = arith.constant 0 : i32
    %c0_i32_1 = arith.constant 0 : i32
    return %c0_i32, %c0_i32_0 : i32, i32
  }
  func.func @transform_8(%arg0: i32) -> (i32, i32) {
    %c0_i32 = arith.constant 0 : i32
    %c0_i32_0 = arith.constant 0 : i32
    %c0_i32_1 = arith.constant 0 : i32
    return %c0_i32, %c0_i32_0 : i32, i32
  }
}

module attributes {stable_mosaic.version = 11 : i64} {
  func.func @_fused_mlp_kernel(%arg0: i32, %arg1: i32, %arg2: memref<4x2x784xbf16, #tpu.memory_space<vmem>>, %arg3: memref<1x4x784x512xbf16, #tpu.memory_space<vmem>>, %arg4: memref<1x512xf32, #tpu.memory_space<vmem>>, %arg5: memref<1x512xf32, #tpu.memory_space<vmem>>, %arg6: memref<512x10xf32, #tpu.memory_space<vmem>>, %arg7: memref<1x2x10xf32, #tpu.memory_space<vmem>>, %arg8: memref<2x10xf32, #tpu.memory_space<vmem>>) attributes {dimension_semantics = [#tpu.dimension_semantics<parallel>, #tpu.dimension_semantics<arbitrary>], iteration_bounds = array<i64: 2, 1>, scalar_prefetch = 0 : i64, scratch_operands = 1 : i64, tpu.core_type = #tpu.core_type<tc>, window_params = [{pipeline_mode = #tpu.pipeline_mode<synchronous>, transform_indices = @transform_0, window_bounds = array<i64: 4, 2, 784>}, {transform_indices = @transform_1, window_bounds = array<i64: 1, 4, 784, 512>}, {transform_indices = @transform_2, window_bounds = array<i64: 1, 512>}, {transform_indices = @transform_3, window_bounds = array<i64: 1, 512>}, {transform_indices = @transform_4, window_bounds = array<i64: 512, 10>}, {transform_indices = @transform_5, window_bounds = array<i64: 1, 2, 10>}]} {
    %c0_i32 = arith.constant 0 : i32
    %0 = arith.cmpi eq, %arg1, %c0_i32 : i32
    %1 = arith.extui %0 : i1 to i32
    %c0_i32_0 = arith.constant 0 : i32
    %2 = arith.cmpi ne, %1, %c0_i32_0 : i32
    scf.if %2 {
      %cst_42 = arith.constant 0.000000e+00 : f32
      %42 = vector.broadcast %cst_42 : f32 to vector<2x10xf32>
      %c0_43 = arith.constant 0 : index
      %c0_44 = arith.constant 0 : index
      %43 = vector.load %arg8[%c0_43, %c0_44] : memref<2x10xf32, #tpu.memory_space<vmem>>, vector<2x10xf32>
      tpu.vector_store %arg8[%c0_43, %c0_44], %42 {strides = array<i32>} : memref<2x10xf32, #tpu.memory_space<vmem>>, vector<2x10xf32>,
    } else {
    }
    %c0 = arith.constant 0 : index
    %c0_1 = arith.constant 0 : index
    %c0_2 = arith.constant 0 : index
    %3 = vector.load %arg2[%c0, %c0_1, %c0_2] : memref<4x2x784xbf16, #tpu.memory_space<vmem>>, vector<1x2x784xbf16>
    %4 = vector.shape_cast %3 : vector<1x2x784xbf16> to vector<2x784xbf16>
    %c0_3 = arith.constant 0 : index
    %c0_4 = arith.constant 0 : index
    %c0_5 = arith.constant 0 : index
    %c0_6 = arith.constant 0 : index
    %5 = vector.load %arg3[%c0_3, %c0_4, %c0_5, %c0_6] : memref<1x4x784x512xbf16, #tpu.memory_space<vmem>>, vector<1x1x784x512xbf16>
    %6 = vector.shape_cast %5 : vector<1x1x784x512xbf16> to vector<784x512xbf16>
    %cst = arith.constant dense<0.000000e+00> : vector<2x512xf32>
    %7 = tpu.matmul %4, %6, %cst {dimension_numbers = #tpu.dot_dimension_numbers<[1], [0], [0], [1], [0, 0, 1, 1], [], []>} : vector<2x784xbf16>, vector<784x512xbf16>, vector<2x512xf32> -> vector<2x512xf32>
    %c1 = arith.constant 1 : index
    %c0_7 = arith.constant 0 : index
    %c0_8 = arith.constant 0 : index
    %8 = vector.load %arg2[%c1, %c0_7, %c0_8] : memref<4x2x784xbf16, #tpu.memory_space<vmem>>, vector<1x2x784xbf16>
    %9 = vector.shape_cast %8 : vector<1x2x784xbf16> to vector<2x784xbf16>
    %c0_9 = arith.constant 0 : index
    %c1_10 = arith.constant 1 : index
    %c0_11 = arith.constant 0 : index
    %c0_12 = arith.constant 0 : index
    %10 = vector.load %arg3[%c0_9, %c1_10, %c0_11, %c0_12] : memref<1x4x784x512xbf16, #tpu.memory_space<vmem>>, vector<1x1x784x512xbf16>
    %11 = vector.shape_cast %10 : vector<1x1x784x512xbf16> to vector<784x512xbf16>
    %cst_13 = arith.constant dense<0.000000e+00> : vector<2x512xf32>
    %12 = tpu.matmul %9, %11, %cst_13 {dimension_numbers = #tpu.dot_dimension_numbers<[1], [0], [0], [1], [0, 0, 1, 1], [], []>} : vector<2x784xbf16>, vector<784x512xbf16>, vector<2x512xf32> -> vector<2x512xf32>
    %13 = arith.addf %7, %12 : vector<2x512xf32>
    %c2 = arith.constant 2 : index
    %c0_14 = arith.constant 0 : index
    %c0_15 = arith.constant 0 : index
    %14 = vector.load %arg2[%c2, %c0_14, %c0_15] : memref<4x2x784xbf16, #tpu.memory_space<vmem>>, vector<1x2x784xbf16>
    %15 = vector.shape_cast %14 : vector<1x2x784xbf16> to vector<2x784xbf16>
    %c0_16 = arith.constant 0 : index
    %c2_17 = arith.constant 2 : index
    %c0_18 = arith.constant 0 : index
    %c0_19 = arith.constant 0 : index
    %16 = vector.load %arg3[%c0_16, %c2_17, %c0_18, %c0_19] : memref<1x4x784x512xbf16, #tpu.memory_space<vmem>>, vector<1x1x784x512xbf16>
    %17 = vector.shape_cast %16 : vector<1x1x784x512xbf16> to vector<784x512xbf16>
    %cst_20 = arith.constant dense<0.000000e+00> : vector<2x512xf32>
    %18 = tpu.matmul %15, %17, %cst_20 {dimension_numbers = #tpu.dot_dimension_numbers<[1], [0], [0], [1], [0, 0, 1, 1], [], []>} : vector<2x784xbf16>, vector<784x512xbf16>, vector<2x512xf32> -> vector<2x512xf32>
    %19 = arith.addf %13, %18 : vector<2x512xf32>
    %c3 = arith.constant 3 : index
    %c0_21 = arith.constant 0 : index
    %c0_22 = arith.constant 0 : index
    %20 = vector.load %arg2[%c3, %c0_21, %c0_22] : memref<4x2x784xbf16, #tpu.memory_space<vmem>>, vector<1x2x784xbf16>
    %21 = vector.shape_cast %20 : vector<1x2x784xbf16> to vector<2x784xbf16>
    %c0_23 = arith.constant 0 : index
    %c3_24 = arith.constant 3 : index
    %c0_25 = arith.constant 0 : index
    %c0_26 = arith.constant 0 : index
    %22 = vector.load %arg3[%c0_23, %c3_24, %c0_25, %c0_26] : memref<1x4x784x512xbf16, #tpu.memory_space<vmem>>, vector<1x1x784x512xbf16>
    %23 = vector.shape_cast %22 : vector<1x1x784x512xbf16> to vector<784x512xbf16>
    %cst_27 = arith.constant dense<0.000000e+00> : vector<2x512xf32>
    %24 = tpu.matmul %21, %23, %cst_27 {dimension_numbers = #tpu.dot_dimension_numbers<[1], [0], [0], [1], [0, 0, 1, 1], [], []>} : vector<2x784xbf16>, vector<784x512xbf16>, vector<2x512xf32> -> vector<2x512xf32>
    %25 = arith.addf %19, %24 : vector<2x512xf32>
    %c0_28 = arith.constant 0 : index
    %c0_29 = arith.constant 0 : index
    %26 = vector.load %arg4[%c0_28, %c0_29] : memref<1x512xf32, #tpu.memory_space<vmem>>, vector<1x512xf32>
    %27 = vector.broadcast %26 : vector<1x512xf32> to vector<2x512xf32>
    %28 = arith.mulf %25, %27 : vector<2x512xf32>
    %c0_30 = arith.constant 0 : index
    %c0_31 = arith.constant 0 : index
    %29 = vector.load %arg5[%c0_30, %c0_31] : memref<1x512xf32, #tpu.memory_space<vmem>>, vector<1x512xf32>
    %30 = vector.broadcast %29 : vector<1x512xf32> to vector<2x512xf32>
    %31 = arith.addf %28, %30 : vector<2x512xf32>
    %cst_32 = arith.constant 0.000000e+00 : f32
    %32 = vector.broadcast %cst_32 : f32 to vector<2x512xf32>
    %33 = arith.maximumf %31, %32 : vector<2x512xf32>
    %c0_33 = arith.constant 0 : index
    %c0_34 = arith.constant 0 : index
    %34 = vector.load %arg8[%c0_33, %c0_34] : memref<2x10xf32, #tpu.memory_space<vmem>>, vector<2x10xf32>
    %c0_35 = arith.constant 0 : index
    %c0_36 = arith.constant 0 : index
    %35 = vector.load %arg6[%c0_35, %c0_36] : memref<512x10xf32, #tpu.memory_space<vmem>>, vector<512x10xf32>
    %cst_37 = arith.constant dense<0.000000e+00> : vector<2x10xf32>
    %36 = tpu.matmul %33, %35, %cst_37 {dimension_numbers = #tpu.dot_dimension_numbers<[1], [0], [0], [1], [0, 0, 1, 1], [], []>} : vector<2x512xf32>, vector<512x10xf32>, vector<2x10xf32> -> vector<2x10xf32>
    %37 = arith.addf %34, %36 : vector<2x10xf32>
    %c0_38 = arith.constant 0 : index
    %c0_39 = arith.constant 0 : index
    %38 = vector.load %arg8[%c0_38, %c0_39] : memref<2x10xf32, #tpu.memory_space<vmem>>, vector<2x10xf32>
    tpu.vector_store %arg8[%c0_38, %c0_39], %37 {strides = array<i32>} : memref<2x10xf32, #tpu.memory_space<vmem>>, vector<2x10xf32>,
    %c0_i32_40 = arith.constant 0 : i32
    %39 = arith.cmpi eq, %arg1, %c0_i32_40 : i32
    %40 = arith.extui %39 : i1 to i32
    %c0_i32_41 = arith.constant 0 : i32
    %41 = arith.cmpi ne, %40, %c0_i32_41 : i32
    scf.if %41 {
      %c0_42 = arith.constant 0 : index
      %c0_43 = arith.constant 0 : index
      %42 = vector.load %arg8[%c0_42, %c0_43] : memref<2x10xf32, #tpu.memory_space<vmem>>, vector<2x10xf32>
      %c0_44 = arith.constant 0 : index
      %c0_45 = arith.constant 0 : index
      %c0_46 = arith.constant 0 : index
      %43 = vector.load %arg7[%c0_44, %c0_45, %c0_46] : memref<1x2x10xf32, #tpu.memory_space<vmem>>, vector<1x2x10xf32>
      %44 = vector.shape_cast %43 : vector<1x2x10xf32> to vector<2x10xf32>
      %45 = vector.shape_cast %42 : vector<2x10xf32> to vector<1x2x10xf32>
      tpu.vector_store %arg7[%c0_44, %c0_45, %c0_46], %45 {strides = array<i32>} : memref<1x2x10xf32, #tpu.memory_space<vmem>>, vector<1x2x10xf32>,
    } else {
    }
    return
  }
  func.func @transform_0(%arg0: i32, %arg1: i32) -> (i32, i32, i32) {
    %c0_i32 = arith.constant 0 : i32
    %c0_i32_0 = arith.constant 0 : i32
    %c0_i32_1 = arith.constant 0 : i32
    %c0_i32_2 = arith.constant 0 : i32
    return %c0_i32, %c0_i32_0, %c0_i32_1 : i32, i32, i32
  }
  func.func @transform_1(%arg0: i32, %arg1: i32) -> (i32, i32, i32, i32) {
    %c1_i32 = arith.constant 1 : i32
    %0 = arith.muli %arg0, %c1_i32 : i32
    %1 = arith.addi %0, %arg1 : i32
    %c0_i32 = arith.constant 0 : i32
    %c0_i32_0 = arith.constant 0 : i32
    %c0_i32_1 = arith.constant 0 : i32
    %c0_i32_2 = arith.constant 0 : i32
    return %1, %c0_i32, %c0_i32_0, %c0_i32_1 : i32, i32, i32, i32
  }
  func.func @transform_2(%arg0: i32, %arg1: i32) -> (i32, i32) {
    %c1_i32 = arith.constant 1 : i32
    %0 = arith.muli %arg0, %c1_i32 : i32
    %1 = arith.addi %0, %arg1 : i32
    %c0_i32 = arith.constant 0 : i32
    %c0_i32_0 = arith.constant 0 : i32
    return %c0_i32, %1 : i32, i32
  }
  func.func @transform_3(%arg0: i32, %arg1: i32) -> (i32, i32) {
    %c1_i32 = arith.constant 1 : i32
    %0 = arith.muli %arg0, %c1_i32 : i32
    %1 = arith.addi %0, %arg1 : i32
    %c0_i32 = arith.constant 0 : i32
    %c0_i32_0 = arith.constant 0 : i32
    return %c0_i32, %1 : i32, i32
  }
  func.func @transform_4(%arg0: i32, %arg1: i32) -> (i32, i32) {
    %c1_i32 = arith.constant 1 : i32
    %0 = arith.muli %arg0, %c1_i32 : i32
    %1 = arith.addi %0, %arg1 : i32
    %c0_i32 = arith.constant 0 : i32
    %c0_i32_0 = arith.constant 0 : i32
    return %1, %c0_i32 : i32, i32
  }
  func.func @transform_5(%arg0: i32, %arg1: i32) -> (i32, i32, i32) {
    %c0_i32 = arith.constant 0 : i32
    %c0_i32_0 = arith.constant 0 : i32
    %c0_i32_1 = arith.constant 0 : i32
    return %arg0, %c0_i32, %c0_i32_0 : i32, i32, i32
  }
}

</mosaic_0001>

<bundles_post_ra>
// kernel: mnist_classifier_forward.3
= control target key start
LH: loop header
LB: loop body
LE: loop exit
PB: predicated region body
PF: predicated region fallthrough
CT: control target
= control target key end

     0   :  { %s11279_s0 = inlined_call_operand.vmem [shape: bf16[4,2,784], index: 0, kind: input, shape index: {}]   ;;  %s11280_s1 = inlined_call_operand.hbm [shape: bf16[2,4,784,512], index: 1, kind: input, shape index: {}]   ;;  %s11281_s2 = inlined_call_operand.hbm [shape: f32[1,1024], index: 2, kind: input, shape index: {}]   ;;  %s11282_s3 = inlined_call_operand.hbm [shape: f32[1,1024], index: 3, kind: input, shape index: {}]   ;;  %s11283_s4 = inlined_call_operand.vmem [shape: f32[1024,10], index: 4, kind: input, shape index: {}]   ;;  %s11284_s5 = inlined_call_operand.vmem [shape: f32[2,2,10], index: 5, kind: output, shape index: {}]  }
   0x1   :  { %11287 = sst [smem:[#allocation11_spill]] %s11281_s2 }
   0x2   :  { %11288 = sst [smem:[#allocation12_spill]] %s11282_s3 }
   0x3   :  { %10 = vsyncpa [#allocation4], 0 }
   0x4   :  { %12 = vsyncpa [#allocation4 + $0x1], 0 }
   0x5   :  { %13 = vsyncpa [#allocation6], 0 }
   0x6   :  { %15 = vsyncpa [#allocation6 + $0x1], 0  ;;  %s9950_s18 = smov 0   ;;  %s9952_s19 = smov 0  }
   0x7   :  { %s9954_s20 = smov 0   ;;  %s9956_s21 = smov 0  }
   0x8   :  { %s9958_s22 = smov 0   ;;  %s9960_s23 = smov 0  }
   0x9 LB: > { %s11285_s24 = sadd.s32 4294967295, %s9910_s23   ;;  %s33_s25 = sadd.s32 1, %s9906_s22  ;;  %s9910_s23 = sphi %s9960_s23, %s21_s23   ;;  %s9906_s22 = sphi %s9958_s22, %s11301_s22   ;;  %s9902_s21 = sphi %s9956_s21, %s11300_s21   ;;  %s9898_s20 = sphi %s9954_s20, %s11299_s20   ;;  %s9894_s19 = sphi %s9952_s19, %s11298_s19   ;;  %s9890_s18 = sphi %s9950_s18, %s11297_s18  }
   0xa   : > { %p35_p0 = scmp.ge.s32.totalorder %s33_s25, 2  ;;  %s63_s26 = sadd.s32 1, %s9898_s20 }
   0xb   : > { %p70_p1 = scmp.ne.s32.totalorder %s9898_s20, %s9894_s19  ;;  %p71_p2 = scmp.eq.s32.totalorder %s9910_s23, 0 }
   0xc   : > { %s11303_s25 = smov (%p35_p0, %s33_s25), 0  ;;  %p76_p4 = scmp.ne.s32.totalorder %s9894_s19, %s9890_s18 }
   0xd   : > { %11289 = sst [smem:[#allocation10_spill]] %s11303_s25  ;;  %p72_p3 = por %p71_p2, %p70_p1 }
   0xe   : > { %s60_s27 = ssub.s32 %s9906_s22, %s11303_s25  ;;  %p77_p5 = scmp.eq.s32.totalorder %s11285_s24, 0 }
   0xf   : > { %p61_p6 = scmp.eq.s32.totalorder %s60_s27, 0  ;;  %p8538_p8 = scmp.lt.s32.totalorder %s9910_s23, 2 }
  0x10   : > { %p9991_p7 = por %p77_p5, %p76_p4  ;;  %s10000_s30 = sand.u32 1, %s9898_s20  }
  0x11   : > { %s9997_s29 = scalar_select %p61_p6, %s9898_s20, %s63_s26  }
  0x12   : > { %p10002_p9 = pnand %p8538_p8, %p72_p3  ;;  %s235_s7 = sand.u32 1, %s9910_s23  }
  0x13   : > { %s7050_s8 = sshll.u32 %s10000_s30, 2  ;;  %s8447_s9 = sshll.u32 %s9906_s22, 6 }
  0x14   : > { %s11292_s2 = sld [smem:[#allocation11_spill]]  ;;  %s239_s13 = scalar_lea.vmem [#allocation5], %s7050_s8 }
  0x15   : > { %s248_s14 = sshll.u32 %s239_s13, 4  ;;  %s10014_s15 = scalar_lea.sflag [#allocation6], %s235_s7  ;;  %s249_s14 = int_to_ptr.vmem [resolvable:$true] %s248_s14 }
  0x16   : > { %p9774_p10 = pneg %p10002_p9  ;;  %s9785_s16 = scalar_lea.vmem %s249_s14, 64 }
  0x17   : > { %p9786_p11 = scmp.ne.s32.totalorder %s249_s14, %s9785_s16  ;;  %s9912_s17 = smov [#allocation5]  }
  0x18   : > { %s9790_s18 = sshll.u32 %s9912_s17, 4  ;;  %s9791_s18 = int_to_ptr.vmem [resolvable:$false] %s9790_s18 }
  0x19   : > { %p9788_p12 = pnand %p9786_p11, %p9774_p10  ;;  %s9792_s26 = scalar_lea.vmem %s9791_s18, 128 }
  0x1a   : > { %s246_s12 = scalar_lea.hbm %s11292_s2, %s8447_s9  ;;  %p9793_p0 = scmp.lt.s32.totalorder %s249_s14, %s9791_s18 }
  0x1b   : > { %p9789_p13 = pneg %p9788_p12  ;;  %p9794_p1 = scmp.lt.s32.totalorder %s9792_s26, %s9785_s16 }
  0x1d   : > { %p9795_p2 = por %p9794_p1, %p9793_p0 }
  0x1f   : > { %p9796_p3 = pnand %p9795_p2, %p9789_p13 }
  0x21   : > { %9799 = shalt.err (!%p9796_p3)
}
  0x22   : > { %8534 = dma.hbm_to_vmem [thread:$0]  (!%p10002_p9), %s246_s12, 64, %s249_s14, %s10014_s15  }
  0x23   : > { %s11293_s3 = sld [smem:[#allocation12_spill]]  ;;  %p7056_p4 = scmp.ge.s32.totalorder %s9910_s23, 1 }
  0x24   : > { %p284_p5 = scmp.lt.s32.totalorder %s9910_s23, 3  ;;  %s8519_s13 = smul.u32 6272, %s10000_s30 }
  0x25   : > { %s8520_s16 = smul.u32 100352, %s9906_s22  ;;  %s259_s14 = scalar_lea.vmem [#allocation7], %s7050_s8 }
  0x26   : > { %p10031_p6 = pnand %p7056_p4, %p284_p5  ;;  %s217_s24 = scalar_lea.vmem [#allocation3], %s8519_s13 }
  0x27   : > { %s224_s26 = scalar_lea.hbm %s11280_s1, %s8520_s16  ;;  %s225_s12 = sshll.u32 %s217_s24, 4  ;;  %s226_s12 = int_to_ptr.vmem [resolvable:$true] %s225_s12 }
  0x28   : > { %s268_s27 = sshll.u32 %s259_s14, 4  ;;  %s9813_s7 = scalar_lea.vmem %s226_s12, 100352  ;;  %s269_s27 = int_to_ptr.vmem [resolvable:$true] %s268_s27 }
  0x29   : > { %s10027_s10 = scalar_lea.hbm %s11293_s3, %s8447_s9  ;;  %s214_s9 = scalar_lea.sflag [#allocation4], %s10000_s30 }
  0x2a   : > { %p9814_p8 = scmp.ne.s32.totalorder %s226_s12, %s9813_s7  ;;  %s9913_s2 = smov [#allocation3]  }
  0x2b   : > { %s9818_s3 = sshll.u32 %s9913_s2, 4  ;;  %s9819_s3 = int_to_ptr.vmem [resolvable:$false] %s9818_s3 }
  0x2c   : > { %p9816_p11 = pnand %p9814_p8, %p9774_p10  ;;  %s9820_s25 = scalar_lea.vmem %s9819_s3, 200704 }
  0x2d   : > { %p9821_p13 = scmp.lt.s32.totalorder %s226_s12, %s9819_s3  ;;  %p9822_p0 = scmp.lt.s32.totalorder %s9820_s25, %s9813_s7 }
  0x2e   : > { %p9817_p12 = pneg %p9816_p11 }
  0x2f   : > { %p9823_p1 = por %p9822_p0, %p9821_p13 }
  0x31   : > { %p9824_p2 = pnand %p9823_p1, %p9817_p12 }
  0x33   : > { %9827 = shalt.err (!%p9824_p2)
}
  0x34   : > { %s9914_s24 = smov 256   ;;  %s9915_s8 = smov 16  }
  0x35   : > { %8531 = dma.hbm_to_vmem [thread:$0]  (!%p10002_p9), %s224_s26, 100352, %s226_s12, %s214_s9, %s9914_s24, %s9914_s24, %s9915_s8  }
  0x36   : > { %s9841_s30 = scalar_lea.vmem %s269_s27, 64  ;;  %s9916_s2 = smov [#allocation7]  }
  0x37   : > { %p9842_p3 = scmp.ne.s32.totalorder %s269_s27, %s9841_s30  ;;  %s9846_s13 = sshll.u32 %s9916_s2, 4  ;;  %s9847_s13 = int_to_ptr.vmem [resolvable:$false] %s9846_s13 }
  0x38   : > { %s9848_s3 = scalar_lea.vmem %s9847_s13, 128  ;;  %p9849_p8 = scmp.lt.s32.totalorder %s269_s27, %s9847_s13 }
  0x39   : > { %p9844_p4 = pnand %p9842_p3, %p9774_p10  ;;  %p9850_p11 = scmp.lt.s32.totalorder %s9848_s3, %s9841_s30 }
  0x3b   : > { %p9845_p5 = pneg %p9844_p4  ;;  %p9851_p12 = por %p9850_p11, %p9849_p8 }
  0x3d   : > { %p9852_p13 = pnand %p9851_p12, %p9845_p5 }
  0x3f   : > { %9855 = shalt.err (!%p9852_p13)
}
  0x40   : > { %8537 = dma.hbm_to_vmem [thread:$0]  (!%p10002_p9), %s10027_s10, 64, %s269_s27, %s10014_s15  }
  0x41   : > { %288 = sbr.rel (%p10031_p6) target bundleno = 1295 (0x50f), region = 40  ;;  %s10058_s25 = sand.u32 (!%p10031_p6), 1, %s9894_s19  }
  0x42   : > { %s8521_s16 = smul.u32 (!%p10031_p6), 6272, %s10058_s25  ;;  %s291_s17 = scalar_lea.sflag (!%p10031_p6), [#allocation4], %s10058_s25 }
  0x44   : > { %s10062_s18 = scalar_lea.vmem (!%p10031_p6), [#allocation3], %s8521_s16 }
  0x46   : > { %9881 = dma.done.wait (%p9991_p7), %s291_s17, 100352  }
  0x47   : > { %9883 = vsyncadd (%p9991_p7), %s291_s17, 4294866944  ;;  %s11295_s6 = sadd.s32 4294967295, %s9910_s23   ;;  %s7057_s10 = sshll.u32 %s10058_s25, 2 }
  0x48   : > { %s299_s15 = sand.u32 1, %s11295_s6   ;;  %s10073_s26 = scalar_lea.vmem [#allocation5], %s7057_s10 }
  0x49   : > { %s300_s11 = scalar_lea.sflag [#allocation6], %s299_s15 }
  0x4a   : > { %9885 = dma.done.wait (%p9991_p7), %s300_s11, 128  }
  0x4b   : > { %9887 = vsyncadd (%p9991_p7), %s300_s11, 4294967168  ;;  %v8592_v0 = vld [vmem:[%s10062_s18 + $0x704] ss:$16 sps:$4 sm:$0xff]   ;;  %v8596_v2 = vld [vmem:[%s10062_s18 + $0x700] ss:$16 sps:$4 sm:$0xff]   ;;  %v779_v38 = vlaneseq  ;;  %vm1809_vm0 = vcmask 130048  }
  0x4c   : > { %v8594_v1 = vld [vmem:[%s10062_s18 + $0x904] ss:$16 sps:$4 sm:$0xff]   ;;  %1813 = vmatprep.subr.bf16.mxu0 %v8592_v0  ;;  %v8597_v3 = vld [vmem:[%s10062_s18 + $0x900] ss:$16 sps:$4 sm:$0xff]   ;;  %v9917_v36 = vmov 1966171168  }
  0x4d   : > { %1854 = vmatprep.subr.bf16.mxu1 %v8594_v1  ;;  %v8598_v4 = vld [vmem:[%s10062_s18 + $0x6e4] ss:$16 sps:$4 sm:$0xff]   ;;  %1814 = vmatpush1.bf16.msra.mxu0 %v8596_v2  ;;  %v8602_v6 = vld [vmem:[%s10062_s18 + $0x6e0] ss:$16 sps:$4 sm:$0xff]   ;;  %v777_v37 = vunpack.c.l.s4 %v9917_v36  ;;  %v10118_v43 = vshrl.u32 %v779_v38, 7  ;;  %s7059_s30 = sshll.u32 %s9902_s21, 6 }
  0x4e   : > { %1855 = vmatpush1.bf16.msra.mxu1 %v8597_v3  ;;  %v8600_v5 = vld [vmem:[%s10062_s18 + $0x8e4] ss:$16 sps:$4 sm:$0xff]   ;;  %1815 = vmatprep.subr.bf16.mxu0 %v8598_v4  ;;  %v8603_v7 = vld [vmem:[%s10062_s18 + $0x8e0] ss:$16 sps:$4 sm:$0xff]   ;;  %v8710_v36 = vld [vmem:[%s10062_s18 + $0x6c8] ss:$16 sps:$4 sm:$0xff]  }
  0x4f   : > { %1856 = vmatprep.subr.bf16.mxu1 %v8600_v5  ;;  %v8604_v8 = vld [vmem:[%s10062_s18 + $0x6c4] ss:$16 sps:$4 sm:$0xff]   ;;  %v8608_v10 = vld [vmem:[%s10062_s18 + $0x6c0] ss:$16 sps:$4 sm:$0xff]   ;;  %v778_v42 = vunpack.c.0.s8 %v777_v37  ;;  %v8718_v38 = vld [vmem:[%s10062_s18 + $0x6ac] ss:$16 sps:$4 sm:$0xff]  }
  0x50   : > { %v8606_v9 = vld [vmem:[%s10062_s18 + $0x8c4] ss:$16 sps:$4 sm:$0xff]   ;;  %v8609_v11 = vld [vmem:[%s10062_s18 + $0x8c0] ss:$16 sps:$4 sm:$0xff]   ;;  %p361_p7 = scmp.lt.s32.totalorder %s7059_s30, 127  ;;  %s312_s17 = scalar_lea.vmem [#allocation7], %s7057_s10 }
  0x51   : > { %1816 = vmatpush1.bf16.msra.mxu0 %v8602_v6  ;;  %v8610_v12 = vld [vmem:[%s10062_s18 + $0x6a4] ss:$16 sps:$4 sm:$0xff]   ;;  %v8614_v14 = vld [vmem:[%s10062_s18 + $0x6a0] ss:$16 sps:$4 sm:$0xff]   ;;  %v10126_v49 = vsub.s32 %v778_v42, %v10118_v43  ;;  %v8724_v42 = vld [vmem:[%s10062_s18 + $0x68c] ss:$16 sps:$4 sm:$0xff]  }
  0x52   : > { %1857 = vmatpush1.bf16.msra.mxu1 %v8603_v7  ;;  %1817 = vmatprep.subr.bf16.mxu0 %v8604_v8  ;;  %v8612_v13 = vld [vmem:[%s10062_s18 + $0x8a4] ss:$16 sps:$4 sm:$0xff]   ;;  %v8615_v15 = vld [vmem:[%s10062_s18 + $0x8a0] ss:$16 sps:$4 sm:$0xff]   ;;  %s11305_s30 = smov (!%p361_p7, %s7059_s30), 127  ;;  %vm376_vm1 = vcmask 74752  }
  0x53   : > { %1858 = vmatprep.subr.bf16.mxu1 %v8606_v9  ;;  %v8616_v16 = vld [vmem:[%s10062_s18 + $0x684] ss:$16 sps:$4 sm:$0xff]   ;;  %v8620_v18 = vld [vmem:[%s10062_s18 + $0x680] ss:$16 sps:$4 sm:$0xff]   ;;  %s7060_s2 = sshll.u32 %s11305_s30, 3  ;;  %p367_p9 = scmp.lt.s32.totalorder %s9902_s21, 1 }
  0x54   : > { %v8618_v17 = vld [vmem:[%s10062_s18 + $0x884] ss:$16 sps:$4 sm:$0xff]   ;;  %v8621_v19 = vld [vmem:[%s10062_s18 + $0x880] ss:$16 sps:$4 sm:$0xff]   ;;  %s11163_s16 = scalar_lea.vmem %s11283_s4, %s7060_s2 }
  0x55   : > { %1818 = vmatpush1.bf16.msra.mxu0 %v8608_v10  ;;  %v8622_v20 = vld [vmem:[%s10062_s18 + $0x664] ss:$16 sps:$4 sm:$0xff]   ;;  %v8626_v22 = vld [vmem:[%s10062_s18 + $0x660] ss:$16 sps:$4 sm:$0xff]   ;;  %s11307_s21 = smov (!%p367_p9, %s9902_s21), 1 }
  0x56   : > { %1859 = vmatpush1.bf16.msra.mxu1 %v8609_v11  ;;  %1819 = vmatprep.subr.bf16.mxu0 %v8610_v12  ;;  %v8624_v21 = vld [vmem:[%s10062_s18 + $0x864] ss:$16 sps:$4 sm:$0xff]   ;;  %v8627_v23 = vld [vmem:[%s10062_s18 + $0x860] ss:$16 sps:$4 sm:$0xff]   ;;  %s7061_s25 = sshll.u32 %s11307_s21, 1 }
  0x57   : > { %1860 = vmatprep.subr.bf16.mxu1 %v8612_v13  ;;  %v8628_v24 = vld [vmem:[%s10062_s18 + $0x644] ss:$16 sps:$4 sm:$0xff]   ;;  %v8632_v26 = vld [vmem:[%s10062_s18 + $0x640] ss:$16 sps:$4 sm:$0xff]   ;;  %s370_s15 = scalar_lea.vmem %s11284_s5, %s7061_s25 }
  0x58   : > { %v8630_v25 = vld [vmem:[%s10062_s18 + $0x844] ss:$16 sps:$4 sm:$0xff]   ;;  %v8633_v27 = vld [vmem:[%s10062_s18 + $0x840] ss:$16 sps:$4 sm:$0xff]  }
  0x59   : > { %1820 = vmatpush1.bf16.msra.mxu0 %v8614_v14  ;;  %v8634_v28 = vld [vmem:[%s10062_s18 + $0x624] ss:$16 sps:$4 sm:$0xff]   ;;  %v8638_v30 = vld [vmem:[%s10062_s18 + $0x620] ss:$16 sps:$4 sm:$0xff]  }
  0x5a   : > { %1861 = vmatpush1.bf16.msra.mxu1 %v8615_v15  ;;  %1821 = vmatprep.subr.bf16.mxu0 %v8616_v16  ;;  %v8636_v29 = vld [vmem:[%s10062_s18 + $0x824] ss:$16 sps:$4 sm:$0xff]   ;;  %v8639_v31 = vld [vmem:[%s10062_s18 + $0x820] ss:$16 sps:$4 sm:$0xff]  }
  0x5b   : > { %1862 = vmatprep.subr.bf16.mxu1 %v8618_v17  ;;  %v8640_v32 = vld [vmem:[%s10062_s18 + $0x804] ss:$16 sps:$4 sm:$0xff]   ;;  %v8644_v34 = vld [vmem:[%s10062_s18 + $0x800] ss:$16 sps:$4 sm:$0xff]  }
  0x5c   : > { %v8642_v33 = vld [vmem:[%s10062_s18 + $0xa04] ss:$16 sps:$4 sm:$0xff]   ;;  %v8645_v35 = vld [vmem:[%s10062_s18 + $0xa00] ss:$16 sps:$4 sm:$0xff]  }
  0x5d   : > { %1822 = vmatpush1.bf16.msra.mxu0 %v8620_v18  ;;  %v8646_v39 = vld [vmem:[%s10062_s18 + $0x7e4] ss:$16 sps:$4 sm:$0xff]   ;;  %v8650_v41 = vld [vmem:[%s10062_s18 + $0x7e0] ss:$16 sps:$4 sm:$0xff]  }
  0x5e   : > { %1863 = vmatpush1.bf16.msra.mxu1 %v8621_v19  ;;  %1823 = vmatprep.subr.bf16.mxu0 %v8622_v20  ;;  %v8648_v40 = vld [vmem:[%s10062_s18 + $0x9e4] ss:$16 sps:$4 sm:$0xff]   ;;  %v8651_v44 = vld [vmem:[%s10062_s18 + $0x9e0] ss:$16 sps:$4 sm:$0xff]  }
  0x5f   : > { %1864 = vmatprep.subr.bf16.mxu1 %v8624_v21  ;;  %v8652_v45 = vld [vmem:[%s10062_s18 + $0x7c4] ss:$16 sps:$4 sm:$0xff]   ;;  %v8656_v47 = vld [vmem:[%s10062_s18 + $0x7c0] ss:$16 sps:$4 sm:$0xff]   ;;  %v8700_v21 = vld [vmem:[%s10062_s18 + $0x70c] ss:$16 sps:$4 sm:$0xff]  }
  0x60   : > { %v8654_v46 = vld [vmem:[%s10062_s18 + $0x9c4] ss:$16 sps:$4 sm:$0xff]   ;;  %v8657_v48 = vld [vmem:[%s10062_s18 + $0x9c0] ss:$16 sps:$4 sm:$0xff]  }
  0x61   : > { %1824 = vmatpush1.bf16.msra.mxu0 %v8626_v22  ;;  %v8658_v50 = vld [vmem:[%s10062_s18 + $0x7a4] ss:$16 sps:$4 sm:$0xff]   ;;  %v8662_v53 = vld [vmem:[%s10062_s18 + $0x7a0] ss:$16 sps:$4 sm:$0xff]  }
  0x62   : > { %1865 = vmatpush1.bf16.msra.mxu1 %v8627_v23  ;;  %1825 = vmatprep.subr.bf16.mxu0 %v8628_v24  ;;  %v8660_v51 = vld [vmem:[%s10062_s18 + $0x9a4] ss:$16 sps:$4 sm:$0xff]   ;;  %v8663_v55 = vld [vmem:[%s10062_s18 + $0x9a0] ss:$16 sps:$4 sm:$0xff]  }
  0x63   : > { %1866 = vmatprep.subr.bf16.mxu1 %v8630_v25  ;;  %v7062_v52 = vld [vmem:[%s11279_s0 + $0x7] sm:$0x7f]  ;;  %v8668_v59 = vld [vmem:[%s10062_s18 + $0x780] ss:$16 sps:$4 sm:$0xff]   ;;  %v9918_v25 = vmov 0  }
  0x64   : > { %v782_v54 = vrot.slane %v7062_v52, %v10126_v49  ;;  %v8664_v56 = vld [vmem:[%s10062_s18 + $0x784] ss:$16 sps:$4 sm:$0xff]   ;;  %v8669_v61 = vld [vmem:[%s10062_s18 + $0x980] ss:$16 sps:$4 sm:$0xff]   ;;  %v775_v7 = vcombine.high %v7062_v52, %v7062_v52  ;;  %v8736_v52 = vld [vmem:[%s10062_s18 + $0x64c] ss:$16 sps:$4 sm:$0xff]  }
  0x65   : > { %1826 = vmatpush1.bf16.msra.mxu0 %v8632_v26  ;;  %v8666_v57 = vld [vmem:[%s10062_s18 + $0x984] ss:$16 sps:$4 sm:$0xff]   ;;  %v8674_v1 = vld [vmem:[%s10062_s18 + $0x760] ss:$16 sps:$4 sm:$0xff]  }
  0x66   : > { %1867 = vmatpush1.bf16.msra.mxu1 %v8633_v27  ;;  %1827 = vmatprep.subr.bf16.mxu0 %v8634_v28  ;;  %v790_v58 = vcombine.high %v782_v54, %v782_v54  ;;  %v8670_v62 = vld [vmem:[%s10062_s18 + $0x764] ss:$16 sps:$4 sm:$0xff]   ;;  %v8675_v2 = vld [vmem:[%s10062_s18 + $0x960] ss:$16 sps:$4 sm:$0xff]   ;;  %v10161_v11 = vrot.slane %v782_v54, %v10126_v49  ;;  %v789_v13 = vrot.slane %v775_v7, %v10126_v49  ;;  %v8698_v27 = vld [vmem:[%s10062_s18 + $0x708] ss:$16 sps:$4 sm:$0xff]  }
  0x67   : > { %1868 = vmatprep.subr.bf16.mxu1 %v8636_v29  ;;  %v8672_v63 = vld [vmem:[%s10062_s18 + $0x964] ss:$16 sps:$4 sm:$0xff]   ;;  %v8680_v5 = vld [vmem:[%s10062_s18 + $0x740] ss:$16 sps:$4 sm:$0xff]   ;;  %v8734_v54 = vld [vmem:[%s10062_s18 + $0x648] ss:$16 sps:$4 sm:$0xff]  }
  0x68   : > { %v10140_v60 = vrot.slane %v790_v58, %v10126_v49  ;;  %v8676_v3 = vld [vmem:[%s10062_s18 + $0x744] ss:$16 sps:$4 sm:$0xff]   ;;  %v8681_v6 = vld [vmem:[%s10062_s18 + $0x940] ss:$16 sps:$4 sm:$0xff]   ;;  %v791_v16 = vcombine.high %v789_v13, %v789_v13  ;;  %v10169_v17 = vcombine.high %v10161_v11, %v10161_v11  ;;  %v10179_v23 = vrot.slane %v789_v13, %v10126_v49  ;;  %v8740_v58 = vld [vmem:[%s10062_s18 + $0x628] ss:$16 sps:$4 sm:$0xff]  }
  0x69   : > { %1828 = vmatpush1.bf16.msra.mxu0 %v8638_v30  ;;  %v8678_v4 = vld [vmem:[%s10062_s18 + $0x944] ss:$16 sps:$4 sm:$0xff]   ;;  %v8686_v10 = vld [vmem:[%s10062_s18 + $0x720] ss:$16 sps:$4 sm:$0xff]   ;;  %v8706_v30 = vld [vmem:[%s10062_s18 + $0x6ec] ss:$16 sps:$4 sm:$0xff]  }
  0x6a   : > { %1869 = vmatpush1.bf16.msra.mxu1 %v8639_v31  ;;  %1829 = vmatprep.subr.bf16.mxu0 %v8640_v32  ;;  %v10147_v0 = vcombine.high %v10140_v60, %v10140_v60  ;;  %v8682_v8 = vld [vmem:[%s10062_s18 + $0x724] ss:$16 sps:$4 sm:$0xff]   ;;  %v8687_v12 = vld [vmem:[%s10062_s18 + $0x920] ss:$16 sps:$4 sm:$0xff]   ;;  %v10176_v22 = vrot.slane %v791_v16, %v10126_v49  ;;  %v10190_v28 = vcombine.high %v10179_v23, %v10179_v23  ;;  %v8704_v32 = vld [vmem:[%s10062_s18 + $0x6e8] ss:$16 sps:$4 sm:$0xff]  }
  0x6b   : > { %1870 = vmatprep.subr.bf16.mxu1 %v8642_v33  ;;  %1845 = vmatprep.mubr.bf16.mxu0 %v10140_v60  ;;  %v8684_v9 = vld [vmem:[%s10062_s18 + $0x924] ss:$16 sps:$4 sm:$0xff]   ;;  %v8689_v18 = vld [vmem:[%s10062_s18 + $0xb00] ss:$16 sps:$4 sm:$0xff]   ;;  %v8758_v7 = vld [vmem:[%s10062_s18 + $0x7c8] ss:$16 sps:$4 sm:$0xff]  }
  0x6c   : > { %1886 = vmatprep.mubr.bf16.mxu1 %v10147_v0  ;;  %v8691_v14 = vld [vmem:[%s10062_s18 + $0xb04] ss:$16 sps:$4 sm:$0xff]   ;;  %v8692_v19 = vld [vmem:[%s10062_s18 + $0xc20] ss:$16 sps:$4 sm:$0xff]   ;;  %v8770_v16 = vld [vmem:[%s10062_s18 + $0x788] ss:$16 sps:$4 sm:$0xff]  }
  0x6d   : > { %1830 = vmatpush2.bf16.msra.mxu0 %v8644_v34  ;;  %v8694_v15 = vld [vmem:[%s10062_s18 + $0xc24] ss:$16 sps:$4 sm:$0xff]   ;;  %v8695_v24 = vld [vmem:[%s10062_s18 + $0xae0] ss:$16 sps:$4 sm:$0xff]   ;;  %v8712_v34 = vld [vmem:[%s10062_s18 + $0x6cc] ss:$16 sps:$4 sm:$0xff]  }
  0x6e   : > { %1871 = vmatpush2.bf16.msra.mxu1 %v8645_v35  ;;  %1831 = vmatprep.subr.bf16.mxu0 %v8646_v39  ;;  %v8697_v20 = vld [vmem:[%s10062_s18 + $0xae4] ss:$16 sps:$4 sm:$0xff]   ;;  %v8701_v29 = vld [vmem:[%s10062_s18 + $0xac0] ss:$16 sps:$4 sm:$0xff]  }
  0x6f   : > { %1872 = vmatprep.subr.bf16.mxu1 %v8648_v40  ;;  %v8703_v26 = vld [vmem:[%s10062_s18 + $0xac4] ss:$16 sps:$4 sm:$0xff]   ;;  %v8707_v33 = vld [vmem:[%s10062_s18 + $0xaa0] ss:$16 sps:$4 sm:$0xff]   ;;  %v8716_v40 = vld [vmem:[%s10062_s18 + $0x6a8] ss:$16 sps:$4 sm:$0xff]  }
  0x70   : > { %v8709_v31 = vld [vmem:[%s10062_s18 + $0xaa4] ss:$16 sps:$4 sm:$0xff]   ;;  %v8713_v37 = vld [vmem:[%s10062_s18 + $0xa80] ss:$16 sps:$4 sm:$0xff]  }
  0x71   : > { %1832 = vmatpush2.bf16.msra.mxu0 %v8650_v41  ;;  %v8715_v35 = vld [vmem:[%s10062_s18 + $0xa84] ss:$16 sps:$4 sm:$0xff]   ;;  %v8719_v41 = vld [vmem:[%s10062_s18 + $0xa60] ss:$16 sps:$4 sm:$0xff]  }
  0x72   : > { %1873 = vmatpush2.bf16.msra.mxu1 %v8651_v44  ;;  %1833 = vmatprep.subr.bf16.mxu0 %v8652_v45  ;;  %v8721_v39 = vld [vmem:[%s10062_s18 + $0xa64] ss:$16 sps:$4 sm:$0xff]   ;;  %v8722_v45 = vld [vmem:[%s10062_s18 + $0x688] ss:$16 sps:$4 sm:$0xff]   ;;  %v8767_v13 = vld [vmem:[%s10062_s18 + $0xb60] ss:$16 sps:$4 sm:$0xff]  }
  0x73   : > { %1874 = vmatprep.subr.bf16.mxu1 %v8654_v46  ;;  %v8727_v44 = vld [vmem:[%s10062_s18 + $0xa44] ss:$16 sps:$4 sm:$0xff]   ;;  %v8725_v46 = vld [vmem:[%s10062_s18 + $0xa40] ss:$16 sps:$4 sm:$0xff]  }
  0x75   : > { %1834 = vmatpush2.bf16.msra.mxu0 %v8656_v47  ;;  %v8730_v47 = vld [vmem:[%s10062_s18 + $0x66c] ss:$16 sps:$4 sm:$0xff]  }
  0x76   : > { %1875 = vmatpush2.bf16.msra.mxu1 %v8657_v48  ;;  %1835 = vmatprep.subr.bf16.mxu0 %v8658_v50  ;;  %v8733_v48 = vld [vmem:[%s10062_s18 + $0xa24] ss:$16 sps:$4 sm:$0xff]   ;;  %v8728_v50 = vld [vmem:[%s10062_s18 + $0x668] ss:$16 sps:$4 sm:$0xff]  }
  0x77   : > { %1876 = vmatprep.subr.bf16.mxu1 %v8660_v51  ;;  %v8731_v51 = vld [vmem:[%s10062_s18 + $0xa20] ss:$16 sps:$4 sm:$0xff]  }
  0x79   : > { %1836 = vmatpush2.bf16.msra.mxu0 %v8662_v53  ;;  %v8739_v53 = vld [vmem:[%s10062_s18 + $0xc04] ss:$16 sps:$4 sm:$0xff]  }
  0x7a   : > { %1877 = vmatpush2.bf16.msra.mxu1 %v8663_v55  ;;  %1837 = vmatprep.subr.bf16.mxu0 %v8664_v56  ;;  %v8737_v55 = vld [vmem:[%s10062_s18 + $0xc00] ss:$16 sps:$4 sm:$0xff]   ;;  %v8742_v56 = vld [vmem:[%s10062_s18 + $0x62c] ss:$16 sps:$4 sm:$0xff]  }
  0x7b   : > { %1878 = vmatprep.subr.bf16.mxu1 %v8666_v57  ;;  %v8745_v57 = vld [vmem:[%s10062_s18 + $0xbe4] ss:$16 sps:$4 sm:$0xff]  }
  0x7d   : > { %1838 = vmatpush2.bf16.msra.mxu0 %v8668_v59  ;;  %v8743_v59 = vld [vmem:[%s10062_s18 + $0xbe0] ss:$16 sps:$4 sm:$0xff]  }
  0x7e   : > { %1879 = vmatpush2.bf16.msra.mxu1 %v8669_v61  ;;  %1839 = vmatprep.subr.bf16.mxu0 %v8670_v62  ;;  %v8751_v61 = vld [vmem:[%s10062_s18 + $0xbc4] ss:$16 sps:$4 sm:$0xff]   ;;  %v8746_v62 = vld [vmem:[%s10062_s18 + $0x808] ss:$16 sps:$4 sm:$0xff]  }
  0x7f   : > { %1880 = vmatprep.subr.bf16.mxu1 %v8672_v63  ;;  %v8749_v63 = vld [vmem:[%s10062_s18 + $0xbc0] ss:$16 sps:$4 sm:$0xff]  }
  0x81   : > { %1840 = vmatpush2.bf16.msra.mxu0 %v8674_v1  ;;  %v8754_v1 = vld [vmem:[%s10062_s18 + $0x7ec] ss:$16 sps:$4 sm:$0xff]  }
  0x82   : > { %1881 = vmatpush2.bf16.msra.mxu1 %v8675_v2  ;;  %1841 = vmatprep.subr.bf16.mxu0 %v8676_v3  ;;  %v8757_v2 = vld [vmem:[%s10062_s18 + $0xba4] ss:$16 sps:$4 sm:$0xff]   ;;  %v8752_v3 = vld [vmem:[%s10062_s18 + $0x7e8] ss:$16 sps:$4 sm:$0xff]  }
  0x83   : > { %1882 = vmatprep.subr.bf16.mxu1 %v8678_v4  ;;  %v8755_v4 = vld [vmem:[%s10062_s18 + $0xba0] ss:$16 sps:$4 sm:$0xff]  }
  0x85   : > { %1842 = vmatpush2.bf16.msra.mxu0 %v8680_v5  ;;  %v8760_v5 = vld [vmem:[%s10062_s18 + $0x7cc] ss:$16 sps:$4 sm:$0xff]  }
  0x86   : > { %1883 = vmatpush2.bf16.msra.mxu1 %v8681_v6  ;;  %1843 = vmatprep.subr.bf16.mxu0 %v8682_v8  ;;  %v8763_v6 = vld [vmem:[%s10062_s18 + $0xb84] ss:$16 sps:$4 sm:$0xff]   ;;  %v8761_v8 = vld [vmem:[%s10062_s18 + $0xb80] ss:$16 sps:$4 sm:$0xff]  }
  0x87   : > { %1884 = vmatprep.subr.bf16.mxu1 %v8684_v9  ;;  %v8766_v9 = vld [vmem:[%s10062_s18 + $0x7ac] ss:$16 sps:$4 sm:$0xff]  }
  0x89   : > { %1844 = vmatpush2.bf16.msra.mxu0 %v8686_v10  ;;  %v8769_v10 = vld [vmem:[%s10062_s18 + $0xb64] ss:$16 sps:$4 sm:$0xff]  }
  0x8a   : > { %1885 = vmatpush2.bf16.msra.mxu1 %v8687_v12  ;;  %1895 = vmatprep.subr.bf16.mxu0 %v8691_v14  ;;  %v8764_v12 = vld [vmem:[%s10062_s18 + $0x7a8] ss:$16 sps:$4 sm:$0xff]   ;;  %v8772_v14 = vld [vmem:[%s10062_s18 + $0x78c] ss:$16 sps:$4 sm:$0xff]  }
  0x8b   : > { %1950 = vmatprep.subr.bf16.mxu1 %v8694_v15  ;;  %v8775_v15 = vld [vmem:[%s10062_s18 + $0xb44] ss:$16 sps:$4 sm:$0xff]  }
  0x8c   : > { %1846 = vmatmul.mubr.bf16.vlgmr.msra.gmra.mxu0 %v10161_v11 }
  0x8d   : > { %1887 = vmatmul.mubr.bf16.vlgmr.msra.gmra.mxu1 %v10169_v17  ;;  %1896 = vmatpush1.bf16.msra.mxu0 %v8689_v18  ;;  %v8773_v18 = vld [vmem:[%s10062_s18 + $0xb40] ss:$16 sps:$4 sm:$0xff]  }
  0x8e   : > { %1951 = vmatpush1.bf16.msra.mxu1 %v8692_v19  ;;  %1897 = vmatprep.subr.bf16.mxu0 %v8697_v20  ;;  %v8778_v19 = vld [vmem:[%s10062_s18 + $0x76c] ss:$16 sps:$4 sm:$0xff]   ;;  %v8781_v20 = vld [vmem:[%s10062_s18 + $0xb24] ss:$16 sps:$4 sm:$0xff]  }
  0x8f   : > { %1968 = vmatprep.mubr.bf16.mxu1 %v9918_v25  ;;  %1977 = vmatprep.subr.bf16.mxu1 %v8700_v21  ;;  %v8776_v21 = vld [vmem:[%s10062_s18 + $0x768] ss:$16 sps:$4 sm:$0xff]  }
  0x90   : > { %1927 = vmatprep.mubr.bf16.mxu0 %v10176_v22 }
  0x91   : > { %1898 = vmatpush1.bf16.msra.mxu0 %v8695_v24  ;;  %v8779_v24 = vld [vmem:[%s10062_s18 + $0xb20] ss:$16 sps:$4 sm:$0xff]  }
  0x92   : > { %1899 = vmatprep.subr.bf16.mxu0 %v8703_v26  ;;  %v8784_v26 = vld [vmem:[%s10062_s18 + $0x74c] ss:$16 sps:$4 sm:$0xff]  }
  0x95   : > { %7455 = vmatmul.mubr.msk.bf16.vlgmr.msra.gmra.mxu1 %vm1809_vm0, %v10190_v28  ;;  %1900 = vmatpush1.bf16.msra.mxu0 %v8701_v29  ;;  %v8782_v29 = vld [vmem:[%s10062_s18 + $0x748] ss:$16 sps:$4 sm:$0xff]  }
  0x96   : > { %1978 = vmatpush1.bf16.msra.mxu1 %v8698_v27  ;;  %1901 = vmatprep.subr.bf16.mxu0 %v8709_v31  ;;  %v8787_v27 = vld [vmem:[%s10062_s18 + $0x90c] ss:$16 sps:$4 sm:$0xff]  }
  0x97   : > { %1979 = vmatprep.subr.bf16.mxu1 %v8706_v30  ;;  %2009 = vmatprep.mubr.bf16.mxu1 %v10140_v60  ;;  %v8748_v60 = vld [vmem:[%s10062_s18 + $0x80c] ss:$16 sps:$4 sm:$0xff]   ;;  %v8785_v30 = vld [vmem:[%s10062_s18 + $0x908] ss:$16 sps:$4 sm:$0xff]  }
  0x98   : > { %v8790_v31 = vld [vmem:[%s10062_s18 + $0x72c] ss:$16 sps:$4 sm:$0xff]  }
  0x99   : > { %1902 = vmatpush1.bf16.msra.mxu0 %v8707_v33  ;;  %v8788_v33 = vld [vmem:[%s10062_s18 + $0x728] ss:$16 sps:$4 sm:$0xff]  }
  0x9a   : > { %1980 = vmatpush1.bf16.msra.mxu1 %v8704_v32  ;;  %1903 = vmatprep.subr.bf16.mxu0 %v8715_v35  ;;  %v8793_v32 = vld [vmem:[%s10062_s18 + $0x8ec] ss:$16 sps:$4 sm:$0xff]  }
  0x9b   : > { %1981 = vmatprep.subr.bf16.mxu1 %v8712_v34  ;;  %v8791_v34 = vld [vmem:[%s10062_s18 + $0x8e8] ss:$16 sps:$4 sm:$0xff]   ;;  %v8796_v35 = vld [vmem:[%s10062_s18 + $0xb0c] ss:$16 sps:$4 sm:$0xff]  }
  0x9d   : > { %1904 = vmatpush1.bf16.msra.mxu0 %v8713_v37  ;;  %v8794_v37 = vld [vmem:[%s10062_s18 + $0xb08] ss:$16 sps:$4 sm:$0xff]  }
  0x9e   : > { %1982 = vmatpush1.bf16.msra.mxu1 %v8710_v36  ;;  %1905 = vmatprep.subr.bf16.mxu0 %v8721_v39  ;;  %v8799_v36 = vld [vmem:[%s10062_s18 + $0x8cc] ss:$16 sps:$4 sm:$0xff]  }
  0x9f   : > { %1983 = vmatprep.subr.bf16.mxu1 %v8718_v38  ;;  %v8797_v38 = vld [vmem:[%s10062_s18 + $0x8c8] ss:$16 sps:$4 sm:$0xff]   ;;  %v8802_v39 = vld [vmem:[%s10062_s18 + $0xaec] ss:$16 sps:$4 sm:$0xff]  }
  0xa1   : > { %1906 = vmatpush1.bf16.msra.mxu0 %v8719_v41  ;;  %v8800_v41 = vld [vmem:[%s10062_s18 + $0xae8] ss:$16 sps:$4 sm:$0xff]  }
  0xa2   : > { %1984 = vmatpush1.bf16.msra.mxu1 %v8716_v40  ;;  %1907 = vmatprep.subr.bf16.mxu0 %v8727_v44  ;;  %v8805_v40 = vld [vmem:[%s10062_s18 + $0x8ac] ss:$16 sps:$4 sm:$0xff]  }
  0xa3   : > { %1985 = vmatprep.subr.bf16.mxu1 %v8724_v42  ;;  %v8808_v42 = vld [vmem:[%s10062_s18 + $0xacc] ss:$16 sps:$4 sm:$0xff]  }
  0xa4   : > { %v8811_v44 = vld [vmem:[%s10062_s18 + $0x88c] ss:$16 sps:$4 sm:$0xff]  }
  0xa5   : > { %1908 = vmatpush1.bf16.msra.mxu0 %v8725_v46  ;;  %v8814_v46 = vld [vmem:[%s10062_s18 + $0xaac] ss:$16 sps:$4 sm:$0xff]  }
  0xa6   : > { %1986 = vmatpush1.bf16.msra.mxu1 %v8722_v45  ;;  %1909 = vmatprep.subr.bf16.mxu0 %v8733_v48  ;;  %v8806_v45 = vld [vmem:[%s10062_s18 + $0xac8] ss:$16 sps:$4 sm:$0xff]  }
  0xa7   : > { %1987 = vmatprep.subr.bf16.mxu1 %v8730_v47  ;;  %v8817_v47 = vld [vmem:[%s10062_s18 + $0x86c] ss:$16 sps:$4 sm:$0xff]   ;;  %v8812_v48 = vld [vmem:[%s10062_s18 + $0xaa8] ss:$16 sps:$4 sm:$0xff]  }
  0xa9   : > { %1910 = vmatpush1.bf16.msra.mxu0 %v8731_v51  ;;  %v8823_v51 = vld [vmem:[%s10062_s18 + $0x84c] ss:$16 sps:$4 sm:$0xff]  }
  0xaa   : > { %1988 = vmatpush1.bf16.msra.mxu1 %v8728_v50  ;;  %1911 = vmatprep.subr.bf16.mxu0 %v8739_v53  ;;  %v8815_v50 = vld [vmem:[%s10062_s18 + $0x868] ss:$16 sps:$4 sm:$0xff]  }
  0xab   : > { %1989 = vmatprep.subr.bf16.mxu1 %v8736_v52  ;;  %v8818_v52 = vld [vmem:[%s10062_s18 + $0xa88] ss:$16 sps:$4 sm:$0xff]  }
  0xac   : > { %v8821_v53 = vld [vmem:[%s10062_s18 + $0x848] ss:$16 sps:$4 sm:$0xff]  }
  0xad   : > { %1912 = vmatpush2.bf16.msra.mxu0 %v8737_v55  ;;  %v8829_v55 = vld [vmem:[%s10062_s18 + $0x82c] ss:$16 sps:$4 sm:$0xff]  }
  0xae   : > { %1990 = vmatpush1.bf16.msra.mxu1 %v8734_v54  ;;  %1913 = vmatprep.subr.bf16.mxu0 %v8745_v57  ;;  %v8826_v54 = vld [vmem:[%s10062_s18 + $0xa6c] ss:$16 sps:$4 sm:$0xff]   ;;  %v8827_v57 = vld [vmem:[%s10062_s18 + $0x828] ss:$16 sps:$4 sm:$0xff]  }
  0xaf   : > { %1991 = vmatprep.subr.bf16.mxu1 %v8742_v56  ;;  %v8824_v56 = vld [vmem:[%s10062_s18 + $0xa68] ss:$16 sps:$4 sm:$0xff]  }
  0xb1   : > { %1914 = vmatpush2.bf16.msra.mxu0 %v8743_v59  ;;  %v8835_v59 = vld [vmem:[%s10062_s18 + $0xa0c] ss:$16 sps:$4 sm:$0xff]  }
  0xb2   : > { %1992 = vmatpush1.bf16.msra.mxu1 %v8740_v58  ;;  %1915 = vmatprep.subr.bf16.mxu0 %v8751_v61  ;;  %v8832_v58 = vld [vmem:[%s10062_s18 + $0xa4c] ss:$16 sps:$4 sm:$0xff]   ;;  %v8833_v61 = vld [vmem:[%s10062_s18 + $0xa08] ss:$16 sps:$4 sm:$0xff]  }
  0xb3   : > { %1993 = vmatprep.subr.bf16.mxu1 %v8748_v60  ;;  %v8830_v60 = vld [vmem:[%s10062_s18 + $0xa48] ss:$16 sps:$4 sm:$0xff]  }
  0xb5   : > { %1916 = vmatpush2.bf16.msra.mxu0 %v8749_v63  ;;  %v8841_v63 = vld [vmem:[%s10062_s18 + $0x9ec] ss:$16 sps:$4 sm:$0xff]  }
  0xb6   : > { %1994 = vmatpush2.bf16.msra.mxu1 %v8746_v62  ;;  %1917 = vmatprep.subr.bf16.mxu0 %v8757_v2  ;;  %v8838_v62 = vld [vmem:[%s10062_s18 + $0xa2c] ss:$16 sps:$4 sm:$0xff]   ;;  %v8839_v2 = vld [vmem:[%s10062_s18 + $0x9e8] ss:$16 sps:$4 sm:$0xff]  }
  0xb7   : > { %1995 = vmatprep.subr.bf16.mxu1 %v8754_v1  ;;  %v8836_v1 = vld [vmem:[%s10062_s18 + $0xa28] ss:$16 sps:$4 sm:$0xff]  }
  0xb9   : > { %1918 = vmatpush2.bf16.msra.mxu0 %v8755_v4  ;;  %v8847_v4 = vld [vmem:[%s10062_s18 + $0x9cc] ss:$16 sps:$4 sm:$0xff]  }
  0xba   : > { %1996 = vmatpush2.bf16.msra.mxu1 %v8752_v3  ;;  %1919 = vmatprep.subr.bf16.mxu0 %v8763_v6  ;;  %v8844_v3 = vld [vmem:[%s10062_s18 + $0xc0c] ss:$16 sps:$4 sm:$0xff]   ;;  %v8845_v6 = vld [vmem:[%s10062_s18 + $0x9c8] ss:$16 sps:$4 sm:$0xff]  }
  0xbb   : > { %1997 = vmatprep.subr.bf16.mxu1 %v8760_v5  ;;  %v8842_v5 = vld [vmem:[%s10062_s18 + $0xc08] ss:$16 sps:$4 sm:$0xff]  }
  0xbd   : > { %1920 = vmatpush2.bf16.msra.mxu0 %v8761_v8  ;;  %v8853_v8 = vld [vmem:[%s10062_s18 + $0x9ac] ss:$16 sps:$4 sm:$0xff]  }
  0xbe   : > { %1998 = vmatpush2.bf16.msra.mxu1 %v8758_v7  ;;  %1921 = vmatprep.subr.bf16.mxu0 %v8769_v10  ;;  %v8850_v7 = vld [vmem:[%s10062_s18 + $0xbec] ss:$16 sps:$4 sm:$0xff]   ;;  %v8851_v10 = vld [vmem:[%s10062_s18 + $0x9a8] ss:$16 sps:$4 sm:$0xff]  }
  0xbf   : > { %1999 = vmatprep.subr.bf16.mxu1 %v8766_v9  ;;  %v8848_v9 = vld [vmem:[%s10062_s18 + $0xbe8] ss:$16 sps:$4 sm:$0xff]  }
  0xc1   : > { %1922 = vmatpush2.bf16.msra.mxu0 %v8767_v13  ;;  %v8859_v13 = vld [vmem:[%s10062_s18 + $0x98c] ss:$16 sps:$4 sm:$0xff]  }
  0xc2   : > { %2000 = vmatpush2.bf16.msra.mxu1 %v8764_v12  ;;  %1923 = vmatprep.subr.bf16.mxu0 %v8775_v15  ;;  %v8856_v12 = vld [vmem:[%s10062_s18 + $0xbcc] ss:$16 sps:$4 sm:$0xff]   ;;  %v8857_v15 = vld [vmem:[%s10062_s18 + $0x988] ss:$16 sps:$4 sm:$0xff]  }
  0xc3   : > { %2001 = vmatprep.subr.bf16.mxu1 %v8772_v14  ;;  %v8854_v14 = vld [vmem:[%s10062_s18 + $0xbc8] ss:$16 sps:$4 sm:$0xff]  }
  0xc5   : > { %1924 = vmatpush2.bf16.msra.mxu0 %v8773_v18  ;;  %v8865_v18 = vld [vmem:[%s10062_s18 + $0x96c] ss:$16 sps:$4 sm:$0xff]  }
  0xc6   : > { %2002 = vmatpush2.bf16.msra.mxu1 %v8770_v16  ;;  %1925 = vmatprep.subr.bf16.mxu0 %v8781_v20  ;;  %v8862_v16 = vld [vmem:[%s10062_s18 + $0xbac] ss:$16 sps:$4 sm:$0xff]   ;;  %v8863_v20 = vld [vmem:[%s10062_s18 + $0x968] ss:$16 sps:$4 sm:$0xff]  }
  0xc7   : > { %2003 = vmatprep.subr.bf16.mxu1 %v8778_v19  ;;  %v8860_v19 = vld [vmem:[%s10062_s18 + $0xba8] ss:$16 sps:$4 sm:$0xff]  }
  0xc9   : > { %1926 = vmatpush2.bf16.msra.mxu0 %v8779_v24  ;;  %v8871_v24 = vld [vmem:[%s10062_s18 + $0x94c] ss:$16 sps:$4 sm:$0xff]  }
  0xca   : > { %2004 = vmatpush2.bf16.msra.mxu1 %v8776_v21  ;;  %2018 = vmatprep.subr.bf16.mxu0 %v8787_v27  ;;  %v8868_v21 = vld [vmem:[%s10062_s18 + $0xb8c] ss:$16 sps:$4 sm:$0xff]   ;;  %v8869_v27 = vld [vmem:[%s10062_s18 + $0x948] ss:$16 sps:$4 sm:$0xff]  }
  0xcb   : > { %2005 = vmatprep.subr.bf16.mxu1 %v8784_v26  ;;  %v8866_v26 = vld [vmem:[%s10062_s18 + $0xb88] ss:$16 sps:$4 sm:$0xff]  }
  0xcc   : > { %1928 = vmatmul.mubr.bf16.vlgmr.msra.gmra.mxu0 %v10179_v23 }
  0xcd   : > { %2019 = vmatpush1.bf16.msra.mxu0 %v8785_v30  ;;  %2050 = vmatprep.mubr.bf16.mxu0 %v10147_v0  ;;  %v8803_v0 = vld [vmem:[%s10062_s18 + $0x8a8] ss:$16 sps:$4 sm:$0xff]   ;;  %v8877_v30 = vld [vmem:[%s10062_s18 + $0x92c] ss:$16 sps:$4 sm:$0xff]  }
  0xce   : > { %2006 = vmatpush2.bf16.msra.mxu1 %v8782_v29  ;;  %2020 = vmatprep.subr.bf16.mxu0 %v8793_v32  ;;  %v8874_v29 = vld [vmem:[%s10062_s18 + $0xb6c] ss:$16 sps:$4 sm:$0xff]   ;;  %v8872_v32 = vld [vmem:[%s10062_s18 + $0xb68] ss:$16 sps:$4 sm:$0xff]  }
  0xcf   : > { %2007 = vmatprep.subr.bf16.mxu1 %v8790_v31  ;;  %v10317_v31 = vld [vmem:[%s11279_s0] sm:$0x7f] }
  0xd1   : > { %2021 = vmatpush1.bf16.msra.mxu0 %v8791_v34  ;;  %v8880_v34 = vld [vmem:[%s10062_s18 + $0xb4c] ss:$16 sps:$4 sm:$0xff]  }
  0xd2   : > { %2008 = vmatpush2.bf16.msra.mxu1 %v8788_v33  ;;  %2022 = vmatprep.subr.bf16.mxu0 %v8799_v36  ;;  %v8875_v33 = vld [vmem:[%s10062_s18 + $0x928] ss:$16 sps:$4 sm:$0xff]   ;;  %v10325_v36 = vrot.slane %v10317_v31, %v10126_v49 }
  0xd3   : > { %2059 = vmatprep.subr.bf16.mxu1 %v8796_v35  ;;  %v8883_v35 = vld [vmem:[%s10062_s18 + $0xc2c] ss:$16 sps:$4 sm:$0xff]  }
  0xd5   : > { %2010 = vmatmul.mubr.bf16.vlgmr.msra.gmra.mxu1 %v10161_v11  ;;  %2023 = vmatpush1.bf16.msra.mxu0 %v8797_v38  ;;  %v8809_v11 = vld [vmem:[%s10062_s18 + $0x888] ss:$16 sps:$4 sm:$0xff]  }
  0xd6   : > { %2060 = vmatpush1.bf16.msra.mxu1 %v8794_v37  ;;  %2024 = vmatprep.subr.bf16.mxu0 %v8805_v40  ;;  %v8878_v37 = vld [vmem:[%s10062_s18 + $0xb48] ss:$16 sps:$4 sm:$0xff]   ;;  %v8889_v40 = vld [vmem:[%s10062_s18 + $0xe4] ss:$16 sps:$4 sm:$0xff]  }
  0xd7   : > { %2061 = vmatprep.subr.bf16.mxu1 %v8802_v39  ;;  %2091 = vmatprep.mubr.bf16.mxu1 %v10176_v22  ;;  %v8820_v22 = vld [vmem:[%s10062_s18 + $0xa8c] ss:$16 sps:$4 sm:$0xff]   ;;  %v8881_v38 = vld [vmem:[%s10062_s18 + $0xc28] ss:$16 sps:$4 sm:$0xff]  }
  0xd8   : > { %v8886_v39 = vld [vmem:[%s10062_s18 + $0xb2c] ss:$16 sps:$4 sm:$0xff]  }
  0xd9   : > { %2025 = vmatpush1.bf16.msra.mxu0 %v8803_v0  ;;  %v8884_v0 = vld [vmem:[%s10062_s18 + $0xb28] ss:$16 sps:$4 sm:$0xff]  }
  0xda   : > { %2062 = vmatpush1.bf16.msra.mxu1 %v8800_v41  ;;  %2026 = vmatprep.subr.bf16.mxu0 %v8811_v44  ;;  %v2157_v41 = vcombine.high %v10325_v36, %v10325_v36 }
  0xdb   : > { %2063 = vmatprep.subr.bf16.mxu1 %v8808_v42  ;;  %v8892_v42 = vld [vmem:[%s10062_s18 + $0x2e4] ss:$16 sps:$4 sm:$0xff]  }
  0xdc   : > { %v10338_v44 = vrot.slane %v2157_v41, %v10126_v49  ;;  %v8973_v41 = vld [vmem:[%s10062_s18 + $0x124] ss:$16 sps:$4 sm:$0xff]  }
  0xdd   : > { %2027 = vmatpush1.bf16.msra.mxu0 %v8809_v11  ;;  %v8890_v11 = vld [vmem:[%s10062_s18 + $0x2e0] ss:$16 sps:$4 sm:$0xff]  }
  0xde   : > { %2064 = vmatpush1.bf16.msra.mxu1 %v8806_v45  ;;  %2028 = vmatprep.subr.bf16.mxu0 %v8817_v47  ;;  %v8887_v45 = vld [vmem:[%s10062_s18 + $0xe0] ss:$16 sps:$4 sm:$0xff]   ;;  %v10346_v47 = vcombine.high %v10338_v44, %v10338_v44 }
  0xdf   : > { %2065 = vmatprep.subr.bf16.mxu1 %v8814_v46  ;;  %v8898_v46 = vld [vmem:[%s10062_s18 + $0x2c4] ss:$16 sps:$4 sm:$0xff]  }
  0xe1   : > { %2029 = vmatpush1.bf16.msra.mxu0 %v8815_v50  ;;  %v8896_v50 = vld [vmem:[%s10062_s18 + $0x2c0] ss:$16 sps:$4 sm:$0xff]  }
  0xe2   : > { %2066 = vmatpush1.bf16.msra.mxu1 %v8812_v48  ;;  %2030 = vmatprep.subr.bf16.mxu0 %v8823_v51  ;;  %v8893_v48 = vld [vmem:[%s10062_s18 + $0xc0] ss:$16 sps:$4 sm:$0xff]   ;;  %v8904_v51 = vld [vmem:[%s10062_s18 + $0x2a4] ss:$16 sps:$4 sm:$0xff]  }
  0xe3   : > { %2067 = vmatprep.subr.bf16.mxu1 %v8820_v22  ;;  %v8901_v22 = vld [vmem:[%s10062_s18 + $0xa4] ss:$16 sps:$4 sm:$0xff]  }
  0xe5   : > { %2031 = vmatpush1.bf16.msra.mxu0 %v8821_v53  ;;  %v8910_v53 = vld [vmem:[%s10062_s18 + $0x284] ss:$16 sps:$4 sm:$0xff]  }
  0xe6   : > { %2068 = vmatpush1.bf16.msra.mxu1 %v8818_v52  ;;  %2032 = vmatprep.subr.bf16.mxu0 %v8829_v55  ;;  %v8907_v52 = vld [vmem:[%s10062_s18 + $0x84] ss:$16 sps:$4 sm:$0xff]   ;;  %v8908_v55 = vld [vmem:[%s10062_s18 + $0x280] ss:$16 sps:$4 sm:$0xff]  }
  0xe7   : > { %2069 = vmatprep.subr.bf16.mxu1 %v8826_v54  ;;  %v8905_v54 = vld [vmem:[%s10062_s18 + $0x80] ss:$16 sps:$4 sm:$0xff]  }
  0xe9   : > { %2033 = vmatpush1.bf16.msra.mxu0 %v8827_v57  ;;  %v8916_v57 = vld [vmem:[%s10062_s18 + $0x264] ss:$16 sps:$4 sm:$0xff]  }
  0xea   : > { %2070 = vmatpush1.bf16.msra.mxu1 %v8824_v56  ;;  %2034 = vmatprep.subr.bf16.mxu0 %v8835_v59  ;;  %v8913_v56 = vld [vmem:[%s10062_s18 + $0x64] ss:$16 sps:$4 sm:$0xff]   ;;  %v8914_v59 = vld [vmem:[%s10062_s18 + $0x260] ss:$16 sps:$4 sm:$0xff]  }
  0xeb   : > { %2071 = vmatprep.subr.bf16.mxu1 %v8832_v58  ;;  %v8911_v58 = vld [vmem:[%s10062_s18 + $0x60] ss:$16 sps:$4 sm:$0xff]  }
  0xed   : > { %2035 = vmatpush2.bf16.msra.mxu0 %v8833_v61  ;;  %v8922_v61 = vld [vmem:[%s10062_s18 + $0x244] ss:$16 sps:$4 sm:$0xff]  }
  0xee   : > { %2072 = vmatpush1.bf16.msra.mxu1 %v8830_v60  ;;  %2036 = vmatprep.subr.bf16.mxu0 %v8841_v63  ;;  %v8919_v60 = vld [vmem:[%s10062_s18 + $0x44] ss:$16 sps:$4 sm:$0xff]   ;;  %v8920_v63 = vld [vmem:[%s10062_s18 + $0x240] ss:$16 sps:$4 sm:$0xff]  }
  0xef   : > { %2073 = vmatprep.subr.bf16.mxu1 %v8838_v62  ;;  %v8917_v62 = vld [vmem:[%s10062_s18 + $0x40] ss:$16 sps:$4 sm:$0xff]  }
  0xf1   : > { %2037 = vmatpush2.bf16.msra.mxu0 %v8839_v2  ;;  %v8928_v2 = vld [vmem:[%s10062_s18 + $0x224] ss:$16 sps:$4 sm:$0xff]  }
  0xf2   : > { %2074 = vmatpush1.bf16.msra.mxu1 %v8836_v1  ;;  %2038 = vmatprep.subr.bf16.mxu0 %v8847_v4  ;;  %v8925_v1 = vld [vmem:[%s10062_s18 + $0x24] ss:$16 sps:$4 sm:$0xff]   ;;  %v8926_v4 = vld [vmem:[%s10062_s18 + $0x220] ss:$16 sps:$4 sm:$0xff]  }
  0xf3   : > { %2075 = vmatprep.subr.bf16.mxu1 %v8844_v3  ;;  %v8923_v3 = vld [vmem:[%s10062_s18 + $0x20] ss:$16 sps:$4 sm:$0xff]  }
  0xf5   : > { %2039 = vmatpush2.bf16.msra.mxu0 %v8845_v6  ;;  %v8934_v6 = vld [vmem:[%s10062_s18 + $0x204] ss:$16 sps:$4 sm:$0xff]  }
  0xf6   : > { %2076 = vmatpush2.bf16.msra.mxu1 %v8842_v5  ;;  %2040 = vmatprep.subr.bf16.mxu0 %v8853_v8  ;;  %v8931_v5 = vld [vmem:[%s10062_s18 + $0x4] ss:$16 sps:$4 sm:$0xff]   ;;  %v8932_v8 = vld [vmem:[%s10062_s18 + $0x200] ss:$16 sps:$4 sm:$0xff]  }
  0xf7   : > { %2077 = vmatprep.subr.bf16.mxu1 %v8850_v7  ;;  %v8929_v7 = vld [vmem:[%s10062_s18] ss:$16 sps:$4 sm:$0xff]  }
  0xf9   : > { %2041 = vmatpush2.bf16.msra.mxu0 %v8851_v10  ;;  %v8940_v10 = vld [vmem:[%s10062_s18 + $0x3e4] ss:$16 sps:$4 sm:$0xff]  }
  0xfa   : > { %2078 = vmatpush2.bf16.msra.mxu1 %v8848_v9  ;;  %2042 = vmatprep.subr.bf16.mxu0 %v8859_v13  ;;  %v8937_v9 = vld [vmem:[%s10062_s18 + $0x1e4] ss:$16 sps:$4 sm:$0xff]   ;;  %v8938_v13 = vld [vmem:[%s10062_s18 + $0x3e0] ss:$16 sps:$4 sm:$0xff]  }
  0xfb   : > { %2079 = vmatprep.subr.bf16.mxu1 %v8856_v12  ;;  %v8935_v12 = vld [vmem:[%s10062_s18 + $0x1e0] ss:$16 sps:$4 sm:$0xff]  }
  0xfd   : > { %2043 = vmatpush2.bf16.msra.mxu0 %v8857_v15  ;;  %v8946_v15 = vld [vmem:[%s10062_s18 + $0x3c4] ss:$16 sps:$4 sm:$0xff]  }
  0xfe   : > { %2080 = vmatpush2.bf16.msra.mxu1 %v8854_v14  ;;  %2044 = vmatprep.subr.bf16.mxu0 %v8865_v18  ;;  %v8943_v14 = vld [vmem:[%s10062_s18 + $0x1c4] ss:$16 sps:$4 sm:$0xff]   ;;  %v8944_v18 = vld [vmem:[%s10062_s18 + $0x3c0] ss:$16 sps:$4 sm:$0xff]  }
  0xff   : > { %2081 = vmatprep.subr.bf16.mxu1 %v8862_v16  ;;  %v8941_v16 = vld [vmem:[%s10062_s18 + $0x1c0] ss:$16 sps:$4 sm:$0xff]  }
 0x101   : > { %2045 = vmatpush2.bf16.msra.mxu0 %v8863_v20  ;;  %v8952_v20 = vld [vmem:[%s10062_s18 + $0x3a4] ss:$16 sps:$4 sm:$0xff]  }
 0x102   : > { %2082 = vmatpush2.bf16.msra.mxu1 %v8860_v19  ;;  %2046 = vmatprep.subr.bf16.mxu0 %v8871_v24  ;;  %v8949_v19 = vld [vmem:[%s10062_s18 + $0x1a4] ss:$16 sps:$4 sm:$0xff]   ;;  %v8950_v24 = vld [vmem:[%s10062_s18 + $0x3a0] ss:$16 sps:$4 sm:$0xff]  }
 0x103   : > { %2083 = vmatprep.subr.bf16.mxu1 %v8868_v21  ;;  %v8947_v21 = vld [vmem:[%s10062_s18 + $0x1a0] ss:$16 sps:$4 sm:$0xff]  }
 0x105   : > { %2047 = vmatpush2.bf16.msra.mxu0 %v8869_v27  ;;  %v8958_v27 = vld [vmem:[%s10062_s18 + $0x384] ss:$16 sps:$4 sm:$0xff]  }
 0x106   : > { %2084 = vmatpush2.bf16.msra.mxu1 %v8866_v26  ;;  %2048 = vmatprep.subr.bf16.mxu0 %v8877_v30  ;;  %v8955_v26 = vld [vmem:[%s10062_s18 + $0x184] ss:$16 sps:$4 sm:$0xff]   ;;  %v8956_v30 = vld [vmem:[%s10062_s18 + $0x380] ss:$16 sps:$4 sm:$0xff]  }
 0x107   : > { %2085 = vmatprep.subr.bf16.mxu1 %v8874_v29  ;;  %v8953_v29 = vld [vmem:[%s10062_s18 + $0x180] ss:$16 sps:$4 sm:$0xff]  }
 0x109   : > { %2049 = vmatpush2.bf16.msra.mxu0 %v8875_v33  ;;  %v8964_v33 = vld [vmem:[%s10062_s18 + $0x364] ss:$16 sps:$4 sm:$0xff]  }
 0x10a   : > { %2086 = vmatpush2.bf16.msra.mxu1 %v8872_v32  ;;  %2114 = vmatprep.subr.bf16.mxu0 %v8883_v35  ;;  %v8961_v32 = vld [vmem:[%s10062_s18 + $0x164] ss:$16 sps:$4 sm:$0xff]   ;;  %v8962_v35 = vld [vmem:[%s10062_s18 + $0x360] ss:$16 sps:$4 sm:$0xff]  }
 0x10b   : > { %2087 = vmatprep.subr.bf16.mxu1 %v8880_v34  ;;  %v8959_v34 = vld [vmem:[%s10062_s18 + $0x160] ss:$16 sps:$4 sm:$0xff]  }
 0x10c   : > { %2051 = vmatmul.mubr.bf16.vlgmr.msra.gmra.mxu0 %v10169_v17  ;;  %v8895_v17 = vld [vmem:[%s10062_s18 + $0xc4] ss:$16 sps:$4 sm:$0xff]  }
 0x10d   : > { %2115 = vmatpush1.bf16.msra.mxu0 %v8881_v38  ;;  %2132 = vmatprep.mubr.bf16.mxu0 %v9918_v25  ;;  %v8970_v38 = vld [vmem:[%s10062_s18 + $0x344] ss:$16 sps:$4 sm:$0xff]  }
 0x10e   : > { %2088 = vmatpush2.bf16.msra.mxu1 %v8878_v37  ;;  %3179 = vmatprep.subr.bf16.mxu0 %v8889_v40  ;;  %v8967_v37 = vld [vmem:[%s10062_s18 + $0x144] ss:$16 sps:$4 sm:$0xff]   ;;  %v8968_v40 = vld [vmem:[%s10062_s18 + $0x340] ss:$16 sps:$4 sm:$0xff]  }
 0x10f   : > { %2089 = vmatprep.subr.bf16.mxu1 %v8886_v39  ;;  %v8965_v39 = vld [vmem:[%s10062_s18 + $0x140] ss:$16 sps:$4 sm:$0xff]  }
 0x112   : > { %2090 = vmatpush2.bf16.msra.mxu1 %v8884_v0  ;;  %v8976_v0 = vld [vmem:[%s10062_s18 + $0x324] ss:$16 sps:$4 sm:$0xff]  }
 0x113   : > { %3220 = vmatprep.subr.bf16.mxu1 %v8892_v42  ;;  %v8971_v42 = vld [vmem:[%s10062_s18 + $0x120] ss:$16 sps:$4 sm:$0xff]  }
 0x114   : > { %7456 = vmatmul.mubr.msk.bf16.vlgmr.msra.gmra.mxu0 %vm1809_vm0, %v10190_v28  ;;  %v8902_v28 = vld [vmem:[%s10062_s18 + $0x2a0] ss:$16 sps:$4 sm:$0xff]  }
 0x115   : > { %2092 = vmatmul.mubr.bf16.vlgmr.msra.gmra.mxu1 %v10179_v23  ;;  %3180 = vmatpush1.bf16.msra.mxu0 %v8887_v45  ;;  %v8899_v23 = vld [vmem:[%s10062_s18 + $0xa0] ss:$16 sps:$4 sm:$0xff]  }
 0x116   : > { %3221 = vmatpush1.bf16.msra.mxu1 %v8890_v11  ;;  %3181 = vmatprep.subr.bf16.mxu0 %v8895_v17  ;;  %v8974_v45 = vld [vmem:[%s10062_s18 + $0x320] ss:$16 sps:$4 sm:$0xff]   ;;  %v2142_v11 = vcombine.high %v10317_v31, %v10317_v31  ;;  %v8979_v17 = vld [vmem:[%s10062_s18 + $0x104] ss:$16 sps:$4 sm:$0xff]  }
 0x117   : > { %3222 = vmatprep.subr.bf16.mxu1 %v8898_v46  ;;  %3211 = vmatprep.mubr.bf16.mxu0 %v10338_v44  ;;  %v8982_v46 = vld [vmem:[%s10062_s18 + $0x304] ss:$16 sps:$4 sm:$0xff]  }
 0x118   : > { %3252 = vmatprep.mubr.bf16.mxu1 %v10346_v47  ;;  %v2156_v31 = vrot.slane %v2142_v11, %v10126_v49  ;;  %v9037_v11 = vld [vmem:[%s10062_s18 + $0xc] ss:$16 sps:$4 sm:$0xff]  }
 0x119   : > { %3182 = vmatpush1.bf16.msra.mxu0 %v8893_v48  ;;  %v8977_v48 = vld [vmem:[%s10062_s18 + $0x100] ss:$16 sps:$4 sm:$0xff]  }
 0x11a   : > { %3223 = vmatpush1.bf16.msra.mxu1 %v8896_v50  ;;  %3183 = vmatprep.subr.bf16.mxu0 %v8901_v22  ;;  %v8980_v50 = vld [vmem:[%s10062_s18 + $0x300] ss:$16 sps:$4 sm:$0xff]  }
 0x11b   : > { %3224 = vmatprep.subr.bf16.mxu1 %v8904_v51 }
 0x11d   : > { %3184 = vmatpush1.bf16.msra.mxu0 %v8899_v23  ;;  %v10415_v23 = vrot.slane %v10325_v36, %v10126_v49  ;;  %v8987_v36 = vld [vmem:[%s10062_s18 + $0x600] ss:$16 sps:$4 sm:$0xff]  }
 0x11e   : > { %3225 = vmatpush1.bf16.msra.mxu1 %v8902_v28  ;;  %3185 = vmatprep.subr.bf16.mxu0 %v8907_v52  ;;  %v8986_v28 = vld [vmem:[%s10062_s18 + $0x4e4] ss:$16 sps:$4 sm:$0xff]  }
 0x11f   : > { %3226 = vmatprep.subr.bf16.mxu1 %v8910_v53 }
 0x121   : > { %3186 = vmatpush1.bf16.msra.mxu0 %v8905_v54 }
 0x122   : > { %3227 = vmatpush1.bf16.msra.mxu1 %v8908_v55  ;;  %3187 = vmatprep.subr.bf16.mxu0 %v8913_v56  ;;  %v8989_v55 = vld [vmem:[%s10062_s18 + $0x604] ss:$16 sps:$4 sm:$0xff]  }
 0x123   : > { %3228 = vmatprep.subr.bf16.mxu1 %v8916_v57  ;;  %v8984_v57 = vld [vmem:[%s10062_s18 + $0x4e0] ss:$16 sps:$4 sm:$0xff]  }
 0x125   : > { %3188 = vmatpush1.bf16.msra.mxu0 %v8911_v58  ;;  %v2158_v58 = vcombine.high %v2156_v31, %v2156_v31 }
 0x126   : > { %3229 = vmatpush1.bf16.msra.mxu1 %v8914_v59  ;;  %3189 = vmatprep.subr.bf16.mxu0 %v8919_v60 }
 0x127   : > { %3230 = vmatprep.subr.bf16.mxu1 %v8922_v61  ;;  %v10428_v61 = vcombine.high %v10415_v23, %v10415_v23 }
 0x129   : > { %3190 = vmatpush1.bf16.msra.mxu0 %v8917_v62 }
 0x12a   : > { %3231 = vmatpush1.bf16.msra.mxu1 %v8920_v63  ;;  %3191 = vmatprep.subr.bf16.mxu0 %v8925_v1  ;;  %v8992_v1 = vld [vmem:[%s10062_s18 + $0x4c4] ss:$16 sps:$4 sm:$0xff]  }
 0x12b   : > { %3232 = vmatprep.subr.bf16.mxu1 %v8928_v2  ;;  %v8995_v2 = vld [vmem:[%s10062_s18 + $0xec] ss:$16 sps:$4 sm:$0xff]  }
 0x12d   : > { %3192 = vmatpush1.bf16.msra.mxu0 %v8923_v3  ;;  %v8990_v3 = vld [vmem:[%s10062_s18 + $0x4c0] ss:$16 sps:$4 sm:$0xff]  }
 0x12e   : > { %3233 = vmatpush1.bf16.msra.mxu1 %v8926_v4  ;;  %3193 = vmatprep.subr.bf16.mxu0 %v8931_v5  ;;  %v10434_v4 = vrot.slane %v2158_v58, %v10126_v49  ;;  %v10437_v5 = vrot.slane %v2156_v31, %v10126_v49  ;;  %v9049_v31 = vld [vmem:[%s10062_s18 + $0x1cc] ss:$16 sps:$4 sm:$0xff]   ;;  %v9053_v58 = vld [vmem:[%s10062_s18 + $0x1a8] ss:$16 sps:$4 sm:$0xff]  }
 0x12f   : > { %3234 = vmatprep.subr.bf16.mxu1 %v8934_v6 }
 0x131   : > { %3194 = vmatpush1.bf16.msra.mxu0 %v8929_v7 }
 0x132   : > { %3235 = vmatpush1.bf16.msra.mxu1 %v8932_v8  ;;  %3195 = vmatprep.subr.bf16.mxu0 %v8937_v9  ;;  %v8998_v8 = vld [vmem:[%s10062_s18 + $0x4a4] ss:$16 sps:$4 sm:$0xff]   ;;  %v8993_v9 = vld [vmem:[%s10062_s18 + $0xe8] ss:$16 sps:$4 sm:$0xff]  }
 0x133   : > { %3236 = vmatprep.subr.bf16.mxu1 %v8940_v10  ;;  %v8996_v10 = vld [vmem:[%s10062_s18 + $0x4a0] ss:$16 sps:$4 sm:$0xff]  }
 0x135   : > { %3196 = vmatpush2.bf16.msra.mxu0 %v8935_v12 }
 0x136   : > { %3237 = vmatpush2.bf16.msra.mxu1 %v8938_v13  ;;  %3197 = vmatprep.subr.bf16.mxu0 %v8943_v14  ;;  %v10452_v13 = vcombine.high %v10437_v5, %v10437_v5 }
 0x137   : > { %3238 = vmatprep.subr.bf16.mxu1 %v8946_v15  ;;  %v9001_v15 = vld [vmem:[%s10062_s18 + $0xcc] ss:$16 sps:$4 sm:$0xff]  }
 0x139   : > { %3198 = vmatpush2.bf16.msra.mxu0 %v8941_v16  ;;  %v9004_v16 = vld [vmem:[%s10062_s18 + $0x484] ss:$16 sps:$4 sm:$0xff]  }
 0x13a   : > { %3239 = vmatpush2.bf16.msra.mxu1 %v8944_v18  ;;  %3199 = vmatprep.subr.bf16.mxu0 %v8949_v19  ;;  %v8999_v18 = vld [vmem:[%s10062_s18 + $0xc8] ss:$16 sps:$4 sm:$0xff]   ;;  %v9002_v19 = vld [vmem:[%s10062_s18 + $0x480] ss:$16 sps:$4 sm:$0xff]  }
 0x13b   : > { %3240 = vmatprep.subr.bf16.mxu1 %v8952_v20  ;;  %v9007_v20 = vld [vmem:[%s10062_s18 + $0xac] ss:$16 sps:$4 sm:$0xff]  }
 0x13d   : > { %3200 = vmatpush2.bf16.msra.mxu0 %v8947_v21  ;;  %v9010_v21 = vld [vmem:[%s10062_s18 + $0x464] ss:$16 sps:$4 sm:$0xff]  }
 0x13e   : > { %3241 = vmatpush2.bf16.msra.mxu1 %v8950_v24  ;;  %3201 = vmatprep.subr.bf16.mxu0 %v8955_v26  ;;  %v9005_v24 = vld [vmem:[%s10062_s18 + $0xa8] ss:$16 sps:$4 sm:$0xff]   ;;  %v9008_v26 = vld [vmem:[%s10062_s18 + $0x460] ss:$16 sps:$4 sm:$0xff]  }
 0x13f   : > { %3242 = vmatprep.subr.bf16.mxu1 %v8958_v27  ;;  %v9013_v27 = vld [vmem:[%s10062_s18 + $0x8c] ss:$16 sps:$4 sm:$0xff]  }
 0x141   : > { %3202 = vmatpush2.bf16.msra.mxu0 %v8953_v29  ;;  %v9016_v29 = vld [vmem:[%s10062_s18 + $0x444] ss:$16 sps:$4 sm:$0xff]  }
 0x142   : > { %3243 = vmatpush2.bf16.msra.mxu1 %v8956_v30  ;;  %3203 = vmatprep.subr.bf16.mxu0 %v8961_v32  ;;  %v9011_v30 = vld [vmem:[%s10062_s18 + $0x88] ss:$16 sps:$4 sm:$0xff]   ;;  %v9014_v32 = vld [vmem:[%s10062_s18 + $0x440] ss:$16 sps:$4 sm:$0xff]  }
 0x143   : > { %3244 = vmatprep.subr.bf16.mxu1 %v8964_v33  ;;  %v9022_v33 = vld [vmem:[%s10062_s18 + $0x424] ss:$16 sps:$4 sm:$0xff]  }
 0x145   : > { %3204 = vmatpush2.bf16.msra.mxu0 %v8959_v34  ;;  %v9017_v34 = vld [vmem:[%s10062_s18 + $0x68] ss:$16 sps:$4 sm:$0xff]  }
 0x146   : > { %3245 = vmatpush2.bf16.msra.mxu1 %v8962_v35  ;;  %3205 = vmatprep.subr.bf16.mxu0 %v8967_v37  ;;  %v9020_v35 = vld [vmem:[%s10062_s18 + $0x420] ss:$16 sps:$4 sm:$0xff]   ;;  %v9025_v37 = vld [vmem:[%s10062_s18 + $0x4c] ss:$16 sps:$4 sm:$0xff]  }
 0x147   : > { %3246 = vmatprep.subr.bf16.mxu1 %v8970_v38  ;;  %v9028_v38 = vld [vmem:[%s10062_s18 + $0x404] ss:$16 sps:$4 sm:$0xff]  }
 0x149   : > { %3206 = vmatpush2.bf16.msra.mxu0 %v8965_v39  ;;  %v9023_v39 = vld [vmem:[%s10062_s18 + $0x48] ss:$16 sps:$4 sm:$0xff]  }
 0x14a   : > { %3247 = vmatpush2.bf16.msra.mxu1 %v8968_v40  ;;  %3207 = vmatprep.subr.bf16.mxu0 %v8973_v41  ;;  %v9026_v40 = vld [vmem:[%s10062_s18 + $0x400] ss:$16 sps:$4 sm:$0xff]   ;;  %v9031_v41 = vld [vmem:[%s10062_s18 + $0x2c] ss:$16 sps:$4 sm:$0xff]  }
 0x14b   : > { %3248 = vmatprep.subr.bf16.mxu1 %v8976_v0  ;;  %v9034_v0 = vld [vmem:[%s10062_s18 + $0x5e4] ss:$16 sps:$4 sm:$0xff]  }
 0x14c   : > { %v1847_v22 = vpop.f32.mrf.mxu0 }
 0x14d   : > { %v1888_v51 = vpop.f32.mrf.mxu1  ;;  %3208 = vmatpush2.bf16.msra.mxu0 %v8971_v42  ;;  %v9029_v42 = vld [vmem:[%s10062_s18 + $0x28] ss:$16 sps:$4 sm:$0xff]  }
 0x14e   : > { %v10418_v52 = vadd.f32 %v1888_v51, %v1847_v22  ;;  %3249 = vmatpush2.bf16.msra.mxu1 %v8974_v45  ;;  %v1849_v53 = vpop.f32.mrf.mxu0  ;;  %3209 = vmatprep.subr.bf16.mxu0 %v8979_v17  ;;  %v9032_v45 = vld [vmem:[%s10062_s18 + $0x5e0] ss:$16 sps:$4 sm:$0xff]   ;;  %v9040_v17 = vld [vmem:[%s10062_s18 + $0x5c4] ss:$16 sps:$4 sm:$0xff]   ;;  %v9041_v51 = vld [vmem:[%s10062_s18 + $0x1e8] ss:$16 sps:$4 sm:$0xff]  }
 0x14f   : > { %v1890_v54 = vpop.f32.mrf.mxu1  ;;  %3250 = vmatprep.subr.bf16.mxu1 %v8982_v46  ;;  %v9035_v46 = vld [vmem:[%s10062_s18 + $0x8] ss:$16 sps:$4 sm:$0xff]   ;;  %v9046_v22 = vld [vmem:[%s10062_s18 + $0x5a4] ss:$16 sps:$4 sm:$0xff]  }
 0x150   : > { %v10422_v56 = vadd.f32 %v1890_v54, %v1849_v53  ;;  %v1851_v59 = vpop.f32.mrf.mxu0  ;;  %v9052_v53 = vld [vmem:[%s10062_s18 + $0x584] ss:$16 sps:$4 sm:$0xff]   ;;  %v9047_v54 = vld [vmem:[%s10062_s18 + $0x1c8] ss:$16 sps:$4 sm:$0xff]  }
 0x151   : > { %v1892_v60 = vpop.f32.mrf.mxu1  ;;  %3210 = vmatpush2.bf16.msra.mxu0 %v8977_v48  ;;  %v9038_v48 = vld [vmem:[%s10062_s18 + $0x5c0] ss:$16 sps:$4 sm:$0xff]  }
 0x152   : > { %3251 = vmatpush2.bf16.msra.mxu1 %v8980_v50  ;;  %v1852_v62 = vpop.f32.mrf.mxu0  ;;  %3261 = vmatprep.subr.bf16.mxu0 %v8986_v28  ;;  %v9043_v50 = vld [vmem:[%s10062_s18 + $0x1ec] ss:$16 sps:$4 sm:$0xff]   ;;  %v9044_v28 = vld [vmem:[%s10062_s18 + $0x5a0] ss:$16 sps:$4 sm:$0xff]  }
 0x153   : > { %v1893_v63 = vpop.f32.mrf.mxu1  ;;  %3316 = vmatprep.subr.bf16.mxu1 %v8989_v55  ;;  %v9050_v55 = vld [vmem:[%s10062_s18 + $0x580] ss:$16 sps:$4 sm:$0xff]   ;;  %v9061_v60 = vld [vmem:[%s10062_s18 + $0x18c] ss:$16 sps:$4 sm:$0xff]   ;;  %v9064_v62 = vld [vmem:[%s10062_s18 + $0x544] ss:$16 sps:$4 sm:$0xff]  }
 0x154   : > { %3212 = vmatmul.mubr.bf16.vlgmr.msra.gmra.mxu0 %v10415_v23  ;;  %v9056_v59 = vld [vmem:[%s10062_s18 + $0x560] ss:$16 sps:$4 sm:$0xff]   ;;  %v9059_v63 = vld [vmem:[%s10062_s18 + $0x188] ss:$16 sps:$4 sm:$0xff]  }
 0x155   : > { %3253 = vmatmul.mubr.bf16.vlgmr.msra.gmra.mxu1 %v10428_v61  ;;  %v10441_v6 = vpop.f32.mrf.mxu1  ;;  %3262 = vmatpush1.bf16.msra.mxu0 %v8984_v57  ;;  %v9055_v57 = vld [vmem:[%s10062_s18 + $0x1ac] ss:$16 sps:$4 sm:$0xff]  }
 0x156   : > { %3317 = vmatpush1.bf16.msra.mxu1 %v8987_v36  ;;  %3263 = vmatprep.subr.bf16.mxu0 %v8992_v1  ;;  %v9058_v36 = vld [vmem:[%s10062_s18 + $0x564] ss:$16 sps:$4 sm:$0xff]   ;;  %v9062_v1 = vld [vmem:[%s10062_s18 + $0x540] ss:$16 sps:$4 sm:$0xff]  }
 0x157   : > { %v10443_v7 = vpop.f32.mrf.mxu1  ;;  %3334 = vmatprep.mubr.bf16.mxu1 %v9918_v25  ;;  %3343 = vmatprep.subr.bf16.mxu1 %v8995_v2  ;;  %v9067_v2 = vld [vmem:[%s10062_s18 + $0x16c] ss:$16 sps:$4 sm:$0xff]  }
 0x158   : > { %3293 = vmatprep.mubr.bf16.mxu0 %v10434_v4 }
 0x159   : > { %v1974_v12 = vpop.f32.mrf.mxu1  ;;  %3264 = vmatpush1.bf16.msra.mxu0 %v8990_v3  ;;  %v9070_v3 = vld [vmem:[%s10062_s18 + $0x524] ss:$16 sps:$4 sm:$0xff]  }
 0x15a   : > { %3265 = vmatprep.subr.bf16.mxu0 %v8998_v8  ;;  %v9065_v8 = vld [vmem:[%s10062_s18 + $0x168] ss:$16 sps:$4 sm:$0xff]   ;;  %v9076_v12 = vld [vmem:[%s10062_s18 + $0x504] ss:$16 sps:$4 sm:$0xff]  }
 0x15b   : > { %v1975_v14 = vpop.f32.mrf.mxu1 }
 0x15d   : > { %7653 = vmatmul.mubr.msk.bf16.vlgmr.msra.gmra.mxu1 %vm1809_vm0, %v10452_v13  ;;  %3266 = vmatpush1.bf16.msra.mxu0 %v8996_v10  ;;  %v9073_v10 = vld [vmem:[%s10062_s18 + $0x14c] ss:$16 sps:$4 sm:$0xff]  }
 0x15e   : > { %3344 = vmatpush1.bf16.msra.mxu1 %v8993_v9  ;;  %3267 = vmatprep.subr.bf16.mxu0 %v9004_v16  ;;  %v9068_v9 = vld [vmem:[%s10062_s18 + $0x520] ss:$16 sps:$4 sm:$0xff]   ;;  %v9071_v16 = vld [vmem:[%s10062_s18 + $0x148] ss:$16 sps:$4 sm:$0xff]  }
 0x15f   : > { %3345 = vmatprep.subr.bf16.mxu1 %v9001_v15  ;;  %3375 = vmatprep.mubr.bf16.mxu1 %v10338_v44  ;;  %v9019_v44 = vld [vmem:[%s10062_s18 + $0x6c] ss:$16 sps:$4 sm:$0xff]  }
 0x161   : > { %3268 = vmatpush1.bf16.msra.mxu0 %v9002_v19 }
 0x162   : > { %3346 = vmatpush1.bf16.msra.mxu1 %v8999_v18  ;;  %3269 = vmatprep.subr.bf16.mxu0 %v9010_v21  ;;  %v9074_v18 = vld [vmem:[%s10062_s18 + $0x500] ss:$16 sps:$4 sm:$0xff]   ;;  %v9082_v21 = vld [vmem:[%s10062_s18 + $0x2ec] ss:$16 sps:$4 sm:$0xff]  }
 0x163   : > { %3347 = vmatprep.subr.bf16.mxu1 %v9007_v20  ;;  %v9079_v20 = vld [vmem:[%s10062_s18 + $0x12c] ss:$16 sps:$4 sm:$0xff]  }
 0x165   : > { %3270 = vmatpush1.bf16.msra.mxu0 %v9008_v26 }
 0x166   : > { %3348 = vmatpush1.bf16.msra.mxu1 %v9005_v24  ;;  %3271 = vmatprep.subr.bf16.mxu0 %v9016_v29  ;;  %v9080_v29 = vld [vmem:[%s10062_s18 + $0x2e8] ss:$16 sps:$4 sm:$0xff]  }
 0x167   : > { %3349 = vmatprep.subr.bf16.mxu1 %v9013_v27 }
 0x169   : > { %3272 = vmatpush1.bf16.msra.mxu0 %v9014_v32 }
 0x16a   : > { %3350 = vmatpush1.bf16.msra.mxu1 %v9011_v30  ;;  %3273 = vmatprep.subr.bf16.mxu0 %v9022_v33  ;;  %v9086_v33 = vld [vmem:[%s10062_s18 + $0x2c8] ss:$16 sps:$4 sm:$0xff]  }
 0x16b   : > { %3351 = vmatprep.subr.bf16.mxu1 %v9019_v44  ;;  %v9085_v44 = vld [vmem:[%s10062_s18 + $0x10c] ss:$16 sps:$4 sm:$0xff]  }
 0x16d   : > { %3274 = vmatpush1.bf16.msra.mxu0 %v9020_v35  ;;  %v9091_v35 = vld [vmem:[%s10062_s18 + $0x4ec] ss:$16 sps:$4 sm:$0xff]  }
 0x16e   : > { %3352 = vmatpush1.bf16.msra.mxu1 %v9017_v34  ;;  %3275 = vmatprep.subr.bf16.mxu0 %v9028_v38  ;;  %v9089_v38 = vld [vmem:[%s10062_s18 + $0x4e8] ss:$16 sps:$4 sm:$0xff]  }
 0x16f   : > { %3353 = vmatprep.subr.bf16.mxu1 %v9025_v37  ;;  %v9094_v37 = vld [vmem:[%s10062_s18 + $0x2ac] ss:$16 sps:$4 sm:$0xff]  }
 0x171   : > { %3276 = vmatpush1.bf16.msra.mxu0 %v9026_v40 }
 0x172   : > { %3354 = vmatpush1.bf16.msra.mxu1 %v9023_v39  ;;  %3277 = vmatprep.subr.bf16.mxu0 %v9034_v0  ;;  %v9092_v39 = vld [vmem:[%s10062_s18 + $0x2a8] ss:$16 sps:$4 sm:$0xff]  }
 0x173   : > { %3355 = vmatprep.subr.bf16.mxu1 %v9031_v41  ;;  %v9097_v41 = vld [vmem:[%s10062_s18 + $0x4cc] ss:$16 sps:$4 sm:$0xff]  }
 0x175   : > { %3278 = vmatpush2.bf16.msra.mxu0 %v9032_v45  ;;  %v9095_v45 = vld [vmem:[%s10062_s18 + $0x4c8] ss:$16 sps:$4 sm:$0xff]  }
 0x176   : > { %3356 = vmatpush1.bf16.msra.mxu1 %v9029_v42  ;;  %3279 = vmatprep.subr.bf16.mxu0 %v9040_v17  ;;  %v9100_v42 = vld [vmem:[%s10062_s18 + $0x28c] ss:$16 sps:$4 sm:$0xff]  }
 0x177   : > { %3357 = vmatprep.subr.bf16.mxu1 %v9037_v11  ;;  %v9098_v11 = vld [vmem:[%s10062_s18 + $0x288] ss:$16 sps:$4 sm:$0xff]   ;;  %v9106_v17 = vld [vmem:[%s10062_s18 + $0x26c] ss:$16 sps:$4 sm:$0xff]  }
 0x179   : > { %3280 = vmatpush2.bf16.msra.mxu0 %v9038_v48  ;;  %v9109_v48 = vld [vmem:[%s10062_s18 + $0x48c] ss:$16 sps:$4 sm:$0xff]  }
 0x17a   : > { %3358 = vmatpush1.bf16.msra.mxu1 %v9035_v46  ;;  %3281 = vmatprep.subr.bf16.mxu0 %v9046_v22  ;;  %v9101_v46 = vld [vmem:[%s10062_s18 + $0x4a8] ss:$16 sps:$4 sm:$0xff]  }
 0x17b   : > { %3359 = vmatprep.subr.bf16.mxu1 %v9043_v50  ;;  %v9112_v50 = vld [vmem:[%s10062_s18 + $0x24c] ss:$16 sps:$4 sm:$0xff]   ;;  %v9107_v22 = vld [vmem:[%s10062_s18 + $0x488] ss:$16 sps:$4 sm:$0xff]  }
 0x17d   : > { %3282 = vmatpush2.bf16.msra.mxu0 %v9044_v28  ;;  %v9118_v28 = vld [vmem:[%s10062_s18 + $0x22c] ss:$16 sps:$4 sm:$0xff]  }
 0x17e   : > { %3360 = vmatpush2.bf16.msra.mxu1 %v9041_v51  ;;  %3283 = vmatprep.subr.bf16.mxu0 %v9052_v53  ;;  %v9110_v51 = vld [vmem:[%s10062_s18 + $0x248] ss:$16 sps:$4 sm:$0xff]  }
 0x17f   : > { %3361 = vmatprep.subr.bf16.mxu1 %v9049_v31  ;;  %v9113_v31 = vld [vmem:[%s10062_s18 + $0x468] ss:$16 sps:$4 sm:$0xff]  }
 0x180   : > { %v9116_v53 = vld [vmem:[%s10062_s18 + $0x228] ss:$16 sps:$4 sm:$0xff]  }
 0x181   : > { %3284 = vmatpush2.bf16.msra.mxu0 %v9050_v55  ;;  %v9124_v55 = vld [vmem:[%s10062_s18 + $0x20c] ss:$16 sps:$4 sm:$0xff]  }
 0x182   : > { %3362 = vmatpush2.bf16.msra.mxu1 %v9047_v54  ;;  %3285 = vmatprep.subr.bf16.mxu0 %v9058_v36  ;;  %v9121_v54 = vld [vmem:[%s10062_s18 + $0x44c] ss:$16 sps:$4 sm:$0xff]   ;;  %v9122_v36 = vld [vmem:[%s10062_s18 + $0x208] ss:$16 sps:$4 sm:$0xff]  }
 0x183   : > { %3363 = vmatprep.subr.bf16.mxu1 %v9055_v57  ;;  %v9119_v57 = vld [vmem:[%s10062_s18 + $0x448] ss:$16 sps:$4 sm:$0xff]  }
 0x185   : > { %3286 = vmatpush2.bf16.msra.mxu0 %v9056_v59  ;;  %v9130_v59 = vld [vmem:[%s10062_s18 + $0x3ec] ss:$16 sps:$4 sm:$0xff]  }
 0x186   : > { %3364 = vmatpush2.bf16.msra.mxu1 %v9053_v58  ;;  %3287 = vmatprep.subr.bf16.mxu0 %v9064_v62  ;;  %v9127_v58 = vld [vmem:[%s10062_s18 + $0x42c] ss:$16 sps:$4 sm:$0xff]   ;;  %v9128_v62 = vld [vmem:[%s10062_s18 + $0x3e8] ss:$16 sps:$4 sm:$0xff]  }
 0x187   : > { %3365 = vmatprep.subr.bf16.mxu1 %v9061_v60  ;;  %v9125_v60 = vld [vmem:[%s10062_s18 + $0x428] ss:$16 sps:$4 sm:$0xff]  }
 0x189   : > { %3288 = vmatpush2.bf16.msra.mxu0 %v9062_v1  ;;  %v9136_v1 = vld [vmem:[%s10062_s18 + $0x3cc] ss:$16 sps:$4 sm:$0xff]  }
 0x18a   : > { %3366 = vmatpush2.bf16.msra.mxu1 %v9059_v63  ;;  %3289 = vmatprep.subr.bf16.mxu0 %v9070_v3  ;;  %v9133_v63 = vld [vmem:[%s10062_s18 + $0x40c] ss:$16 sps:$4 sm:$0xff]   ;;  %v9134_v3 = vld [vmem:[%s10062_s18 + $0x3c8] ss:$16 sps:$4 sm:$0xff]  }
 0x18b   : > { %3367 = vmatprep.subr.bf16.mxu1 %v9067_v2  ;;  %v9131_v2 = vld [vmem:[%s10062_s18 + $0x408] ss:$16 sps:$4 sm:$0xff]  }
 0x18c   : > { %v1929_v14 = vpop.f32.mrf.mxu0 }
 0x18d   : > { %v1930_v15 = vadd.f32 %v1929_v14, %v10418_v52  ;;  %3290 = vmatpush2.bf16.msra.mxu0 %v9068_v9  ;;  %v9077_v52 = vld [vmem:[%s10062_s18 + $0x128] ss:$16 sps:$4 sm:$0xff]   ;;  %v9142_v9 = vld [vmem:[%s10062_s18 + $0x3ac] ss:$16 sps:$4 sm:$0xff]  }
 0x18e   : > { %3368 = vmatpush2.bf16.msra.mxu1 %v9065_v8  ;;  %v1931_v19 = vpop.f32.mrf.mxu0  ;;  %3291 = vmatprep.subr.bf16.mxu0 %v9076_v12  ;;  %v9139_v8 = vld [vmem:[%s10062_s18 + $0x5ec] ss:$16 sps:$4 sm:$0xff]   ;;  %v9140_v12 = vld [vmem:[%s10062_s18 + $0x3a8] ss:$16 sps:$4 sm:$0xff]  }
 0x18f   : > { %3369 = vmatprep.subr.bf16.mxu1 %v9073_v10  ;;  %v1932_v24 = vadd.f32 %v1931_v19, %v10422_v56  ;;  %v10514_v26 = vadd.f32 %v10441_v6, %v1930_v15  ;;  %v9088_v56 = vld [vmem:[%s10062_s18 + $0x2cc] ss:$16 sps:$4 sm:$0xff]   ;;  %v9083_v6 = vld [vmem:[%s10062_s18 + $0x108] ss:$16 sps:$4 sm:$0xff]  }
 0x190   : > { %v1933_v27 = vpop.f32.mrf.mxu0  ;;  %v9137_v10 = vld [vmem:[%s10062_s18 + $0x5e8] ss:$16 sps:$4 sm:$0xff]   ;;  %v9145_v14 = vld [vmem:[%s10062_s18 + $0x5cc] ss:$16 sps:$4 sm:$0xff]  }
 0x191   : > { %3292 = vmatpush2.bf16.msra.mxu0 %v9074_v18  ;;  %v10519_v30 = vadd.f32 %v10443_v7, %v1932_v24  ;;  %v9148_v15 = vld [vmem:[%s10062_s18 + $0x38c] ss:$16 sps:$4 sm:$0xff]   ;;  %v9146_v18 = vld [vmem:[%s10062_s18 + $0x388] ss:$16 sps:$4 sm:$0xff]  }
 0x192   : > { %3370 = vmatpush2.bf16.msra.mxu1 %v9071_v16  ;;  %v1934_v32 = vpop.f32.mrf.mxu0  ;;  %3384 = vmatprep.subr.bf16.mxu0 %v9082_v21  ;;  %v9143_v16 = vld [vmem:[%s10062_s18 + $0x5c8] ss:$16 sps:$4 sm:$0xff]   ;;  %v9151_v19 = vld [vmem:[%s10062_s18 + $0x5ac] ss:$16 sps:$4 sm:$0xff]  }
 0x193   : > { %3371 = vmatprep.subr.bf16.mxu1 %v9079_v20  ;;  %v9154_v20 = vld [vmem:[%s10062_s18 + $0x36c] ss:$16 sps:$4 sm:$0xff]   ;;  %v9149_v21 = vld [vmem:[%s10062_s18 + $0x5a8] ss:$16 sps:$4 sm:$0xff]  }
 0x194   : > { %3294 = vmatmul.mubr.bf16.vlgmr.msra.gmra.mxu0 %v10437_v5  ;;  %v9152_v24 = vld [vmem:[%s10062_s18 + $0x368] ss:$16 sps:$4 sm:$0xff]   ;;  %v9157_v27 = vld [vmem:[%s10062_s18 + $0x58c] ss:$16 sps:$4 sm:$0xff]  }
 0x195   : > { %v10525_v34 = vpop.f32.mrf.mxu1  ;;  %3385 = vmatpush1.bf16.msra.mxu0 %v9080_v29  ;;  %3416 = vmatprep.mubr.bf16.mxu0 %v10346_v47  ;;  %v9103_v47 = vld [vmem:[%s10062_s18 + $0x4ac] ss:$16 sps:$4 sm:$0xff]   ;;  %v9155_v29 = vld [vmem:[%s10062_s18 + $0x588] ss:$16 sps:$4 sm:$0xff]  }
 0x196   : > { %3372 = vmatpush2.bf16.msra.mxu1 %v9077_v52  ;;  %3386 = vmatprep.subr.bf16.mxu0 %v9088_v56  ;;  %v9160_v52 = vld [vmem:[%s10062_s18 + $0x34c] ss:$16 sps:$4 sm:$0xff]   ;;  %v9158_v32 = vld [vmem:[%s10062_s18 + $0x348] ss:$16 sps:$4 sm:$0xff]  }
 0x197   : > { %v10528_v7 = vpop.f32.mrf.mxu1  ;;  %3373 = vmatprep.subr.bf16.mxu1 %v9085_v44  ;;  %v9163_v44 = vld [vmem:[%s10062_s18 + $0x56c] ss:$16 sps:$4 sm:$0xff]  }
 0x198   : > { %v9166_v56 = vld [vmem:[%s10062_s18 + $0x32c] ss:$16 sps:$4 sm:$0xff]  }
 0x199   : > { %v2015_v40 = vpop.f32.mrf.mxu1  ;;  %3387 = vmatpush1.bf16.msra.mxu0 %v9086_v33  ;;  %v9164_v33 = vld [vmem:[%s10062_s18 + $0x328] ss:$16 sps:$4 sm:$0xff]  }
 0x19a   : > { %3374 = vmatpush2.bf16.msra.mxu1 %v9083_v6  ;;  %3388 = vmatprep.subr.bf16.mxu0 %v9094_v37  ;;  %v9161_v6 = vld [vmem:[%s10062_s18 + $0x568] ss:$16 sps:$4 sm:$0xff]   ;;  %v9172_v37 = vld [vmem:[%s10062_s18 + $0x30c] ss:$16 sps:$4 sm:$0xff]  }
 0x19b   : > { %v2016_v0 = vpop.f32.mrf.mxu1  ;;  %3425 = vmatprep.subr.bf16.mxu1 %v9091_v35  ;;  %v9169_v35 = vld [vmem:[%s10062_s18 + $0x54c] ss:$16 sps:$4 sm:$0xff]  }
 0x19c   : > { %v9170_v0 = vld [vmem:[%s10062_s18 + $0x308] ss:$16 sps:$4 sm:$0xff]  }
 0x19d   : > { %3376 = vmatmul.mubr.bf16.vlgmr.msra.gmra.mxu1 %v10415_v23  ;;  %3389 = vmatpush1.bf16.msra.mxu0 %v9092_v39  ;;  %v9104_v23 = vld [vmem:[%s10062_s18 + $0x268] ss:$16 sps:$4 sm:$0xff]  }
 0x19e   : > { %3426 = vmatpush1.bf16.msra.mxu1 %v9089_v38  ;;  %3390 = vmatprep.subr.bf16.mxu0 %v9100_v42  ;;  %v10590_v38 = vld [vmem:[%s11279_s0 + $0xe] sm:$0x7f] }
 0x19f   : > { %3427 = vmatprep.subr.bf16.mxu1 %v9097_v41  ;;  %3457 = vmatprep.mubr.bf16.mxu1 %v10434_v4  ;;  %v9115_v4 = vld [vmem:[%s10062_s18 + $0x46c] ss:$16 sps:$4 sm:$0xff]   ;;  %v9167_v41 = vld [vmem:[%s10062_s18 + $0x548] ss:$16 sps:$4 sm:$0xff]  }
 0x1a1   : > { %3391 = vmatpush1.bf16.msra.mxu0 %v9098_v11  ;;  %v9178_v11 = vld [vmem:[%s10062_s18 + $0x60c] ss:$16 sps:$4 sm:$0xff]  }
 0x1a2   : > { %3428 = vmatpush1.bf16.msra.mxu1 %v9095_v45  ;;  %3392 = vmatprep.subr.bf16.mxu0 %v9106_v17  ;;  %v9175_v45 = vld [vmem:[%s10062_s18 + $0x52c] ss:$16 sps:$4 sm:$0xff]   ;;  %v10600_v17 = vrot.slane %v10590_v38, %v10126_v49 }
 0x1a3   : > { %3429 = vmatprep.subr.bf16.mxu1 %v9103_v47 }
 0x1a5   : > { %3393 = vmatpush1.bf16.msra.mxu0 %v9104_v23  ;;  %v9176_v23 = vld [vmem:[%s10062_s18 + $0x608] ss:$16 sps:$4 sm:$0xff]  }
 0x1a6   : > { %3430 = vmatpush1.bf16.msra.mxu1 %v9101_v46  ;;  %3394 = vmatprep.subr.bf16.mxu0 %v9112_v50  ;;  %v9181_v50 = vld [vmem:[%s10062_s18 + $0x50c] ss:$16 sps:$4 sm:$0xff]  }
 0x1a7   : > { %3431 = vmatprep.subr.bf16.mxu1 %v9109_v48 }
 0x1a9   : > { %3395 = vmatpush1.bf16.msra.mxu0 %v9110_v51  ;;  %v9179_v51 = vld [vmem:[%s10062_s18 + $0x508] ss:$16 sps:$4 sm:$0xff]  }
 0x1aa   : > { %3432 = vmatpush1.bf16.msra.mxu1 %v9107_v22  ;;  %3396 = vmatprep.subr.bf16.mxu0 %v9118_v28  ;;  %v9184_v22 = vld [vmem:[%s10062_s18 + $0xd24] ss:$16 sps:$4 sm:$0xff]  }
 0x1ab   : > { %3433 = vmatprep.subr.bf16.mxu1 %v9115_v4 }
 0x1ad   : > { %3397 = vmatpush1.bf16.msra.mxu0 %v9116_v53 }
 0x1ae   : > { %3434 = vmatpush1.bf16.msra.mxu1 %v9113_v31  ;;  %3398 = vmatprep.subr.bf16.mxu0 %v9124_v55  ;;  %v9187_v55 = vld [vmem:[%s10062_s18 + $0xf24] ss:$16 sps:$4 sm:$0xff]  }
 0x1af   : > { %3435 = vmatprep.subr.bf16.mxu1 %v9121_v54 }
 0x1b1   : > { %3399 = vmatpush1.bf16.msra.mxu0 %v9122_v36 }
 0x1b2   : > { %3436 = vmatpush1.bf16.msra.mxu1 %v9119_v57  ;;  %3400 = vmatprep.subr.bf16.mxu0 %v9130_v59 }
 0x1b3   : > { %3437 = vmatprep.subr.bf16.mxu1 %v9127_v58  ;;  %v9182_v58 = vld [vmem:[%s10062_s18 + $0xd20] ss:$16 sps:$4 sm:$0xff]  }
 0x1b5   : > { %3401 = vmatpush2.bf16.msra.mxu0 %v9128_v62  ;;  %v9185_v62 = vld [vmem:[%s10062_s18 + $0xf20] ss:$16 sps:$4 sm:$0xff]  }
 0x1b6   : > { %3438 = vmatpush1.bf16.msra.mxu1 %v9125_v60  ;;  %3402 = vmatprep.subr.bf16.mxu0 %v9136_v1 }
 0x1b7   : > { %3439 = vmatprep.subr.bf16.mxu1 %v9133_v63 }
 0x1b9   : > { %3403 = vmatpush2.bf16.msra.mxu0 %v9134_v3  ;;  %v9190_v3 = vld [vmem:[%s10062_s18 + $0xd04] ss:$16 sps:$4 sm:$0xff]  }
 0x1ba   : > { %3440 = vmatpush1.bf16.msra.mxu1 %v9131_v2  ;;  %3404 = vmatprep.subr.bf16.mxu0 %v9142_v9  ;;  %v9188_v9 = vld [vmem:[%s10062_s18 + $0xd00] ss:$16 sps:$4 sm:$0xff]  }
 0x1bb   : > { %3441 = vmatprep.subr.bf16.mxu1 %v9139_v8  ;;  %v9193_v8 = vld [vmem:[%s10062_s18 + $0xf04] ss:$16 sps:$4 sm:$0xff]  }
 0x1bd   : > { %3405 = vmatpush2.bf16.msra.mxu0 %v9140_v12 }
 0x1be   : > { %3442 = vmatpush2.bf16.msra.mxu1 %v9137_v10  ;;  %3406 = vmatprep.subr.bf16.mxu0 %v9148_v15  ;;  %v9191_v10 = vld [vmem:[%s10062_s18 + $0xf00] ss:$16 sps:$4 sm:$0xff]   ;;  %v9199_v15 = vld [vmem:[%s10062_s18 + $0xee4] ss:$16 sps:$4 sm:$0xff]  }
 0x1bf   : > { %3443 = vmatprep.subr.bf16.mxu1 %v9145_v14  ;;  %v9196_v14 = vld [vmem:[%s10062_s18 + $0xce4] ss:$16 sps:$4 sm:$0xff]  }
 0x1c1   : > { %3407 = vmatpush2.bf16.msra.mxu0 %v9146_v18  ;;  %v9197_v18 = vld [vmem:[%s10062_s18 + $0xee0] ss:$16 sps:$4 sm:$0xff]  }
 0x1c2   : > { %3444 = vmatpush2.bf16.msra.mxu1 %v9143_v16  ;;  %3408 = vmatprep.subr.bf16.mxu0 %v9154_v20  ;;  %v9194_v16 = vld [vmem:[%s10062_s18 + $0xce0] ss:$16 sps:$4 sm:$0xff]  }
 0x1c3   : > { %3445 = vmatprep.subr.bf16.mxu1 %v9151_v19  ;;  %v9200_v19 = vld [vmem:[%s10062_s18 + $0xcc0] ss:$16 sps:$4 sm:$0xff]  }
 0x1c4   : > { %v9203_v20 = vld [vmem:[%s10062_s18 + $0xec0] ss:$16 sps:$4 sm:$0xff]  }
 0x1c5   : > { %3409 = vmatpush2.bf16.msra.mxu0 %v9152_v24  ;;  %v9211_v24 = vld [vmem:[%s10062_s18 + $0xea4] ss:$16 sps:$4 sm:$0xff]  }
 0x1c6   : > { %3446 = vmatpush2.bf16.msra.mxu1 %v9149_v21  ;;  %3410 = vmatprep.subr.bf16.mxu0 %v9160_v52  ;;  %v9208_v21 = vld [vmem:[%s10062_s18 + $0xca4] ss:$16 sps:$4 sm:$0xff]   ;;  %v9209_v52 = vld [vmem:[%s10062_s18 + $0xea0] ss:$16 sps:$4 sm:$0xff]  }
 0x1c7   : > { %3447 = vmatprep.subr.bf16.mxu1 %v9157_v27  ;;  %v9206_v27 = vld [vmem:[%s10062_s18 + $0xca0] ss:$16 sps:$4 sm:$0xff]  }
 0x1c9   : > { %3411 = vmatpush2.bf16.msra.mxu0 %v9158_v32  ;;  %v9217_v32 = vld [vmem:[%s10062_s18 + $0xe84] ss:$16 sps:$4 sm:$0xff]  }
 0x1ca   : > { %3448 = vmatpush2.bf16.msra.mxu1 %v9155_v29  ;;  %3412 = vmatprep.subr.bf16.mxu0 %v9166_v56  ;;  %v9214_v29 = vld [vmem:[%s10062_s18 + $0xc84] ss:$16 sps:$4 sm:$0xff]   ;;  %v9215_v56 = vld [vmem:[%s10062_s18 + $0xe80] ss:$16 sps:$4 sm:$0xff]  }
 0x1cb   : > { %3449 = vmatprep.subr.bf16.mxu1 %v9163_v44  ;;  %v9212_v44 = vld [vmem:[%s10062_s18 + $0xc80] ss:$16 sps:$4 sm:$0xff]  }
 0x1cc   : > { %v2052_v39 = vpop.f32.mrf.mxu0 }
 0x1cd   : > { %v2053_v40 = vadd.f32 %v2052_v39, %v10525_v34  ;;  %3413 = vmatpush2.bf16.msra.mxu0 %v9164_v33  ;;  %v9173_v34 = vld [vmem:[%s10062_s18 + $0x528] ss:$16 sps:$4 sm:$0xff]   ;;  %v9223_v33 = vld [vmem:[%s10062_s18 + $0xe64] ss:$16 sps:$4 sm:$0xff]  }
 0x1ce   : > { %3450 = vmatpush2.bf16.msra.mxu1 %v9161_v6  ;;  %v2054_v42 = vpop.f32.mrf.mxu0  ;;  %3414 = vmatprep.subr.bf16.mxu0 %v9172_v37  ;;  %v9220_v6 = vld [vmem:[%s10062_s18 + $0xc64] ss:$16 sps:$4 sm:$0xff]   ;;  %v9221_v37 = vld [vmem:[%s10062_s18 + $0xe60] ss:$16 sps:$4 sm:$0xff]  }
 0x1cf   : > { %3451 = vmatprep.subr.bf16.mxu1 %v9169_v35  ;;  %v2055_v47 = vadd.f32 %v2054_v42, %v10528_v7  ;;  %v3722_v7 = vcombine.high %v10600_v17, %v10600_v17  ;;  %v9218_v35 = vld [vmem:[%s10062_s18 + $0xc60] ss:$16 sps:$4 sm:$0xff]   ;;  %v9226_v39 = vld [vmem:[%s10062_s18 + $0xc44] ss:$16 sps:$4 sm:$0xff]  }
 0x1d0   : > { %v2056_v46 = vpop.f32.mrf.mxu0  ;;  %v9232_v42 = vld [vmem:[%s10062_s18 + $0xe24] ss:$16 sps:$4 sm:$0xff]  }
 0x1d1   : > { %3415 = vmatpush2.bf16.msra.mxu0 %v9170_v0  ;;  %v9227_v0 = vld [vmem:[%s10062_s18 + $0xe40] ss:$16 sps:$4 sm:$0xff]   ;;  %v9238_v46 = vld [vmem:[%s10062_s18 + $0xe04] ss:$16 sps:$4 sm:$0xff]  }
 0x1d2   : > { %3452 = vmatpush2.bf16.msra.mxu1 %v9167_v41  ;;  %v2057_v48 = vpop.f32.mrf.mxu0  ;;  %3480 = vmatprep.subr.bf16.mxu0 %v9178_v11  ;;  %v9224_v41 = vld [vmem:[%s10062_s18 + $0xc40] ss:$16 sps:$4 sm:$0xff]  }
 0x1d3   : > { %3453 = vmatprep.subr.bf16.mxu1 %v9175_v45  ;;  %v9235_v45 = vld [vmem:[%s10062_s18 + $0x1024] ss:$16 sps:$4 sm:$0xff]   ;;  %v9230_v11 = vld [vmem:[%s10062_s18 + $0xe20] ss:$16 sps:$4 sm:$0xff]  }
 0x1d4   : > { %3417 = vmatmul.mubr.bf16.vlgmr.msra.gmra.mxu0 %v10428_v61  ;;  %v2134_v28 = vpop.f32.mrf.mxu0  ;;  %v10616_v61 = vrot.slane %v3722_v7, %v10126_v49  ;;  %v9239_v48 = vld [vmem:[%s10062_s18 + $0x1000] ss:$16 sps:$4 sm:$0xff]  }
 0x1d5   : > { %v2093_v4 = vpop.f32.mrf.mxu1  ;;  %3481 = vmatpush1.bf16.msra.mxu0 %v9176_v23  ;;  %3498 = vmatprep.mubr.bf16.mxu0 %v9918_v25  ;;  %v9236_v23 = vld [vmem:[%s10062_s18 + $0xe00] ss:$16 sps:$4 sm:$0xff]  }
 0x1d6   : > { %v2094_v31 = vadd.f32 %v2093_v4, %v2053_v40  ;;  %3454 = vmatpush2.bf16.msra.mxu1 %v9173_v34  ;;  %v2136_v54 = vpop.f32.mrf.mxu0  ;;  %4744 = vmatprep.subr.bf16.mxu0 %v9184_v22  ;;  %v10627_v12 = vcombine.high %v10616_v61, %v10616_v61  ;;  %v9229_v40 = vld [vmem:[%s10062_s18 + $0xe44] ss:$16 sps:$4 sm:$0xff]   ;;  %v9245_v7 = vld [vmem:[%s10062_s18 + $0xfe0] ss:$16 sps:$4 sm:$0xff]  }
 0x1d7   : > { %v2095_v53 = vpop.f32.mrf.mxu1  ;;  %3455 = vmatprep.subr.bf16.mxu1 %v9181_v50  ;;  %v9241_v34 = vld [vmem:[%s10062_s18 + $0x1004] ss:$16 sps:$4 sm:$0xff]  }
 0x1d8   : > { %v10612_v57 = vadd.f32 %v2134_v28, %v2094_v31  ;;  %v2096_v36 = vadd.f32 %v2095_v53, %v2055_v47  ;;  %v2138_v60 = vpop.f32.mrf.mxu0  ;;  %v9233_v47 = vld [vmem:[%s10062_s18 + $0x1020] ss:$16 sps:$4 sm:$0xff]   ;;  %v9244_v50 = vld [vmem:[%s10062_s18 + $0xde4] ss:$16 sps:$4 sm:$0xff]  }
 0x1d9   : > { %v2097_v59 = vpop.f32.mrf.mxu1  ;;  %v9247_v22 = vld [vmem:[%s10062_s18 + $0xfe4] ss:$16 sps:$4 sm:$0xff]   ;;  %v9248_v31 = vld [vmem:[%s10062_s18 + $0xdc0] ss:$16 sps:$4 sm:$0xff]  }
 0x1da   : > { %v10619_v63 = vadd.f32 %v2136_v54, %v2096_v36  ;;  %3456 = vmatpush2.bf16.msra.mxu1 %v9179_v51  ;;  %v2139_v2 = vpop.f32.mrf.mxu0  ;;  %v9242_v51 = vld [vmem:[%s10062_s18 + $0xde0] ss:$16 sps:$4 sm:$0xff]   ;;  %v9250_v4 = vld [vmem:[%s10062_s18 + $0xdc4] ss:$16 sps:$4 sm:$0xff]  }
 0x1db   : > { %v2098_v1 = vpop.f32.mrf.mxu1  ;;  %4785 = vmatprep.subr.bf16.mxu1 %v9187_v55  ;;  %v9253_v28 = vld [vmem:[%s10062_s18 + $0xfc4] ss:$16 sps:$4 sm:$0xff]   ;;  %v9251_v53 = vld [vmem:[%s10062_s18 + $0xfc0] ss:$16 sps:$4 sm:$0xff]  }
 0x1dc   : > { %7654 = vmatmul.mubr.msk.bf16.vlgmr.msra.gmra.mxu0 %vm1809_vm0, %v10452_v13  ;;  %v9205_v13 = vld [vmem:[%s10062_s18 + $0xec4] ss:$16 sps:$4 sm:$0xff]   ;;  %v9254_v36 = vld [vmem:[%s10062_s18 + $0xda0] ss:$16 sps:$4 sm:$0xff]  }
 0x1dd   : > { %3458 = vmatmul.mubr.bf16.vlgmr.msra.gmra.mxu1 %v10437_v5  ;;  %4745 = vmatpush1.bf16.msra.mxu0 %v9182_v58  ;;  %v9202_v5 = vld [vmem:[%s10062_s18 + $0xcc4] ss:$16 sps:$4 sm:$0xff]   ;;  %v9257_v58 = vld [vmem:[%s10062_s18 + $0xfa0] ss:$16 sps:$4 sm:$0xff]  }
 0x1de   : > { %4786 = vmatpush1.bf16.msra.mxu1 %v9185_v62  ;;  %4746 = vmatprep.subr.bf16.mxu0 %v9190_v3  ;;  %v9256_v54 = vld [vmem:[%s10062_s18 + $0xda4] ss:$16 sps:$4 sm:$0xff]   ;;  %v9260_v62 = vld [vmem:[%s10062_s18 + $0xd80] ss:$16 sps:$4 sm:$0xff]  }
 0x1df   : > { %4787 = vmatprep.subr.bf16.mxu1 %v9193_v8  ;;  %4776 = vmatprep.mubr.bf16.mxu0 %v10616_v61  ;;  %v9259_v55 = vld [vmem:[%s10062_s18 + $0xfa4] ss:$16 sps:$4 sm:$0xff]   ;;  %v9263_v1 = vld [vmem:[%s10062_s18 + $0xf80] ss:$16 sps:$4 sm:$0xff]  }
 0x1e0   : > { %4817 = vmatprep.mubr.bf16.mxu1 %v10627_v12  ;;  %v9262_v59 = vld [vmem:[%s10062_s18 + $0xd84] ss:$16 sps:$4 sm:$0xff]   ;;  %v9266_v8 = vld [vmem:[%s10062_s18 + $0xd60] ss:$16 sps:$4 sm:$0xff]  }
 0x1e1   : > { %4747 = vmatpush1.bf16.msra.mxu0 %v9188_v9  ;;  %v9265_v60 = vld [vmem:[%s10062_s18 + $0xf84] ss:$16 sps:$4 sm:$0xff]   ;;  %v9269_v9 = vld [vmem:[%s10062_s18 + $0xf60] ss:$16 sps:$4 sm:$0xff]  }
 0x1e2   : > { %4788 = vmatpush1.bf16.msra.mxu1 %v9191_v10  ;;  %4748 = vmatprep.subr.bf16.mxu0 %v9196_v14  ;;  %v9268_v2 = vld [vmem:[%s10062_s18 + $0xd64] ss:$16 sps:$4 sm:$0xff]   ;;  %v3707_v10 = vcombine.high %v10590_v38, %v10590_v38 }
 0x1e3   : > { %4789 = vmatprep.subr.bf16.mxu1 %v9199_v15  ;;  %v9271_v3 = vld [vmem:[%s10062_s18 + $0xf64] ss:$16 sps:$4 sm:$0xff]  }
 0x1e4   : > { %v9274_v14 = vld [vmem:[%s10062_s18 + $0xd44] ss:$16 sps:$4 sm:$0xff]   ;;  %v3721_v38 = vrot.slane %v3707_v10, %v10126_v49  ;;  %v9326_v10 = vld [vmem:[%s10062_s18 + $0xc6c] ss:$16 sps:$4 sm:$0xff]  }
 0x1e5   : > { %4749 = vmatpush1.bf16.msra.mxu0 %v9194_v16  ;;  %v9277_v15 = vld [vmem:[%s10062_s18 + $0xf44] ss:$16 sps:$4 sm:$0xff]  }
 0x1e6   : > { %4790 = vmatpush1.bf16.msra.mxu1 %v9197_v18  ;;  %4750 = vmatprep.subr.bf16.mxu0 %v9202_v5  ;;  %v10692_v5 = vrot.slane %v10600_v17, %v10126_v49  ;;  %v3723_v17 = vcombine.high %v3721_v38, %v3721_v38 }
 0x1e7   : > { %4791 = vmatprep.subr.bf16.mxu1 %v9205_v13 }
 0x1e9   : > { %4751 = vmatpush1.bf16.msra.mxu0 %v9200_v19  ;;  %v9272_v19 = vld [vmem:[%s10062_s18 + $0xd40] ss:$16 sps:$4 sm:$0xff]  }
 0x1ea   : > { %4792 = vmatpush1.bf16.msra.mxu1 %v9203_v20  ;;  %4752 = vmatprep.subr.bf16.mxu0 %v9208_v21  ;;  %v9275_v20 = vld [vmem:[%s10062_s18 + $0xf40] ss:$16 sps:$4 sm:$0xff]  }
 0x1eb   : > { %4793 = vmatprep.subr.bf16.mxu1 %v9211_v24 }
 0x1ed   : > { %4753 = vmatpush1.bf16.msra.mxu0 %v9206_v27  ;;  %v9281_v27 = vld [vmem:[%s10062_s18 + $0x1124] ss:$16 sps:$4 sm:$0xff]  }
 0x1ee   : > { %4794 = vmatpush1.bf16.msra.mxu1 %v9209_v52  ;;  %4754 = vmatprep.subr.bf16.mxu0 %v9214_v29  ;;  %v9284_v52 = vld [vmem:[%s10062_s18 + $0x1244] ss:$16 sps:$4 sm:$0xff]  }
 0x1ef   : > { %4795 = vmatprep.subr.bf16.mxu1 %v9217_v32 }
 0x1f1   : > { %4755 = vmatpush1.bf16.msra.mxu0 %v9212_v44 }
 0x1f2   : > { %4796 = vmatpush1.bf16.msra.mxu1 %v9215_v56  ;;  %4756 = vmatprep.subr.bf16.mxu0 %v9220_v6  ;;  %v10705_v56 = vcombine.high %v10692_v5, %v10692_v5 }
 0x1f3   : > { %4797 = vmatprep.subr.bf16.mxu1 %v9223_v33  ;;  %v9279_v33 = vld [vmem:[%s10062_s18 + $0x1120] ss:$16 sps:$4 sm:$0xff]  }
 0x1f5   : > { %4757 = vmatpush1.bf16.msra.mxu0 %v9218_v35  ;;  %v9282_v35 = vld [vmem:[%s10062_s18 + $0x1240] ss:$16 sps:$4 sm:$0xff]  }
 0x1f6   : > { %4798 = vmatpush1.bf16.msra.mxu1 %v9221_v37  ;;  %4758 = vmatprep.subr.bf16.mxu0 %v9226_v39 }
 0x1f7   : > { %4799 = vmatprep.subr.bf16.mxu1 %v9229_v40  ;;  %v9290_v40 = vld [vmem:[%s10062_s18 + $0xd2c] ss:$16 sps:$4 sm:$0xff]  }
 0x1f9   : > { %4759 = vmatpush1.bf16.msra.mxu0 %v9224_v41  ;;  %v10714_v41 = vrot.slane %v3723_v17, %v10126_v49  ;;  %v9342_v17 = vld [vmem:[%s10062_s18 + $0xe08] ss:$16 sps:$4 sm:$0xff]  }
 0x1fa   : > { %4800 = vmatpush1.bf16.msra.mxu1 %v9227_v0  ;;  %4760 = vmatprep.subr.bf16.mxu0 %v9232_v42  ;;  %v10717_v0 = vrot.slane %v3721_v38, %v10126_v49  ;;  %v9338_v38 = vld [vmem:[%s10062_s18 + $0xe2c] ss:$16 sps:$4 sm:$0xff]  }
 0x1fb   : > { %4801 = vmatprep.subr.bf16.mxu1 %v9235_v45  ;;  %v9285_v45 = vld [vmem:[%s10062_s18 + $0x1100] ss:$16 sps:$4 sm:$0xff]  }
 0x1fd   : > { %4761 = vmatpush2.bf16.msra.mxu0 %v9230_v11 }
 0x1fe   : > { %4802 = vmatpush2.bf16.msra.mxu1 %v9233_v47  ;;  %4762 = vmatprep.subr.bf16.mxu0 %v9238_v46  ;;  %v9293_v47 = vld [vmem:[%s10062_s18 + $0x10e4] ss:$16 sps:$4 sm:$0xff]  }
 0x1ff   : > { %4803 = vmatprep.subr.bf16.mxu1 %v9241_v34  ;;  %v10731_v34 = vcombine.high %v10717_v0, %v10717_v0 }
 0x201   : > { %4763 = vmatpush2.bf16.msra.mxu0 %v9236_v23  ;;  %v9288_v23 = vld [vmem:[%s10062_s18 + $0xd28] ss:$16 sps:$4 sm:$0xff]  }
 0x202   : > { %4804 = vmatpush2.bf16.msra.mxu1 %v9239_v48  ;;  %4764 = vmatprep.subr.bf16.mxu0 %v9244_v50  ;;  %v9291_v48 = vld [vmem:[%s10062_s18 + $0x10e0] ss:$16 sps:$4 sm:$0xff]  }
 0x203   : > { %4805 = vmatprep.subr.bf16.mxu1 %v9247_v22  ;;  %v9296_v22 = vld [vmem:[%s10062_s18 + $0xd0c] ss:$16 sps:$4 sm:$0xff]  }
 0x205   : > { %4765 = vmatpush2.bf16.msra.mxu0 %v9242_v51  ;;  %v9299_v51 = vld [vmem:[%s10062_s18 + $0x10c4] ss:$16 sps:$4 sm:$0xff]  }
 0x206   : > { %4806 = vmatpush2.bf16.msra.mxu1 %v9245_v7  ;;  %4766 = vmatprep.subr.bf16.mxu0 %v9250_v4  ;;  %v9294_v7 = vld [vmem:[%s10062_s18 + $0xd08] ss:$16 sps:$4 sm:$0xff]   ;;  %v9297_v4 = vld [vmem:[%s10062_s18 + $0x10c0] ss:$16 sps:$4 sm:$0xff]  }
 0x207   : > { %4807 = vmatprep.subr.bf16.mxu1 %v9253_v28  ;;  %v9302_v28 = vld [vmem:[%s10062_s18 + $0xcec] ss:$16 sps:$4 sm:$0xff]  }
 0x209   : > { %4767 = vmatpush2.bf16.msra.mxu0 %v9248_v31  ;;  %v9305_v31 = vld [vmem:[%s10062_s18 + $0x10a4] ss:$16 sps:$4 sm:$0xff]  }
 0x20a   : > { %4808 = vmatpush2.bf16.msra.mxu1 %v9251_v53  ;;  %4768 = vmatprep.subr.bf16.mxu0 %v9256_v54  ;;  %v9300_v53 = vld [vmem:[%s10062_s18 + $0xce8] ss:$16 sps:$4 sm:$0xff]   ;;  %v9303_v54 = vld [vmem:[%s10062_s18 + $0x10a0] ss:$16 sps:$4 sm:$0xff]  }
 0x20b   : > { %4809 = vmatprep.subr.bf16.mxu1 %v9259_v55  ;;  %v9308_v55 = vld [vmem:[%s10062_s18 + $0xccc] ss:$16 sps:$4 sm:$0xff]  }
 0x20d   : > { %4769 = vmatpush2.bf16.msra.mxu0 %v9254_v36  ;;  %v9311_v36 = vld [vmem:[%s10062_s18 + $0x1084] ss:$16 sps:$4 sm:$0xff]  }
 0x20e   : > { %4810 = vmatpush2.bf16.msra.mxu1 %v9257_v58  ;;  %4770 = vmatprep.subr.bf16.mxu0 %v9262_v59  ;;  %v9306_v58 = vld [vmem:[%s10062_s18 + $0xcc8] ss:$16 sps:$4 sm:$0xff]   ;;  %v9309_v59 = vld [vmem:[%s10062_s18 + $0x1080] ss:$16 sps:$4 sm:$0xff]  }
 0x20f   : > { %4811 = vmatprep.subr.bf16.mxu1 %v9265_v60  ;;  %v9317_v60 = vld [vmem:[%s10062_s18 + $0x1064] ss:$16 sps:$4 sm:$0xff]  }
 0x211   : > { %4771 = vmatpush2.bf16.msra.mxu0 %v9260_v62  ;;  %v9312_v62 = vld [vmem:[%s10062_s18 + $0xca8] ss:$16 sps:$4 sm:$0xff]  }
 0x212   : > { %4812 = vmatpush2.bf16.msra.mxu1 %v9263_v1  ;;  %4772 = vmatprep.subr.bf16.mxu0 %v9268_v2  ;;  %v9315_v1 = vld [vmem:[%s10062_s18 + $0x1060] ss:$16 sps:$4 sm:$0xff]   ;;  %v9320_v2 = vld [vmem:[%s10062_s18 + $0xc8c] ss:$16 sps:$4 sm:$0xff]  }
 0x213   : > { %4813 = vmatprep.subr.bf16.mxu1 %v9271_v3  ;;  %v9323_v3 = vld [vmem:[%s10062_s18 + $0x1044] ss:$16 sps:$4 sm:$0xff]  }
 0x214   : > { %v3213_v16 = vpop.f32.mrf.mxu0 }
 0x215   : > { %v3254_v18 = vpop.f32.mrf.mxu1  ;;  %v3214_v13 = vadd.f32 %v3213_v16, %v10514_v26  ;;  %4773 = vmatpush2.bf16.msra.mxu0 %v9266_v8  ;;  %v9318_v8 = vld [vmem:[%s10062_s18 + $0xc88] ss:$16 sps:$4 sm:$0xff]   ;;  %v9327_v16 = vld [vmem:[%s10062_s18 + $0x1220] ss:$16 sps:$4 sm:$0xff]  }
 0x216   : > { %4814 = vmatpush2.bf16.msra.mxu1 %v9269_v9  ;;  %v3215_v21 = vpop.f32.mrf.mxu0  ;;  %4774 = vmatprep.subr.bf16.mxu0 %v9274_v14  ;;  %v9321_v9 = vld [vmem:[%s10062_s18 + $0x1040] ss:$16 sps:$4 sm:$0xff]   ;;  %v9329_v14 = vld [vmem:[%s10062_s18 + $0x1224] ss:$16 sps:$4 sm:$0xff]  }
 0x217   : > { %v3256_v24 = vpop.f32.mrf.mxu1  ;;  %4815 = vmatprep.subr.bf16.mxu1 %v9277_v15  ;;  %v10700_v29 = vadd.f32 %v3254_v18, %v3214_v13  ;;  %v3216_v26 = vadd.f32 %v3215_v21, %v10519_v30  ;;  %v9287_v30 = vld [vmem:[%s10062_s18 + $0x1104] ss:$16 sps:$4 sm:$0xff]   ;;  %v9324_v15 = vld [vmem:[%s10062_s18 + $0xc68] ss:$16 sps:$4 sm:$0xff]   ;;  %v9332_v18 = vld [vmem:[%s10062_s18 + $0xc4c] ss:$16 sps:$4 sm:$0xff]  }
 0x218   : > { %v3217_v32 = vpop.f32.mrf.mxu0  ;;  %v9335_v13 = vld [vmem:[%s10062_s18 + $0x1204] ss:$16 sps:$4 sm:$0xff]  }
 0x219   : > { %v3258_v44 = vpop.f32.mrf.mxu1  ;;  %v10707_v6 = vadd.f32 %v3256_v24, %v3216_v26  ;;  %4775 = vmatpush2.bf16.msra.mxu0 %v9272_v19  ;;  %v9330_v19 = vld [vmem:[%s10062_s18 + $0xc48] ss:$16 sps:$4 sm:$0xff]   ;;  %v9341_v21 = vld [vmem:[%s10062_s18 + $0x11e4] ss:$16 sps:$4 sm:$0xff]   ;;  %v9345_v32 = vld [vmem:[%s10062_s18 + $0x11c0] ss:$16 sps:$4 sm:$0xff]  }
 0x21a   : > { %4816 = vmatpush2.bf16.msra.mxu1 %v9275_v20  ;;  %v3218_v37 = vpop.f32.mrf.mxu0  ;;  %4826 = vmatprep.subr.bf16.mxu0 %v9281_v27  ;;  %v9333_v20 = vld [vmem:[%s10062_s18 + $0x1200] ss:$16 sps:$4 sm:$0xff]   ;;  %v9336_v24 = vld [vmem:[%s10062_s18 + $0xe28] ss:$16 sps:$4 sm:$0xff]   ;;  %v9347_v26 = vld [vmem:[%s10062_s18 + $0x11c4] ss:$16 sps:$4 sm:$0xff]  }
 0x21b   : > { %v3259_v39 = vpop.f32.mrf.mxu1  ;;  %4881 = vmatprep.subr.bf16.mxu1 %v9284_v52  ;;  %v9339_v27 = vld [vmem:[%s10062_s18 + $0x11e0] ss:$16 sps:$4 sm:$0xff]   ;;  %v9344_v52 = vld [vmem:[%s10062_s18 + $0xe0c] ss:$16 sps:$4 sm:$0xff]  }
 0x21c   : > { %4777 = vmatmul.mubr.bf16.vlgmr.msra.gmra.mxu0 %v10692_v5  ;;  %v9350_v44 = vld [vmem:[%s10062_s18 + $0xdec] ss:$16 sps:$4 sm:$0xff]   ;;  %v9351_v37 = vld [vmem:[%s10062_s18 + $0x11a0] ss:$16 sps:$4 sm:$0xff]  }
 0x21d   : > { %4818 = vmatmul.mubr.bf16.vlgmr.msra.gmra.mxu1 %v10705_v56  ;;  %v10721_v42 = vpop.f32.mrf.mxu1  ;;  %4827 = vmatpush1.bf16.msra.mxu0 %v9279_v33  ;;  %v9353_v33 = vld [vmem:[%s10062_s18 + $0x11a4] ss:$16 sps:$4 sm:$0xff]   ;;  %v9356_v39 = vld [vmem:[%s10062_s18 + $0xdcc] ss:$16 sps:$4 sm:$0xff]  }
 0x21e   : > { %4882 = vmatpush1.bf16.msra.mxu1 %v9282_v35  ;;  %4828 = vmatprep.subr.bf16.mxu0 %v9287_v30  ;;  %v9348_v35 = vld [vmem:[%s10062_s18 + $0xde8] ss:$16 sps:$4 sm:$0xff]   ;;  %v9359_v30 = vld [vmem:[%s10062_s18 + $0x1184] ss:$16 sps:$4 sm:$0xff]  }
 0x21f   : > { %v10724_v11 = vpop.f32.mrf.mxu1  ;;  %4899 = vmatprep.mubr.bf16.mxu1 %v9918_v25  ;;  %4908 = vmatprep.subr.bf16.mxu1 %v9290_v40  ;;  %v9354_v40 = vld [vmem:[%s10062_s18 + $0xdc8] ss:$16 sps:$4 sm:$0xff]  }
 0x220   : > { %4858 = vmatprep.mubr.bf16.mxu0 %v10714_v41 }
 0x221   : > { %v3340_v46 = vpop.f32.mrf.mxu1  ;;  %4829 = vmatpush1.bf16.msra.mxu0 %v9285_v45  ;;  %v9357_v45 = vld [vmem:[%s10062_s18 + $0x1180] ss:$16 sps:$4 sm:$0xff]  }
 0x222   : > { %4830 = vmatprep.subr.bf16.mxu0 %v9293_v47  ;;  %v9362_v47 = vld [vmem:[%s10062_s18 + $0xdac] ss:$16 sps:$4 sm:$0xff]   ;;  %v9365_v46 = vld [vmem:[%s10062_s18 + $0x1164] ss:$16 sps:$4 sm:$0xff]  }
 0x223   : > { %v3341_v50 = vpop.f32.mrf.mxu1 }
 0x224   : > { %v9368_v50 = vld [vmem:[%s10062_s18 + $0xd8c] ss:$16 sps:$4 sm:$0xff]  }
 0x225   : > { %8048 = vmatmul.mubr.msk.bf16.vlgmr.msra.gmra.mxu1 %vm1809_vm0, %v10731_v34  ;;  %4831 = vmatpush1.bf16.msra.mxu0 %v9291_v48  ;;  %v9363_v48 = vld [vmem:[%s10062_s18 + $0x1160] ss:$16 sps:$4 sm:$0xff]  }
 0x226   : > { %4909 = vmatpush1.bf16.msra.mxu1 %v9288_v23  ;;  %4832 = vmatprep.subr.bf16.mxu0 %v9299_v51  ;;  %v9360_v23 = vld [vmem:[%s10062_s18 + $0xda8] ss:$16 sps:$4 sm:$0xff]  }
 0x227   : > { %4910 = vmatprep.subr.bf16.mxu1 %v9296_v22  ;;  %4940 = vmatprep.mubr.bf16.mxu1 %v10616_v61  ;;  %v9314_v61 = vld [vmem:[%s10062_s18 + $0xcac] ss:$16 sps:$4 sm:$0xff]   ;;  %v9371_v22 = vld [vmem:[%s10062_s18 + $0x1144] ss:$16 sps:$4 sm:$0xff]  }
 0x229   : > { %4833 = vmatpush1.bf16.msra.mxu0 %v9297_v4  ;;  %v9366_v4 = vld [vmem:[%s10062_s18 + $0xd88] ss:$16 sps:$4 sm:$0xff]  }
 0x22a   : > { %4911 = vmatpush1.bf16.msra.mxu1 %v9294_v7  ;;  %4834 = vmatprep.subr.bf16.mxu0 %v9305_v31 }
 0x22b   : > { %4912 = vmatprep.subr.bf16.mxu1 %v9302_v28  ;;  %v9369_v28 = vld [vmem:[%s10062_s18 + $0x1140] ss:$16 sps:$4 sm:$0xff]  }
 0x22d   : > { %4835 = vmatpush1.bf16.msra.mxu0 %v9303_v54  ;;  %v9377_v54 = vld [vmem:[%s10062_s18 + $0xf2c] ss:$16 sps:$4 sm:$0xff]  }
 0x22e   : > { %4913 = vmatpush1.bf16.msra.mxu1 %v9300_v53  ;;  %4836 = vmatprep.subr.bf16.mxu0 %v9311_v36  ;;  %v9374_v53 = vld [vmem:[%s10062_s18 + $0xd6c] ss:$16 sps:$4 sm:$0xff]  }
 0x22f   : > { %4914 = vmatprep.subr.bf16.mxu1 %v9308_v55 }
 0x231   : > { %4837 = vmatpush1.bf16.msra.mxu0 %v9309_v59  ;;  %v9372_v59 = vld [vmem:[%s10062_s18 + $0xd68] ss:$16 sps:$4 sm:$0xff]  }
 0x232   : > { %4915 = vmatpush1.bf16.msra.mxu1 %v9306_v58  ;;  %4838 = vmatprep.subr.bf16.mxu0 %v9317_v60 }
 0x233   : > { %4916 = vmatprep.subr.bf16.mxu1 %v9314_v61  ;;  %v9375_v61 = vld [vmem:[%s10062_s18 + $0xf28] ss:$16 sps:$4 sm:$0xff]  }
 0x235   : > { %4839 = vmatpush1.bf16.msra.mxu0 %v9315_v1 }
 0x236   : > { %4917 = vmatpush1.bf16.msra.mxu1 %v9312_v62  ;;  %4840 = vmatprep.subr.bf16.mxu0 %v9323_v3  ;;  %v9380_v62 = vld [vmem:[%s10062_s18 + $0xd4c] ss:$16 sps:$4 sm:$0xff]  }
 0x237   : > { %4918 = vmatprep.subr.bf16.mxu1 %v9320_v2  ;;  %v9381_v2 = vld [vmem:[%s10062_s18 + $0xf08] ss:$16 sps:$4 sm:$0xff]  }
 0x239   : > { %4841 = vmatpush1.bf16.msra.mxu0 %v9321_v9  ;;  %v9389_v9 = vld [vmem:[%s10062_s18 + $0xeec] ss:$16 sps:$4 sm:$0xff]  }
 0x23a   : > { %4919 = vmatpush1.bf16.msra.mxu1 %v9318_v8  ;;  %4842 = vmatprep.subr.bf16.mxu0 %v9329_v14  ;;  %v9386_v8 = vld [vmem:[%s10062_s18 + $0x112c] ss:$16 sps:$4 sm:$0xff]   ;;  %v9384_v14 = vld [vmem:[%s10062_s18 + $0x1128] ss:$16 sps:$4 sm:$0xff]  }
 0x23b   : > { %4920 = vmatprep.subr.bf16.mxu1 %v9326_v10 }
 0x23d   : > { %4843 = vmatpush2.bf16.msra.mxu0 %v9327_v16 }
 0x23e   : > { %4921 = vmatpush1.bf16.msra.mxu1 %v9324_v15  ;;  %4844 = vmatprep.subr.bf16.mxu0 %v9335_v13  ;;  %v9387_v15 = vld [vmem:[%s10062_s18 + $0xee8] ss:$16 sps:$4 sm:$0xff]   ;;  %v9395_v13 = vld [vmem:[%s10062_s18 + $0xecc] ss:$16 sps:$4 sm:$0xff]  }
 0x23f   : > { %4922 = vmatprep.subr.bf16.mxu1 %v9332_v18  ;;  %v9392_v18 = vld [vmem:[%s10062_s18 + $0x110c] ss:$16 sps:$4 sm:$0xff]  }
 0x241   : > { %4845 = vmatpush2.bf16.msra.mxu0 %v9333_v20  ;;  %v9401_v20 = vld [vmem:[%s10062_s18 + $0xeac] ss:$16 sps:$4 sm:$0xff]  }
 0x242   : > { %4923 = vmatpush1.bf16.msra.mxu1 %v9330_v19  ;;  %4846 = vmatprep.subr.bf16.mxu0 %v9341_v21  ;;  %v9398_v19 = vld [vmem:[%s10062_s18 + $0x10ec] ss:$16 sps:$4 sm:$0xff]  }
 0x243   : > { %4924 = vmatprep.subr.bf16.mxu1 %v9338_v38  ;;  %v9396_v38 = vld [vmem:[%s10062_s18 + $0x10e8] ss:$16 sps:$4 sm:$0xff]   ;;  %v9404_v21 = vld [vmem:[%s10062_s18 + $0x10cc] ss:$16 sps:$4 sm:$0xff]  }
 0x245   : > { %4847 = vmatpush2.bf16.msra.mxu0 %v9339_v27  ;;  %v9402_v27 = vld [vmem:[%s10062_s18 + $0x10c8] ss:$16 sps:$4 sm:$0xff]  }
 0x246   : > { %4925 = vmatpush2.bf16.msra.mxu1 %v9336_v24  ;;  %4848 = vmatprep.subr.bf16.mxu0 %v9347_v26  ;;  %v9407_v24 = vld [vmem:[%s10062_s18 + $0xe8c] ss:$16 sps:$4 sm:$0xff]  }
 0x247   : > { %4926 = vmatprep.subr.bf16.mxu1 %v9344_v52  ;;  %v9405_v52 = vld [vmem:[%s10062_s18 + $0xe88] ss:$16 sps:$4 sm:$0xff]   ;;  %v9413_v26 = vld [vmem:[%s10062_s18 + $0xe6c] ss:$16 sps:$4 sm:$0xff]  }
 0x249   : > { %4849 = vmatpush2.bf16.msra.mxu0 %v9345_v32  ;;  %v9411_v32 = vld [vmem:[%s10062_s18 + $0xe68] ss:$16 sps:$4 sm:$0xff]  }
 0x24a   : > { %4927 = vmatpush2.bf16.msra.mxu1 %v9342_v17  ;;  %4850 = vmatprep.subr.bf16.mxu0 %v9353_v33  ;;  %v9408_v17 = vld [vmem:[%s10062_s18 + $0x10a8] ss:$16 sps:$4 sm:$0xff]   ;;  %v9419_v33 = vld [vmem:[%s10062_s18 + $0xe4c] ss:$16 sps:$4 sm:$0xff]  }
 0x24b   : > { %4928 = vmatprep.subr.bf16.mxu1 %v9350_v44  ;;  %v9416_v44 = vld [vmem:[%s10062_s18 + $0x108c] ss:$16 sps:$4 sm:$0xff]  }
 0x24d   : > { %4851 = vmatpush2.bf16.msra.mxu0 %v9351_v37  ;;  %v9417_v37 = vld [vmem:[%s10062_s18 + $0xe48] ss:$16 sps:$4 sm:$0xff]  }
 0x24e   : > { %4929 = vmatpush2.bf16.msra.mxu1 %v9348_v35  ;;  %4852 = vmatprep.subr.bf16.mxu0 %v9359_v30  ;;  %v9414_v35 = vld [vmem:[%s10062_s18 + $0x1088] ss:$16 sps:$4 sm:$0xff]   ;;  %v9425_v30 = vld [vmem:[%s10062_s18 + $0x102c] ss:$16 sps:$4 sm:$0xff]  }
 0x24f   : > { %4930 = vmatprep.subr.bf16.mxu1 %v9356_v39  ;;  %v9422_v39 = vld [vmem:[%s10062_s18 + $0x106c] ss:$16 sps:$4 sm:$0xff]  }
 0x251   : > { %4853 = vmatpush2.bf16.msra.mxu0 %v9357_v45  ;;  %v9423_v45 = vld [vmem:[%s10062_s18 + $0x1028] ss:$16 sps:$4 sm:$0xff]  }
 0x252   : > { %4931 = vmatpush2.bf16.msra.mxu1 %v9354_v40  ;;  %4854 = vmatprep.subr.bf16.mxu0 %v9365_v46  ;;  %v9420_v40 = vld [vmem:[%s10062_s18 + $0x1068] ss:$16 sps:$4 sm:$0xff]   ;;  %v9431_v46 = vld [vmem:[%s10062_s18 + $0x100c] ss:$16 sps:$4 sm:$0xff]  }
 0x253   : > { %4932 = vmatprep.subr.bf16.mxu1 %v9362_v47  ;;  %v9428_v47 = vld [vmem:[%s10062_s18 + $0x104c] ss:$16 sps:$4 sm:$0xff]  }
 0x254   : > { %v3295_v51 = vpop.f32.mrf.mxu0 }
 0x255   : > { %v3296_v7 = vadd.f32 %v3295_v51, %v10700_v29  ;;  %4855 = vmatpush2.bf16.msra.mxu0 %v9363_v48  ;;  %v9429_v48 = vld [vmem:[%s10062_s18 + $0x1008] ss:$16 sps:$4 sm:$0xff]  }
 0x256   : > { %4933 = vmatpush2.bf16.msra.mxu1 %v9360_v23  ;;  %v3297_v31 = vpop.f32.mrf.mxu0  ;;  %4856 = vmatprep.subr.bf16.mxu0 %v9371_v22  ;;  %v9426_v23 = vld [vmem:[%s10062_s18 + $0x1048] ss:$16 sps:$4 sm:$0xff]   ;;  %v9437_v22 = vld [vmem:[%s10062_s18 + $0xfec] ss:$16 sps:$4 sm:$0xff]  }
 0x257   : > { %4934 = vmatprep.subr.bf16.mxu1 %v9368_v50  ;;  %v10794_v55 = vadd.f32 %v10721_v42, %v3296_v7  ;;  %v3298_v36 = vadd.f32 %v3297_v31, %v10707_v6  ;;  %v9383_v42 = vld [vmem:[%s10062_s18 + $0xf0c] ss:$16 sps:$4 sm:$0xff]   ;;  %v9432_v51 = vld [vmem:[%s10062_s18 + $0x1228] ss:$16 sps:$4 sm:$0xff]  }
 0x258   : > { %v3299_v58 = vpop.f32.mrf.mxu0  ;;  %v9434_v50 = vld [vmem:[%s10062_s18 + $0x122c] ss:$16 sps:$4 sm:$0xff]   ;;  %v9435_v7 = vld [vmem:[%s10062_s18 + $0xfe8] ss:$16 sps:$4 sm:$0xff]  }
 0x259   : > { %v10798_v29 = vadd.f32 %v10724_v11, %v3298_v36  ;;  %4857 = vmatpush2.bf16.msra.mxu0 %v9369_v28  ;;  %v9378_v11 = vld [vmem:[%s10062_s18 + $0xd48] ss:$16 sps:$4 sm:$0xff]   ;;  %v9443_v28 = vld [vmem:[%s10062_s18 + $0xfcc] ss:$16 sps:$4 sm:$0xff]  }
 0x25a   : > { %4935 = vmatpush2.bf16.msra.mxu1 %v9366_v4  ;;  %v3300_v60 = vpop.f32.mrf.mxu0  ;;  %4949 = vmatprep.subr.bf16.mxu0 %v9377_v54  ;;  %v9440_v4 = vld [vmem:[%s10062_s18 + $0x120c] ss:$16 sps:$4 sm:$0xff]   ;;  %v9438_v31 = vld [vmem:[%s10062_s18 + $0x1208] ss:$16 sps:$4 sm:$0xff]  }
 0x25b   : > { %4936 = vmatprep.subr.bf16.mxu1 %v9374_v53  ;;  %v9441_v53 = vld [vmem:[%s10062_s18 + $0xfc8] ss:$16 sps:$4 sm:$0xff]   ;;  %v9446_v54 = vld [vmem:[%s10062_s18 + $0x11ec] ss:$16 sps:$4 sm:$0xff]  }
 0x25c   : > { %4859 = vmatmul.mubr.bf16.vlgmr.msra.gmra.mxu0 %v10717_v0  ;;  %v9449_v36 = vld [vmem:[%s10062_s18 + $0xfac] ss:$16 sps:$4 sm:$0xff]   ;;  %v9444_v58 = vld [vmem:[%s10062_s18 + $0x11e8] ss:$16 sps:$4 sm:$0xff]  }
 0x25d   : > { %v3377_v1 = vpop.f32.mrf.mxu1  ;;  %4950 = vmatpush1.bf16.msra.mxu0 %v9375_v61  ;;  %4981 = vmatprep.mubr.bf16.mxu0 %v10627_v12  ;;  %v9393_v12 = vld [vmem:[%s10062_s18 + $0xec8] ss:$16 sps:$4 sm:$0xff]   ;;  %v9452_v61 = vld [vmem:[%s10062_s18 + $0x11cc] ss:$16 sps:$4 sm:$0xff]  }
 0x25e   : > { %v10806_v6 = vadd.f32 %v3377_v1, %v10612_v57  ;;  %4937 = vmatpush2.bf16.msra.mxu1 %v9372_v59  ;;  %4951 = vmatprep.subr.bf16.mxu0 %v9383_v42  ;;  %v9447_v59 = vld [vmem:[%s10062_s18 + $0xfa8] ss:$16 sps:$4 sm:$0xff]   ;;  %v9455_v60 = vld [vmem:[%s10062_s18 + $0xf8c] ss:$16 sps:$4 sm:$0xff]  }
 0x25f   : > { %v3379_v3 = vpop.f32.mrf.mxu1  ;;  %4938 = vmatprep.subr.bf16.mxu1 %v9380_v62  ;;  %v9450_v62 = vld [vmem:[%s10062_s18 + $0x11c8] ss:$16 sps:$4 sm:$0xff]   ;;  %v9458_v1 = vld [vmem:[%s10062_s18 + $0x11ac] ss:$16 sps:$4 sm:$0xff]  }
 0x260   : > { %v10813_v10 = vadd.f32 %v3379_v3, %v10619_v63  ;;  %v9390_v63 = vld [vmem:[%s10062_s18 + $0x1108] ss:$16 sps:$4 sm:$0xff]  }
 0x261   : > { %v3381_v57 = vpop.f32.mrf.mxu1  ;;  %4952 = vmatpush1.bf16.msra.mxu0 %v9381_v2  ;;  %v9453_v42 = vld [vmem:[%s10062_s18 + $0xf88] ss:$16 sps:$4 sm:$0xff]  }
 0x262   : > { %4939 = vmatpush2.bf16.msra.mxu1 %v9378_v11  ;;  %4953 = vmatprep.subr.bf16.mxu0 %v9389_v9  ;;  %v9461_v11 = vld [vmem:[%s10062_s18 + $0xf6c] ss:$16 sps:$4 sm:$0xff]   ;;  %v9456_v2 = vld [vmem:[%s10062_s18 + $0x11a8] ss:$16 sps:$4 sm:$0xff]  }
 0x263   : > { %v3382_v16 = vpop.f32.mrf.mxu1  ;;  %4990 = vmatprep.subr.bf16.mxu1 %v9386_v8  ;;  %v9459_v3 = vld [vmem:[%s10062_s18 + $0xf68] ss:$16 sps:$4 sm:$0xff]   ;;  %v9464_v8 = vld [vmem:[%s10062_s18 + $0x118c] ss:$16 sps:$4 sm:$0xff]  }
 0x264   : > { %v9467_v9 = vld [vmem:[%s10062_s18 + $0xf4c] ss:$16 sps:$4 sm:$0xff]   ;;  %v9462_v16 = vld [vmem:[%s10062_s18 + $0x1188] ss:$16 sps:$4 sm:$0xff]  }
 0x265   : > { %4941 = vmatmul.mubr.bf16.vlgmr.msra.gmra.mxu1 %v10692_v5  ;;  %4954 = vmatpush1.bf16.msra.mxu0 %v9387_v15  ;;  %v9399_v5 = vld [vmem:[%s10062_s18 + $0xea8] ss:$16 sps:$4 sm:$0xff]  }
 0x266   : > { %4991 = vmatpush1.bf16.msra.mxu1 %v9384_v14  ;;  %4955 = vmatprep.subr.bf16.mxu0 %v9395_v13  ;;  %v10873_v14 = vld [vmem:[%s11279_s0 + $0x15] sm:$0x7f] }
 0x267   : > { %4992 = vmatprep.subr.bf16.mxu1 %v9392_v18  ;;  %5022 = vmatprep.mubr.bf16.mxu1 %v10714_v41  ;;  %v9410_v41 = vld [vmem:[%s10062_s18 + $0x10ac] ss:$16 sps:$4 sm:$0xff]   ;;  %v9465_v18 = vld [vmem:[%s10062_s18 + $0xf48] ss:$16 sps:$4 sm:$0xff]  }
 0x269   : > { %4956 = vmatpush1.bf16.msra.mxu0 %v9393_v12  ;;  %v9473_v12 = vld [vmem:[%s10062_s18 + $0x124c] ss:$16 sps:$4 sm:$0xff]  }
 0x26a   : > { %4993 = vmatpush1.bf16.msra.mxu1 %v9390_v63  ;;  %4957 = vmatprep.subr.bf16.mxu0 %v9401_v20  ;;  %v9470_v63 = vld [vmem:[%s10062_s18 + $0x116c] ss:$16 sps:$4 sm:$0xff]   ;;  %v10883_v20 = vrot.slane %v10873_v14, %v10126_v49 }
 0x26b   : > { %4994 = vmatprep.subr.bf16.mxu1 %v9398_v19 }
 0x26d   : > { %4958 = vmatpush1.bf16.msra.mxu0 %v9399_v5  ;;  %v9471_v5 = vld [vmem:[%s10062_s18 + $0x1248] ss:$16 sps:$4 sm:$0xff]  }
 0x26e   : > { %4995 = vmatpush1.bf16.msra.mxu1 %v9396_v38  ;;  %4959 = vmatprep.subr.bf16.mxu0 %v9407_v24  ;;  %v9476_v24 = vld [vmem:[%s10062_s18 + $0x114c] ss:$16 sps:$4 sm:$0xff]  }
 0x26f   : > { %4996 = vmatprep.subr.bf16.mxu1 %v9404_v21 }
 0x271   : > { %4960 = vmatpush1.bf16.msra.mxu0 %v9405_v52  ;;  %v5291_v52 = vcombine.high %v10883_v20, %v10883_v20 }
 0x272   : > { %4997 = vmatpush1.bf16.msra.mxu1 %v9402_v27  ;;  %4961 = vmatprep.subr.bf16.mxu0 %v9413_v26  ;;  %v9479_v27 = vld [vmem:[%s10062_s18 + $0x1344] ss:$16 sps:$4 sm:$0xff]  }
 0x273   : > { %4998 = vmatprep.subr.bf16.mxu1 %v9410_v41 }
 0x275   : > { %4962 = vmatpush1.bf16.msra.mxu0 %v9411_v32 }
 0x276   : > { %4999 = vmatpush1.bf16.msra.mxu1 %v9408_v17  ;;  %4963 = vmatprep.subr.bf16.mxu0 %v9419_v33  ;;  %v9474_v17 = vld [vmem:[%s10062_s18 + $0x1148] ss:$16 sps:$4 sm:$0xff]   ;;  %v9482_v33 = vld [vmem:[%s10062_s18 + $0x1544] ss:$16 sps:$4 sm:$0xff]  }
 0x277   : > { %5000 = vmatprep.subr.bf16.mxu1 %v9416_v44 }
 0x279   : > { %4964 = vmatpush1.bf16.msra.mxu0 %v9417_v37 }
 0x27a   : > { %5001 = vmatpush1.bf16.msra.mxu1 %v9414_v35  ;;  %4965 = vmatprep.subr.bf16.mxu0 %v9425_v30 }
 0x27b   : > { %5002 = vmatprep.subr.bf16.mxu1 %v9422_v39 }
 0x27d   : > { %4966 = vmatpush2.bf16.msra.mxu0 %v9423_v45  ;;  %v9477_v45 = vld [vmem:[%s10062_s18 + $0x1340] ss:$16 sps:$4 sm:$0xff]  }
 0x27e   : > { %5003 = vmatpush1.bf16.msra.mxu1 %v9420_v40  ;;  %4967 = vmatprep.subr.bf16.mxu0 %v9431_v46 }
 0x27f   : > { %5004 = vmatprep.subr.bf16.mxu1 %v9428_v47  ;;  %v9480_v47 = vld [vmem:[%s10062_s18 + $0x1540] ss:$16 sps:$4 sm:$0xff]  }
 0x281   : > { %4968 = vmatpush2.bf16.msra.mxu0 %v9429_v48  ;;  %v9485_v48 = vld [vmem:[%s10062_s18 + $0x1324] ss:$16 sps:$4 sm:$0xff]  }
 0x282   : > { %5005 = vmatpush1.bf16.msra.mxu1 %v9426_v23  ;;  %4969 = vmatprep.subr.bf16.mxu0 %v9437_v22 }
 0x283   : > { %5006 = vmatprep.subr.bf16.mxu1 %v9434_v50  ;;  %v9488_v50 = vld [vmem:[%s10062_s18 + $0x1524] ss:$16 sps:$4 sm:$0xff]  }
 0x285   : > { %4970 = vmatpush2.bf16.msra.mxu0 %v9435_v7  ;;  %v9486_v7 = vld [vmem:[%s10062_s18 + $0x1520] ss:$16 sps:$4 sm:$0xff]  }
 0x286   : > { %5007 = vmatpush2.bf16.msra.mxu1 %v9432_v51  ;;  %4971 = vmatprep.subr.bf16.mxu0 %v9443_v28  ;;  %v9483_v51 = vld [vmem:[%s10062_s18 + $0x1320] ss:$16 sps:$4 sm:$0xff]   ;;  %v9494_v28 = vld [vmem:[%s10062_s18 + $0x1504] ss:$16 sps:$4 sm:$0xff]  }
 0x287   : > { %5008 = vmatprep.subr.bf16.mxu1 %v9440_v4  ;;  %v9491_v4 = vld [vmem:[%s10062_s18 + $0x1304] ss:$16 sps:$4 sm:$0xff]  }
 0x289   : > { %4972 = vmatpush2.bf16.msra.mxu0 %v9441_v53  ;;  %v9500_v53 = vld [vmem:[%s10062_s18 + $0x14e4] ss:$16 sps:$4 sm:$0xff]  }
 0x28a   : > { %5009 = vmatpush2.bf16.msra.mxu1 %v9438_v31  ;;  %4973 = vmatprep.subr.bf16.mxu0 %v9449_v36  ;;  %v9497_v31 = vld [vmem:[%s10062_s18 + $0x12e4] ss:$16 sps:$4 sm:$0xff]   ;;  %v9498_v36 = vld [vmem:[%s10062_s18 + $0x14e0] ss:$16 sps:$4 sm:$0xff]  }
 0x28b   : > { %5010 = vmatprep.subr.bf16.mxu1 %v9446_v54  ;;  %v9495_v54 = vld [vmem:[%s10062_s18 + $0x12e0] ss:$16 sps:$4 sm:$0xff]  }
 0x28d   : > { %4974 = vmatpush2.bf16.msra.mxu0 %v9447_v59  ;;  %v9506_v59 = vld [vmem:[%s10062_s18 + $0x14c4] ss:$16 sps:$4 sm:$0xff]  }
 0x28e   : > { %5011 = vmatpush2.bf16.msra.mxu1 %v9444_v58  ;;  %4975 = vmatprep.subr.bf16.mxu0 %v9455_v60  ;;  %v9503_v58 = vld [vmem:[%s10062_s18 + $0x12c4] ss:$16 sps:$4 sm:$0xff]   ;;  %v9504_v60 = vld [vmem:[%s10062_s18 + $0x14c0] ss:$16 sps:$4 sm:$0xff]  }
 0x28f   : > { %5012 = vmatprep.subr.bf16.mxu1 %v9452_v61  ;;  %v9501_v61 = vld [vmem:[%s10062_s18 + $0x12c0] ss:$16 sps:$4 sm:$0xff]  }
 0x291   : > { %4976 = vmatpush2.bf16.msra.mxu0 %v9453_v42  ;;  %v9512_v42 = vld [vmem:[%s10062_s18 + $0x14a4] ss:$16 sps:$4 sm:$0xff]  }
 0x292   : > { %5013 = vmatpush2.bf16.msra.mxu1 %v9450_v62  ;;  %4977 = vmatprep.subr.bf16.mxu0 %v9461_v11  ;;  %v9509_v62 = vld [vmem:[%s10062_s18 + $0x12a4] ss:$16 sps:$4 sm:$0xff]   ;;  %v9510_v11 = vld [vmem:[%s10062_s18 + $0x14a0] ss:$16 sps:$4 sm:$0xff]  }
 0x293   : > { %5014 = vmatprep.subr.bf16.mxu1 %v9458_v1  ;;  %v9507_v1 = vld [vmem:[%s10062_s18 + $0x12a0] ss:$16 sps:$4 sm:$0xff]  }
 0x294   : > { %v3418_v57 = vpop.f32.mrf.mxu0 }
 0x295   : > { %v3419_v15 = vadd.f32 %v3418_v57, %v10806_v6  ;;  %4978 = vmatpush2.bf16.msra.mxu0 %v9459_v3  ;;  %v9468_v6 = vld [vmem:[%s10062_s18 + $0x1168] ss:$16 sps:$4 sm:$0xff]   ;;  %v9518_v3 = vld [vmem:[%s10062_s18 + $0x1484] ss:$16 sps:$4 sm:$0xff]  }
 0x296   : > { %5015 = vmatpush2.bf16.msra.mxu1 %v9456_v2  ;;  %v3420_v13 = vpop.f32.mrf.mxu0  ;;  %4979 = vmatprep.subr.bf16.mxu0 %v9467_v9  ;;  %v9515_v2 = vld [vmem:[%s10062_s18 + $0x1284] ss:$16 sps:$4 sm:$0xff]   ;;  %v9516_v9 = vld [vmem:[%s10062_s18 + $0x1480] ss:$16 sps:$4 sm:$0xff]  }
 0x297   : > { %5016 = vmatprep.subr.bf16.mxu1 %v9464_v8  ;;  %v3421_v19 = vadd.f32 %v3420_v13, %v10813_v10  ;;  %v9513_v8 = vld [vmem:[%s10062_s18 + $0x1280] ss:$16 sps:$4 sm:$0xff]   ;;  %v9521_v57 = vld [vmem:[%s10062_s18 + $0x1264] ss:$16 sps:$4 sm:$0xff]  }
 0x298   : > { %v3422_v38 = vpop.f32.mrf.mxu0  ;;  %v9527_v13 = vld [vmem:[%s10062_s18 + $0x1444] ss:$16 sps:$4 sm:$0xff]  }
 0x299   : > { %4980 = vmatpush2.bf16.msra.mxu0 %v9465_v18  ;;  %v9522_v18 = vld [vmem:[%s10062_s18 + $0x1460] ss:$16 sps:$4 sm:$0xff]   ;;  %v9533_v38 = vld [vmem:[%s10062_s18 + $0x1424] ss:$16 sps:$4 sm:$0xff]  }
 0x29a   : > { %5017 = vmatpush2.bf16.msra.mxu1 %v9462_v16  ;;  %v3423_v21 = vpop.f32.mrf.mxu0  ;;  %5045 = vmatprep.subr.bf16.mxu0 %v9473_v12  ;;  %v9519_v16 = vld [vmem:[%s10062_s18 + $0x1260] ss:$16 sps:$4 sm:$0xff]  }
 0x29b   : > { %5018 = vmatprep.subr.bf16.mxu1 %v9470_v63  ;;  %v9530_v63 = vld [vmem:[%s10062_s18 + $0x1644] ss:$16 sps:$4 sm:$0xff]   ;;  %v9525_v12 = vld [vmem:[%s10062_s18 + $0x1440] ss:$16 sps:$4 sm:$0xff]  }
 0x29c   : > { %4982 = vmatmul.mubr.bf16.vlgmr.msra.gmra.mxu0 %v10705_v56  ;;  %v3500_v41 = vpop.f32.mrf.mxu0  ;;  %v10898_v56 = vrot.slane %v5291_v52, %v10126_v49  ;;  %v9534_v21 = vld [vmem:[%s10062_s18 + $0x1620] ss:$16 sps:$4 sm:$0xff]  }
 0x29d   : > { %v3459_v10 = vpop.f32.mrf.mxu1  ;;  %5046 = vmatpush1.bf16.msra.mxu0 %v9471_v5  ;;  %5063 = vmatprep.mubr.bf16.mxu0 %v9918_v25  ;;  %v9531_v5 = vld [vmem:[%s10062_s18 + $0x1420] ss:$16 sps:$4 sm:$0xff]  }
 0x29e   : > { %v3460_v26 = vadd.f32 %v3459_v10, %v3419_v15  ;;  %5019 = vmatpush2.bf16.msra.mxu1 %v9468_v6  ;;  %v3502_v44 = vpop.f32.mrf.mxu0  ;;  %6313 = vmatprep.subr.bf16.mxu0 %v9479_v27  ;;  %v10908_v22 = vcombine.high %v10898_v56, %v10898_v56  ;;  %v9524_v15 = vld [vmem:[%s10062_s18 + $0x1464] ss:$16 sps:$4 sm:$0xff]   ;;  %v9537_v52 = vld [vmem:[%s10062_s18 + $0x1400] ss:$16 sps:$4 sm:$0xff]  }
 0x29f   : > { %v3461_v32 = vpop.f32.mrf.mxu1  ;;  %5020 = vmatprep.subr.bf16.mxu1 %v9476_v24  ;;  %v9536_v6 = vld [vmem:[%s10062_s18 + $0x1624] ss:$16 sps:$4 sm:$0xff]   ;;  %v9540_v10 = vld [vmem:[%s10062_s18 + $0x1600] ss:$16 sps:$4 sm:$0xff]  }
 0x2a0   : > { %v10895_v35 = vadd.f32 %v3500_v41, %v3460_v26  ;;  %v3462_v37 = vadd.f32 %v3461_v32, %v3421_v19  ;;  %v3504_v30 = vpop.f32.mrf.mxu0  ;;  %v9528_v19 = vld [vmem:[%s10062_s18 + $0x1640] ss:$16 sps:$4 sm:$0xff]   ;;  %v9539_v24 = vld [vmem:[%s10062_s18 + $0x1404] ss:$16 sps:$4 sm:$0xff]  }
 0x2a1   : > { %v3463_v39 = vpop.f32.mrf.mxu1  ;;  %v9542_v27 = vld [vmem:[%s10062_s18 + $0x1604] ss:$16 sps:$4 sm:$0xff]   ;;  %v9546_v32 = vld [vmem:[%s10062_s18 + $0x15e0] ss:$16 sps:$4 sm:$0xff]  }
 0x2a2   : > { %v10900_v40 = vadd.f32 %v3502_v44, %v3462_v37  ;;  %5021 = vmatpush2.bf16.msra.mxu1 %v9474_v17  ;;  %v3505_v23 = vpop.f32.mrf.mxu0  ;;  %v9545_v41 = vld [vmem:[%s10062_s18 + $0x13e4] ss:$16 sps:$4 sm:$0xff]   ;;  %v9543_v17 = vld [vmem:[%s10062_s18 + $0x13e0] ss:$16 sps:$4 sm:$0xff]  }
 0x2a3   : > { %v3464_v46 = vpop.f32.mrf.mxu1  ;;  %6354 = vmatprep.subr.bf16.mxu1 %v9482_v33  ;;  %v9548_v26 = vld [vmem:[%s10062_s18 + $0x15e4] ss:$16 sps:$4 sm:$0xff]   ;;  %v9549_v37 = vld [vmem:[%s10062_s18 + $0x13c0] ss:$16 sps:$4 sm:$0xff]  }
 0x2a4   : > { %8049 = vmatmul.mubr.msk.bf16.vlgmr.msra.gmra.mxu0 %vm1809_vm0, %v10731_v34  ;;  %v9492_v34 = vld [vmem:[%s10062_s18 + $0x1500] ss:$16 sps:$4 sm:$0xff]   ;;  %v9551_v44 = vld [vmem:[%s10062_s18 + $0x13c4] ss:$16 sps:$4 sm:$0xff]  }
 0x2a5   : > { %5023 = vmatmul.mubr.bf16.vlgmr.msra.gmra.mxu1 %v10717_v0  ;;  %6314 = vmatpush1.bf16.msra.mxu0 %v9477_v45  ;;  %v9489_v0 = vld [vmem:[%s10062_s18 + $0x1300] ss:$16 sps:$4 sm:$0xff]   ;;  %v9554_v33 = vld [vmem:[%s10062_s18 + $0x15c4] ss:$16 sps:$4 sm:$0xff]  }
 0x2a6   : > { %6355 = vmatpush1.bf16.msra.mxu1 %v9480_v47  ;;  %6315 = vmatprep.subr.bf16.mxu0 %v9485_v48  ;;  %v9552_v39 = vld [vmem:[%s10062_s18 + $0x15c0] ss:$16 sps:$4 sm:$0xff]   ;;  %v9557_v30 = vld [vmem:[%s10062_s18 + $0x13a4] ss:$16 sps:$4 sm:$0xff]  }
 0x2a7   : > { %6356 = vmatprep.subr.bf16.mxu1 %v9488_v50  ;;  %6345 = vmatprep.mubr.bf16.mxu0 %v10898_v56  ;;  %v9560_v45 = vld [vmem:[%s10062_s18 + $0x15a4] ss:$16 sps:$4 sm:$0xff]   ;;  %v9555_v47 = vld [vmem:[%s10062_s18 + $0x13a0] ss:$16 sps:$4 sm:$0xff]  }
 0x2a8   : > { %6386 = vmatprep.mubr.bf16.mxu1 %v10908_v22  ;;  %v9558_v46 = vld [vmem:[%s10062_s18 + $0x15a0] ss:$16 sps:$4 sm:$0xff]   ;;  %v9563_v23 = vld [vmem:[%s10062_s18 + $0x1384] ss:$16 sps:$4 sm:$0xff]  }
 0x2a9   : > { %6316 = vmatpush1.bf16.msra.mxu0 %v9483_v51  ;;  %v9566_v48 = vld [vmem:[%s10062_s18 + $0x1584] ss:$16 sps:$4 sm:$0xff]   ;;  %v9561_v50 = vld [vmem:[%s10062_s18 + $0x1380] ss:$16 sps:$4 sm:$0xff]  }
 0x2aa   : > { %6357 = vmatpush1.bf16.msra.mxu1 %v9486_v7  ;;  %6317 = vmatprep.subr.bf16.mxu0 %v9491_v4  ;;  %v9564_v51 = vld [vmem:[%s10062_s18 + $0x1580] ss:$16 sps:$4 sm:$0xff]   ;;  %v5276_v7 = vcombine.high %v10873_v14, %v10873_v14  ;;  %v9569_v4 = vld [vmem:[%s10062_s18 + $0x1364] ss:$16 sps:$4 sm:$0xff]  }
 0x2ab   : > { %6358 = vmatprep.subr.bf16.mxu1 %v9494_v28  ;;  %v9572_v28 = vld [vmem:[%s10062_s18 + $0x1564] ss:$16 sps:$4 sm:$0xff]  }
 0x2ac   : > { %v5290_v14 = vrot.slane %v5276_v7, %v10126_v49  ;;  %v9624_v7 = vld [vmem:[%s10062_s18 + $0x1844] ss:$16 sps:$4 sm:$0xff]  }
 0x2ad   : > { %6318 = vmatpush1.bf16.msra.mxu0 %v9489_v0 }
 0x2ae   : > { %6359 = vmatpush1.bf16.msra.mxu1 %v9492_v34  ;;  %6319 = vmatprep.subr.bf16.mxu0 %v9497_v31  ;;  %v10975_v31 = vrot.slane %v10883_v20, %v10126_v49 }
 0x2af   : > { %6360 = vmatprep.subr.bf16.mxu1 %v9500_v53 }
 0x2b1   : > { %6320 = vmatpush1.bf16.msra.mxu0 %v9495_v54  ;;  %v9567_v54 = vld [vmem:[%s10062_s18 + $0x1360] ss:$16 sps:$4 sm:$0xff]  }
 0x2b2   : > { %6361 = vmatpush1.bf16.msra.mxu1 %v9498_v36  ;;  %6321 = vmatprep.subr.bf16.mxu0 %v9503_v58  ;;  %v9570_v36 = vld [vmem:[%s10062_s18 + $0x1560] ss:$16 sps:$4 sm:$0xff]  }
 0x2b3   : > { %6362 = vmatprep.subr.bf16.mxu1 %v9506_v59 }
 0x2b5   : > { %6322 = vmatpush1.bf16.msra.mxu0 %v9501_v61  ;;  %v9576_v61 = vld [vmem:[%s10062_s18 + $0x1744] ss:$16 sps:$4 sm:$0xff]  }
 0x2b6   : > { %6363 = vmatpush1.bf16.msra.mxu1 %v9504_v60  ;;  %6323 = vmatprep.subr.bf16.mxu0 %v9509_v62  ;;  %v9579_v60 = vld [vmem:[%s10062_s18 + $0x1864] ss:$16 sps:$4 sm:$0xff]   ;;  %v5292_v62 = vcombine.high %v5290_v14, %v5290_v14 }
 0x2b7   : > { %6364 = vmatprep.subr.bf16.mxu1 %v9512_v42 }
 0x2b9   : > { %6324 = vmatpush1.bf16.msra.mxu0 %v9507_v1 }
 0x2ba   : > { %6365 = vmatpush1.bf16.msra.mxu1 %v9510_v11  ;;  %6325 = vmatprep.subr.bf16.mxu0 %v9515_v2  ;;  %v10988_v11 = vcombine.high %v10975_v31, %v10975_v31  ;;  %v9574_v2 = vld [vmem:[%s10062_s18 + $0x1740] ss:$16 sps:$4 sm:$0xff]  }
 0x2bb   : > { %6366 = vmatprep.subr.bf16.mxu1 %v9518_v3  ;;  %v9577_v3 = vld [vmem:[%s10062_s18 + $0x1860] ss:$16 sps:$4 sm:$0xff]  }
 0x2bd   : > { %6326 = vmatpush1.bf16.msra.mxu0 %v9513_v8 }
 0x2be   : > { %6367 = vmatpush1.bf16.msra.mxu1 %v9516_v9  ;;  %6327 = vmatprep.subr.bf16.mxu0 %v9521_v57  ;;  %v9582_v57 = vld [vmem:[%s10062_s18 + $0x1724] ss:$16 sps:$4 sm:$0xff]  }
 0x2bf   : > { %6368 = vmatprep.subr.bf16.mxu1 %v9524_v15  ;;  %v9585_v15 = vld [vmem:[%s10062_s18 + $0x134c] ss:$16 sps:$4 sm:$0xff]  }
 0x2c1   : > { %6328 = vmatpush1.bf16.msra.mxu0 %v9519_v16  ;;  %v10995_v16 = vrot.slane %v5292_v62, %v10126_v49  ;;  %v9642_v62 = vld [vmem:[%s10062_s18 + $0x17e4] ss:$16 sps:$4 sm:$0xff]  }
 0x2c2   : > { %6369 = vmatpush1.bf16.msra.mxu1 %v9522_v18  ;;  %6329 = vmatprep.subr.bf16.mxu0 %v9527_v13  ;;  %v10998_v18 = vrot.slane %v5290_v14, %v10126_v49  ;;  %v9588_v49 = vld [vmem:[%s10062_s18 + $0x1704] ss:$16 sps:$4 sm:$0xff]   ;;  %v9633_v14 = vld [vmem:[%s10062_s18 + $0x144c] ss:$16 sps:$4 sm:$0xff]  }
 0x2c3   : > { %6370 = vmatprep.subr.bf16.mxu1 %v9530_v63  ;;  %v9580_v63 = vld [vmem:[%s10062_s18 + $0x1720] ss:$16 sps:$4 sm:$0xff]  }
 0x2c5   : > { %6330 = vmatpush2.bf16.msra.mxu0 %v9525_v12 }
 0x2c6   : > { %6371 = vmatpush2.bf16.msra.mxu1 %v9528_v19  ;;  %6331 = vmatprep.subr.bf16.mxu0 %v9533_v38  ;;  %v11012_v38 = vcombine.high %v10998_v18, %v10998_v18 }
 0x2c7   : > { %6372 = vmatprep.subr.bf16.mxu1 %v9536_v6  ;;  %v9583_v6 = vld [vmem:[%s10062_s18 + $0x1348] ss:$16 sps:$4 sm:$0xff]  }
 0x2c9   : > { %6332 = vmatpush2.bf16.msra.mxu0 %v9531_v5  ;;  %v9586_v5 = vld [vmem:[%s10062_s18 + $0x1700] ss:$16 sps:$4 sm:$0xff]  }
 0x2ca   : > { %6373 = vmatpush2.bf16.msra.mxu1 %v9534_v21  ;;  %6333 = vmatprep.subr.bf16.mxu0 %v9539_v24  ;;  %v9591_v24 = vld [vmem:[%s10062_s18 + $0x132c] ss:$16 sps:$4 sm:$0xff]  }
 0x2cb   : > { %6374 = vmatprep.subr.bf16.mxu1 %v9542_v27  ;;  %v9594_v27 = vld [vmem:[%s10062_s18 + $0x16e4] ss:$16 sps:$4 sm:$0xff]  }
 0x2cd   : > { %6334 = vmatpush2.bf16.msra.mxu0 %v9537_v52  ;;  %v9589_v52 = vld [vmem:[%s10062_s18 + $0x1328] ss:$16 sps:$4 sm:$0xff]  }
 0x2ce   : > { %6375 = vmatpush2.bf16.msra.mxu1 %v9540_v10  ;;  %6335 = vmatprep.subr.bf16.mxu0 %v9545_v41  ;;  %v9592_v10 = vld [vmem:[%s10062_s18 + $0x16e0] ss:$16 sps:$4 sm:$0xff]   ;;  %v9597_v41 = vld [vmem:[%s10062_s18 + $0x130c] ss:$16 sps:$4 sm:$0xff]  }
 0x2cf   : > { %6376 = vmatprep.subr.bf16.mxu1 %v9548_v26  ;;  %v9600_v26 = vld [vmem:[%s10062_s18 + $0x16c4] ss:$16 sps:$4 sm:$0xff]  }
 0x2d1   : > { %6336 = vmatpush2.bf16.msra.mxu0 %v9543_v17  ;;  %v9595_v17 = vld [vmem:[%s10062_s18 + $0x1308] ss:$16 sps:$4 sm:$0xff]  }
 0x2d2   : > { %6377 = vmatpush2.bf16.msra.mxu1 %v9546_v32  ;;  %6337 = vmatprep.subr.bf16.mxu0 %v9551_v44  ;;  %v9598_v32 = vld [vmem:[%s10062_s18 + $0x16c0] ss:$16 sps:$4 sm:$0xff]   ;;  %v9603_v44 = vld [vmem:[%s10062_s18 + $0x12ec] ss:$16 sps:$4 sm:$0xff]  }
 0x2d3   : > { %6378 = vmatprep.subr.bf16.mxu1 %v9554_v33  ;;  %v9606_v33 = vld [vmem:[%s10062_s18 + $0x16a4] ss:$16 sps:$4 sm:$0xff]  }
 0x2d5   : > { %6338 = vmatpush2.bf16.msra.mxu0 %v9549_v37  ;;  %v9601_v37 = vld [vmem:[%s10062_s18 + $0x12e8] ss:$16 sps:$4 sm:$0xff]  }
 0x2d6   : > { %6379 = vmatpush2.bf16.msra.mxu1 %v9552_v39  ;;  %6339 = vmatprep.subr.bf16.mxu0 %v9557_v30  ;;  %v9604_v39 = vld [vmem:[%s10062_s18 + $0x16a0] ss:$16 sps:$4 sm:$0xff]   ;;  %v9612_v30 = vld [vmem:[%s10062_s18 + $0x1684] ss:$16 sps:$4 sm:$0xff]  }
 0x2d7   : > { %6380 = vmatprep.subr.bf16.mxu1 %v9560_v45  ;;  %v9607_v45 = vld [vmem:[%s10062_s18 + $0x12c8] ss:$16 sps:$4 sm:$0xff]  }
 0x2d9   : > { %6340 = vmatpush2.bf16.msra.mxu0 %v9555_v47  ;;  %v9610_v47 = vld [vmem:[%s10062_s18 + $0x1680] ss:$16 sps:$4 sm:$0xff]  }
 0x2da   : > { %6381 = vmatpush2.bf16.msra.mxu1 %v9558_v46  ;;  %6341 = vmatprep.subr.bf16.mxu0 %v9563_v23  ;;  %v9615_v46 = vld [vmem:[%s10062_s18 + $0x12ac] ss:$16 sps:$4 sm:$0xff]   ;;  %v9618_v23 = vld [vmem:[%s10062_s18 + $0x1664] ss:$16 sps:$4 sm:$0xff]  }
 0x2db   : > { %6382 = vmatprep.subr.bf16.mxu1 %v9566_v48  ;;  %v9613_v48 = vld [vmem:[%s10062_s18 + $0x12a8] ss:$16 sps:$4 sm:$0xff]  }
 0x2dc   : > { %v4778_v0 = vpop.f32.mrf.mxu0 }
 0x2dd   : > { %v4819_v34 = vpop.f32.mrf.mxu1  ;;  %6342 = vmatpush2.bf16.msra.mxu0 %v9561_v50  ;;  %v9616_v50 = vld [vmem:[%s10062_s18 + $0x1660] ss:$16 sps:$4 sm:$0xff]  }
 0x2de   : > { %v10977_v53 = vadd.f32 %v4819_v34, %v4778_v0  ;;  %6383 = vmatpush2.bf16.msra.mxu1 %v9564_v51  ;;  %v4780_v58 = vpop.f32.mrf.mxu0  ;;  %6343 = vmatprep.subr.bf16.mxu0 %v9569_v4  ;;  %v9621_v51 = vld [vmem:[%s10062_s18 + $0x128c] ss:$16 sps:$4 sm:$0xff]   ;;  %v9619_v4 = vld [vmem:[%s10062_s18 + $0x1288] ss:$16 sps:$4 sm:$0xff]   ;;  %v9630_v34 = vld [vmem:[%s10062_s18 + $0x1824] ss:$16 sps:$4 sm:$0xff]  }
 0x2df   : > { %v4821_v59 = vpop.f32.mrf.mxu1  ;;  %6384 = vmatprep.subr.bf16.mxu1 %v9572_v28  ;;  %v9622_v28 = vld [vmem:[%s10062_s18 + $0x1840] ss:$16 sps:$4 sm:$0xff]   ;;  %v9627_v0 = vld [vmem:[%s10062_s18 + $0x126c] ss:$16 sps:$4 sm:$0xff]  }
 0x2e0   : > { %v10984_v20 = vadd.f32 %v4821_v59, %v4780_v58  ;;  %v4782_v42 = vpop.f32.mrf.mxu0  ;;  %v9636_v58 = vld [vmem:[%s10062_s18 + $0x1804] ss:$16 sps:$4 sm:$0xff]   ;;  %v9631_v59 = vld [vmem:[%s10062_s18 + $0x1448] ss:$16 sps:$4 sm:$0xff]  }
 0x2e1   : > { %v4823_v1 = vpop.f32.mrf.mxu1  ;;  %6344 = vmatpush2.bf16.msra.mxu0 %v9567_v54  ;;  %v9625_v54 = vld [vmem:[%s10062_s18 + $0x1268] ss:$16 sps:$4 sm:$0xff]  }
 0x2e2   : > { %6385 = vmatpush2.bf16.msra.mxu1 %v9570_v36  ;;  %v4783_v8 = vpop.f32.mrf.mxu0  ;;  %6395 = vmatprep.subr.bf16.mxu0 %v9576_v61  ;;  %v9628_v36 = vld [vmem:[%s10062_s18 + $0x1820] ss:$16 sps:$4 sm:$0xff]   ;;  %v9637_v42 = vld [vmem:[%s10062_s18 + $0x1428] ss:$16 sps:$4 sm:$0xff]  }
 0x2e3   : > { %v4824_v9 = vpop.f32.mrf.mxu1  ;;  %6450 = vmatprep.subr.bf16.mxu1 %v9579_v60  ;;  %v9634_v61 = vld [vmem:[%s10062_s18 + $0x1800] ss:$16 sps:$4 sm:$0xff]   ;;  %v9639_v60 = vld [vmem:[%s10062_s18 + $0x142c] ss:$16 sps:$4 sm:$0xff]   ;;  %v9643_v8 = vld [vmem:[%s10062_s18 + $0x1408] ss:$16 sps:$4 sm:$0xff]  }
 0x2e4   : > { %6346 = vmatmul.mubr.bf16.vlgmr.msra.gmra.mxu0 %v10975_v31  ;;  %v9640_v1 = vld [vmem:[%s10062_s18 + $0x17e0] ss:$16 sps:$4 sm:$0xff]  }
 0x2e5   : > { %6387 = vmatmul.mubr.bf16.vlgmr.msra.gmra.mxu1 %v10988_v11  ;;  %v11002_v13 = vpop.f32.mrf.mxu1  ;;  %6396 = vmatpush1.bf16.msra.mxu0 %v9574_v2  ;;  %v9645_v2 = vld [vmem:[%s10062_s18 + $0x140c] ss:$16 sps:$4 sm:$0xff]   ;;  %v9646_v9 = vld [vmem:[%s10062_s18 + $0x17c0] ss:$16 sps:$4 sm:$0xff]  }
 0x2e6   : > { %6451 = vmatpush1.bf16.msra.mxu1 %v9577_v3  ;;  %6397 = vmatprep.subr.bf16.mxu0 %v9582_v57  ;;  %v9648_v3 = vld [vmem:[%s10062_s18 + $0x17c4] ss:$16 sps:$4 sm:$0xff]   ;;  %v9651_v57 = vld [vmem:[%s10062_s18 + $0x13ec] ss:$16 sps:$4 sm:$0xff]  }
 0x2e7   : > { %v11005_v12 = vpop.f32.mrf.mxu1  ;;  %6468 = vmatprep.mubr.bf16.mxu1 %v9918_v25  ;;  %6477 = vmatprep.subr.bf16.mxu1 %v9585_v15  ;;  %v9654_v15 = vld [vmem:[%s10062_s18 + $0x17a4] ss:$16 sps:$4 sm:$0xff]  }
 0x2e8   : > { %6427 = vmatprep.mubr.bf16.mxu0 %v10995_v16 }
 0x2e9   : > { %v4905_v19 = vpop.f32.mrf.mxu1  ;;  %6398 = vmatpush1.bf16.msra.mxu0 %v9580_v63  ;;  %v9649_v63 = vld [vmem:[%s10062_s18 + $0x13e8] ss:$16 sps:$4 sm:$0xff]  }
 0x2ea   : > { %6399 = vmatprep.subr.bf16.mxu0 %v9588_v49  ;;  %v9652_v49 = vld [vmem:[%s10062_s18 + $0x17a0] ss:$16 sps:$4 sm:$0xff]   ;;  %v9657_v19 = vld [vmem:[%s10062_s18 + $0x13cc] ss:$16 sps:$4 sm:$0xff]  }
 0x2eb   : > { %v4906_v21 = vpop.f32.mrf.mxu1 }
 0x2ec   : > { %v9658_v21 = vld [vmem:[%s10062_s18 + $0x1780] ss:$16 sps:$4 sm:$0xff]  }
 0x2ed   : > { %8443 = vmatmul.mubr.msk.bf16.vlgmr.msra.gmra.mxu1 %vm1809_vm0, %v11012_v38  ;;  %6400 = vmatpush1.bf16.msra.mxu0 %v9586_v5  ;;  %v9655_v5 = vld [vmem:[%s10062_s18 + $0x13c8] ss:$16 sps:$4 sm:$0xff]  }
 0x2ee   : > { %6478 = vmatpush1.bf16.msra.mxu1 %v9583_v6  ;;  %6401 = vmatprep.subr.bf16.mxu0 %v9594_v27  ;;  %v9660_v6 = vld [vmem:[%s10062_s18 + $0x1784] ss:$16 sps:$4 sm:$0xff]  }
 0x2ef   : > { %6479 = vmatprep.subr.bf16.mxu1 %v9591_v24  ;;  %6509 = vmatprep.mubr.bf16.mxu1 %v10898_v56  ;;  %v9609_v56 = vld [vmem:[%s10062_s18 + $0x12cc] ss:$16 sps:$4 sm:$0xff]   ;;  %v9666_v27 = vld [vmem:[%s10062_s18 + $0x1764] ss:$16 sps:$4 sm:$0xff]  }
 0x2f0   : > { %v9663_v24 = vld [vmem:[%s10062_s18 + $0x13ac] ss:$16 sps:$4 sm:$0xff]  }
 0x2f1   : > { %6402 = vmatpush1.bf16.msra.mxu0 %v9592_v10 }
 0x2f2   : > { %6480 = vmatpush1.bf16.msra.mxu1 %v9589_v52  ;;  %6403 = vmatprep.subr.bf16.mxu0 %v9600_v26  ;;  %v9664_v26 = vld [vmem:[%s10062_s18 + $0x1760] ss:$16 sps:$4 sm:$0xff]  }
 0x2f3   : > { %6481 = vmatprep.subr.bf16.mxu1 %v9597_v41  ;;  %v9661_v41 = vld [vmem:[%s10062_s18 + $0x13a8] ss:$16 sps:$4 sm:$0xff]  }
 0x2f5   : > { %6404 = vmatpush1.bf16.msra.mxu0 %v9598_v32  ;;  %v9669_v32 = vld [vmem:[%s10062_s18 + $0x138c] ss:$16 sps:$4 sm:$0xff]  }
 0x2f6   : > { %6482 = vmatpush1.bf16.msra.mxu1 %v9595_v17  ;;  %6405 = vmatprep.subr.bf16.mxu0 %v9606_v33 }
 0x2f7   : > { %6483 = vmatprep.subr.bf16.mxu1 %v9603_v44  ;;  %v9672_v44 = vld [vmem:[%s10062_s18 + $0x154c] ss:$16 sps:$4 sm:$0xff]  }
 0x2f9   : > { %6406 = vmatpush1.bf16.msra.mxu0 %v9604_v39 }
 0x2fa   : > { %6484 = vmatpush1.bf16.msra.mxu1 %v9601_v37  ;;  %6407 = vmatprep.subr.bf16.mxu0 %v9612_v30  ;;  %v9667_v30 = vld [vmem:[%s10062_s18 + $0x1388] ss:$16 sps:$4 sm:$0xff]  }
 0x2fb   : > { %6485 = vmatprep.subr.bf16.mxu1 %v9609_v56 }
 0x2fd   : > { %6408 = vmatpush1.bf16.msra.mxu0 %v9610_v47 }
 0x2fe   : > { %6486 = vmatpush1.bf16.msra.mxu1 %v9607_v45  ;;  %6409 = vmatprep.subr.bf16.mxu0 %v9618_v23  ;;  %v9670_v45 = vld [vmem:[%s10062_s18 + $0x1548] ss:$16 sps:$4 sm:$0xff]  }
 0x2ff   : > { %6487 = vmatprep.subr.bf16.mxu1 %v9615_v46  ;;  %v9678_v46 = vld [vmem:[%s10062_s18 + $0x152c] ss:$16 sps:$4 sm:$0xff]   ;;  %v9676_v23 = vld [vmem:[%s10062_s18 + $0x1528] ss:$16 sps:$4 sm:$0xff]  }
 0x301   : > { %6410 = vmatpush1.bf16.msra.mxu0 %v9616_v50  ;;  %v9681_v50 = vld [vmem:[%s10062_s18 + $0x174c] ss:$16 sps:$4 sm:$0xff]  }
 0x302   : > { %6488 = vmatpush1.bf16.msra.mxu1 %v9613_v48  ;;  %6411 = vmatprep.subr.bf16.mxu0 %v9624_v7  ;;  %v9679_v7 = vld [vmem:[%s10062_s18 + $0x1748] ss:$16 sps:$4 sm:$0xff]  }
 0x303   : > { %6489 = vmatprep.subr.bf16.mxu1 %v9621_v51 }
 0x305   : > { %6412 = vmatpush2.bf16.msra.mxu0 %v9622_v28 }
 0x306   : > { %6490 = vmatpush1.bf16.msra.mxu1 %v9619_v4  ;;  %6413 = vmatprep.subr.bf16.mxu0 %v9630_v34  ;;  %v9682_v4 = vld [vmem:[%s10062_s18 + $0x1508] ss:$16 sps:$4 sm:$0xff]   ;;  %v9690_v34 = vld [vmem:[%s10062_s18 + $0x14ec] ss:$16 sps:$4 sm:$0xff]  }
 0x307   : > { %6491 = vmatprep.subr.bf16.mxu1 %v9627_v0  ;;  %v9687_v0 = vld [vmem:[%s10062_s18 + $0x172c] ss:$16 sps:$4 sm:$0xff]  }
 0x309   : > { %6414 = vmatpush2.bf16.msra.mxu0 %v9628_v36  ;;  %v9693_v36 = vld [vmem:[%s10062_s18 + $0x170c] ss:$16 sps:$4 sm:$0xff]  }
 0x30a   : > { %6492 = vmatpush1.bf16.msra.mxu1 %v9625_v54  ;;  %6415 = vmatprep.subr.bf16.mxu0 %v9636_v58  ;;  %v9688_v54 = vld [vmem:[%s10062_s18 + $0x14e8] ss:$16 sps:$4 sm:$0xff]  }
 0x30b   : > { %6493 = vmatprep.subr.bf16.mxu1 %v9633_v14  ;;  %v9696_v14 = vld [vmem:[%s10062_s18 + $0x14cc] ss:$16 sps:$4 sm:$0xff]   ;;  %v9691_v58 = vld [vmem:[%s10062_s18 + $0x1708] ss:$16 sps:$4 sm:$0xff]  }
 0x30d   : > { %6416 = vmatpush2.bf16.msra.mxu0 %v9634_v61  ;;  %v9702_v61 = vld [vmem:[%s10062_s18 + $0x14ac] ss:$16 sps:$4 sm:$0xff]  }
 0x30e   : > { %6494 = vmatpush2.bf16.msra.mxu1 %v9631_v59  ;;  %6417 = vmatprep.subr.bf16.mxu0 %v9642_v62  ;;  %v9699_v59 = vld [vmem:[%s10062_s18 + $0x16ec] ss:$16 sps:$4 sm:$0xff]   ;;  %v9700_v62 = vld [vmem:[%s10062_s18 + $0x14a8] ss:$16 sps:$4 sm:$0xff]  }
 0x30f   : > { %6495 = vmatprep.subr.bf16.mxu1 %v9639_v60  ;;  %v9697_v60 = vld [vmem:[%s10062_s18 + $0x16e8] ss:$16 sps:$4 sm:$0xff]  }
 0x311   : > { %6418 = vmatpush2.bf16.msra.mxu0 %v9640_v1  ;;  %v9703_v1 = vld [vmem:[%s10062_s18 + $0x16c8] ss:$16 sps:$4 sm:$0xff]  }
 0x312   : > { %6496 = vmatpush2.bf16.msra.mxu1 %v9637_v42  ;;  %6419 = vmatprep.subr.bf16.mxu0 %v9648_v3  ;;  %v9708_v42 = vld [vmem:[%s10062_s18 + $0x148c] ss:$16 sps:$4 sm:$0xff]  }
 0x313   : > { %6497 = vmatprep.subr.bf16.mxu1 %v9645_v2  ;;  %v9706_v2 = vld [vmem:[%s10062_s18 + $0x1488] ss:$16 sps:$4 sm:$0xff]   ;;  %v9711_v3 = vld [vmem:[%s10062_s18 + $0x16ac] ss:$16 sps:$4 sm:$0xff]  }
 0x315   : > { %6420 = vmatpush2.bf16.msra.mxu0 %v9646_v9  ;;  %v9709_v9 = vld [vmem:[%s10062_s18 + $0x16a8] ss:$16 sps:$4 sm:$0xff]  }
 0x316   : > { %6498 = vmatpush2.bf16.msra.mxu1 %v9643_v8  ;;  %6421 = vmatprep.subr.bf16.mxu0 %v9654_v15  ;;  %v9714_v8 = vld [vmem:[%s10062_s18 + $0x146c] ss:$16 sps:$4 sm:$0xff]  }
 0x317   : > { %6499 = vmatprep.subr.bf16.mxu1 %v9651_v57  ;;  %v9712_v57 = vld [vmem:[%s10062_s18 + $0x1468] ss:$16 sps:$4 sm:$0xff]   ;;  %v9717_v15 = vld [vmem:[%s10062_s18 + $0x168c] ss:$16 sps:$4 sm:$0xff]  }
 0x319   : > { %6422 = vmatpush2.bf16.msra.mxu0 %v9652_v49  ;;  %v9715_v49 = vld [vmem:[%s10062_s18 + $0x1688] ss:$16 sps:$4 sm:$0xff]  }
 0x31a   : > { %6500 = vmatpush2.bf16.msra.mxu1 %v9649_v63  ;;  %6423 = vmatprep.subr.bf16.mxu0 %v9660_v6  ;;  %v9720_v63 = vld [vmem:[%s10062_s18 + $0x164c] ss:$16 sps:$4 sm:$0xff]  }
 0x31b   : > { %6501 = vmatprep.subr.bf16.mxu1 %v9657_v19  ;;  %v9718_v19 = vld [vmem:[%s10062_s18 + $0x1648] ss:$16 sps:$4 sm:$0xff]   ;;  %v9723_v6 = vld [vmem:[%s10062_s18 + $0x166c] ss:$16 sps:$4 sm:$0xff]  }
 0x31c   : > { %v4860_v52 = vpop.f32.mrf.mxu0 }
 0x31d   : > { %v4861_v10 = vadd.f32 %v4860_v52, %v10977_v53  ;;  %6424 = vmatpush2.bf16.msra.mxu0 %v9658_v21  ;;  %v9721_v21 = vld [vmem:[%s10062_s18 + $0x1668] ss:$16 sps:$4 sm:$0xff]   ;;  %v9732_v52 = vld [vmem:[%s10062_s18 + $0x160c] ss:$16 sps:$4 sm:$0xff]  }
 0x31e   : > { %6502 = vmatpush2.bf16.msra.mxu1 %v9655_v5  ;;  %v4862_v17 = vpop.f32.mrf.mxu0  ;;  %6425 = vmatprep.subr.bf16.mxu0 %v9666_v27  ;;  %v9726_v5 = vld [vmem:[%s10062_s18 + $0x162c] ss:$16 sps:$4 sm:$0xff]  }
 0x31f   : > { %6503 = vmatprep.subr.bf16.mxu1 %v9663_v24  ;;  %v4902_v33 = vadd.f32 %v11002_v13, %v4861_v10  ;;  %v4863_v37 = vadd.f32 %v4862_v17, %v10984_v20  ;;  %v9675_v13 = vld [vmem:[%s10062_s18 + $0x136c] ss:$16 sps:$4 sm:$0xff]   ;;  %v9724_v24 = vld [vmem:[%s10062_s18 + $0x1628] ss:$16 sps:$4 sm:$0xff]  }
 0x320   : > { %v4864_v39 = vpop.f32.mrf.mxu0  ;;  %v9729_v27 = vld [vmem:[%s10062_s18 + $0x184c] ss:$16 sps:$4 sm:$0xff]   ;;  %v9727_v10 = vld [vmem:[%s10062_s18 + $0x1848] ss:$16 sps:$4 sm:$0xff]  }
 0x321   : > { %v11077_v56 = vadd.f32 %v4902_v33, %v10794_v55  ;;  %v4904_v53 = vadd.f32 %v11005_v12, %v4863_v37  ;;  %6426 = vmatpush2.bf16.msra.mxu0 %v9664_v26  ;;  %v9673_v12 = vld [vmem:[%s10062_s18 + $0x1368] ss:$16 sps:$4 sm:$0xff]   ;;  %v9735_v26 = vld [vmem:[%s10062_s18 + $0x182c] ss:$16 sps:$4 sm:$0xff]  }
 0x322   : > { %6504 = vmatpush2.bf16.msra.mxu1 %v9661_v41  ;;  %v4865_v47 = vpop.f32.mrf.mxu0  ;;  %6518 = vmatprep.subr.bf16.mxu0 %v9672_v44  ;;  %v9730_v41 = vld [vmem:[%s10062_s18 + $0x1608] ss:$16 sps:$4 sm:$0xff]   ;;  %v9738_v17 = vld [vmem:[%s10062_s18 + $0x15ec] ss:$16 sps:$4 sm:$0xff]  }
 0x323   : > { %6505 = vmatprep.subr.bf16.mxu1 %v9669_v32  ;;  %v11085_v20 = vadd.f32 %v4904_v53, %v10798_v29  ;;  %v9684_v29 = vld [vmem:[%s10062_s18 + $0x150c] ss:$16 sps:$4 sm:$0xff]   ;;  %v9733_v32 = vld [vmem:[%s10062_s18 + $0x1828] ss:$16 sps:$4 sm:$0xff]  }
 0x324   : > { %6428 = vmatmul.mubr.bf16.vlgmr.msra.gmra.mxu0 %v10998_v18  ;;  %v9736_v44 = vld [vmem:[%s10062_s18 + $0x15e8] ss:$16 sps:$4 sm:$0xff]   ;;  %v9741_v33 = vld [vmem:[%s10062_s18 + $0x180c] ss:$16 sps:$4 sm:$0xff]  }
 0x325   : > { %v11087_v55 = vpop.f32.mrf.mxu1  ;;  %6519 = vmatpush1.bf16.msra.mxu0 %v9670_v45  ;;  %6550 = vmatprep.mubr.bf16.mxu0 %v10908_v22  ;;  %v9685_v22 = vld [vmem:[%s10062_s18 + $0x1728] ss:$16 sps:$4 sm:$0xff]   ;;  %v9744_v37 = vld [vmem:[%s10062_s18 + $0x15cc] ss:$16 sps:$4 sm:$0xff]  }
 0x326   : > { %6506 = vmatpush2.bf16.msra.mxu1 %v9667_v30  ;;  %6520 = vmatprep.subr.bf16.mxu0 %v9678_v46  ;;  %v9739_v39 = vld [vmem:[%s10062_s18 + $0x1808] ss:$16 sps:$4 sm:$0xff]   ;;  %v9747_v30 = vld [vmem:[%s10062_s18 + $0x17ec] ss:$16 sps:$4 sm:$0xff]  }
 0x327   : > { %v11092_v48 = vpop.f32.mrf.mxu1  ;;  %6507 = vmatprep.subr.bf16.mxu1 %v9675_v13  ;;  %v9742_v53 = vld [vmem:[%s10062_s18 + $0x15c8] ss:$16 sps:$4 sm:$0xff]   ;;  %v9750_v45 = vld [vmem:[%s10062_s18 + $0x15ac] ss:$16 sps:$4 sm:$0xff]  }
 0x328   : > { %v9745_v47 = vld [vmem:[%s10062_s18 + $0x17e8] ss:$16 sps:$4 sm:$0xff]   ;;  %v9753_v46 = vld [vmem:[%s10062_s18 + $0x17cc] ss:$16 sps:$4 sm:$0xff]  }
 0x329   : > { %v4946_v51 = vpop.f32.mrf.mxu1  ;;  %6521 = vmatpush1.bf16.msra.mxu0 %v9676_v23  ;;  %v9748_v13 = vld [vmem:[%s10062_s18 + $0x15a8] ss:$16 sps:$4 sm:$0xff]  }
 0x32a   : > { %6508 = vmatpush2.bf16.msra.mxu1 %v9673_v12  ;;  %6522 = vmatprep.subr.bf16.mxu0 %v9684_v29  ;;  %v9756_v12 = vld [vmem:[%s10062_s18 + $0x158c] ss:$16 sps:$4 sm:$0xff]   ;;  %v9751_v23 = vld [vmem:[%s10062_s18 + $0x17c8] ss:$16 sps:$4 sm:$0xff]  }
 0x32b   : > { %v4947_v28 = vpop.f32.mrf.mxu1  ;;  %6559 = vmatprep.subr.bf16.mxu1 %v9681_v50  ;;  %v9754_v50 = vld [vmem:[%s10062_s18 + $0x1588] ss:$16 sps:$4 sm:$0xff]   ;;  %v9759_v29 = vld [vmem:[%s10062_s18 + $0x17ac] ss:$16 sps:$4 sm:$0xff]  }
 0x32c   : > { %v9762_v51 = vld [vmem:[%s10062_s18 + $0x156c] ss:$16 sps:$4 sm:$0xff]   ;;  %v9757_v28 = vld [vmem:[%s10062_s18 + $0x17a8] ss:$16 sps:$4 sm:$0xff]  }
 0x32d   : > { %6510 = vmatmul.mubr.bf16.vlgmr.msra.gmra.mxu1 %v10975_v31  ;;  %6523 = vmatpush1.bf16.msra.mxu0 %v9682_v4  ;;  %v9694_v31 = vld [vmem:[%s10062_s18 + $0x14c8] ss:$16 sps:$4 sm:$0xff]  }
 0x32e   : > { %6560 = vmatpush1.bf16.msra.mxu1 %v9679_v7  ;;  %6524 = vmatprep.subr.bf16.mxu0 %v9690_v34 }
 0x32f   : > { %6561 = vmatprep.subr.bf16.mxu1 %v9687_v0  ;;  %6591 = vmatprep.mubr.bf16.mxu1 %v10995_v16  ;;  %v9705_v16 = vld [vmem:[%s10062_s18 + $0x16cc] ss:$16 sps:$4 sm:$0xff]   ;;  %v9760_v0 = vld [vmem:[%s10062_s18 + $0x1568] ss:$16 sps:$4 sm:$0xff]  }
 0x331   : > { %6525 = vmatpush1.bf16.msra.mxu0 %v9688_v54  ;;  %v9768_v54 = vld [vmem:[%s10062_s18 + $0x186c] ss:$16 sps:$4 sm:$0xff]  }
 0x332   : > { %6562 = vmatpush1.bf16.msra.mxu1 %v9685_v22  ;;  %6526 = vmatprep.subr.bf16.mxu0 %v9696_v14  ;;  %v9765_v22 = vld [vmem:[%s10062_s18 + $0x178c] ss:$16 sps:$4 sm:$0xff]  }
 0x333   : > { %6563 = vmatprep.subr.bf16.mxu1 %v9693_v36 }
 0x335   : > { %6527 = vmatpush1.bf16.msra.mxu0 %v9694_v31  ;;  %v9766_v31 = vld [vmem:[%s10062_s18 + $0x1868] ss:$16 sps:$4 sm:$0xff]  }
 0x336   : > { %6564 = vmatpush1.bf16.msra.mxu1 %v9691_v58  ;;  %6528 = vmatprep.subr.bf16.mxu0 %v9702_v61  ;;  %v9763_v58 = vld [vmem:[%s10062_s18 + $0x1788] ss:$16 sps:$4 sm:$0xff]  }
 0x337   : > { %6565 = vmatprep.subr.bf16.mxu1 %v9699_v59  ;;  %v9771_v59 = vld [vmem:[%s10062_s18 + $0x176c] ss:$16 sps:$4 sm:$0xff]  }
 0x339   : > { %6529 = vmatpush1.bf16.msra.mxu0 %v9700_v62 }
 0x33a   : > { %6566 = vmatpush1.bf16.msra.mxu1 %v9697_v60  ;;  %6530 = vmatprep.subr.bf16.mxu0 %v9708_v42  ;;  %v6733_v60 = vld [vmem:[%s11163_s16 + $0xf8] sm:$0xff] }
 0x33b   : > { %6567 = vmatprep.subr.bf16.mxu1 %v9705_v16  ;;  %v9769_v16 = vld [vmem:[%s10062_s18 + $0x1768] ss:$16 sps:$4 sm:$0xff]  }
 0x33d   : > { %6531 = vmatpush1.bf16.msra.mxu0 %v9706_v2 }
 0x33e   : > { %6568 = vmatpush1.bf16.msra.mxu1 %v9703_v1  ;;  %6532 = vmatprep.subr.bf16.mxu0 %v9714_v8 }
 0x33f   : > { %6569 = vmatprep.subr.bf16.mxu1 %v9711_v3 }
 0x341   : > { %6533 = vmatpush1.bf16.msra.mxu0 %v9712_v57 }
 0x342   : > { %6570 = vmatpush1.bf16.msra.mxu1 %v9709_v9  ;;  %6534 = vmatprep.subr.bf16.mxu0 %v9720_v63 }
 0x343   : > { %6571 = vmatprep.subr.bf16.mxu1 %v9717_v15 }
 0x345   : > { %6535 = vmatpush2.bf16.msra.mxu0 %v9718_v19  ;;  %v6732_v19 = vld [vmem:[%s11163_s16 + $0xf0] sm:$0xff] }
 0x346   : > { %6572 = vmatpush1.bf16.msra.mxu1 %v9715_v49  ;;  %6536 = vmatprep.subr.bf16.mxu0 %v9726_v5  ;;  %v6717_v49 = vld [vmem:[%s11163_s16 + $0x78] sm:$0xff]  ;;  %v6715_v5 = vld [vmem:[%s11163_s16 + $0x68] sm:$0xff] }
 0x347   : > { %6573 = vmatprep.subr.bf16.mxu1 %v9723_v6  ;;  %v6731_v6 = vld [vmem:[%s11163_s16 + $0xe8] sm:$0xff] }
 0x349   : > { %6537 = vmatpush2.bf16.msra.mxu0 %v9724_v24  ;;  %v6728_v24 = vld [vmem:[%s11163_s16 + $0xd0] sm:$0xff] }
 0x34a   : > { %6574 = vmatpush1.bf16.msra.mxu1 %v9721_v21  ;;  %6538 = vmatprep.subr.bf16.mxu0 %v9732_v52  ;;  %v6714_v21 = vld [vmem:[%s11163_s16 + $0x60] sm:$0xff]  ;;  %v6765_v52 = vld [vmem:[%s11163_s16 + $0x1f8] sm:$0xff] }
 0x34b   : > { %6575 = vmatprep.subr.bf16.mxu1 %v9729_v27  ;;  %v6712_v27 = vld [vmem:[%s11163_s16 + $0x50] sm:$0xff] }
 0x34d   : > { %6539 = vmatpush2.bf16.msra.mxu0 %v9730_v41  ;;  %v6764_v41 = vld [vmem:[%s11163_s16 + $0x1f0] sm:$0xff] }
 0x34e   : > { %6576 = vmatpush2.bf16.msra.mxu1 %v9727_v10  ;;  %6540 = vmatprep.subr.bf16.mxu0 %v9738_v17  ;;  %v6749_v10 = vld [vmem:[%s11163_s16 + $0x178] sm:$0xff]  ;;  %v6748_v17 = vld [vmem:[%s11163_s16 + $0x170] sm:$0xff] }
 0x34f   : > { %6577 = vmatprep.subr.bf16.mxu1 %v9735_v26  ;;  %v6727_v26 = vld [vmem:[%s11163_s16 + $0xc8] sm:$0xff] }
 0x351   : > { %6541 = vmatpush2.bf16.msra.mxu0 %v9736_v44  ;;  %v6763_v44 = vld [vmem:[%s11163_s16 + $0x1e8] sm:$0xff] }
 0x352   : > { %6578 = vmatpush2.bf16.msra.mxu1 %v9733_v32  ;;  %6542 = vmatprep.subr.bf16.mxu0 %v9744_v37  ;;  %v6711_v32 = vld [vmem:[%s11163_s16 + $0x48] sm:$0xff] }
 0x353   : > { %6579 = vmatprep.subr.bf16.mxu1 %v9741_v33  ;;  %v6726_v33 = vld [vmem:[%s11163_s16 + $0xc0] sm:$0xff]  ;;  %v6747_v37 = vld [vmem:[%s11163_s16 + $0x168] sm:$0xff] }
 0x355   : > { %6543 = vmatpush2.bf16.msra.mxu0 %v9742_v53  ;;  %v6762_v53 = vld [vmem:[%s11163_s16 + $0x1e0] sm:$0xff] }
 0x356   : > { %6580 = vmatpush2.bf16.msra.mxu1 %v9739_v39  ;;  %6544 = vmatprep.subr.bf16.mxu0 %v9750_v45  ;;  %v6710_v39 = vld [vmem:[%s11163_s16 + $0x40] sm:$0xff] }
 0x357   : > { %6581 = vmatprep.subr.bf16.mxu1 %v9747_v30  ;;  %v6725_v30 = vld [vmem:[%s11163_s16 + $0xb8] sm:$0xff]  ;;  %v6746_v45 = vld [vmem:[%s11163_s16 + $0x160] sm:$0xff] }
 0x359   : > { %6545 = vmatpush2.bf16.msra.mxu0 %v9748_v13  ;;  %v6761_v13 = vld [vmem:[%s11163_s16 + $0x1d8] sm:$0xff] }
 0x35a   : > { %6582 = vmatpush2.bf16.msra.mxu1 %v9745_v47  ;;  %6546 = vmatprep.subr.bf16.mxu0 %v9756_v12  ;;  %v6709_v47 = vld [vmem:[%s11163_s16 + $0x38] sm:$0xff]  ;;  %v6708_v12 = vld [vmem:[%s11163_s16 + $0x30] sm:$0xff] }
 0x35b   : > { %6583 = vmatprep.subr.bf16.mxu1 %v9753_v46  ;;  %v6724_v46 = vld [vmem:[%s11163_s16 + $0xb0] sm:$0xff] }
 0x35c   : > { %v4983_v7 = vpop.f32.mrf.mxu0 }
 0x35d   : > { %v4984_v4 = vadd.f32 %v4983_v7, %v11087_v55  ;;  %6547 = vmatpush2.bf16.msra.mxu0 %v9754_v50  ;;  %v6707_v50 = vld [vmem:[%s11163_s16 + $0x28] sm:$0xff]  ;;  %v6721_v7 = vld [vmem:[%s11163_s16 + $0x98] sm:$0xff] }
 0x35e   : > { %6584 = vmatpush2.bf16.msra.mxu1 %v9751_v23  ;;  %v4985_v34 = vpop.f32.mrf.mxu0  ;;  %6548 = vmatprep.subr.bf16.mxu0 %v9762_v51  ;;  %v6723_v23 = vld [vmem:[%s11163_s16 + $0xa8] sm:$0xff]  ;;  %v6706_v51 = vld [vmem:[%s11163_s16 + $0x20] sm:$0xff] }
 0x35f   : > { %6585 = vmatprep.subr.bf16.mxu1 %v9759_v29  ;;  %v4986_v36 = vadd.f32 %v4985_v34, %v11092_v48  ;;  %v6722_v29 = vld [vmem:[%s11163_s16 + $0xa0] sm:$0xff]  ;;  %v6719_v34 = vld [vmem:[%s11163_s16 + $0x88] sm:$0xff] }
 0x360   : > { %v4987_v14 = vpop.f32.mrf.mxu0 }
 0x361   : > { %6549 = vmatpush2.bf16.msra.mxu0 %v9760_v0  ;;  %v6704_v0 = vld [vmem:[%s11163_s16 + $0x10] sm:$0xff] }
 0x362   : > { %6586 = vmatpush2.bf16.msra.mxu1 %v9757_v28  ;;  %v4988_v55 = vpop.f32.mrf.mxu0  ;;  %6614 = vmatprep.subr.bf16.mxu0 %v9768_v54  ;;  %v6720_v28 = vld [vmem:[%s11163_s16 + $0x90] sm:$0xff]  ;;  %v6718_v54 = vld [vmem:[%s11163_s16 + $0x80] sm:$0xff] }
 0x363   : > { %6587 = vmatprep.subr.bf16.mxu1 %v9765_v22  ;;  %v6703_v22 = vld [vmem:[%s11163_s16 + $0x8] sm:$0xff] }
 0x364   : > { %6551 = vmatmul.mubr.bf16.vlgmr.msra.gmra.mxu0 %v10988_v11  ;;  %v5065_v48 = vpop.f32.mrf.mxu0 }
 0x365   : > { %v5024_v61 = vpop.f32.mrf.mxu1  ;;  %6615 = vmatpush1.bf16.msra.mxu0 %v9766_v31  ;;  %6632 = vmatprep.mubr.bf16.mxu0 %v9918_v25  ;;  %v6745_v31 = vld [vmem:[%s11163_s16 + $0x158] sm:$0xff] }
 0x366   : > { %v5025_v62 = vadd.f32 %v5024_v61, %v4984_v4  ;;  %6588 = vmatpush2.bf16.msra.mxu1 %v9763_v58  ;;  %v5067_v1 = vpop.f32.mrf.mxu0  ;;  %8449 = vmatprep.subr.mxu0 %v6733_v60  ;;  %v6705_v4 = vld [vmem:[%s11163_s16 + $0x18] sm:$0xff]  ;;  %v6744_v60 = vld [vmem:[%s11163_s16 + $0x150] sm:$0xff] }
 0x367   : > { %v5026_v42 = vpop.f32.mrf.mxu1  ;;  %6589 = vmatprep.subr.bf16.mxu1 %v9771_v59  ;;  %v6760_v59 = vld [vmem:[%s11163_s16 + $0x1d0] sm:$0xff] }
 0x368   : > { %v5066_v2 = vadd.f32 %v5065_v48, %v5025_v62  ;;  %v5027_v3 = vadd.f32 %v5026_v42, %v4986_v36  ;;  %v5069_v11 = vpop.f32.mrf.mxu0  ;;  %v6702_v36 = vld [vmem:[%s11163_s16] sm:$0xff]  ;;  %v6759_v62 = vld [vmem:[%s11163_s16 + $0x1c8] sm:$0xff] }
 0x369   : > { %v5028_v8 = vpop.f32.mrf.mxu1  ;;  %v6742_v11 = vld [vmem:[%s11163_s16 + $0x140] sm:$0xff] }
 0x36a   : > { %v11171_v9 = vadd.f32 %v5066_v2, %v10895_v35  ;;  %v5068_v57 = vadd.f32 %v5067_v1, %v5027_v3  ;;  %6590 = vmatpush2.bf16.msra.mxu1 %v9769_v16  ;;  %v5070_v63 = vpop.f32.mrf.mxu0  ;;  %v6716_v35 = vld [vmem:[%s11163_s16 + $0x70] sm:$0xff]  ;;  %v6743_v1 = vld [vmem:[%s11163_s16 + $0x148] sm:$0xff]  ;;  %v6758_v2 = vld [vmem:[%s11163_s16 + $0x1c0] sm:$0xff] }
 0x36b   : > { %v5029_v15 = vpop.f32.mrf.mxu1  ;;  %8484 = vmatprep.subr.mxu1 %v6765_v52  ;;  %v6741_v63 = vld [vmem:[%s11163_s16 + $0x138] sm:$0xff]  ;;  %v6752_v52 = vld [vmem:[%s11163_s16 + $0x190] sm:$0xff] }
 0x36c   : > { %v11175_v25 = vadd.f32 %v5068_v57, %v10900_v40  ;;  %8444 = vmatmul.mubr.msk.bf16.vlgmr.msra.gmra.mxu0 %vm1809_vm0, %v11012_v38  ;;  %v6730_v40 = vld [vmem:[%s11163_s16 + $0xe0] sm:$0xff]  ;;  %v6713_v38 = vld [vmem:[%s11163_s16 + $0x58] sm:$0xff] }
 0x36d   : > { %6592 = vmatmul.mubr.bf16.vlgmr.msra.gmra.mxu1 %v10998_v18  ;;  %8450 = vmatpush3.msra.mxu0 %v6717_v49  ;;  %v6729_v18 = vld [vmem:[%s11163_s16 + $0xd8] sm:$0xff]  ;;  %v6756_v49 = vld [vmem:[%s11163_s16 + $0x1b0] sm:$0xff] }
 0x36e   : > { %8451 = vmatprep.subr.mxu0 %v6732_v19  ;;  %8485 = vmatpush3.msra.mxu1 %v6749_v10  ;;  %v6757_v57 = vld [vmem:[%s11163_s16 + $0x1b8] sm:$0xff]  ;;  %v6736_v10 = vld [vmem:[%s11163_s16 + $0x110] sm:$0xff] }
 0x36f   : > { %8452 = vmatpush3.msra.mxu0 %v6716_v35  ;;  %8486 = vmatprep.subr.mxu1 %v6764_v41  ;;  %v6740_v35 = vld [vmem:[%s11163_s16 + $0x130] sm:$0xff]  ;;  %v6751_v41 = vld [vmem:[%s11163_s16 + $0x188] sm:$0xff] }
 0x370   : > { %8453 = vmatprep.subr.mxu0 %v6731_v6  ;;  %8487 = vmatpush3.msra.mxu1 %v6748_v17  ;;  %v6755_v6 = vld [vmem:[%s11163_s16 + $0x1a8] sm:$0xff]  ;;  %v6750_v17 = vld [vmem:[%s11163_s16 + $0x180] sm:$0xff] }
 0x371   : > { %8454 = vmatpush3.msra.mxu0 %v6715_v5  ;;  %8488 = vmatprep.subr.mxu1 %v6763_v44  ;;  %v6649_v44 = vsub.s32 0, %v10118_v43 }
 0x372   : > { %8455 = vmatprep.subr.mxu0 %v6730_v40  ;;  %8489 = vmatpush3.msra.mxu1 %v6747_v37  ;;  %v6739_v40 = vld [vmem:[%s11163_s16 + $0x128] sm:$0xff] }
 0x373   : > { %8456 = vmatpush3.msra.mxu0 %v6714_v21  ;;  %8490 = vmatprep.subr.mxu1 %v6762_v53  ;;  %v6754_v21 = vld [vmem:[%s11163_s16 + $0x1a0] sm:$0xff] }
 0x374   : > { %8457 = vmatprep.subr.mxu0 %v6729_v18  ;;  %8491 = vmatpush3.msra.mxu1 %v6746_v45  ;;  %v6645_v37 = vld [vmem:[%s10073_s26] sm:$0xf] }
 0x375   : > { %8458 = vmatpush3.msra.mxu0 %v6713_v38  ;;  %8492 = vmatprep.subr.mxu1 %v6761_v13  ;;  %v6738_v38 = vld [vmem:[%s11163_s16 + $0x120] sm:$0xff]  ;;  %v6650_v13 = vrot.slane %v6645_v37, %v6649_v44 }
 0x376   : > { %8459 = vmatprep.subr.mxu0 %v6728_v24  ;;  %8493 = vmatpush3.msra.mxu1 %v6745_v31  ;;  %v6753_v24 = vld [vmem:[%s11163_s16 + $0x198] sm:$0xff] }
 0x377   : > { %8460 = vmatpush3.msra.mxu0 %v6712_v27  ;;  %8494 = vmatprep.subr.mxu1 %v6760_v59  ;;  %v6737_v27 = vld [vmem:[%s11163_s16 + $0x118] sm:$0xff] }
 0x378   : > { %8461 = vmatprep.subr.mxu0 %v6727_v26  ;;  %8495 = vmatpush3.msra.mxu1 %v6744_v60  ;;  %v6735_v26 = vld [vmem:[%s11163_s16 + $0x108] sm:$0xff] }
 0x379   : > { %8462 = vmatpush3.msra.mxu0 %v6711_v32  ;;  %8496 = vmatprep.subr.mxu1 %v6759_v62  ;;  %v6734_v32 = vld [vmem:[%s11163_s16 + $0x100] sm:$0xff] }
 0x37a   : > { %8463 = vmatprep.subr.mxu0 %v6726_v33  ;;  %8497 = vmatpush3.msra.mxu1 %v6743_v1 }
 0x37b   : > { %8464 = vmatpush3.msra.mxu0 %v6710_v39  ;;  %8498 = vmatprep.subr.mxu1 %v6758_v2 }
 0x37c   : > { %8465 = vmatprep.subr.mxu0 %v6725_v30  ;;  %8499 = vmatpush3.msra.mxu1 %v6742_v11  ;;  %v6653_v30 = vsub.s32 1, %v10118_v43 }
 0x37d   : > { %8466 = vmatpush3.msra.mxu0 %v6709_v47  ;;  %8500 = vmatprep.subr.mxu1 %v6757_v57 }
 0x37e   : > { %8467 = vmatprep.subr.mxu0 %v6724_v46  ;;  %8501 = vmatpush3.msra.mxu1 %v6741_v63 }
 0x37f   : > { %8468 = vmatpush3.msra.mxu0 %v6708_v12  ;;  %8502 = vmatprep.subr.mxu1 %v6756_v49  ;;  %v6671_v12 = vld [vmem:[%s312_s17] sm:$0xf] }
 0x380   : > { %8469 = vmatprep.subr.mxu0 %v6723_v23  ;;  %8503 = vmatpush3.msra.mxu1 %v6740_v35 }
 0x381   : > { %8470 = vmatpush3.msra.mxu0 %v6707_v50  ;;  %8504 = vmatprep.subr.mxu1 %v6755_v6 }
 0x382   : > { %8471 = vmatprep.subr.mxu0 %v6722_v29  ;;  %8505 = vmatpush3.msra.mxu1 %v6739_v40 }
 0x383   : > { %8472 = vmatpush3.msra.mxu0 %v6706_v51  ;;  %8506 = vmatprep.subr.mxu1 %v6754_v21  ;;  %v6654_v51 = vrot.slane %v6645_v37, %v6653_v30 }
 0x384   : > { %8473 = vmatprep.subr.mxu0 %v6721_v7  ;;  %8507 = vmatpush3.msra.mxu1 %v6738_v38 }
 0x385   : > { %8474 = vmatpush3.msra.mxu0 %v6705_v4  ;;  %8508 = vmatprep.subr.mxu1 %v6753_v24  ;;  %v6676_v4 = vrot.slane %v6671_v12, %v6649_v44 }
 0x386   : > { %8475 = vmatprep.subr.mxu0 %v6720_v28  ;;  %8509 = vmatpush3.msra.mxu1 %v6737_v27 }
 0x387   : > { %8476 = vmatpush3.msra.mxu0 %v6704_v0  ;;  %8510 = vmatprep.subr.mxu1 %v6752_v52 }
 0x388   : > { %8477 = vmatprep.subr.mxu0 %v6719_v34  ;;  %8511 = vmatpush3.msra.mxu1 %v6736_v10  ;;  %v6680_v34 = vrot.slane %v6671_v12, %v6653_v30 }
 0x389   : > { %8478 = vmatpush3.msra.mxu0 %v6703_v22  ;;  %8512 = vmatprep.subr.mxu1 %v6751_v41 }
 0x38a   : > { %8479 = vmatprep.subr.mxu0 %v6718_v54  ;;  %8513 = vmatpush3.msra.mxu1 %v6735_v26 }
 0x38b   : > { %8480 = vmatpush3.msra.mxu0 %v6702_v36  ;;  %8514 = vmatprep.subr.mxu1 %v6750_v17 }
 0x38c   : > { %8515 = vmatpush3.msra.mxu1 %v6734_v32 }
 0x3a4   : > { %v6347_v14 = vpop.f32.mrf.mxu0 }
 0x3a5   : > { %v6388_v58 = vpop.f32.mrf.mxu1 }
 0x3a6   : > { %v6389_v55 = vadd.f32 %v6388_v58, %v6347_v14  ;;  %v6349_v61 = vpop.f32.mrf.mxu0 }
 0x3a7   : > { %v6390_v48 = vpop.f32.mrf.mxu1 }
 0x3a8   : > { %v6351_v16 = vpop.f32.mrf.mxu0  ;;  %v6391_v39 = vadd.f32 %v6390_v48, %v6349_v61 }
 0x3a9   : > { %v6392_v42 = vpop.f32.mrf.mxu1 }
 0x3aa   : > { %v6352_v3 = vpop.f32.mrf.mxu0  ;;  %v6657_v42 = vsub.s32 2, %v10118_v43 }
 0x3ab   : > { %v6393_v8 = vpop.f32.mrf.mxu1 }
 0x3ac   : > { %v6661_v8 = vsub.s32 3, %v10118_v43  ;;  %v6658_v63 = vrot.slane %v6645_v37, %v6657_v42  ;;  %v6684_v21 = vrot.slane %v6671_v12, %v6657_v42 }
 0x3ad   : > { %v6470_v15 = vpop.f32.mrf.mxu1 }
 0x3ae   : > { %v6662_v40 = vrot.slane %v6645_v37, %v6661_v8  ;;  %v6688_v52 = vrot.slane %v6671_v12, %v6661_v8 }
 0x3af   : > { %v6472_v19 = vpop.f32.mrf.mxu1 }
 0x3b1   : > { %v6474_v5 = vpop.f32.mrf.mxu1 }
 0x3b3   : > { %v6475_v18 = vpop.f32.mrf.mxu1 }
 0x3e4   : > { %v6429_v33 = vpop.f32.mrf.mxu0 }
 0x3e5   : > { %v6430_v53 = vadd.f32 %v6429_v33, %v6389_v55 }
 0x3e6   : > { %v6431_v45 = vpop.f32.mrf.mxu0 }
 0x3e7   : > { %v6471_v47 = vadd.f32 %v6470_v15, %v6430_v53  ;;  %v6432_v46 = vadd.f32 %v6431_v45, %v6391_v39 }
 0x3e8   : > { %v6433_v23 = vpop.f32.mrf.mxu0 }
 0x3e9   : > { %v6641_v50 = vadd.f32 %v6471_v47, %v11077_v56  ;;  %v6473_v29 = vadd.f32 %v6472_v19, %v6432_v46 }
 0x3ea   : > { %v6434_v7 = vpop.f32.mrf.mxu0 }
 0x3eb   : > { %v6667_v28 = vmul.f32 %v6650_v13, %v6641_v50  ;;  %v6642_v0 = vadd.f32 %v6473_v29, %v11085_v20 }
 0x3ed   : > { %v6511_v22 = vpop.f32.mrf.mxu1  ;;  %v6668_v54 = vmul.f32 %v6654_v51, %v6642_v0  ;;  %v6693_v14 = vadd.f32 %v6676_v4, %v6667_v28 }
 0x3ef   : > { %v6513_v36 = vpop.f32.mrf.mxu1  ;;  %v6694_v58 = vadd.f32 %v6680_v34, %v6668_v54  ;;  %v6697_v61 = vmax.f32 %v6693_v14, 0.0 }
 0x3f1   : > { %v6515_v31 = vpop.f32.mrf.mxu1  ;;  %v6698_v55 = vmax.f32 %v6694_v58, 0.0 }
 0x3f3   : > { %v6516_v59 = vpop.f32.mrf.mxu1  ;;  %6830 = vmatprep.mubr.f32.mxu0 %v6698_v55 }
 0x3f4   : > { %6831 = vmatmul.mubr.f32.vlgmr.msra.gmra.mxu0 %v6697_v61 }
 0x424   : > { %v6552_v56 = vpop.f32.mrf.mxu0 }
 0x425   : > { %v6553_v16 = vadd.f32 %v6552_v56, %v6511_v22 }
 0x426   : > { %v6554_v48 = vpop.f32.mrf.mxu0 }
 0x427   : > { %v6555_v2 = vadd.f32 %v6554_v48, %v6513_v36 }
 0x428   : > { %v6556_v60 = vpop.f32.mrf.mxu0 }
 0x42a   : > { %v6557_v62 = vpop.f32.mrf.mxu0 }
 0x42c   : > { %v6634_v1 = vpop.f32.mrf.mxu0 }
 0x42d   : > { %v6593_v20 = vpop.f32.mrf.mxu1 }
 0x42e   : > { %v6594_v3 = vadd.f32 %v6593_v20, %v6553_v16  ;;  %v6636_v57 = vpop.f32.mrf.mxu0 }
 0x42f   : > { %v6595_v11 = vpop.f32.mrf.mxu1 }
 0x430   : > { %v6635_v15 = vadd.f32 %v6634_v1, %v6594_v3  ;;  %v6596_v49 = vadd.f32 %v6595_v11, %v6555_v2  ;;  %v6638_v35 = vpop.f32.mrf.mxu0 }
 0x431   : > { %v6597_v19 = vpop.f32.mrf.mxu1 }
 0x432   : > { %v6643_v6 = vadd.f32 %v6635_v15, %v11171_v9  ;;  %v6637_v5 = vadd.f32 %v6636_v57, %v6596_v49  ;;  %v6639_v38 = vpop.f32.mrf.mxu0  ;;  %v9919_v9 = vmov 0.0  }
 0x433   : > { %v6598_v18 = vpop.f32.mrf.mxu1  ;;  %377 = vst.msk [vmem:[#allocation2] sm:$0x3] %vm376_vm1, %v9919_v9 }
 0x434   : > { %v6669_v24 = vmul.f32 %v6658_v63, %v6643_v6  ;;  %v6644_v27 = vadd.f32 %v6637_v5, %v11175_v25 }
 0x436   : > { %v6670_v43 = vmul.f32 %v6662_v40, %v6644_v27  ;;  %v6695_v10 = vadd.f32 %v6684_v21, %v6669_v24 }
 0x438   : > { %v6696_v41 = vadd.f32 %v6688_v52, %v6670_v43  ;;  %v6699_v17 = vmax.f32 %v6695_v10, 0.0 }
 0x43a   : > { %v6700_v26 = vmax.f32 %v6696_v41, 0.0  ;;  %v6701_v53 = vld [vmem:[#allocation2] sm:$0x3] }
 0x43c   : > { %6900 = vmatprep.mubr.f32.mxu1 %v6700_v26 }
 0x43d   : > { %6901 = vmatmul.mubr.f32.vlgmr.msra.gmra.mxu1 %v6699_v17 }
 0x4b4   : > { %v8481_v32 = vpop.f32.mrf.mxu0 }
 0x4b6   : > { %v8482_v44 = vpop.f32.mrf.mxu0 }
 0x4b7   : > { %v8483_v39 = vadd.f32 %v8482_v44, %v8481_v32 }
 0x4fd   : > { %v8516_v33 = vpop.f32.mrf.mxu1 }
 0x4ff   : > { %v8517_v37 = vpop.f32.mrf.mxu1 }
 0x500   : > { %v8518_v25 = vadd.f32 %v8517_v37, %v8516_v33 }
 0x502   : > { %v6903_v30 = vadd.f32 %v8518_v25, %v8483_v39 }
 0x504   : > { %v6906_v45 = vadd.f32 %v6903_v30, %v6701_v53 }
 0x506   : > { %6908 = vst.msk [vmem:[#allocation2] sm:$0x3] %vm376_vm1, %v6906_v45 }
 0x50d   : > { %v6912_v47 = vld [vmem:[#allocation2] sm:$0x3] }
 0x50e   : > { %6913 = vst.msk [vmem:[%s370_s15] sm:$0x3] %vm376_vm1, %v6912_v47 }
 0x50f PF: > { %s21_s23 = sadd.s32 1, %s9910_s23   ;;  %s11296_s10 = sld [smem:[#allocation10_spill]] }
 0x510   : > { %p18_p10 = scmp.ge.s32.totalorder %s21_s23, 4   ;;  %s11297_s18 = smov %s9894_s19 }
 0x511   : > { %s11298_s19 = smov %s9898_s20  ;;  %s11299_s20 = smov %s9997_s29 }
 0x512   : > { %s11300_s21 = smov %s9906_s22  ;;  %20 = sbr.rel (!%p18_p10) target bundleno = 9 (0x9), region = 121 }
 0x515   : > { %s11301_s22 = smov %s11296_s10 }
 0x517   :  { %6933 = vsyncpa [#allocation4], 1 }
 0x518   :  { %6935 = vsyncpa [#allocation4 + $0x1], 1 }
 0x519   :  { %6936 = vsyncpa [#allocation6], 1 }
 0x51a   :  { %6938 = vsyncpa [#allocation6 + $0x1], 1 }

// kernel: mnist_classifier_forward.2
= control target key start
LH: loop header
LB: loop body
LE: loop exit
PB: predicated region body
PF: predicated region fallthrough
CT: control target
= control target key end

     0   :  { %13 = vsyncpa [#allocation4], 0  ;;  %s12453_s27 = smov [#allocation3]   ;;  %s16330_s0 = inlined_call_operand.vmem [shape: f32[2,8,784], index: 0, kind: input, shape index: {}]   ;;  %s16331_s1 = inlined_call_operand.hbm [shape: bf16[9,1568], index: 1, kind: input, shape index: {}]   ;;  %s16332_s2 = inlined_call_operand.vmem [shape: bf16[9,8,8], index: 2, kind: input, shape index: {}]   ;;  %s16333_s3 = inlined_call_operand.vmem [shape: f32[8,1], index: 3, kind: input, shape index: {}]   ;;  %s16334_s4 = inlined_call_operand.vmem [shape: f32[8,1], index: 4, kind: input, shape index: {}]   ;;  %s16335_s5 = inlined_call_operand.vmem [shape: bf16[9,4,8], index: 5, kind: input, shape index: {}]   ;;  %s16336_s6 = inlined_call_operand.vmem [shape: f32[4,1], index: 6, kind: input, shape index: {}]   ;;  %s16337_s7 = inlined_call_operand.vmem [shape: f32[4,1], index: 7, kind: input, shape index: {}]   ;;  %s16338_s8 = inlined_call_operand.vmem [shape: bf16[4,1568], index: 8, kind: output, shape index: {}]  }
   0x1   :  { %s21_s28 = sshll.u32 %s12453_s27, 4  ;;  %s22_s28 = int_to_ptr.vmem [resolvable:$true] %s21_s28 }
   0x2   :  { %s12439_s29 = scalar_lea.vmem %s22_s28, 1664  ;;  %p12444_p1 = scmp.lt.s32.totalorder %s22_s28, %s22_s28 }
   0x3   :  { %p12440_p0 = scmp.ne.s32.totalorder %s22_s28, %s12439_s29  ;;  %p12445_p2 = scmp.lt.s32.totalorder %s12439_s29, %s12439_s29 }
   0x5   :  { %p12446_p3 = por %p12445_p2, %p12444_p1 }
   0x7   :  { %p12447_p4 = pnand %p12446_p3, %p12440_p0 }
   0x9   :  { %12450 = shalt.err (!%p12447_p4)
}
   0xa   :  { %s12454_s30 = smov 832   ;;  %s12455_s9 = smov 52  }
   0xb   :  { %27 = dma.hbm_to_vmem [thread:$0]  %s16331_s1, 1664, %s22_s28, [#allocation4], %s12454_s30, %s12454_s30, %s12455_s9  }
   0xc   :  { %12451 = dma.done.wait [#allocation4], 1664  }
   0xd   :  { %12452 = vsyncadd [#allocation4], 4294965632  ;;  %v16348_v0 = vmov 0   ;;  %v227_v1 = vlaneseq  ;;  %v56_v2 = vld [vmem:[%s16330_s0 + $0x20] sm:$0xff]  ;;  %v57_v3 = vld [vmem:[%s16330_s0 + $0x28] sm:$0xff]  ;;  %s12457_s29 = smov 32  }
   0xe   :  { %44 = vst [vmem:[#allocation2] sm:$0xff] %v16348_v0  ;;  %47 = vst [vmem:[#allocation2 + $0x18] sm:$0xff] %v16348_v0  ;;  %717 = vmatprep.mubr.bf16.mxu0 %v16348_v0  ;;  %758 = vmatprep.mubr.bf16.mxu1 %v16348_v0  ;;  %v52_v4 = vld [vmem:[%s16330_s0] sm:$0xff]  ;;  %v12104_v6 = vpack.c.bf16 %v57_v3, %v56_v2  ;;  %v53_v7 = vld [vmem:[%s16330_s0 + $0x8] sm:$0xff]  ;;  %s12458_s15 = smov 48   ;;  %s12459_s16 = smov 4  }
   0xf   :  { %12287 = vset.pattern.permute.xlu0 %v16348_v0  ;;  %12288 = vset.pattern.permute.xlu1 %v16348_v0  ;;  %v12542_v5 = vshrl.u32 %v227_v1, 7  ;;  %v11338_v8 = vld [vmem:[%s16330_s0 + $0x38] sm:$0xff]  ;;  %v11339_v9 = vld [vmem:[%s16330_s0 + $0x40] sm:$0xff]  ;;  %v12102_v10 = vpack.c.bf16 %v53_v7, %v52_v4  ;;  %v54_v11 = vld [vmem:[%s16330_s0 + $0x10] sm:$0xff]  ;;  %s12461_s19 = smov 5   ;;  %vm50_vm0 = vcmask 781312  }
  0x10   :  { %v55_v12 = vld [vmem:[%s16330_s0 + $0x18] sm:$0xff]  ;;  %v11340_v13 = vld [vmem:[%s16330_s0 + $0x48] sm:$0xff]  ;;  %88 = vrot.lane.b32.xlu1 %v12104_v6, %s12457_s29  ;;  %v12106_v14 = vpack.c.bf16 %v11339_v9, %v11338_v8  ;;  %v11341_v15 = vld [vmem:[%s16330_s0 + $0x50] sm:$0xff]  ;;  %51 = vst.msk [vmem:[#allocation2 + $0x30] sm:$0xf] %vm50_vm0, %v16348_v0  ;;  %s12462_s20 = smov 31  }
  0x11   :  { %16356 = vst [vmem:[#allocation6_spill] sm:$0xff] %v12542_v5  ;;  %v58_v16 = vld [vmem:[%s16330_s0 + $0x30] sm:$0xff]  ;;  %v11342_v17 = vld [vmem:[%s16330_s0 + $0x58] sm:$0xff]  ;;  %84 = vrot.lane.b32.xlu0 %v12102_v10, %s12457_s29  ;;  %v12103_v18 = vpack.c.bf16 %v55_v12, %v54_v11  ;;  %v12107_v19 = vpack.c.bf16 %v11341_v15, %v11340_v13  ;;  %v11343_v21 = vld [vmem:[%s16330_s0 + $0x60] sm:$0xff]  ;;  %v12577_v23 = vsub.s32 0, %v12542_v5  ;;  %vm107_vm1 = vcmask 1043712  }
  0x12   :  { %v12105_v20 = vpack.c.bf16 %v58_v16, %v58_v16  ;;  %v185_v22 = vld [vmem:[#allocation3 + $0x8] sm:$0x11]  ;;  %v184_v24 = vld [vmem:[#allocation3] sm:$0x11]  ;;  %v12108_v25 = vpack.c.bf16 %v11343_v21, %v11342_v17  ;;  %v186_v29 = vld [vmem:[#allocation3 + $0x10] sm:$0x11] }
  0x13   :  { %16357 = vst [vmem:[#allocation7_spill] sm:$0xff] %v12577_v23  ;;  %v12579_v26 = vcombine.low %v185_v22, %v185_v22  ;;  %v12581_v27 = vcombine.high %v185_v22, %v185_v22  ;;  %v12583_v28 = vcombine.low %v184_v24, %v184_v24  ;;  %v188_v30 = vld [vmem:[#allocation3 + $0x20] sm:$0x11]  ;;  %v12585_v31 = vcombine.high %v184_v24, %v184_v24  ;;  %v187_v51 = vld [vmem:[#allocation3 + $0x18] sm:$0x11]  ;;  %s12463_s21 = smov 124  }
  0x14   :  { %v12587_v32 = vcombine.low %v186_v29, %v186_v29  ;;  %v12589_v33 = vcombine.high %v186_v29, %v186_v29  ;;  %v12591_v34 = vcombine.low %v188_v30, %v188_v30  ;;  %148 = vrot.lane.b32.xlu1 %v12106_v14, %s12458_s15  ;;  %v12597_v38 = vcombine.high %v188_v30, %v188_v30  ;;  %v189_v56 = vld [vmem:[#allocation3 + $0x28] sm:$0x11]  ;;  %v12617_v63 = vld [vmem:[#allocation3 + $0x30] ss:$0 sps:$4 sm:$0x11]   ;;  %s12464_s22 = smov 125  }
  0x15   :  { %v410_v35 = vshrl.u32 %v12579_v26, 16  ;;  %v417_v36 = vshrl.u32 %v12581_v27, 16  ;;  %v396_v37 = vshrl.u32 %v12583_v28, 16  ;;  %86 = vrot.lane.b32.xlu0 %v12103_v18, %s12457_s29  ;;  %v403_v39 = vshrl.u32 %v12585_v31, 16  ;;  %s12465_s23 = smov 123   ;;  %s12466_s24 = smov 33  }
  0x16   :  { %v424_v40 = vshrl.u32 %v12587_v32, 16  ;;  %v431_v41 = vshrl.u32 %v12589_v33, 16  ;;  %v452_v42 = vshrl.u32 %v12591_v34, 16  ;;  %v459_v46 = vshrl.u32 %v12597_v38, 16  ;;  %s12467_s25 = smov 97   ;;  %s12468_s26 = smov 59  }
  0x17   :  { %v411_v43 = vpack.i.b16 %v410_v35, %v410_v35  ;;  %v418_v44 = vpack.i.b16 %v417_v36, %v417_v36  ;;  %v397_v45 = vpack.i.b16 %v396_v37, %v396_v37  ;;  %v404_v47 = vpack.i.b16 %v403_v39, %v403_v39  ;;  %s12469_s27 = smov 96   ;;  %s12472_s11 = smov 60  }
  0x18   :  { %v425_v48 = vpack.i.b16 %v424_v40, %v424_v40  ;;  %v432_v49 = vpack.i.b16 %v431_v41, %v431_v41  ;;  %v453_v50 = vpack.i.b16 %v452_v42, %v452_v42  ;;  %150 = vrot.lane.b32.xlu1 %v12107_v19, %s12458_s15  ;;  %v460_v55 = vpack.i.b16 %v459_v46, %v459_v46  ;;  %s12473_s1 = smov 95   ;;  %s12474_s17 = smov 61  }
  0x19   :  { %v416_v52 = vrot.slane %v411_v43, %v12577_v23  ;;  %v423_v53 = vrot.slane %v418_v44, %v12577_v23  ;;  %v402_v54 = vrot.slane %v397_v45, %v12577_v23  ;;  %90 = vrot.lane.b32.xlu0 %v12105_v20, %s12457_s29  ;;  %v409_v57 = vrot.slane %v404_v47, %v12577_v23  ;;  %v1371_v47 = vld [vmem:[#allocation3] sm:$0x22]  ;;  %s12475_s18 = smov 69   ;;  %s12476_s9 = smov 68  }
  0x1a   :  { %v430_v58 = vrot.slane %v425_v48, %v12577_v23  ;;  %v437_v59 = vrot.slane %v432_v49, %v12577_v23  ;;  %v12613_v61 = vcombine.low %v187_v51, %v187_v51  ;;  %v12615_v62 = vcombine.high %v187_v51, %v187_v51  ;;  %s12477_s13 = smov 67  }
  0x1b   :  { %v11370_v60 = vcombine.low %v416_v52, %v423_v53  ;;  %v458_v1 = vrot.slane %v453_v50, %v12577_v23  ;;  %v12620_v2 = vcombine.low %v189_v56, %v189_v56  ;;  %v12622_v3 = vcombine.high %v189_v56, %v189_v56 }
  0x1c   :  { %152 = vrot.lane.b32.xlu1 %v12108_v25, %s12458_s15  ;;  %v11369_v4 = vcombine.low %v402_v54, %v409_v57  ;;  %v465_v6 = vrot.slane %v460_v55, %v12577_v23  ;;  %v438_v7 = vshrl.u32 %v12613_v61, 16  ;;  %v445_v8 = vshrl.u32 %v12615_v62, 16 }
  0x1d   :  { %522 = vrot.lane.b32.xlu0 %v11370_v60, %s12459_s16  ;;  %v11371_v9 = vcombine.low %v430_v58, %v437_v59  ;;  %v466_v10 = vshrl.u32 %v12620_v2, 16  ;;  %v473_v11 = vshrl.u32 %v12622_v3, 16  ;;  %v480_v14 = vshrl.u32 %v12617_v63, 16  ;;  %v1374_v58 = vld [vmem:[#allocation3 + $0x18] sm:$0x22] }
  0x1e   :  { %v439_v12 = vpack.i.b16 %v438_v7, %v438_v7  ;;  %v446_v13 = vpack.i.b16 %v445_v8, %v445_v8  ;;  %v225_v17 = vpack.i.b16 %v12583_v28, %v12583_v28  ;;  %v232_v18 = vpack.i.b16 %v12585_v31, %v12585_v31  ;;  %v11344_v28 = vld [vmem:[%s16330_s0 + $0x68] sm:$0xff]  ;;  %s12460_s0 = smov 3  }
  0x1f   :  { %v467_v15 = vpack.i.b16 %v466_v10, %v466_v10  ;;  %v474_v16 = vpack.i.b16 %v473_v11, %v473_v11  ;;  %v11373_v19 = vcombine.low %v458_v1, %v465_v6  ;;  %v481_v25 = vpack.i.b16 %v480_v14, %v480_v14 }
  0x20   :  { %520 = vrot.lane.b32.xlu1 %v11369_v4, %s12459_s16  ;;  %v444_v20 = vrot.slane %v439_v12, %v12577_v23  ;;  %v451_v21 = vrot.slane %v446_v13, %v12577_v23  ;;  %v230_v30 = vrot.slane %v225_v17, %v12577_v23  ;;  %v237_v31 = vrot.slane %v232_v18, %v12577_v23 }
  0x21   :  { %524 = vrot.lane.b32.xlu0 %v11371_v9, %s12459_s16  ;;  %v472_v22 = vrot.slane %v467_v15, %v12577_v23  ;;  %v479_v24 = vrot.slane %v474_v16, %v12577_v23  ;;  %v253_v35 = vpack.i.b16 %v12587_v32, %v12587_v32  ;;  %v260_v36 = vpack.i.b16 %v12589_v33, %v12589_v33  ;;  %v1372_v33 = vld [vmem:[#allocation3 + $0x8] sm:$0x22]  ;;  %v1375_v16 = vld [vmem:[#allocation3 + $0x20] sm:$0x22] }
  0x22   :  { %v11372_v29 = vcombine.low %v444_v20, %v451_v21  ;;  %v239_v39 = vpack.i.b16 %v12579_v26, %v12579_v26  ;;  %v246_v40 = vpack.i.b16 %v12581_v27, %v12581_v27  ;;  %v12109_v41 = vpack.c.bf16 %v11344_v28, %v11344_v28  ;;  %v1376_v20 = vld [vmem:[#allocation3 + $0x28] sm:$0x22] }
  0x23   :  { %v11374_v37 = vcombine.low %v472_v22, %v479_v24  ;;  %v486_v42 = vrot.slane %v481_v25, %v12577_v23  ;;  %v11362_v43 = vcombine.low %v230_v30, %v237_v31  ;;  %v258_v32 = vrot.slane %v253_v35, %v12577_v23 }
  0x24   :  { %528 = vrot.lane.b32.xlu1 %v11373_v19, %s12459_s16  ;;  %v265_v44 = vrot.slane %v260_v36, %v12577_v23  ;;  %v244_v45 = vrot.slane %v239_v39, %v12577_v23  ;;  %v251_v26 = vrot.slane %v246_v40, %v12577_v23  ;;  %v281_v27 = vpack.i.b16 %v12591_v34, %v12591_v34 }
  0x25   :  { %526 = vrot.lane.b32.xlu0 %v11372_v29, %s12459_s16  ;;  %v288_v46 = vpack.i.b16 %v12597_v38, %v12597_v38  ;;  %v11375_v48 = vcombine.low %v486_v42, %v486_v42  ;;  %v267_v49 = vpack.i.b16 %v12613_v61, %v12613_v61  ;;  %v274_v50 = vpack.i.b16 %v12615_v62, %v12615_v62 }
  0x26   :  { %v309_v51 = vpack.i.b16 %v12617_v63, %v12617_v63  ;;  %v12674_v52 = vcombine.low %v1372_v33, %v1372_v33  ;;  %v12676_v53 = vcombine.high %v1372_v33, %v1372_v33  ;;  %v12678_v34 = vcombine.low %v1371_v47, %v1371_v47  ;;  %v1373_v63 = vld [vmem:[#allocation3 + $0x10] sm:$0x22] }
  0x27   :  { %v12680_v38 = vcombine.high %v1371_v47, %v1371_v47  ;;  %v11364_v54 = vcombine.low %v258_v32, %v265_v44  ;;  %v11363_v55 = vcombine.low %v244_v45, %v251_v26  ;;  %v286_v56 = vrot.slane %v281_v27, %v12577_v23 }
  0x28   :  { %530 = vrot.lane.b32.xlu1 %v11374_v37, %s12459_s16  ;;  %v293_v57 = vrot.slane %v288_v46, %v12577_v23  ;;  %v272_v59 = vrot.slane %v267_v49, %v12577_v23  ;;  %v279_v60 = vrot.slane %v274_v50, %v12577_v23  ;;  %v295_v61 = vpack.i.b16 %v12620_v2, %v12620_v2 }
  0x29   :  { %154 = vrot.lane.b32.xlu0 %v12109_v41, %s12458_s15  ;;  %v302_v62 = vpack.i.b16 %v12622_v3, %v12622_v3  ;;  %v314_v1 = vrot.slane %v309_v51, %v12577_v23  ;;  %v12694_v4 = vsub.s32 1, %v12542_v5  ;;  %v1426_v6 = vpack.i.b16 %v12674_v52, %v12674_v52 }
  0x2a   :  { %v1433_v7 = vpack.i.b16 %v12676_v53, %v12676_v53  ;;  %v1412_v8 = vpack.i.b16 %v12678_v34, %v12678_v34  ;;  %v1419_v2 = vpack.i.b16 %v12680_v38, %v12680_v38  ;;  %v12704_v9 = vcombine.low %v1374_v58, %v1374_v58 }
  0x2b   :  { %v12706_v3 = vcombine.high %v1374_v58, %v1374_v58  ;;  %v11366_v10 = vcombine.low %v286_v56, %v293_v57  ;;  %v11433_v11 = vcombine.low %v1373_v63, %v1373_v63  ;;  %v11434_v12 = vcombine.high %v1373_v63, %v1373_v63 }
  0x2c   :  { %348 = vrot.lane.b32.xlu1 %v11362_v43, %s12460_s0  ;;  %v11365_v13 = vcombine.low %v272_v59, %v279_v60  ;;  %v300_v14 = vrot.slane %v295_v61, %v12577_v23  ;;  %v307_v15 = vrot.slane %v302_v62, %v12577_v23  ;;  %v11368_v17 = vcombine.low %v314_v1, %v314_v1  ;;  %v12728_v43 = vld [vmem:[#allocation3 + $0x30] ss:$0 sps:$4 sm:$0x22]  }
  0x2d   :  { %532 = vrot.lane.b32.xlu0 %v11375_v48, %s12459_s16  ;;  %v1431_v18 = vrot.slane %v1426_v6, %v12694_v4  ;;  %v1438_v19 = vrot.slane %v1433_v7, %v12694_v4  ;;  %v1417_v21 = vrot.slane %v1412_v8, %v12694_v4  ;;  %v1424_v22 = vrot.slane %v1419_v2, %v12694_v4 }
  0x2e   :  { %v1454_v24 = vpack.i.b16 %v12704_v9, %v12704_v9  ;;  %v1461_v25 = vpack.i.b16 %v12706_v3, %v12706_v3  ;;  %v1440_v29 = vpack.i.b16 %v11433_v11, %v11433_v11  ;;  %v1447_v28 = vpack.i.b16 %v11434_v12, %v11434_v12 }
  0x2f   :  { %v12721_v30 = vcombine.low %v1375_v16, %v1375_v16  ;;  %v12723_v31 = vcombine.high %v1375_v16, %v1375_v16  ;;  %v11367_v35 = vcombine.low %v300_v14, %v307_v15  ;;  %v11439_v36 = vcombine.low %v1376_v20, %v1376_v20  ;;  %v2583_v15 = vld [vmem:[#allocation3] sm:$0x44] }
  0x30   :  { %352 = vrot.lane.b32.xlu1 %v11364_v54, %s12460_s0  ;;  %v11440_v37 = vcombine.high %v1376_v20, %v1376_v20  ;;  %v11443_v39 = vcombine.low %v1431_v18, %v1438_v19  ;;  %v11442_v40 = vcombine.low %v1417_v21, %v1424_v22  ;;  %v1459_v41 = vrot.slane %v1454_v24, %v12694_v4 }
  0x31   :  { %350 = vrot.lane.b32.xlu0 %v11363_v55, %s12460_s0  ;;  %v1466_v42 = vrot.slane %v1461_v25, %v12694_v4  ;;  %v1445_v32 = vrot.slane %v1440_v29, %v12694_v4  ;;  %v1452_v44 = vrot.slane %v1447_v28, %v12694_v4  ;;  %v1468_v33 = vpack.i.b16 %v12721_v30, %v12721_v30 }
  0x32   :  { %v1475_v45 = vpack.i.b16 %v12723_v31, %v12723_v31  ;;  %v1482_v26 = vpack.i.b16 %v11439_v36, %v11439_v36  ;;  %v1489_v27 = vpack.i.b16 %v11440_v37, %v11440_v37  ;;  %v1997_v46 = vshrl.u32 %v12678_v34, 16 }
  0x33   :  { %v2004_v47 = vshrl.u32 %v12680_v38, 16  ;;  %v2011_v48 = vshrl.u32 %v12674_v52, 16  ;;  %v2018_v49 = vshrl.u32 %v12676_v53, 16  ;;  %v1496_v50 = vpack.i.b16 %v12728_v43, %v12728_v43 }
  0x34   :  { %356 = vrot.lane.b32.xlu1 %v11366_v10, %s12460_s0  ;;  %v2025_v51 = vshrl.u32 %v11433_v11, 16  ;;  %v2032_v54 = vshrl.u32 %v11434_v12, 16  ;;  %v11445_v55 = vcombine.low %v1459_v41, %v1466_v42  ;;  %v11444_v56 = vcombine.low %v1445_v32, %v1452_v44  ;;  %v2584_v44 = vld [vmem:[#allocation3 + $0x8] sm:$0x44] }
  0x35   :  { %354 = vrot.lane.b32.xlu0 %v11365_v13, %s12460_s0  ;;  %v1473_v57 = vrot.slane %v1468_v33, %v12694_v4  ;;  %v1480_v34 = vrot.slane %v1475_v45, %v12694_v4  ;;  %v1487_v52 = vrot.slane %v1482_v26, %v12694_v4  ;;  %v1494_v53 = vrot.slane %v1489_v27, %v12694_v4 }
  0x36   :  { %v1998_v38 = vpack.i.b16 %v1997_v46, %v1997_v46  ;;  %v2005_v58 = vpack.i.b16 %v2004_v47, %v2004_v47  ;;  %v2012_v59 = vpack.i.b16 %v2011_v48, %v2011_v48  ;;  %v2019_v60 = vpack.i.b16 %v2018_v49, %v2018_v49 }
  0x37   :  { %v2039_v61 = vshrl.u32 %v12704_v9, 16  ;;  %v1501_v62 = vrot.slane %v1496_v50, %v12694_v4  ;;  %v2026_v63 = vpack.i.b16 %v2025_v51, %v2025_v51  ;;  %v2033_v1 = vpack.i.b16 %v2032_v54, %v2032_v54 }
  0x38   :  { %360 = vrot.lane.b32.xlu1 %v11368_v17, %s12460_s0  ;;  %v2046_v6 = vshrl.u32 %v12706_v3, 16  ;;  %v11446_v7 = vcombine.low %v1473_v57, %v1480_v34  ;;  %v2067_v8 = vshrl.u32 %v11439_v36, 16  ;;  %v2074_v2 = vshrl.u32 %v11440_v37, 16  ;;  %v2585_v37 = vld [vmem:[#allocation3 + $0x10] sm:$0x44] }
  0x39   :  { %358 = vrot.lane.b32.xlu0 %v11367_v35, %s12460_s0  ;;  %v11447_v10 = vcombine.low %v1487_v52, %v1494_v53  ;;  %v2003_v11 = vrot.slane %v1998_v38, %v12694_v4  ;;  %v2010_v12 = vrot.slane %v2005_v58, %v12694_v4  ;;  %v2017_v9 = vrot.slane %v2012_v59, %v12694_v4  ;;  %v2586_v34 = vld [vmem:[#allocation3 + $0x18] sm:$0x44] }
  0x3a   :  { %v2024_v13 = vrot.slane %v2019_v60, %v12694_v4  ;;  %v2040_v14 = vpack.i.b16 %v2039_v61, %v2039_v61  ;;  %v11448_v16 = vcombine.low %v1501_v62, %v1501_v62  ;;  %v2031_v3 = vrot.slane %v2026_v63, %v12694_v4 }
  0x3b   :  { %v2038_v17 = vrot.slane %v2033_v1, %v12694_v4  ;;  %v2047_v18 = vpack.i.b16 %v2046_v6, %v2046_v6  ;;  %v2068_v19 = vpack.i.b16 %v2067_v8, %v2067_v8  ;;  %v2075_v20 = vpack.i.b16 %v2074_v2, %v2074_v2  ;;  %v2587_v1 = vld [vmem:[#allocation3 + $0x20] sm:$0x44] }
  0x3c   :  { %1537 = vrot.lane.b32.xlu1 %v11443_v39, %s12461_s19  ;;  %v2053_v21 = vshrl.u32 %v12721_v30, 16  ;;  %v2060_v22 = vshrl.u32 %v12723_v31, 16  ;;  %v11476_v24 = vcombine.low %v2003_v11, %v2010_v12  ;;  %v12765_v25 = vcombine.low %v2583_v15, %v2583_v15 }
  0x3d   :  { %1535 = vrot.lane.b32.xlu0 %v11442_v40, %s12461_s19  ;;  %v12767_v29 = vcombine.high %v2583_v15, %v2583_v15  ;;  %v11477_v28 = vcombine.low %v2017_v9, %v2024_v13  ;;  %v2045_v35 = vrot.slane %v2040_v14, %v12694_v4  ;;  %v12771_v36 = vsub.s32 2, %v12542_v5 }
  0x3e   :  { %v11478_v39 = vcombine.low %v2031_v3, %v2038_v17  ;;  %v2052_v40 = vrot.slane %v2047_v18, %v12694_v4  ;;  %v2081_v30 = vshrl.u32 %v12728_v43, 16  ;;  %v2073_v31 = vrot.slane %v2068_v19, %v12694_v4 }
  0x3f   :  { %v2080_v41 = vrot.slane %v2075_v20, %v12694_v4  ;;  %v2054_v42 = vpack.i.b16 %v2053_v21, %v2053_v21  ;;  %v2061_v32 = vpack.i.b16 %v2060_v22, %v2060_v22  ;;  %v2624_v33 = vpack.i.b16 %v12765_v25, %v12765_v25 }
  0x40   :  { %1541 = vrot.lane.b32.xlu1 %v11445_v55, %s12461_s19  ;;  %v2631_v43 = vpack.i.b16 %v12767_v29, %v12767_v29  ;;  %v12784_v45 = vcombine.low %v2585_v37, %v2585_v37  ;;  %v12786_v26 = vcombine.high %v2585_v37, %v2585_v37  ;;  %v2082_v27 = vpack.i.b16 %v2081_v30, %v2081_v30 }
  0x41   :  { %1539 = vrot.lane.b32.xlu0 %v11444_v56, %s12461_s19  ;;  %v11512_v46 = vcombine.low %v2584_v44, %v2584_v44  ;;  %v11513_v47 = vcombine.high %v2584_v44, %v2584_v44  ;;  %v11479_v48 = vcombine.low %v2045_v35, %v2052_v40  ;;  %v11481_v49 = vcombine.low %v2073_v31, %v2080_v41 }
  0x42   :  { %v2059_v50 = vrot.slane %v2054_v42, %v12694_v4  ;;  %v2066_v51 = vrot.slane %v2061_v32, %v12694_v4  ;;  %v2629_v54 = vrot.slane %v2624_v33, %v12771_v36  ;;  %v2636_v55 = vrot.slane %v2631_v43, %v12771_v36 }
  0x43   :  { %v2652_v56 = vpack.i.b16 %v12784_v45, %v12784_v45  ;;  %v2659_v57 = vpack.i.b16 %v12786_v26, %v12786_v26  ;;  %v2087_v52 = vrot.slane %v2082_v27, %v12694_v4  ;;  %v2638_v53 = vpack.i.b16 %v11512_v46, %v11512_v46 }
  0x44   :  { %1543 = vrot.lane.b32.xlu1 %v11446_v7, %s12461_s19  ;;  %v2645_v38 = vpack.i.b16 %v11513_v47, %v11513_v47  ;;  %v11480_v58 = vcombine.low %v2059_v50, %v2066_v51  ;;  %v11516_v59 = vcombine.low %v2586_v34, %v2586_v34  ;;  %v11517_v60 = vcombine.high %v2586_v34, %v2586_v34 }
  0x45   :  { %1545 = vrot.lane.b32.xlu0 %v11447_v10, %s12461_s19  ;;  %v11523_v61 = vcombine.low %v2629_v54, %v2636_v55  ;;  %v2657_v62 = vrot.slane %v2652_v56, %v12771_v36  ;;  %v2664_v63 = vrot.slane %v2659_v57, %v12771_v36  ;;  %v11482_v6 = vcombine.low %v2087_v52, %v2087_v52 }
  0x46   :  { %v2643_v7 = vrot.slane %v2638_v53, %v12771_v36  ;;  %v2650_v8 = vrot.slane %v2645_v38, %v12771_v36  ;;  %v2666_v2 = vpack.i.b16 %v11516_v59, %v11516_v59  ;;  %v2673_v10 = vpack.i.b16 %v11517_v60, %v11517_v60 }
  0x47   :  { %v11518_v11 = vcombine.low %v2587_v1, %v2587_v1  ;;  %v11519_v12 = vcombine.high %v2587_v1, %v2587_v1  ;;  %v11525_v9 = vcombine.low %v2657_v62, %v2664_v63  ;;  %v3222_v21 = vshrl.u32 %v11512_v46, 16 }
  0x48   :  { %1547 = vrot.lane.b32.xlu1 %v11448_v16, %s12461_s19  ;;  %v11524_v13 = vcombine.low %v2643_v7, %v2650_v8  ;;  %v2671_v14 = vrot.slane %v2666_v2, %v12771_v36  ;;  %v2678_v15 = vrot.slane %v2673_v10, %v12771_v36  ;;  %v3229_v22 = vshrl.u32 %v11513_v47, 16 }
  0x49   :  { %2121 = vrot.lane.b32.xlu0 %v11476_v24, %s12462_s20  ;;  %v2680_v16 = vpack.i.b16 %v11518_v11, %v11518_v11  ;;  %v2687_v3 = vpack.i.b16 %v11519_v12, %v11519_v12  ;;  %v3223_v24 = vpack.i.b16 %v3222_v21, %v3222_v21  ;;  %v3250_v40 = vshrl.u32 %v11516_v59, 16 }
  0x4a   :  { %v11526_v17 = vcombine.low %v2671_v14, %v2678_v15  ;;  %v3257_v30 = vshrl.u32 %v11517_v60, 16  ;;  %v3264_v33 = vshrl.u32 %v11518_v11, 16  ;;  %v3271_v43 = vshrl.u32 %v11519_v12, 16 }
  0x4b   :  { %v2685_v18 = vrot.slane %v2680_v16, %v12771_v36  ;;  %v2692_v19 = vrot.slane %v2687_v3, %v12771_v36  ;;  %v3228_v35 = vrot.slane %v3223_v24, %v12771_v36  ;;  %v3251_v31 = vpack.i.b16 %v3250_v40, %v3250_v40 }
  0x4c   :  { %2123 = vrot.lane.b32.xlu1 %v11477_v28, %s12462_s20  ;;  %v3230_v28 = vpack.i.b16 %v3229_v22, %v3229_v22  ;;  %v3258_v41 = vpack.i.b16 %v3257_v30, %v3257_v30  ;;  %v3265_v27 = vpack.i.b16 %v3264_v33, %v3264_v33  ;;  %v3272_v46 = vpack.i.b16 %v3271_v43, %v3271_v43 }
  0x4d   :  { %2125 = vrot.lane.b32.xlu0 %v11478_v39, %s12462_s20  ;;  %v11527_v20 = vcombine.low %v2685_v18, %v2692_v19  ;;  %v3256_v42 = vrot.slane %v3251_v31, %v12771_v36  ;;  %v3215_v50 = vshrl.u32 %v12767_v29, 16  ;;  %vm108_vm2 = vcmask 1047556  }
  0x4e   :  { %v3235_v37 = vrot.slane %v3230_v28, %v12771_v36  ;;  %v3263_v32 = vrot.slane %v3258_v41, %v12771_v36  ;;  %v3270_v47 = vrot.slane %v3265_v27, %v12771_v36  ;;  %vm95_vm3 = vcmask 261120   ;;  %vm12837_vm4 = vmor %vm108_vm2, %vm107_vm1 }
  0x4f   :  { %v3216_v55 = vpack.i.b16 %v3215_v50, %v3215_v50  ;;  %vm170_vm5 = vcmask 1043840   ;;  %vm159_vm6 = vcmask 392192   ;;  %vm113_vm7 = vcmask 388096  }
  0x50   :  { %2127 = vrot.lane.b32.xlu1 %v11479_v48, %s12462_s20  ;;  %v12818_v39 = vcombine.low %v3228_v35, %v3235_v37  ;;  %v12822_v44 = vcombine.low %v3256_v42, %v3263_v32  ;;  %v3277_v48 = vrot.slane %v3272_v46, %v12771_v36  ;;  %vm171_vm8 = vmor %vm108_vm2, %vm170_vm5  ;;  %vm540_vm9 = vcmask 31744  }
  0x51   :  { %2131 = vrot.lane.b32.xlu0 %v11481_v49, %s12462_s20  ;;  %v3208_v49 = vshrl.u32 %v12765_v25, 16  ;;  %v3221_v34 = vrot.slane %v3216_v55, %v12771_v36  ;;  %vm175_vm10 = vcmask 519168   ;;  %vm368_vm11 = vcmask 23552  }
  0x52   :  { %v12828_v51 = vcombine.low %v3270_v47, %v3277_v48  ;;  %vm97_vm12 = vcmask 1043456   ;;  %vm1555_vm13 = vcmask 39936   ;;  %vm2141_vm14 = vcmask 252928  }
  0x53   :  { %v3209_v54 = vpack.i.b16 %v3208_v49, %v3208_v49  ;;  %vm628_vm15 = vcmask 1014784   ;;  %vm641_vm0 = vcmask 64512   ;;  %vm1030_vm1 = vcmask 1022976  }
  0x54   :  { %2129 = vrot.lane.b32.xlu1 %v11480_v58, %s12462_s20  ;;  %vm12471_vm2 = vmmov 0   ;;  %vm1643_vm5 = vcmask 1006592  }
  0x55   :  { %2747 = vrot.lane.b32.xlu0 %v11523_v61, %s12457_s29  ;;  %v3214_v57 = vrot.slane %v3209_v54, %v12771_v36 }
  0x57   :  { %v12842_v53 = vcombine.low %v3214_v57, %v3221_v34 }
  0x58   :  { %2133 = vrot.lane.b32.xlu1 %v11482_v6, %s12462_s20 }
  0x59   :  { %2751 = vrot.lane.b32.xlu0 %v11525_v9, %s12457_s29 }
  0x5c   :  { %2749 = vrot.lane.b32.xlu1 %v11524_v13, %s12457_s29 }
  0x60   :  { %2753 = vrot.lane.b32.xlu1 %v11526_v17, %s12457_s29 }
  0x64   :  { %2755 = vrot.lane.b32.xlu1 %v11527_v20, %s12457_s29 }
  0x82   :  { %v12830_v56 = vpop.permute.xlu1 %88 }
  0x83   :  { %v12834_v52 = vpop.permute.xlu0 %84  ;;  %v94_v61 = vrot.slane %v12830_v56, 4 }
  0x84   :  { %v92_v29 = vrot.slane %v12834_v52, 4 }
  0x86   :  { %v96_v38 = vsel %vm95_vm3, %v92_v29, %v12834_v52  ;;  %v12848_v58 = vpop.permute.xlu1 %148 }
  0x87   :  { %110 = vst.msk [vmem:[#allocation2] sm:$0xff] %vm12837_vm4, %v96_v38  ;;  %v156_v59 = vrot.slane %v12848_v58, 4  ;;  %v12853_v60 = vpop.permute.xlu0 %86 }
  0x88   :  { %v93_v50 = vrot.slane %v12853_v60, 4 }
  0x89   :  { %v160_v63 = vsel %vm159_vm6, %v156_v59, %v12848_v58 }
  0x8a   :  { %v12856_v62 = vpop.permute.xlu1 %150 }
  0x8b   :  { %v91_v1 = vpop.permute.xlu0 %90 }
  0x8c   :  { %v102_v6 = vsel %vm95_vm3, %v94_v61, %v91_v1 }
  0x8d   :  { %114 = vst.msk [vmem:[#allocation2 + $0x18] sm:$0xf] %vm113_vm7, %v102_v6  ;;  %vm16339_vm7 = vcmask 793600  }
  0x8e   :  { %172 = vst.msk [vmem:[#allocation2 + $0x18] sm:$0xff] %vm171_vm8, %v160_v63  ;;  %v12866_v7 = vpop.permute.xlu1 %152  ;;  %v12870_v12 = vld [vmem:[#allocation2] sm:$0xff]  ;;  %vm16340_vm8 = vcmask 482304  }
  0x8f   :  { %v523_v8 = vpop.permute.xlu0 %522  ;;  %v158_v17 = vrot.slane %v12866_v7, 4 }
  0x90   :  { %v535_v54 = vrot.slane %v523_v8, 4 }
  0x92   :  { %v521_v2 = vpop.permute.xlu1 %520 }
  0x93   :  { %v534_v10 = vrot.slane %v521_v2, 4  ;;  %v12868_v11 = vpop.permute.xlu0 %524 }
  0x94   :  { %v536_v46 = vrot.slane %v12868_v11, 4 }
  0x95   :  { %v541_v9 = vsel %vm540_vm9, %v534_v10, %v521_v2  ;;  %v542_v34 = vsel %vm97_vm12, %v534_v10, %v535_v54  ;;  %v98_v2 = vsel %vm97_vm12, %v92_v29, %v93_v50 }
  0x96   :  { %v560_v13 = vmul.bf16 %v541_v9, %v12870_v12  ;;  %v12874_v14 = vpop.permute.xlu1 %528  ;;  %v544_v38 = vsel %vm97_vm12, %v535_v54, %v536_v46  ;;  %v100_v9 = vsel %vm97_vm12, %v93_v50, %v94_v61  ;;  %v12943_v29 = vsel %vm95_vm3, %v98_v2, %v12853_v60 }
  0x97   :  { %v12876_v15 = vpop.permute.xlu0 %526  ;;  %v545_v10 = vsel %vm540_vm9, %v544_v38, %v12868_v11  ;;  %v12947_v61 = vsel %vm95_vm3, %v100_v9, %v12830_v56  ;;  %v157_v60 = vrot.slane %v12856_v62, 4 }
  0x98   :  { %v11378_v16 = vcombine.high %v560_v13, %v560_v13  ;;  %v11377_v3 = vcombine.low %v560_v13, %v560_v13  ;;  %v562_v11 = vmul.bf16 %v545_v10, %v12947_v61 }
  0x99   :  { %v161_v54 = vsel %vm97_vm12, %v156_v59, %v157_v60 }
  0x9a   :  { %v12879_v18 = vpop.permute.xlu1 %530  ;;  %604 = vrot.lane.b32.xlu1 %v11378_v16, %s12463_s21  ;;  %602 = vrot.lane.b32.xlu0 %v11377_v3, %s12463_s21  ;;  %v543_v3 = vsel %vm540_vm9, %v542_v34, %v523_v8  ;;  %v12982_v58 = vsel %vm159_vm6, %v161_v54, %v12856_v62 }
  0x9b   :  { %v155_v19 = vpop.permute.xlu0 %154  ;;  %v539_v35 = vrot.slane %v12879_v18, 4  ;;  %v561_v8 = vmul.bf16 %v543_v3, %v12943_v29 }
  0x9c   :  { %v165_v20 = vsel %vm159_vm6, %v158_v17, %v155_v19  ;;  %v537_v19 = vrot.slane %v12876_v15, 4 }
  0x9d   :  { %176 = vst.msk [vmem:[#allocation2 + $0x30] sm:$0xf] %vm175_vm10, %v165_v20  ;;  %v11379_v56 = vcombine.low %v561_v8, %v561_v8 }
  0x9e   :  { %v12887_v21 = vpop.permute.xlu1 %348 }
  0x9f   :  { %v362_v22 = vrot.slane %v12887_v21, 4  ;;  %v533_v24 = vpop.permute.xlu0 %532 }
  0xa0   :  { %v552_v41 = vsel %vm540_vm9, %v539_v35, %v533_v24 }
  0xa1   :  { %v369_v28 = vsel %vm368_vm11, %v362_v22, %v12887_v21 }
  0xa2   :  { %v388_v37 = vmul.bf16 %v369_v28, %v12870_v12  ;;  %v12896_v40 = vpop.permute.xlu1 %352  ;;  %v538_v28 = vrot.slane %v12874_v14, 4 }
  0xa3   :  { %v12898_v30 = vpop.permute.xlu0 %350 }
  0xa4   :  { %v12900_v31 = vld [vmem:[#allocation2 + $0x30] sm:$0xf]  ;;  %v11403_v42 = vcombine.low %v388_v37, %v388_v37  ;;  %v11404_v48 = vcombine.high %v388_v37, %v388_v37  ;;  %v546_v37 = vsel %vm97_vm12, %v536_v46, %v537_v19  ;;  %v364_v46 = vrot.slane %v12896_v40, 4 }
  0xa5   :  { %v566_v32 = vmul.bf16 %v552_v41, %v12900_v31  ;;  %v11381_v41 = vcombine.low %v562_v11, %v562_v11  ;;  %v363_v50 = vrot.slane %v12898_v30, 4 }
  0xa6   :  { %1004 = vrot.lane.b32.xlu0 %v11403_v42, %s12464_s22  ;;  %v12905_v43 = vpop.permute.xlu1 %356  ;;  %v12956_v42 = vld [vmem:[#allocation2 + $0x18] sm:$0xff] }
  0xa7   :  { %v11389_v33 = vcombine.low %v566_v32, %v566_v32  ;;  %v12907_v27 = vpop.permute.xlu0 %354  ;;  %v547_v32 = vsel %vm540_vm9, %v546_v37, %v12876_v15  ;;  %v163_v15 = vsel %vm97_vm12, %v157_v60, %v158_v17 }
  0xa8   :  { %v12986_v59 = vsel %vm159_vm6, %v163_v15, %v12866_v7  ;;  %vm3352_vm6 = vcmask 269312  }
  0xa9   :  { %626 = vrot.lane.b32.xlu1 %v11389_v33, %s12463_s21  ;;  %v548_v33 = vsel %vm97_vm12, %v537_v19, %v538_v28  ;;  %v366_v19 = vrot.slane %v12905_v43, 4 }
  0xaa   :  { %v361_v55 = vpop.permute.xlu1 %360  ;;  %v549_v38 = vsel %vm540_vm9, %v548_v33, %v12874_v14 }
  0xab   :  { %v12911_v47 = vpop.permute.xlu0 %358  ;;  %v564_v14 = vmul.bf16 %v549_v38, %v12982_v58 }
  0xac   :  { %v367_v49 = vrot.slane %v12911_v47, 4 }
  0xad   :  { %1006 = vrot.lane.b32.xlu1 %v11404_v48, %s12464_s22  ;;  %v550_v48 = vsel %vm97_vm12, %v538_v28, %v539_v35  ;;  %v11380_v35 = vcombine.high %v561_v8, %v561_v8  ;;  %v11385_v10 = vcombine.low %v564_v14, %v564_v14 }
  0xae   :  { %v380_v57 = vsel %vm368_vm11, %v367_v49, %v361_v55  ;;  %v563_v55 = vmul.bf16 %v547_v32, %v12956_v42  ;;  %v551_v34 = vsel %vm540_vm9, %v550_v48, %v12879_v18  ;;  %v1538_v21 = vpop.permute.xlu1 %1537 }
  0xaf   :  { %v12921_v63 = vpop.permute.xlu0 %1535  ;;  %v394_v1 = vmul.bf16 %v380_v57, %v12900_v31  ;;  %v11382_v57 = vcombine.high %v562_v11, %v562_v11  ;;  %v565_v17 = vmul.bf16 %v551_v34, %v12986_v59  ;;  %v11386_v11 = vcombine.high %v564_v14, %v564_v14  ;;  %v13033_v34 = vld [vmem:[#allocation3 + $0x30] ss:$0 sps:$4 sm:$0x44]  }
  0xb0   :  { %v1549_v6 = vrot.slane %v12921_v63, 4  ;;  %v11384_v18 = vcombine.high %v563_v55, %v563_v55  ;;  %v11383_v2 = vcombine.low %v563_v55, %v563_v55 }
  0xb1   :  { %v11415_v13 = vcombine.low %v394_v1, %v394_v1  ;;  %v372_v1 = vsel %vm97_vm12, %v363_v50, %v364_v46  ;;  %v11387_v62 = vcombine.low %v565_v17, %v565_v17  ;;  %v11388_v28 = vcombine.high %v565_v17, %v565_v17 }
  0xb2   :  { %v1556_v16 = vsel %vm1555_vm13, %v1549_v6, %v12921_v63  ;;  %v373_v9 = vsel %vm368_vm11, %v372_v1, %v12896_v40 }
  0xb3   :  { %v1575_v52 = vmul.bf16 %v1556_v16, %v12870_v12  ;;  %1028 = vrot.lane.b32.xlu1 %v11415_v13, %s12464_s22  ;;  %v365_v13 = vrot.slane %v12907_v27, 4  ;;  %v390_v7 = vmul.bf16 %v373_v9, %v12947_v61  ;;  %v370_v16 = vsel %vm97_vm12, %v362_v22, %v363_v50  ;;  %v1540_v40 = vpop.permute.xlu0 %1539 }
  0xb4   :  { %v378_v22 = vsel %vm97_vm12, %v366_v19, %v367_v49  ;;  %v1551_v8 = vrot.slane %v1540_v40, 4  ;;  %v13019_v49 = vpop.permute.xlu1 %1541 }
  0xb5   :  { %v11451_v20 = vcombine.high %v1575_v52, %v1575_v52  ;;  %v11450_v24 = vcombine.low %v1575_v52, %v1575_v52  ;;  %v374_v3 = vsel %vm97_vm12, %v364_v46, %v365_v13  ;;  %v11407_v52 = vcombine.low %v390_v7, %v390_v7 }
  0xb6   :  { %v376_v50 = vsel %vm97_vm12, %v365_v13, %v366_v19  ;;  %v1552_v54 = vrot.slane %v13019_v49, 4  ;;  %v2588_v19 = vld [vmem:[#allocation3 + $0x28] sm:$0x44] }
  0xb7   :  { %1619 = vrot.lane.b32.xlu1 %v11451_v20, %s12465_s23  ;;  %1617 = vrot.lane.b32.xlu0 %v11450_v24, %s12465_s23  ;;  %v371_v20 = vsel %vm368_vm11, %v370_v16, %v12898_v30  ;;  %v375_v24 = vsel %vm368_vm11, %v374_v3, %v12907_v27  ;;  %v11408_v30 = vcombine.high %v390_v7, %v390_v7  ;;  %v1546_v1 = vpop.permute.xlu0 %1545 }
  0xb8   :  { %v389_v37 = vmul.bf16 %v371_v20, %v12943_v29  ;;  %v391_v60 = vmul.bf16 %v375_v24, %v12956_v42  ;;  %v379_v27 = vsel %vm368_vm11, %v378_v22, %v12911_v47  ;;  %v1544_v38 = vpop.permute.xlu1 %1543  ;;  %v1554_v13 = vrot.slane %v1546_v1, 4 }
  0xb9   :  { %v393_v32 = vmul.bf16 %v379_v27, %v12986_v59  ;;  %v1553_v9 = vrot.slane %v1544_v38, 4  ;;  %v13056_v22 = vcombine.high %v2588_v19, %v2588_v19 }
  0xba   :  { %v11410_v33 = vcombine.high %v391_v60, %v391_v60  ;;  %v11405_v48 = vcombine.low %v389_v37, %v389_v37  ;;  %v11406_v55 = vcombine.high %v389_v37, %v389_v37 }
  0xbb   :  { %610 = vrot.lane.b32.xlu1 %v11381_v41, %s12463_s21  ;;  %606 = vrot.lane.b32.xlu0 %v11379_v56, %s12463_s21  ;;  %v1550_v41 = vrot.slane %v1538_v21, 4  ;;  %v11413_v15 = vcombine.low %v393_v32, %v393_v32  ;;  %v1565_v3 = vsel %vm97_vm12, %v1553_v9, %v1554_v13 }
  0xbc   :  { %v1566_v20 = vsel %vm1555_vm13, %v1565_v3, %v1546_v1 }
  0xbd   :  { %v1559_v56 = vsel %vm97_vm12, %v1550_v41, %v1551_v8  ;;  %v1557_v16 = vsel %vm97_vm12, %v1549_v6, %v1550_v41  ;;  %v13054_v6 = vcombine.low %v2588_v19, %v2588_v19  ;;  %v2701_v41 = vpack.i.b16 %v13056_v22, %v13056_v22 }
  0xbe   :  { %v1560_v46 = vsel %vm1555_vm13, %v1559_v56, %v1540_v40  ;;  %v1558_v24 = vsel %vm1555_vm13, %v1557_v16, %v1538_v21  ;;  %v3243_v16 = vshrl.u32 %v12786_v26, 16 }
  0xbf   :  { %612 = vrot.lane.b32.xlu1 %v11382_v57, %s12463_s21  ;;  %608 = vrot.lane.b32.xlu0 %v11380_v35, %s12463_s21  ;;  %v1577_v47 = vmul.bf16 %v1560_v46, %v12947_v61  ;;  %v377_v57 = vsel %vm368_vm11, %v376_v50, %v12905_v43  ;;  %v1561_v35 = vsel %vm97_vm12, %v1551_v8, %v1552_v54 }
  0xc0   :  { %v1562_v14 = vsel %vm1555_vm13, %v1561_v35, %v13019_v49  ;;  %v2708_v43 = vpack.i.b16 %v13033_v34, %v13033_v34  ;;  %v13059_v8 = vmul.bf16 %v1566_v20, %v12986_v59  ;;  %v1576_v37 = vmul.bf16 %v1558_v24, %v12943_v29  ;;  %v13071_v49 = vpop.permute.xlu0 %2121 }
  0xc1   :  { %v11454_v17 = vcombine.low %v1577_v47, %v1577_v47  ;;  %v1578_v7 = vmul.bf16 %v1562_v14, %v12956_v42  ;;  %v2694_v21 = vpack.i.b16 %v13054_v6, %v13054_v6  ;;  %v2135_v50 = vrot.slane %v13071_v49, 4 }
  0xc2   :  { %v2713_v40 = vrot.slane %v2708_v43, %v12771_v36  ;;  %v11452_v27 = vcombine.low %v1576_v37, %v1576_v37  ;;  %v11453_v46 = vcombine.high %v1576_v37, %v1576_v37 }
  0xc3   :  { %616 = vrot.lane.b32.xlu1 %v11384_v18, %s12463_s21  ;;  %614 = vrot.lane.b32.xlu0 %v11383_v2, %s12463_s21  ;;  %v11409_v18 = vcombine.low %v391_v60, %v391_v60  ;;  %v392_v2 = vmul.bf16 %v377_v57, %v12982_v58  ;;  %v1548_v60 = vpop.permute.xlu1 %1547 }
  0xc4   :  { %v11529_v63 = vcombine.low %v2713_v40, %v2713_v40  ;;  %v1567_v56 = vsel %vm1555_vm13, %v1554_v13, %v1548_v60  ;;  %v2126_v57 = vpop.permute.xlu0 %2125 }
  0xc7   :  { %622 = vrot.lane.b32.xlu1 %v11387_v62, %s12463_s21  ;;  %618 = vrot.lane.b32.xlu0 %v11385_v10, %s12463_s21  ;;  %v11455_v62 = vcombine.high %v1577_v47, %v1577_v47  ;;  %v11411_v10 = vcombine.low %v392_v2, %v392_v2  ;;  %v1563_v47 = vsel %vm97_vm12, %v1552_v54, %v1553_v9  ;;  %v2137_v54 = vrot.slane %v2126_v57, 4 }
  0xc8   :  { %v1564_v1 = vsel %vm1555_vm13, %v1563_v47, %v1544_v38  ;;  %v11456_v9 = vcombine.low %v1578_v7, %v1578_v7  ;;  %v3797_v47 = vld [vmem:[#allocation3 + $0x18] sm:$0x88] }
  0xcb   :  { %1012 = vrot.lane.b32.xlu1 %v11407_v52, %s12464_s22  ;;  %620 = vrot.lane.b32.xlu0 %v11386_v11, %s12463_s21  ;;  %v11457_v52 = vcombine.high %v1578_v7, %v1578_v7  ;;  %v11412_v11 = vcombine.high %v392_v2, %v392_v2  ;;  %v1579_v2 = vmul.bf16 %v1564_v1, %v12982_v58 }
  0xcd   :  { %v11458_v43 = vcombine.low %v1579_v2, %v1579_v2  ;;  %v11459_v40 = vcombine.high %v1579_v2, %v1579_v2 }
  0xcf   :  { %1014 = vrot.lane.b32.xlu1 %v11408_v30, %s12464_s22  ;;  %624 = vrot.lane.b32.xlu0 %v11388_v28, %s12463_s21  ;;  %v11414_v28 = vcombine.high %v393_v32, %v393_v32  ;;  %v11460_v30 = vcombine.low %v13059_v8, %v13059_v8  ;;  %v2699_v32 = vrot.slane %v2694_v21, %v12771_v36 }
  0xd3   :  { %1018 = vrot.lane.b32.xlu1 %v11410_v33, %s12464_s22  ;;  %1008 = vrot.lane.b32.xlu0 %v11405_v48, %s12464_s22  ;;  %v2706_v33 = vrot.slane %v2701_v41, %v12771_v36  ;;  %v1581_v48 = vmul.bf16 %v1567_v56, %v12900_v31 }
  0xd5   :  { %v11462_v35 = vcombine.low %v1581_v48, %v1581_v48 }
  0xd7   :  { %1024 = vrot.lane.b32.xlu1 %v11413_v15, %s12464_s22  ;;  %1010 = vrot.lane.b32.xlu0 %v11406_v55, %s12464_s22  ;;  %v13080_v15 = vpop.permute.xlu1 %2123  ;;  %v11528_v55 = vcombine.low %v2699_v32, %v2706_v33 }
  0xdb   :  { %1625 = vrot.lane.b32.xlu1 %v11454_v17, %s12465_s23  ;;  %1016 = vrot.lane.b32.xlu0 %v11409_v18, %s12464_s22  ;;  %v2142_v17 = vsel %vm2141_vm14, %v2135_v50, %v13071_v49  ;;  %v2136_v18 = vrot.slane %v13080_v15, 4  ;;  %v13095_v14 = vpop.permute.xlu1 %2127 }
  0xdc   :  { %v2138_v3 = vrot.slane %v13095_v14, 4 }
  0xdd   :  { %v2145_v38 = vsel %vm97_vm12, %v2136_v18, %v2137_v54  ;;  %v2143_v33 = vsel %vm97_vm12, %v2135_v50, %v2136_v18  ;;  %v3278_v50 = vshrl.u32 %v13054_v6, 16 }
  0xdf   :  { %1627 = vrot.lane.b32.xlu1 %v11455_v62, %s12465_s23  ;;  %1020 = vrot.lane.b32.xlu0 %v11411_v10, %s12464_s22  ;;  %v2146_v62 = vsel %vm2141_vm14, %v2145_v38, %v2126_v57  ;;  %v3236_v10 = vshrl.u32 %v12784_v45, 16  ;;  %v13107_v7 = vpop.permute.xlu1 %2129  ;;  %v2147_v45 = vsel %vm97_vm12, %v2137_v54, %v2138_v3  ;;  %v13159_v54 = vcombine.low %v3797_v47, %v3797_v47 }
  0xe0   :  { %v2148_v24 = vsel %vm2141_vm14, %v2147_v45, %v13095_v14  ;;  %v2139_v21 = vrot.slane %v13107_v7, 4  ;;  %v13169_v38 = vcombine.high %v3797_v47, %v3797_v47 }
  0xe1   :  { %v3237_v19 = vpack.i.b16 %v3236_v10, %v3236_v10  ;;  %v13128_v41 = vmul.bf16 %v2148_v24, %v12956_v42 }
  0xe3   :  { %1631 = vrot.lane.b32.xlu1 %v11457_v52, %s12465_s23  ;;  %1022 = vrot.lane.b32.xlu0 %v11412_v11, %s12464_s22  ;;  %v3244_v52 = vpack.i.b16 %v3243_v16, %v3243_v16  ;;  %v3292_v11 = vshrl.u32 %v13033_v34, 16  ;;  %v2134_v26 = vpop.permute.xlu1 %2133 }
  0xe5   :  { %v3249_v37 = vrot.slane %v3244_v52, %v12771_v36  ;;  %v3293_v34 = vpack.i.b16 %v3292_v11, %v3292_v11 }
  0xe7   :  { %2759 = vrot.lane.b32.xlu1 %v11529_v63, %s12457_s29  ;;  %1026 = vrot.lane.b32.xlu0 %v11414_v28, %s12464_s22  ;;  %v2132_v63 = vpop.permute.xlu0 %2131  ;;  %v3242_v28 = vrot.slane %v3237_v19, %v12771_v36  ;;  %v3298_v49 = vrot.slane %v3293_v34, %v12771_v36 }
  0xe8   :  { %v2140_v60 = vrot.slane %v2132_v63, 4 }
  0xe9   :  { %v11559_v56 = vcombine.low %v3242_v28, %v3249_v37  ;;  %v11563_v1 = vcombine.low %v3298_v49, %v3298_v49  ;;  %v3794_v49 = vld [vmem:[#allocation3] sm:$0x88] }
  0xea   :  { %v2151_v48 = vsel %vm97_vm12, %v2139_v21, %v2140_v60  ;;  %v2153_v19 = vsel %vm2141_vm14, %v2140_v60, %v2134_v26  ;;  %v13213_v47 = vcombine.high %v3794_v49, %v3794_v49 }
  0xeb   :  { %1637 = vrot.lane.b32.xlu1 %v11460_v30, %s12465_s23  ;;  %1621 = vrot.lane.b32.xlu0 %v11452_v27, %s12465_s23  ;;  %v11461_v27 = vcombine.high %v13059_v8, %v13059_v8  ;;  %v11491_v8 = vcombine.high %v13128_v41, %v13128_v41  ;;  %v2152_v57 = vsel %vm2141_vm14, %v2151_v48, %v2132_v63  ;;  %v13184_v45 = vpop.permute.xlu0 %2747  ;;  %v3798_v63 = vld [vmem:[#allocation3 + $0x20] sm:$0x88] }
  0xec   :  { %v2167_v28 = vmul.bf16 %v2153_v19, %v12900_v31  ;;  %v2761_v60 = vrot.slane %v13184_v45, 4  ;;  %v13201_v31 = vcombine.low %v3798_v63, %v3798_v63 }
  0xee   :  { %v11496_v48 = vcombine.low %v2167_v28, %v2167_v28 }
  0xef   :  { %3334 = vrot.lane.b32.xlu1 %v12818_v39, %s12466_s24  ;;  %1623 = vrot.lane.b32.xlu0 %v11453_v46, %s12465_s23  ;;  %v13093_v39 = vmul.bf16 %v2142_v17, %v12870_v12  ;;  %v13137_v46 = vpop.permute.xlu1 %2749  ;;  %v13153_v17 = vsub.s32 3, %v12542_v5 }
  0xf1   :  { %v11485_v13 = vcombine.high %v13093_v39, %v13093_v39 }
  0xf3   :  { %1641 = vrot.lane.b32.xlu1 %v11462_v35, %s12465_s23  ;;  %2757 = vrot.lane.b32.xlu0 %v11528_v55, %s12457_s29  ;;  %v2144_v55 = vsel %vm2141_vm14, %v2143_v33, %v13080_v15  ;;  %v3285_v35 = vshrl.u32 %v13056_v22, 16  ;;  %v13162_v2 = vpop.permute.xlu1 %2753  ;;  %v11484_v22 = vcombine.low %v13093_v39, %v13093_v39  ;;  %v3877_v39 = vpack.i.b16 %v13159_v54, %v13159_v54  ;;  %v2752_v33 = vpop.permute.xlu0 %2751 }
  0xf4   :  { %v2162_v6 = vmul.bf16 %v2144_v55, %v12943_v29  ;;  %v2762_v55 = vrot.slane %v13137_v46, 4 }
  0xf5   :  { %v3882_v34 = vrot.slane %v3877_v39, %v13153_v17 }
  0xf6   :  { %v11487_v37 = vcombine.high %v2162_v6, %v2162_v6 }
  0xf7   :  { %3338 = vrot.lane.b32.xlu1 %v12822_v44, %s12466_s24  ;;  %1629 = vrot.lane.b32.xlu0 %v11456_v9, %s12465_s23  ;;  %v2163_v44 = vmul.bf16 %v2146_v62, %v12947_v61  ;;  %v13167_v9 = vmul.bf16 %v2152_v57, %v12986_v59  ;;  %v2763_v57 = vrot.slane %v2752_v33, 4 }
  0xf9   :  { %v11488_v20 = vcombine.low %v2163_v44, %v2163_v44  ;;  %v11489_v30 = vcombine.high %v2163_v44, %v2163_v44  ;;  %v11494_v16 = vcombine.low %v13167_v9, %v13167_v9  ;;  %v11486_v44 = vcombine.low %v2162_v6, %v2162_v6 }
  0xfb   :  { %2205 = vrot.lane.b32.xlu1 %v11485_v13, %s12467_s25  ;;  %1633 = vrot.lane.b32.xlu0 %v11458_v43, %s12465_s23  ;;  %v3279_v13 = vpack.i.b16 %v3278_v50, %v3278_v50  ;;  %v3286_v43 = vpack.i.b16 %v3285_v35, %v3285_v35 }
  0xfd   :  { %v3284_v52 = vrot.slane %v3279_v13, %v12771_v36  ;;  %v3291_v11 = vrot.slane %v3286_v43, %v12771_v36  ;;  %v2770_v13 = vsel %vm97_vm12, %v2762_v55, %v2763_v57 }
  0xfe   :  { %v2771_v39 = vsel %vm95_vm3, %v2770_v13, %v2752_v33 }
  0xff   :  { %3340 = vrot.lane.b32.xlu1 %v12828_v51, %s12466_s24  ;;  %1635 = vrot.lane.b32.xlu0 %v11459_v40, %s12465_s23  ;;  %v3795_v51 = vld [vmem:[#allocation3 + $0x8] sm:$0x88]  ;;  %v3884_v40 = vpack.i.b16 %v13169_v38, %v13169_v38 }
 0x100   :  { %v13133_v32 = vcombine.low %v3795_v51, %v3795_v51 }
 0x101   :  { %v3889_v26 = vrot.slane %v3884_v40, %v13153_v17 }
 0x102   :  { %v3849_v18 = vpack.i.b16 %v13133_v32, %v13133_v32 }
 0x103   :  { %2211 = vrot.lane.b32.xlu1 %v11488_v20, %s12467_s25  ;;  %3332 = vrot.lane.b32.xlu0 %v12842_v53, %s12466_s24  ;;  %v13141_v53 = vcombine.high %v3795_v51, %v3795_v51  ;;  %v13186_v20 = vpop.permute.xlu1 %2755  ;;  %v11562_v51 = vcombine.low %v3284_v52, %v3291_v11  ;;  %v2764_v52 = vrot.slane %v13162_v2, 4 }
 0x104   :  { %v3854_v62 = vrot.slane %v3849_v18, %v13153_v17 }
 0x105   :  { %v3856_v15 = vpack.i.b16 %v13141_v53, %v13141_v53 }
 0x107   :  { %2213 = vrot.lane.b32.xlu1 %v11489_v30, %s12467_s25  ;;  %1639 = vrot.lane.b32.xlu0 %v11461_v27, %s12465_s23  ;;  %v3861_v10 = vrot.slane %v3856_v15, %v13153_v17  ;;  %v2149_v30 = vsel %vm97_vm12, %v2138_v3, %v2139_v21  ;;  %v2767_v3 = vsel %vm95_vm3, %v2761_v60, %v13184_v45  ;;  %v13302_v45 = vld [vmem:[%s16332_s2 + $0x4] sm:$0xf] }
 0x108   :  { %v2150_v14 = vsel %vm2141_vm14, %v2149_v30, %v13107_v7  ;;  %v13211_v21 = vcombine.low %v3794_v49, %v3794_v49  ;;  %v3891_v7 = vpack.i.b16 %v13201_v31, %v13201_v31  ;;  %v13226_v18 = vmul.bf16 %v2767_v3, %v12870_v12 }
 0x109   :  { %v11605_v24 = vcombine.low %v3854_v62, %v3861_v10  ;;  %v11490_v15 = vcombine.low %v13128_v41, %v13128_v41  ;;  %v3796_v62 = vld [vmem:[#allocation3 + $0x10] sm:$0x88]  ;;  %v2772_v30 = vsel %vm97_vm12, %v2763_v57, %v2764_v52 }
 0x10a   :  { %v3835_v6 = vpack.i.b16 %v13211_v21, %v13211_v21  ;;  %v3896_v43 = vrot.slane %v3891_v7, %v13153_v17  ;;  %v11532_v41 = vcombine.high %v13226_v18, %v13226_v18  ;;  %v2773_v57 = vsel %vm95_vm3, %v2772_v30, %v13162_v2 }
 0x10b   :  { %2217 = vrot.lane.b32.xlu1 %v11491_v8, %s12467_s25  ;;  %3336 = vrot.lane.b32.xlu0 %v11559_v56, %s12466_s24  ;;  %v13203_v56 = vcombine.high %v3798_v63, %v3798_v63  ;;  %v11607_v8 = vcombine.low %v3882_v34, %v3889_v26  ;;  %v13251_v63 = vcombine.high %v3796_v62, %v3796_v62 }
 0x10c   :  { %v13197_v27 = vpop.permute.xlu1 %604  ;;  %v603_v10 = vpop.permute.xlu0 %602  ;;  %v3840_v40 = vrot.slane %v3835_v6, %v13153_v17  ;;  %v13282_v6 = vmul.bf16 %v2773_v57, %v12956_v42 }
 0x10d   :  { %v3898_v35 = vpack.i.b16 %v13203_v56, %v13203_v56  ;;  %v3870_v33 = vpack.i.b16 %v13251_v63, %v13251_v63 }
 0x10f   :  { %3344 = vrot.lane.b32.xlu1 %v11563_v1, %s12466_s24  ;;  %2203 = vrot.lane.b32.xlu0 %v11484_v22, %s12467_s25  ;;  %v2165_v1 = vmul.bf16 %v2150_v14, %v12982_v58  ;;  %v3842_v22 = vpack.i.b16 %v13213_v47, %v13213_v47  ;;  %v3903_v12 = vrot.slane %v3898_v35, %v13153_v17 }
 0x110   :  { %v3875_v35 = vrot.slane %v3870_v33, %v13153_v17 }
 0x111   :  { %v3847_v19 = vrot.slane %v3842_v22, %v13153_v17  ;;  %v11608_v11 = vcombine.low %v3896_v43, %v3903_v12  ;;  %v11493_v28 = vcombine.high %v2165_v1, %v2165_v1  ;;  %v11495_v43 = vcombine.high %v13167_v9, %v13167_v9  ;;  %v3799_v9 = vld [vmem:[#allocation3 + $0x28] sm:$0x88] }
 0x112   :  { %v629_v12 = vsel %vm628_vm15, %v603_v10, %v13197_v27  ;;  %v11538_v10 = vcombine.high %v13282_v6, %v13282_v6 }
 0x113   :  { %2223 = vrot.lane.b32.xlu1 %v11494_v16, %s12467_s25  ;;  %2207 = vrot.lane.b32.xlu0 %v11486_v44, %s12467_s25  ;;  %v11492_v44 = vcombine.low %v2165_v1, %v2165_v1 }
 0x117   :  { %3960 = vrot.lane.b32.xlu1 %v11605_v24, %s12468_s26  ;;  %2209 = vrot.lane.b32.xlu0 %v11487_v37, %s12467_s25  ;;  %v13249_v24 = vcombine.low %v3796_v62, %v3796_v62  ;;  %v2788_v37 = vmul.bf16 %v2771_v39, %v12947_v61 }
 0x118   :  { %v13254_v34 = vpop.permute.xlu0 %1004 }
 0x119   :  { %v3863_v49 = vpack.i.b16 %v13249_v24, %v13249_v24 }
 0x11b   :  { %v13216_v50 = vpop.permute.xlu1 %626  ;;  %2227 = vrot.lane.b32.xlu1 %v11496_v48, %s12467_s25  ;;  %3342 = vrot.lane.b32.xlu0 %v11562_v51, %s12466_s24  ;;  %v11604_v51 = vcombine.low %v3840_v40, %v3847_v19  ;;  %v13267_v48 = vld [vmem:[#allocation3 + $0x30] ss:$0 sps:$4 sm:$0x88]   ;;  %v3868_v7 = vrot.slane %v3863_v49, %v13153_v17 }
 0x11c   :  { %v3919_v1 = vpack.i.b16 %v13267_v48, %v13267_v48 }
 0x11d   :  { %v11606_v42 = vcombine.low %v3868_v7, %v3875_v35 }
 0x11f   :  { %3964 = vrot.lane.b32.xlu1 %v11607_v8, %s12468_s26  ;;  %2215 = vrot.lane.b32.xlu0 %v11490_v15, %s12467_s25  ;;  %v13241_v16 = vpop.permute.xlu1 %1006  ;;  %v11535_v8 = vcombine.low %v2788_v37, %v2788_v37  ;;  %v11536_v15 = vcombine.high %v2788_v37, %v2788_v37  ;;  %v13314_v37 = vcombine.high %v3799_v9, %v3799_v9 }
 0x123   :  { %2830 = vrot.lane.b32.xlu1 %v11532_v41, %s12469_s27  ;;  %2219 = vrot.lane.b32.xlu0 %v11492_v44, %s12467_s25  ;;  %v2768_v41 = vsel %vm97_vm12, %v2761_v60, %v2762_v55  ;;  %v647_v44 = vsel %vm97_vm12, %v629_v12, 0  ;;  %v3924_v60 = vrot.slane %v3919_v1, %v13153_v17  ;;  %v2765_v12 = vrot.slane %v13186_v20, 4 }
 0x124   :  { %v2769_v55 = vsel %vm95_vm3, %v2768_v41, %v13137_v46  ;;  %v11531_v46 = vcombine.low %v13226_v18, %v13226_v18  ;;  %v3912_v18 = vpack.i.b16 %v13314_v37, %v13314_v37 }
 0x125   :  { %v13256_v26 = vpop.permute.xlu1 %1028  ;;  %v2787_v30 = vmul.bf16 %v2769_v55, %v12943_v29 }
 0x127   :  { %3966 = vrot.lane.b32.xlu1 %v11608_v11, %s12468_s26  ;;  %2221 = vrot.lane.b32.xlu0 %v11493_v28, %s12467_s25  ;;  %v13312_v28 = vcombine.low %v3799_v9, %v3799_v9 }
 0x129   :  { %v13269_v14 = vpop.permute.xlu1 %1619  ;;  %v13271_v3 = vpop.permute.xlu0 %1617  ;;  %v3905_v35 = vpack.i.b16 %v13312_v28, %v13312_v28 }
 0x12b   :  { %2836 = vrot.lane.b32.xlu1 %v11535_v8, %s12469_s27  ;;  %3958 = vrot.lane.b32.xlu0 %v11604_v51, %s12468_s26  ;;  %v11610_v8 = vcombine.low %v3924_v60, %v3924_v60  ;;  %v3910_v41 = vrot.slane %v3905_v35, %v13153_v17  ;;  %v2774_v60 = vsel %vm97_vm12, %v2764_v52, %v2765_v12 }
 0x12c   :  { %v2775_v2 = vsel %vm95_vm3, %v2774_v60, %v13186_v20  ;;  %v1031_v35 = vsel %vm1030_vm1, %v13254_v34, %v13241_v16 }
 0x12d   :  { %v611_v22 = vpop.permute.xlu1 %610  ;;  %v607_v13 = vpop.permute.xlu0 %606  ;;  %v1047_v34 = vsel %vm97_vm12, %v1031_v35, 0 }
 0x12e   :  { %v630_v62 = vsel %vm628_vm15, %v13197_v27, %v607_v13 }
 0x12f   :  { %2838 = vrot.lane.b32.xlu1 %v11536_v15, %s12469_s27  ;;  %2225 = vrot.lane.b32.xlu0 %v11495_v43, %s12467_s25  ;;  %v11533_v15 = vcombine.low %v2787_v30, %v2787_v30 }
 0x130   :  { %11390 = vmatprep.subr.msk.bf16.mxu0 %vm97_vm12, %v630_v62 }
 0x131   :  { %700 = vmatpush1.bf16.msra.mxu0 %v647_v44  ;;  %v613_v39 = vpop.permute.xlu1 %612  ;;  %v609_v27 = vpop.permute.xlu0 %608  ;;  %v11534_v44 = vcombine.high %v2787_v30, %v2787_v30 }
 0x132   :  { %v632_v40 = vsel %vm628_vm15, %v609_v27, %v611_v22  ;;  %v631_v19 = vsel %vm628_vm15, %v607_v13, %v609_v27  ;;  %v633_v51 = vsel %vm628_vm15, %v611_v22, %v613_v39 }
 0x133   :  { %2842 = vrot.lane.b32.xlu1 %v11538_v10, %s12469_s27  ;;  %3962 = vrot.lane.b32.xlu0 %v11606_v42, %s12468_s26  ;;  %v653_v11 = vsel %vm97_vm12, %v631_v19, 0  ;;  %v659_v7 = vsel %vm97_vm12, %v633_v51, 0  ;;  %v3917_v42 = vrot.slane %v3912_v18, %v13153_v17  ;;  %v16346_v51 = vmov 0.0  }
 0x134   :  { %11391 = vmatmul.mubr.msk.bf16.vlgmr.msra.gmra.mxu0 %vm641_vm0, %v13302_v45  ;;  %11392 = vmatprep.subr.msk.bf16.mxu1 %vm97_vm12, %v632_v40 }
 0x135   :  { %741 = vmatpush1.bf16.msra.mxu1 %v653_v11  ;;  %v617_v49 = vpop.permute.xlu1 %616  ;;  %v615_v33 = vpop.permute.xlu0 %614  ;;  %799 = vmatprep.mubr.bf16.mxu0 %v16348_v0  ;;  %v11609_v40 = vcombine.low %v3910_v41, %v3917_v42 }
 0x136   :  { %v634_v57 = vsel %vm628_vm15, %v613_v39, %v615_v33  ;;  %v635_v1 = vsel %vm628_vm15, %v615_v33, %v617_v49  ;;  %v4427_v33 = vshrl.u32 %v13213_v47, 16 }
 0x137   :  { %2828 = vrot.lane.b32.xlu0 %v11531_v46, %s12469_s27  ;;  %11394 = vmatprep.subr.msk.bf16.mxu0 %vm97_vm12, %v634_v57  ;;  %v665_v62 = vsel %vm97_vm12, %v635_v1, 0  ;;  %v11537_v57 = vcombine.low %v13282_v6, %v13282_v6 }
 0x138   :  { %11393 = vmatmul.mubr.msk.bf16.vlgmr.msra.gmra.mxu1 %vm641_vm0, %v13302_v45  ;;  %782 = vmatpush1.bf16.msra.mxu0 %v659_v7  ;;  %v2790_v7 = vmul.bf16 %v2775_v2, %v12982_v58  ;;  %v4428_v6 = vpack.i.b16 %v4427_v33, %v4427_v33 }
 0x139   :  { %v623_v22 = vpop.permute.xlu1 %622  ;;  %v619_v13 = vpop.permute.xlu0 %618  ;;  %840 = vmatprep.mubr.bf16.mxu1 %v16348_v0  ;;  %3970 = vrot.lane.b32.xlu1 %v11610_v8, %s12468_s26  ;;  %v683_v8 = vsel %vm97_vm12, %v13216_v50, 0 }
 0x13a   :  { %v636_v43 = vsel %vm628_vm15, %v617_v49, %v619_v13  ;;  %v4420_v49 = vshrl.u32 %v13211_v21, 16  ;;  %v11539_v1 = vcombine.low %v2790_v7, %v2790_v7  ;;  %v4433_v41 = vrot.slane %v4428_v6, %v13153_v17 }
 0x13b   :  { %2832 = vrot.lane.b32.xlu0 %v11533_v15, %s12469_s27  ;;  %11396 = vmatprep.subr.msk.bf16.mxu1 %vm97_vm12, %v636_v43  ;;  %v11540_v42 = vcombine.high %v2790_v7, %v2790_v7  ;;  %v1083_v6 = vsel %vm97_vm12, %v13256_v26, 0 }
 0x13c   :  { %11395 = vmatmul.mubr.msk.bf16.vlgmr.msra.gmra.mxu0 %vm641_vm0, %v13302_v45  ;;  %823 = vmatpush1.bf16.msra.mxu1 %v665_v62 }
 0x13d   :  { %v1013_v9 = vpop.permute.xlu1 %1012  ;;  %v621_v10 = vpop.permute.xlu0 %620  ;;  %881 = vmatprep.mubr.bf16.mxu0 %v16348_v0 }
 0x13e   :  { %v637_v39 = vsel %vm628_vm15, %v619_v13, %v621_v10  ;;  %v638_v27 = vsel %vm628_vm15, %v621_v10, %v623_v22 }
 0x13f   :  { %2834 = vrot.lane.b32.xlu0 %v11534_v44, %s12469_s27  ;;  %11398 = vmatprep.subr.msk.bf16.mxu0 %vm97_vm12, %v638_v27  ;;  %v671_v55 = vsel %vm97_vm12, %v637_v39, 0  ;;  %v13406_v27 = vld [vmem:[%s16332_s2] sm:$0xf] }
 0x140   :  { %11397 = vmatmul.mubr.msk.bf16.vlgmr.msra.gmra.mxu1 %vm641_vm0, %v13302_v45  ;;  %864 = vmatpush1.bf16.msra.mxu0 %v671_v55 }
 0x141   :  { %v1015_v19 = vpop.permute.xlu1 %1014  ;;  %v625_v11 = vpop.permute.xlu0 %624  ;;  %12153 = vmatprep.subr.bf16.mxu0 %v16346_v51  ;;  %922 = vmatprep.mubr.bf16.mxu1 %v16348_v0 }
 0x142   :  { %v639_v52 = vsel %vm628_vm15, %v623_v22, %v625_v11  ;;  %v640_v46 = vsel %vm628_vm15, %v625_v11, %v13216_v50  ;;  %v4421_v50 = vpack.i.b16 %v4420_v49, %v4420_v49  ;;  %v1035_v44 = vsel %vm1030_vm1, %v1013_v9, %v1015_v19 }
 0x143   :  { %3968 = vrot.lane.b32.xlu0 %v11609_v40, %s12468_s26  ;;  %11400 = vmatprep.subr.msk.bf16.mxu1 %vm97_vm12, %v640_v46  ;;  %v677_v30 = vsel %vm97_vm12, %v639_v52, 0 }
 0x144   :  { %11399 = vmatmul.mubr.msk.bf16.vlgmr.msra.gmra.mxu0 %vm641_vm0, %v13302_v45  ;;  %905 = vmatpush1.bf16.msra.mxu1 %v677_v30  ;;  %v4426_v62 = vrot.slane %v4421_v50, %v13153_v17 }
 0x145   :  { %12154 = vmatpush3.bf16.msra.mxu0 %v683_v8  ;;  %v1019_v21 = vpop.permute.xlu1 %1018  ;;  %v1009_v18 = vpop.permute.xlu0 %1008  ;;  %12155 = vmatprep.mubr.msk.bf16.mxu0 %vm12471_vm2, %v16346_v51 }
 0x146   :  { %v1032_v47 = vsel %vm1030_vm1, %v13241_v16, %v1009_v18 }
 0x147   :  { %2840 = vrot.lane.b32.xlu0 %v11537_v57, %s12469_s27  ;;  %11416 = vmatprep.subr.msk.bf16.mxu1 %vm97_vm12, %v1032_v47 }
 0x148   :  { %11401 = vmatmul.mubr.msk.bf16.vlgmr.msra.gmra.mxu1 %vm641_vm0, %v13302_v45 }
 0x149   :  { %1100 = vmatpush1.bf16.msra.mxu1 %v1047_v34  ;;  %v1025_v15 = vpop.permute.xlu1 %1024  ;;  %v1011_v22 = vpop.permute.xlu0 %1010  ;;  %1117 = vmatprep.mubr.bf16.mxu1 %v16348_v0  ;;  %v4448_v34 = vshrl.u32 %v13249_v24, 16  ;;  %v4441_v24 = vshrl.u32 %v13141_v53, 16 }
 0x14a   :  { %v1033_v13 = vsel %vm1030_vm1, %v1009_v18, %v1011_v22  ;;  %v1034_v16 = vsel %vm1030_vm1, %v1011_v22, %v1013_v9  ;;  %v1059_v9 = vsel %vm97_vm12, %v1035_v44, 0 }
 0x14b   :  { %2844 = vrot.lane.b32.xlu0 %v11539_v1, %s12469_s27  ;;  %11418 = vmatprep.subr.msk.bf16.mxu0 %vm97_vm12, %v1034_v16  ;;  %v1053_v43 = vsel %vm97_vm12, %v1033_v13, 0  ;;  %v1644_v1 = vsel %vm1643_vm5, %v13271_v3, %v13269_v14  ;;  %v4455_v13 = vshrl.u32 %v13251_v63, 16  ;;  %v4449_v3 = vpack.i.b16 %v4448_v34, %v4448_v34  ;;  %v13522_v34 = vld [vmem:[#allocation2 + $0x30] sm:$0xf] }
 0x14c   :  { %12156 = vmatmul.mubr.msk.bf16.vlgmr.msra.gmra.mxu0 %vm641_vm0, %v13302_v45  ;;  %v11638_v45 = vcombine.low %v4426_v62, %v4433_v41  ;;  %v4442_v53 = vpack.i.b16 %v4441_v24, %v4441_v24 }
 0x14d   :  { %1141 = vmatpush1.bf16.msra.mxu0 %v1053_v43  ;;  %v13401_v10 = vpop.permute.xlu1 %1625  ;;  %v1017_v39 = vpop.permute.xlu0 %1016  ;;  %1158 = vmatprep.mubr.bf16.mxu0 %v16348_v0  ;;  %v4456_v41 = vpack.i.b16 %v4455_v13, %v4455_v13 }
 0x14e   :  { %v1036_v60 = vsel %vm1030_vm1, %v1015_v19, %v1017_v39  ;;  %v1037_v55 = vsel %vm1030_vm1, %v1017_v39, %v1019_v21 }
 0x14f   :  { %2846 = vrot.lane.b32.xlu0 %v11540_v42, %s12469_s27  ;;  %11420 = vmatprep.subr.msk.bf16.mxu1 %vm97_vm12, %v1036_v60  ;;  %v1065_v2 = vsel %vm97_vm12, %v1037_v55, 0  ;;  %v4454_v60 = vrot.slane %v4449_v3, %v13153_v17  ;;  %v4483_v3 = vshrl.u32 %v13203_v56, 16 }
 0x150   :  { %11417 = vmatmul.mubr.msk.bf16.vlgmr.msra.gmra.mxu1 %vm641_vm0, %v13406_v27 }
 0x151   :  { %1182 = vmatpush1.bf16.msra.mxu1 %v1059_v9  ;;  %v13416_v40 = vpop.permute.xlu1 %1627  ;;  %v1021_v11 = vpop.permute.xlu0 %1020  ;;  %1199 = vmatprep.mubr.bf16.mxu1 %v16348_v0 }
 0x152   :  { %v1038_v19 = vsel %vm1030_vm1, %v1019_v21, %v1021_v11  ;;  %v1648_v9 = vsel %vm1643_vm5, %v13401_v10, %v13416_v40 }
 0x153   :  { %4544 = vrot.lane.b32.xlu0 %v11638_v45, %s12472_s11  ;;  %11422 = vmatprep.subr.msk.bf16.mxu0 %vm97_vm12, %v1038_v19  ;;  %v4462_v45 = vshrl.u32 %v13159_v54, 16  ;;  %v4469_v54 = vshrl.u32 %v13169_v38, 16 }
 0x154   :  { %11419 = vmatmul.mubr.msk.bf16.vlgmr.msra.gmra.mxu0 %vm641_vm0, %v13406_v27 }
 0x155   :  { %1223 = vmatpush1.bf16.msra.mxu0 %v1065_v2  ;;  %v13425_v52 = vpop.permute.xlu1 %1631  ;;  %v1023_v46 = vpop.permute.xlu0 %1022  ;;  %1240 = vmatprep.mubr.bf16.mxu0 %v16348_v0 }
 0x156   :  { %v1039_v30 = vsel %vm1030_vm1, %v1021_v11, %v1023_v46  ;;  %v1040_v49 = vsel %vm1030_vm1, %v1023_v46, %v1025_v15  ;;  %v4447_v46 = vrot.slane %v4442_v53, %v13153_v17 }
 0x157   :  { %11424 = vmatprep.subr.msk.bf16.mxu1 %vm97_vm12, %v1040_v49  ;;  %v1071_v33 = vsel %vm97_vm12, %v1039_v30, 0 }
 0x158   :  { %11421 = vmatmul.mubr.msk.bf16.vlgmr.msra.gmra.mxu1 %vm641_vm0, %v13406_v27 }
 0x159   :  { %1264 = vmatpush1.bf16.msra.mxu1 %v1071_v33  ;;  %v13434_v8 = vpop.permute.xlu1 %2759  ;;  %v1027_v57 = vpop.permute.xlu0 %1026  ;;  %1281 = vmatprep.mubr.bf16.mxu1 %v16348_v0  ;;  %v1672_v33 = vsel %vm97_vm12, %v1648_v9, 0  ;;  %v4497_v9 = vshrl.u32 %v13314_v37, 16 }
 0x15a   :  { %v1041_v7 = vsel %vm1030_vm1, %v1025_v15, %v1027_v57  ;;  %v1042_v35 = vsel %vm1030_vm1, %v1027_v57, %v13256_v26  ;;  %12159 = vmatprep.subr.bf16.mxu1 %v16346_v51  ;;  %v4434_v26 = vshrl.u32 %v13133_v32, 16  ;;  %v4463_v57 = vpack.i.b16 %v4462_v45, %v4462_v45 }
 0x15b   :  { %11426 = vmatprep.subr.msk.bf16.mxu0 %vm97_vm12, %v1042_v35  ;;  %v1077_v21 = vsel %vm97_vm12, %v1041_v7, 0  ;;  %v4490_v45 = vshrl.u32 %v13312_v28, 16 }
 0x15c   :  { %11423 = vmatmul.mubr.msk.bf16.vlgmr.msra.gmra.mxu0 %vm641_vm0, %v13406_v27  ;;  %v4435_v42 = vpack.i.b16 %v4434_v26, %v4434_v26 }
 0x15d   :  { %1305 = vmatpush1.bf16.msra.mxu0 %v1077_v21  ;;  %v13445_v18 = vpop.permute.xlu1 %1637  ;;  %v1622_v47 = vpop.permute.xlu0 %1621  ;;  %1322 = vmatprep.mubr.bf16.mxu0 %v16348_v0  ;;  %v4470_v21 = vpack.i.b16 %v4469_v54, %v4469_v54 }
 0x15e   :  { %v1645_v50 = vsel %vm1643_vm5, %v13269_v14, %v1622_v47  ;;  %v1660_v14 = vsel %vm97_vm12, %v1644_v1, 0  ;;  %v4440_v2 = vrot.slane %v4435_v42, %v13153_v17 }
 0x15f   :  { %11463 = vmatprep.subr.msk.bf16.mxu0 %vm97_vm12, %v1645_v50 }
 0x160   :  { %11425 = vmatmul.mubr.msk.bf16.vlgmr.msra.gmra.mxu1 %vm641_vm0, %v13406_v27 }
 0x161   :  { %12160 = vmatpush3.bf16.msra.mxu1 %v1083_v6  ;;  %v13459_v15 = vpop.permute.xlu1 %3334  ;;  %v1624_v22 = vpop.permute.xlu0 %1623  ;;  %12161 = vmatprep.mubr.msk.bf16.mxu1 %vm12471_vm2, %v16346_v51  ;;  %v11639_v6 = vcombine.low %v4440_v2, %v4447_v46 }
 0x162   :  { %v1647_v16 = vsel %vm1643_vm5, %v1624_v22, %v13401_v10  ;;  %v1646_v43 = vsel %vm1643_vm5, %v1622_v47, %v1624_v22 }
 0x163   :  { %11465 = vmatprep.subr.msk.bf16.mxu1 %vm97_vm12, %v1647_v16  ;;  %v1666_v39 = vsel %vm97_vm12, %v1646_v43, 0  ;;  %v4468_v16 = vrot.slane %v4463_v57, %v13153_v17  ;;  %v4498_v57 = vpack.i.b16 %v4497_v9, %v4497_v9  ;;  %v5007_v9 = vld [vmem:[#allocation3 + $0x3c] sm:$0x11] }
 0x164   :  { %11427 = vmatmul.mubr.msk.bf16.vlgmr.msra.gmra.mxu0 %vm641_vm0, %v13406_v27 }
 0x165   :  { %1713 = vmatpush1.bf16.msra.mxu0 %v1660_v14  ;;  %v13473_v62 = vpop.permute.xlu1 %1641  ;;  %v2758_v63 = vpop.permute.xlu0 %2757  ;;  %1730 = vmatprep.mubr.bf16.mxu0 %v16348_v0  ;;  %v4476_v14 = vshrl.u32 %v13201_v31, 16 }
 0x166   :  { %v2766_v32 = vrot.slane %v2758_v63, 4 }
 0x167   :  { %v4477_v56 = vpack.i.b16 %v4476_v14, %v4476_v14 }
 0x168   :  { %v2776_v44 = vsel %vm97_vm12, %v2765_v12, %v2766_v32  ;;  %12162 = vmatmul.mubr.msk.bf16.vlgmr.msra.gmra.mxu1 %vm641_vm0, %v13406_v27  ;;  %v13493_v12 = vld [vmem:[%s16332_s2 + $0x8] sm:$0xf]  ;;  %v4461_v27 = vrot.slane %v4456_v41, %v13153_v17  ;;  %v2778_v38 = vsel %vm95_vm3, %v2766_v32, %v13434_v8 }
 0x169   :  { %v2777_v55 = vsel %vm95_vm3, %v2776_v44, %v2758_v63  ;;  %1754 = vmatpush1.bf16.msra.mxu1 %v1666_v39  ;;  %v13488_v11 = vpop.permute.xlu1 %3338  ;;  %v1630_v20 = vpop.permute.xlu0 %1629  ;;  %1771 = vmatprep.mubr.bf16.mxu1 %v16348_v0  ;;  %v2792_v1 = vmul.bf16 %v13522_v34, %v2778_v38  ;;  %v3347_v63 = vrot.slane %v13459_v15, 4  ;;  %v4484_v44 = vpack.i.b16 %v4483_v3, %v4483_v3 }
 0x16a   :  { %v2791_v19 = vmul.bf16 %v2777_v55, %v12986_v59  ;;  %v1649_v10 = vsel %vm1643_vm5, %v13416_v40, %v1630_v20  ;;  %v1650_v40 = vsel %vm1643_vm5, %v1630_v20, %v13425_v52  ;;  %v11640_v50 = vcombine.low %v4454_v60, %v4461_v27  ;;  %v13555_v20 = vld [vmem:[#allocation2] sm:$0xff] }
 0x16b   :  { %11467 = vmatprep.subr.msk.bf16.mxu0 %vm97_vm12, %v1649_v10  ;;  %v1678_v8 = vsel %vm97_vm12, %v1650_v40, 0  ;;  %v11543_v41 = vcombine.low %v2792_v1, %v2792_v1  ;;  %v4482_v37 = vrot.slane %v4477_v56, %v13153_v17 }
 0x16c   :  { %v11541_v30 = vcombine.low %v2791_v19, %v2791_v19  ;;  %v11542_v49 = vcombine.high %v2791_v19, %v2791_v19  ;;  %11464 = vmatmul.mubr.msk.bf16.vlgmr.msra.gmra.mxu0 %vm641_vm0, %v13493_v12 }
 0x16d   :  { %1795 = vmatpush1.bf16.msra.mxu0 %v1672_v33  ;;  %v13511_v7 = vpop.permute.xlu1 %2205  ;;  %v1634_v35 = vpop.permute.xlu0 %1633  ;;  %1812 = vmatprep.mubr.bf16.mxu0 %v16348_v0  ;;  %v4491_v33 = vpack.i.b16 %v4490_v45, %v4490_v45 }
 0x16e   :  { %2850 = vrot.lane.b32.xlu0 %v11542_v49, %s12469_s27  ;;  %2848 = vrot.lane.b32.xlu1 %v11541_v30, %s12469_s27  ;;  %v1651_v47 = vsel %vm1643_vm5, %v13425_v52, %v1634_v35  ;;  %v4475_v52 = vrot.slane %v4470_v21, %v13153_v17 }
 0x16f   :  { %11469 = vmatprep.subr.msk.bf16.mxu1 %vm97_vm12, %v1651_v47  ;;  %v3349_v47 = vrot.slane %v13488_v11, 4 }
 0x170   :  { %11466 = vmatmul.mubr.msk.bf16.vlgmr.msra.gmra.mxu1 %vm641_vm0, %v13493_v12  ;;  %v11641_v31 = vcombine.low %v4468_v16, %v4475_v52 }
 0x171   :  { %1836 = vmatpush1.bf16.msra.mxu1 %v1678_v8  ;;  %v13525_v22 = vpop.permute.xlu1 %3340  ;;  %v1636_v13 = vpop.permute.xlu0 %1635  ;;  %1853 = vmatprep.mubr.bf16.mxu1 %v16348_v0  ;;  %v4503_v8 = vrot.slane %v4498_v57, %v13153_v17 }
 0x172   :  { %v1652_v26 = vsel %vm1643_vm5, %v1634_v35, %v1636_v13  ;;  %4548 = vrot.lane.b32.xlu0 %v11640_v50, %s12472_s11  ;;  %4546 = vrot.lane.b32.xlu1 %v11639_v6, %s12472_s11  ;;  %v1653_v24 = vsel %vm1643_vm5, %v1636_v13, %v13445_v18  ;;  %v4496_v6 = vrot.slane %v4491_v33, %v13153_v17  ;;  %v3350_v1 = vrot.slane %v13525_v22, 4 }
 0x173   :  { %11471 = vmatprep.subr.msk.bf16.mxu0 %vm97_vm12, %v1653_v24  ;;  %v1684_v43 = vsel %vm97_vm12, %v1652_v26, 0  ;;  %v4504_v24 = vshrl.u32 %v13267_v48, 16 }
 0x174   :  { %11468 = vmatmul.mubr.msk.bf16.vlgmr.msra.gmra.mxu0 %vm641_vm0, %v13493_v12  ;;  %v3360_v48 = vsel %vm97_vm12, %v3349_v47, %v3350_v1  ;;  %v11643_v56 = vcombine.low %v4496_v6, %v4503_v8 }
 0x175   :  { %1877 = vmatpush1.bf16.msra.mxu0 %v1684_v43  ;;  %v13542_v32 = vpop.permute.xlu1 %2211  ;;  %v3333_v42 = vpop.permute.xlu0 %3332  ;;  %1894 = vmatprep.mubr.bf16.mxu0 %v16348_v0 }
 0x176   :  { %v3346_v53 = vrot.slane %v3333_v42, 4  ;;  %2852 = vrot.lane.b32.xlu1 %v11543_v41, %s12469_s27  ;;  %12165 = vmatprep.subr.bf16.mxu0 %v16346_v51 }
 0x178   :  { %v3353_v39 = vsel %vm3352_vm6, %v3346_v53, %v3333_v42  ;;  %v3354_v60 = vsel %vm97_vm12, %v3346_v53, %v3347_v63  ;;  %11470 = vmatmul.mubr.msk.bf16.vlgmr.msra.gmra.mxu1 %vm641_vm0, %v13493_v12  ;;  %v5006_v42 = vld [vmem:[#allocation3 + $0x34] sm:$0x11] }
 0x179   :  { %v3355_v55 = vsel %vm3352_vm6, %v3354_v60, %v13459_v15  ;;  %v3372_v27 = vmul.bf16 %v13555_v20, %v3353_v39  ;;  %v13558_v54 = vpop.permute.xlu1 %2213  ;;  %v1640_v19 = vpop.permute.xlu0 %1639  ;;  %1935 = vmatprep.mubr.bf16.mxu1 %v16348_v0  ;;  %v4489_v15 = vrot.slane %v4484_v44, %v13153_v17  ;;  %v4505_v44 = vpack.i.b16 %v4504_v24, %v4504_v24  ;;  %v13615_v39 = vld [vmem:[#allocation2 + $0x18] sm:$0xff] }
 0x17a   :  { %v1654_v10 = vsel %vm1643_vm5, %v13445_v18, %v1640_v19  ;;  %4550 = vrot.lane.b32.xlu1 %v11641_v31, %s12472_s11  ;;  %v1655_v28 = vsel %vm1643_vm5, %v1640_v19, %v13473_v62  ;;  %v3373_v49 = vmul.bf16 %v3355_v55, %v12943_v29  ;;  %v1696_v18 = vsel %vm97_vm12, %v13473_v62, 0  ;;  %v13623_v19 = vld [vmem:[%s16332_s2 + $0xc] sm:$0xf] }
 0x17b   :  { %v11565_v2 = vcombine.low %v3372_v27, %v3372_v27  ;;  %v11566_v46 = vcombine.high %v3372_v27, %v3372_v27  ;;  %11473 = vmatprep.subr.msk.bf16.mxu1 %vm97_vm12, %v1655_v28  ;;  %v1690_v30 = vsel %vm97_vm12, %v1654_v10, 0  ;;  %v11642_v21 = vcombine.low %v4482_v37, %v4489_v15 }
 0x17c   :  { %11472 = vmatmul.mubr.msk.bf16.vlgmr.msra.gmra.mxu0 %vm641_vm0, %v13493_v12  ;;  %1918 = vmatpush1.bf16.msra.mxu1 %v1690_v30  ;;  %v11567_v62 = vcombine.low %v3373_v49, %v3373_v49  ;;  %v11568_v3 = vcombine.high %v3373_v49, %v3373_v49  ;;  %v11672_v45 = vcombine.low %v5006_v42, %v5006_v42 }
 0x17d   :  { %12166 = vmatpush3.bf16.msra.mxu0 %v1696_v18  ;;  %v13575_v38 = vpop.permute.xlu1 %2217  ;;  %3414 = vrot.lane.b32.xlu0 %v11565_v2, %s12473_s1  ;;  %v3337_v40 = vpop.permute.xlu0 %3336  ;;  %v3361_v55 = vsel %vm3352_vm6, %v3360_v48, %v13525_v22  ;;  %v4510_v37 = vrot.slane %v4505_v44, %v13153_v17  ;;  %v11675_v30 = vcombine.high %v5007_v9, %v5007_v9 }
 0x17e   :  { %v3348_v35 = vrot.slane %v3337_v40, 4  ;;  %3416 = vrot.lane.b32.xlu1 %v11566_v46, %s12473_s1  ;;  %12167 = vmatprep.mubr.msk.bf16.mxu0 %vm12471_vm2, %v16346_v51  ;;  %v11674_v46 = vcombine.low %v5007_v9, %v5007_v9  ;;  %v3376_v49 = vmul.bf16 %v3361_v55, %v12982_v58  ;;  %v5047_v57 = vpack.i.b16 %v11672_v45, %v11672_v45 }
 0x17f   :  { %v11644_v6 = vcombine.low %v4510_v37, %v4510_v37 }
 0x180   :  { %v3356_v50 = vsel %vm97_vm12, %v3347_v63, %v3348_v35  ;;  %11474 = vmatmul.mubr.msk.bf16.vlgmr.msra.gmra.mxu1 %vm641_vm0, %v13493_v12  ;;  %v3358_v16 = vsel %vm97_vm12, %v3348_v35, %v3349_v47  ;;  %v5008_v47 = vld [vmem:[#allocation3 + $0x44] sm:$0x11]  ;;  %v5061_v8 = vpack.i.b16 %v11674_v46, %v11674_v46  ;;  %v5052_v24 = vrot.slane %v5047_v57, %v12577_v23 }
 0x181   :  { %v3357_v13 = vsel %vm3352_vm6, %v3356_v50, %v3337_v40  ;;  %v13590_v52 = vpop.permute.xlu1 %3344  ;;  %3418 = vrot.lane.b32.xlu0 %v11567_v62, %s12473_s1  ;;  %v2204_v26 = vpop.permute.xlu0 %2203  ;;  %2316 = vmatprep.mubr.bf16.mxu1 %v16348_v0  ;;  %v3359_v43 = vsel %vm3352_vm6, %v3358_v16, %v13488_v11  ;;  %v5009_v16 = vld [vmem:[#allocation3 + $0x4c] sm:$0x11]  ;;  %v11677_v48 = vcombine.high %v5008_v47, %v5008_v47 }
 0x182   :  { %v3374_v14 = vmul.bf16 %v3357_v13, %v12947_v61  ;;  %4552 = vrot.lane.b32.xlu1 %v11642_v21, %s12472_s11  ;;  %v2230_v41 = vsel %vm16339_vm7, %v2204_v26, %v13511_v7  ;;  %v3375_v60 = vmul.bf16 %v13615_v39, %v3359_v43  ;;  %v5068_v13 = vpack.i.b16 %v11675_v30, %v11675_v30 }
 0x183   :  { %v11573_v26 = vcombine.low %v3376_v49, %v3376_v49 }
 0x184   :  { %v11569_v63 = vcombine.low %v3374_v14, %v3374_v14  ;;  %12168 = vmatmul.mubr.msk.bf16.vlgmr.msra.gmra.mxu0 %vm641_vm0, %v13493_v12  ;;  %v2246_v12 = vsel %vm97_vm12, %v2230_v41, 0  ;;  %v11570_v27 = vcombine.high %v3374_v14, %v3374_v14  ;;  %v11571_v33 = vcombine.low %v3375_v60, %v3375_v60 }
 0x185   :  { %v13606_v53 = vpop.permute.xlu1 %2223  ;;  %3420 = vrot.lane.b32.xlu0 %v11568_v3, %s12473_s1  ;;  %v2208_v31 = vpop.permute.xlu0 %2207  ;;  %2357 = vmatprep.mubr.bf16.mxu0 %v16348_v0  ;;  %v11572_v40 = vcombine.high %v3375_v60, %v3375_v60  ;;  %v2234_v14 = vsel %vm16339_vm7, %v13542_v32, %v13558_v54 }
 0x186   :  { %3422 = vrot.lane.b32.xlu1 %v11569_v63, %s12473_s1  ;;  %v2231_v11 = vsel %vm16339_vm7, %v13511_v7, %v2208_v31  ;;  %v11673_v7 = vcombine.high %v5006_v42, %v5006_v42  ;;  %v11676_v63 = vcombine.low %v5008_v47, %v5008_v47 }
 0x187   :  { %11497 = vmatprep.subr.msk.bf16.mxu1 %vm97_vm12, %v2231_v11  ;;  %v11574_v11 = vcombine.high %v3376_v49, %v3376_v49 }
 0x188   :  { %2299 = vmatpush1.bf16.msra.mxu1 %v2246_v12  ;;  %v5054_v35 = vpack.i.b16 %v11673_v7, %v11673_v7  ;;  %v2258_v12 = vsel %vm97_vm12, %v2234_v14, 0 }
 0x189   :  { %v13625_v10 = vpop.permute.xlu1 %3960  ;;  %4554 = vrot.lane.b32.xlu0 %v11643_v56, %s12472_s11  ;;  %v2210_v28 = vpop.permute.xlu0 %2209  ;;  %v11679_v56 = vcombine.high %v5009_v16, %v5009_v16 }
 0x18a   :  { %v2232_v15 = vsel %vm16339_vm7, %v2208_v31, %v2210_v28  ;;  %3424 = vrot.lane.b32.xlu1 %v11570_v27, %s12473_s1  ;;  %v2233_v2 = vsel %vm16339_vm7, %v2210_v28, %v13542_v32  ;;  %v5059_v43 = vrot.slane %v5054_v35, %v12577_v23  ;;  %v11678_v31 = vcombine.low %v5009_v16, %v5009_v16 }
 0x18b   :  { %11499 = vmatprep.subr.msk.bf16.mxu0 %vm97_vm12, %v2233_v2  ;;  %v2252_v18 = vsel %vm97_vm12, %v2232_v15, 0  ;;  %11498 = vmatmul.mubr.msk.bf16.vlgmr.msra.gmra.mxu1 %vm641_vm0, %v13623_v19  ;;  %v5066_v32 = vrot.slane %v5061_v8, %v12577_v23  ;;  %v5075_v27 = vpack.i.b16 %v11676_v63, %v11676_v63  ;;  %v5082_v28 = vpack.i.b16 %v11677_v48, %v11677_v48 }
 0x18c   :  { %2340 = vmatpush1.bf16.msra.mxu0 %v2252_v18  ;;  %2398 = vmatprep.mubr.bf16.mxu1 %v16348_v0  ;;  %v11685_v55 = vcombine.low %v5052_v24, %v5059_v43  ;;  %v5089_v37 = vpack.i.b16 %v11678_v31, %v11678_v31  ;;  %v5096_v15 = vpack.i.b16 %v11679_v56, %v11679_v56  ;;  %v3973_v16 = vrot.slane %v13625_v10, 4 }
 0x18d   :  { %3426 = vrot.lane.b32.xlu0 %v11571_v33, %s12473_s1  ;;  %v3343_v21 = vpop.permute.xlu0 %3342  ;;  %v13640_v62 = vpop.permute.xlu1 %2227  ;;  %v5087_v33 = vrot.slane %v5082_v28, %v12577_v23 }
 0x18e   :  { %v3351_v50 = vrot.slane %v3343_v21, 4  ;;  %3428 = vrot.lane.b32.xlu1 %v11572_v40, %s12473_s1  ;;  %v5094_v57 = vrot.slane %v5089_v37, %v12577_v23  ;;  %v5101_v40 = vrot.slane %v5096_v15, %v12577_v23  ;;  %v2282_v48 = vsel %vm97_vm12, %v13640_v62, 0 }
 0x18f   :  { %11500 = vmatmul.mubr.msk.bf16.vlgmr.msra.gmra.mxu0 %vm641_vm0, %v13623_v19 }
 0x190   :  { %v3362_v3 = vsel %vm97_vm12, %v3350_v1, %v3351_v50  ;;  %2439 = vmatprep.mubr.bf16.mxu0 %v16348_v0  ;;  %v5073_v1 = vrot.slane %v5068_v13, %v12577_v23  ;;  %v11688_v63 = vcombine.low %v5094_v57, %v5101_v40 }
 0x191   :  { %v3363_v41 = vsel %vm3352_vm6, %v3362_v3, %v3343_v21  ;;  %3430 = vrot.lane.b32.xlu0 %v11573_v26, %s12473_s1  ;;  %v2216_v42 = vpop.permute.xlu0 %2215  ;;  %v13664_v45 = vpop.permute.xlu1 %3964  ;;  %v5011_v3 = vld [vmem:[#allocation3 + $0x5c] sm:$0x11] }
 0x192   :  { %v3377_v44 = vmul.bf16 %v3363_v41, %v12986_v59  ;;  %4556 = vrot.lane.b32.xlu1 %v11644_v6, %s12472_s11  ;;  %v2235_v22 = vsel %vm16339_vm7, %v13558_v54, %v2216_v42  ;;  %v2236_v9 = vsel %vm16339_vm7, %v2216_v42, %v13575_v38  ;;  %v3364_v54 = vsel %vm3352_vm6, %v3351_v50, %v13590_v52  ;;  %v5010_v52 = vld [vmem:[#allocation3 + $0x54] sm:$0x11] }
 0x193   :  { %11501 = vmatprep.subr.msk.bf16.mxu1 %vm97_vm12, %v2235_v22  ;;  %v11686_v46 = vcombine.low %v5066_v32, %v5073_v1  ;;  %v2264_v30 = vsel %vm97_vm12, %v2236_v9, 0  ;;  %v3378_v49 = vmul.bf16 %v13522_v34, %v3364_v54  ;;  %v11680_v50 = vcombine.low %v5010_v52, %v5010_v52 }
 0x194   :  { %v11575_v60 = vcombine.low %v3377_v44, %v3377_v44  ;;  %2381 = vmatpush1.bf16.msra.mxu1 %v2258_v12  ;;  %v11681_v6 = vcombine.high %v5010_v52, %v5010_v52  ;;  %v11576_v8 = vcombine.high %v3377_v44, %v3377_v44  ;;  %v11682_v22 = vcombine.low %v5011_v3, %v5011_v3 }
 0x195   :  { %3432 = vrot.lane.b32.xlu0 %v11574_v11, %s12473_s1  ;;  %v2220_v7 = vpop.permute.xlu0 %2219  ;;  %v13685_v35 = vpop.permute.xlu1 %2830  ;;  %v11577_v26 = vcombine.low %v3378_v49, %v3378_v49  ;;  %v5103_v41 = vpack.i.b16 %v11680_v50, %v11680_v50  ;;  %v11683_v12 = vcombine.high %v5011_v3, %v5011_v3 }
 0x196   :  { %3434 = vrot.lane.b32.xlu1 %v11575_v60, %s12473_s1  ;;  %v2237_v2 = vsel %vm16339_vm7, %v13575_v38, %v2220_v7  ;;  %v5080_v38 = vrot.slane %v5075_v27, %v12577_v23  ;;  %v5110_v42 = vpack.i.b16 %v11681_v6, %v11681_v6  ;;  %v5117_v37 = vpack.i.b16 %v11682_v22, %v11682_v22 }
 0x197   :  { %11503 = vmatprep.subr.msk.bf16.mxu0 %vm97_vm12, %v2237_v2  ;;  %11502 = vmatmul.mubr.msk.bf16.vlgmr.msra.gmra.mxu1 %vm641_vm0, %v13623_v19  ;;  %v5124_v15 = vpack.i.b16 %v11683_v12, %v11683_v12 }
 0x198   :  { %2422 = vmatpush1.bf16.msra.mxu0 %v2264_v30  ;;  %2480 = vmatprep.mubr.bf16.mxu1 %v16348_v0  ;;  %v11687_v14 = vcombine.low %v5080_v38, %v5087_v33  ;;  %v3975_v30 = vrot.slane %v13664_v45, 4 }
 0x199   :  { %5170 = vrot.lane.b32.xlu0 %v11685_v55, %s12474_s17  ;;  %v2222_v18 = vpop.permute.xlu0 %2221  ;;  %v13704_v31 = vpop.permute.xlu1 %3966  ;;  %v5108_v55 = vrot.slane %v5103_v41, %v12577_v23 }
 0x19a   :  { %v2238_v21 = vsel %vm16339_vm7, %v2220_v7, %v2222_v18  ;;  %5172 = vrot.lane.b32.xlu1 %v11686_v46, %s12474_s17  ;;  %v2239_v47 = vsel %vm16339_vm7, %v2222_v18, %v13606_v53  ;;  %v5122_v18 = vrot.slane %v5117_v37, %v12577_v23  ;;  %v3976_v38 = vrot.slane %v13704_v31, 4 }
 0x19b   :  { %11505 = vmatprep.subr.msk.bf16.mxu1 %vm97_vm12, %v2239_v47  ;;  %v2270_v13 = vsel %vm97_vm12, %v2238_v21, 0  ;;  %11504 = vmatmul.mubr.msk.bf16.vlgmr.msra.gmra.mxu0 %vm641_vm0, %v13623_v19  ;;  %v5129_v21 = vrot.slane %v5124_v15, %v12577_v23  ;;  %v12353_v47 = vld [vmem:[#allocation3 + $0x64] ss:$0 sps:$4 sm:$0x11]  }
 0x19c   :  { %2463 = vmatpush1.bf16.msra.mxu1 %v2270_v13  ;;  %2521 = vmatprep.mubr.bf16.mxu0 %v16348_v0 }
 0x19d   :  { %3436 = vrot.lane.b32.xlu0 %v11576_v8, %s12473_s1  ;;  %v3959_v24 = vpop.permute.xlu0 %3958  ;;  %12171 = vmatprep.subr.bf16.mxu1 %v16346_v51 }
 0x19e   :  { %v3972_v43 = vrot.slane %v3959_v24, 4  ;;  %3438 = vrot.lane.b32.xlu1 %v11577_v26, %s12473_s1  ;;  %v3986_v26 = vsel %vm97_vm12, %v3975_v30, %v3976_v38 }
 0x19f   :  { %11506 = vmatmul.mubr.msk.bf16.vlgmr.msra.gmra.mxu1 %vm641_vm0, %v13623_v19  ;;  %v3987_v41 = vsel %vm16340_vm8, %v3986_v26, %v13704_v31 }
 0x1a0   :  { %v3979_v56 = vsel %vm16340_vm8, %v3972_v43, %v3959_v24  ;;  %v3980_v44 = vsel %vm97_vm12, %v3972_v43, %v3973_v16  ;;  %12172 = vmatpush3.bf16.msra.mxu1 %v2282_v48  ;;  %12173 = vmatprep.mubr.msk.bf16.mxu1 %vm12471_vm2, %v16346_v51  ;;  %v5131_v43 = vpack.i.b16 %v12353_v47, %v12353_v47  ;;  %v13761_v48 = vld [vmem:[%s16332_s2 + $0x10] sm:$0xf] }
 0x1a1   :  { %v3981_v32 = vsel %vm16340_vm8, %v3980_v44, %v13625_v10  ;;  %v3998_v1 = vmul.bf16 %v13555_v20, %v3979_v56  ;;  %5174 = vrot.lane.b32.xlu0 %v11687_v14, %s12474_s17  ;;  %v2226_v11 = vpop.permute.xlu0 %2225  ;;  %v5115_v10 = vrot.slane %v5110_v42, %v12577_v23  ;;  %v11690_v14 = vcombine.low %v5122_v18, %v5129_v21 }
 0x1a2   :  { %v2240_v60 = vsel %vm16339_vm7, %v13606_v53, %v2226_v11  ;;  %5176 = vrot.lane.b32.xlu1 %v11688_v63, %s12474_s17  ;;  %v2241_v9 = vsel %vm16339_vm7, %v2226_v11, %v13640_v62  ;;  %v3999_v28 = vmul.bf16 %v3981_v32, %v12943_v29  ;;  %v13725_v62 = vpop.permute.xlu1 %2836  ;;  %vm16341_vm7 = vcmask 785408  }
 0x1a3   :  { %v11612_v27 = vcombine.low %v3998_v1, %v3998_v1  ;;  %v11613_v54 = vcombine.high %v3998_v1, %v3998_v1  ;;  %11507 = vmatprep.subr.msk.bf16.mxu0 %vm97_vm12, %v2241_v9  ;;  %v2276_v7 = vsel %vm97_vm12, %v2240_v60, 0  ;;  %v11689_v46 = vcombine.low %v5108_v55, %v5115_v10 }
 0x1a4   :  { %2504 = vmatpush1.bf16.msra.mxu0 %v2276_v7  ;;  %v11614_v52 = vcombine.low %v3999_v28, %v3999_v28  ;;  %v11615_v50 = vcombine.high %v3999_v28, %v3999_v28  ;;  %v5136_v31 = vrot.slane %v5131_v43, %v12577_v23  ;;  %v4002_v32 = vmul.bf16 %v3987_v41, %v12982_v58 }
 0x1a5   :  { %4040 = vrot.lane.b32.xlu0 %v11612_v27, %s12475_s18  ;;  %v3963_v53 = vpop.permute.xlu0 %3962 }
 0x1a6   :  { %v3974_v2 = vrot.slane %v3963_v53, 4  ;;  %4042 = vrot.lane.b32.xlu1 %v11613_v54, %s12475_s18  ;;  %v2839_v6 = vpop.permute.xlu1 %2838  ;;  %v11691_v10 = vcombine.low %v5136_v31, %v5136_v31  ;;  %v11620_v27 = vcombine.low %v4002_v32, %v4002_v32 }
 0x1a7   :  { %11508 = vmatmul.mubr.msk.bf16.vlgmr.msra.gmra.mxu0 %vm641_vm0, %v13623_v19  ;;  %12174 = vmatmul.mubr.msk.bf16.vlgmr.msra.gmra.mxu1 %vm641_vm0, %v13623_v19  ;;  %v2859_v54 = vsel %vm16341_vm7, %v13725_v62, %v2839_v6 }
 0x1a8   :  { %v3982_v49 = vsel %vm97_vm12, %v3973_v16, %v3974_v2  ;;  %2941 = vmatprep.mubr.bf16.mxu0 %v16348_v0  ;;  %2982 = vmatprep.mubr.bf16.mxu1 %v16348_v0  ;;  %v3984_v57 = vsel %vm97_vm12, %v3974_v2, %v3975_v30 }
 0x1a9   :  { %v3983_v33 = vsel %vm16340_vm8, %v3982_v49, %v3963_v53  ;;  %4044 = vrot.lane.b32.xlu0 %v11614_v52, %s12475_s18  ;;  %v2829_v40 = vpop.permute.xlu0 %2828  ;;  %v3985_v8 = vsel %vm16340_vm8, %v3984_v57, %v13664_v45 }
 0x1aa   :  { %v4000_v19 = vmul.bf16 %v3983_v33, %v12947_v61  ;;  %5178 = vrot.lane.b32.xlu1 %v11689_v46, %s12474_s17  ;;  %v2855_v16 = vsel %vm16341_vm7, %v2829_v40, %v13685_v35  ;;  %v4001_v45 = vmul.bf16 %v13615_v39, %v3985_v8  ;;  %v2843_v56 = vpop.permute.xlu1 %2842  ;;  %v11621_v46 = vcombine.high %v4002_v32, %v4002_v32 }
 0x1ab   :  { %v2871_v63 = vsel %vm97_vm12, %v2855_v16, 0 }
 0x1ac   :  { %v11616_v13 = vcombine.low %v4000_v19, %v4000_v19  ;;  %v11617_v42 = vcombine.high %v4000_v19, %v4000_v19  ;;  %v11618_v11 = vcombine.low %v4001_v45, %v4001_v45  ;;  %v11619_v12 = vcombine.high %v4001_v45, %v4001_v45 }
 0x1ad   :  { %4046 = vrot.lane.b32.xlu0 %v11615_v50, %s12475_s18  ;;  %v2833_v24 = vpop.permute.xlu0 %2832 }
 0x1ae   :  { %4048 = vrot.lane.b32.xlu1 %v11616_v13, %s12475_s18  ;;  %v2856_v3 = vsel %vm16341_vm7, %v13685_v35, %v2833_v24  ;;  %v3971_v55 = vpop.permute.xlu1 %3970 }
 0x1af   :  { %11544 = vmatprep.subr.msk.bf16.mxu0 %vm97_vm12, %v2856_v3 }
 0x1b0   :  { %2924 = vmatpush1.bf16.msra.mxu0 %v2871_v63 }
 0x1b1   :  { %5180 = vrot.lane.b32.xlu0 %v11690_v14, %s12474_s17  ;;  %v2835_v35 = vpop.permute.xlu0 %2834 }
 0x1b2   :  { %v2857_v44 = vsel %vm16341_vm7, %v2833_v24, %v2835_v35  ;;  %4050 = vrot.lane.b32.xlu1 %v11617_v42, %s12475_s18  ;;  %v2858_v22 = vsel %vm16341_vm7, %v2835_v35, %v13725_v62  ;;  %v2883_v62 = vsel %vm97_vm12, %v2859_v54, 0 }
 0x1b3   :  { %11545 = vmatmul.mubr.msk.bf16.vlgmr.msra.gmra.mxu0 %vm641_vm0, %v13761_v48  ;;  %11546 = vmatprep.subr.msk.bf16.mxu1 %vm97_vm12, %v2858_v22  ;;  %v2877_v1 = vsel %vm97_vm12, %v2857_v44, 0 }
 0x1b4   :  { %2965 = vmatpush1.bf16.msra.mxu1 %v2877_v1  ;;  %3023 = vmatprep.mubr.bf16.mxu0 %v16348_v0 }
 0x1b5   :  { %4052 = vrot.lane.b32.xlu0 %v11618_v11, %s12475_s18  ;;  %v3969_v60 = vpop.permute.xlu0 %3968 }
 0x1b6   :  { %v3977_v9 = vrot.slane %v3969_v60, 4  ;;  %4054 = vrot.lane.b32.xlu1 %v11619_v12, %s12475_s18 }
 0x1b7   :  { %11547 = vmatmul.mubr.msk.bf16.vlgmr.msra.gmra.mxu1 %vm641_vm0, %v13761_v48 }
 0x1b8   :  { %v3988_v7 = vsel %vm97_vm12, %v3976_v38, %v3977_v9  ;;  %3064 = vmatprep.mubr.bf16.mxu1 %v16348_v0  ;;  %v3990_v37 = vsel %vm16340_vm8, %v3977_v9, %v3971_v55 }
 0x1b9   :  { %v3989_v28 = vsel %vm16340_vm8, %v3988_v7, %v3969_v60  ;;  %4056 = vrot.lane.b32.xlu0 %v11620_v27, %s12475_s18  ;;  %v2841_v53 = vpop.permute.xlu0 %2840  ;;  %v4004_v52 = vmul.bf16 %v13522_v34, %v3990_v37  ;;  %vm16342_vm8 = vcmask 490496  }
 0x1ba   :  { %v4003_v15 = vmul.bf16 %v3989_v28, %v12986_v59  ;;  %5182 = vrot.lane.b32.xlu1 %v11691_v10, %s12474_s17  ;;  %v2860_v2 = vsel %vm16341_vm7, %v2839_v6, %v2841_v53  ;;  %v2861_v49 = vsel %vm16341_vm7, %v2841_v53, %v2843_v56 }
 0x1bb   :  { %11548 = vmatprep.subr.msk.bf16.mxu0 %vm97_vm12, %v2860_v2  ;;  %v2889_v57 = vsel %vm97_vm12, %v2861_v49, 0  ;;  %v11624_v40 = vcombine.low %v4004_v52, %v4004_v52 }
 0x1bc   :  { %v11622_v30 = vcombine.low %v4003_v15, %v4003_v15  ;;  %3006 = vmatpush1.bf16.msra.mxu0 %v2883_v62  ;;  %v11623_v33 = vcombine.high %v4003_v15, %v4003_v15 }
 0x1bd   :  { %4058 = vrot.lane.b32.xlu0 %v11621_v46, %s12475_s18  ;;  %v2845_v18 = vpop.permute.xlu0 %2844 }
 0x1be   :  { %4060 = vrot.lane.b32.xlu1 %v11622_v30, %s12475_s18  ;;  %v2862_v38 = vsel %vm16341_vm7, %v2843_v56, %v2845_v18 }
 0x1bf   :  { %11549 = vmatmul.mubr.msk.bf16.vlgmr.msra.gmra.mxu0 %vm641_vm0, %v13761_v48  ;;  %11550 = vmatprep.subr.msk.bf16.mxu1 %vm97_vm12, %v2862_v38 }
 0x1c0   :  { %3047 = vmatpush1.bf16.msra.mxu1 %v2889_v57  ;;  %3105 = vmatprep.mubr.bf16.mxu0 %v16348_v0 }
 0x1c1   :  { %4062 = vrot.lane.b32.xlu0 %v11623_v33, %s12475_s18  ;;  %v2847_v21 = vpop.permute.xlu0 %2846 }
 0x1c2   :  { %4064 = vrot.lane.b32.xlu1 %v11624_v40, %s12475_s18  ;;  %v2863_v16 = vsel %vm16341_vm7, %v2845_v18, %v2847_v21 }
 0x1c3   :  { %11551 = vmatmul.mubr.msk.bf16.vlgmr.msra.gmra.mxu1 %vm641_vm0, %v13761_v48  ;;  %v2895_v3 = vsel %vm97_vm12, %v2863_v16, 0 }
 0x1c4   :  { %3146 = vmatprep.mubr.bf16.mxu1 %v16348_v0 }
 0x1c5   :  { %v4545_v19 = vpop.permute.xlu0 %4544 }
 0x1c6   :  { %v4558_v47 = vrot.slane %v4545_v19, 4 }
 0x1c8   :  { %v4565_v50 = vsel %vm16342_vm8, %v4558_v47, %v4545_v19  ;;  %v13857_v19 = vld [vmem:[%s16332_s2 + $0x14] sm:$0xf] }
 0x1c9   :  { %v4584_v6 = vmul.bf16 %v13555_v20, %v4565_v50 }
 0x1cb   :  { %v11646_v8 = vcombine.low %v4584_v6, %v4584_v6  ;;  %v11647_v13 = vcombine.high %v4584_v6, %v4584_v6 }
 0x1cd   :  { %4628 = vrot.lane.b32.xlu1 %v11647_v13, %s12476_s9  ;;  %4626 = vrot.lane.b32.xlu0 %v11646_v8, %s12476_s9 }
 0x1e0   :  { %v2849_v26 = vpop.permute.xlu1 %2848  ;;  %v2851_v24 = vpop.permute.xlu0 %2850 }
 0x1e1   :  { %v2864_v14 = vsel %vm16341_vm7, %v2847_v21, %v2849_v26  ;;  %v2865_v42 = vsel %vm16341_vm7, %v2849_v26, %v2851_v24 }
 0x1e2   :  { %11552 = vmatprep.subr.msk.bf16.mxu0 %vm97_vm12, %v2864_v14  ;;  %v2901_v12 = vsel %vm97_vm12, %v2865_v42, 0 }
 0x1e3   :  { %3088 = vmatpush1.bf16.msra.mxu0 %v2895_v3 }
 0x1e4   :  { %v4547_v43 = vpop.permute.xlu1 %4546  ;;  %v4549_v63 = vpop.permute.xlu0 %4548  ;;  %12177 = vmatprep.subr.bf16.mxu0 %v16346_v51 }
 0x1e5   :  { %v4559_v45 = vrot.slane %v4547_v43, 4  ;;  %v4560_v41 = vrot.slane %v4549_v63, 4 }
 0x1e6   :  { %11553 = vmatmul.mubr.msk.bf16.vlgmr.msra.gmra.mxu0 %vm641_vm0, %v13761_v48 }
 0x1e7   :  { %v4566_v35 = vsel %vm97_vm12, %v4558_v47, %v4559_v45  ;;  %v4568_v56 = vsel %vm97_vm12, %v4559_v45, %v4560_v41  ;;  %12179 = vmatprep.mubr.msk.bf16.mxu0 %vm12471_vm2, %v16346_v51 }
 0x1e8   :  { %v4567_v44 = vsel %vm16342_vm8, %v4566_v35, %v4547_v43  ;;  %v4569_v22 = vsel %vm16342_vm8, %v4568_v56, %v4549_v63  ;;  %v2853_v31 = vpop.permute.xlu1 %2852 }
 0x1e9   :  { %v4585_v32 = vmul.bf16 %v4567_v44, %v12943_v29  ;;  %v2866_v1 = vsel %vm16341_vm7, %v2851_v24, %v2853_v31  ;;  %v2907_v11 = vsel %vm97_vm12, %v2853_v31, 0  ;;  %v4586_v55 = vmul.bf16 %v4569_v22, %v12947_v61 }
 0x1ea   :  { %11554 = vmatprep.subr.msk.bf16.mxu1 %vm97_vm12, %v2866_v1  ;;  %12178 = vmatpush3.bf16.msra.mxu0 %v2907_v11  ;;  %vm16343_vm7 = vcmask 777216  }
 0x1eb   :  { %v11648_v60 = vcombine.low %v4585_v32, %v4585_v32  ;;  %v11649_v9 = vcombine.high %v4585_v32, %v4585_v32  ;;  %3129 = vmatpush1.bf16.msra.mxu1 %v2901_v12  ;;  %v11650_v54 = vcombine.low %v4586_v55, %v4586_v55  ;;  %v11651_v7 = vcombine.high %v4586_v55, %v4586_v55 }
 0x1ec   :  { %v4551_v10 = vpop.permute.xlu1 %4550 }
 0x1ed   :  { %v4561_v27 = vrot.slane %v4551_v10, 4  ;;  %4632 = vrot.lane.b32.xlu1 %v11649_v9, %s12476_s9  ;;  %4630 = vrot.lane.b32.xlu0 %v11648_v60, %s12476_s9 }
 0x1ee   :  { %11555 = vmatmul.mubr.msk.bf16.vlgmr.msra.gmra.mxu1 %vm641_vm0, %v13761_v48  ;;  %12180 = vmatmul.mubr.msk.bf16.vlgmr.msra.gmra.mxu0 %vm641_vm0, %v13761_v48 }
 0x1ef   :  { %v4570_v28 = vsel %vm97_vm12, %v4560_v41, %v4561_v27  ;;  %v3415_v37 = vpop.permute.xlu0 %3414  ;;  %3527 = vmatprep.mubr.bf16.mxu1 %v16348_v0  ;;  %3568 = vmatprep.mubr.bf16.mxu0 %v16348_v0 }
 0x1f0   :  { %v4571_v53 = vsel %vm16342_vm8, %v4570_v28, %v4551_v10  ;;  %v3417_v15 = vpop.permute.xlu1 %3416 }
 0x1f1   :  { %v4587_v2 = vmul.bf16 %v13615_v39, %v4571_v53  ;;  %4636 = vrot.lane.b32.xlu1 %v11651_v7, %s12476_s9  ;;  %4634 = vrot.lane.b32.xlu0 %v11650_v54, %s12476_s9  ;;  %v3441_v62 = vsel %vm16343_vm7, %v3415_v37, %v3417_v15 }
 0x1f2   :  { %v3457_v33 = vsel %vm97_vm12, %v3441_v62, 0 }
 0x1f3   :  { %v11652_v48 = vcombine.low %v4587_v2, %v4587_v2  ;;  %v11653_v46 = vcombine.high %v4587_v2, %v4587_v2  ;;  %v3419_v30 = vpop.permute.xlu0 %3418 }
 0x1f4   :  { %v4553_v52 = vpop.permute.xlu1 %4552  ;;  %v3442_v49 = vsel %vm16343_vm7, %v3417_v15, %v3419_v30  ;;  %v13845_v18 = vpop.f32.mrf.mxu0 }
 0x1f5   :  { %v4562_v38 = vrot.slane %v4553_v52, 4  ;;  %4640 = vrot.lane.b32.xlu1 %v11653_v46, %s12476_s9  ;;  %4638 = vrot.lane.b32.xlu0 %v11652_v48, %s12476_s9 }
 0x1f6   :  { %11578 = vmatprep.subr.msk.bf16.mxu1 %vm97_vm12, %v3442_v49  ;;  %v13851_v57 = vpop.f32.mrf.mxu0 }
 0x1f7   :  { %v4572_v40 = vsel %vm97_vm12, %v4561_v27, %v4562_v38  ;;  %3510 = vmatpush1.bf16.msra.mxu1 %v3457_v33  ;;  %v3421_v21 = vpop.permute.xlu0 %3420 }
 0x1f8   :  { %v4573_v47 = vsel %vm16342_vm8, %v4572_v40, %v4553_v52  ;;  %v3443_v50 = vsel %vm16343_vm7, %v3419_v30, %v3421_v21  ;;  %v3423_v6 = vpop.permute.xlu1 %3422  ;;  %v723_v8 = vpop.f32.mrf.mxu0 }
 0x1f9   :  { %v4588_v13 = vmul.bf16 %v4573_v47, %v12982_v58  ;;  %v3444_v16 = vsel %vm16343_vm7, %v3421_v21, %v3423_v6  ;;  %v3463_v26 = vsel %vm97_vm12, %v3443_v50, 0  ;;  %v13864_v24 = vpop.f32.mrf.mxu1 }
 0x1fa   :  { %11579 = vmatmul.mubr.msk.bf16.vlgmr.msra.gmra.mxu1 %vm641_vm0, %v13857_v19  ;;  %11580 = vmatprep.subr.msk.bf16.mxu0 %vm97_vm12, %v3444_v16  ;;  %v724_v14 = vpop.f32.mrf.mxu0 }
 0x1fb   :  { %v11654_v3 = vcombine.low %v4588_v13, %v4588_v13  ;;  %v11655_v43 = vcombine.high %v4588_v13, %v4588_v13  ;;  %3551 = vmatpush1.bf16.msra.mxu0 %v3463_v26  ;;  %v4555_v63 = vpop.permute.xlu0 %4554  ;;  %3609 = vmatprep.mubr.bf16.mxu1 %v16348_v0  ;;  %v13870_v45 = vpop.f32.mrf.mxu1 }
 0x1fc   :  { %v4563_v41 = vrot.slane %v4555_v63, 4  ;;  %v3425_v42 = vpop.permute.xlu1 %3424  ;;  %v13872_v35 = vpop.f32.mrf.mxu0 }
 0x1fd   :  { %4644 = vrot.lane.b32.xlu1 %v11655_v43, %s12476_s9  ;;  %4642 = vrot.lane.b32.xlu0 %v11654_v3, %s12476_s9  ;;  %v764_v56 = vpop.f32.mrf.mxu1  ;;  %v3445_v22 = vsel %vm16343_vm7, %v3423_v6, %v3425_v42 }
 0x1fe   :  { %v4574_v44 = vsel %vm97_vm12, %v4562_v38, %v4563_v41  ;;  %11581 = vmatmul.mubr.msk.bf16.vlgmr.msra.gmra.mxu0 %vm641_vm0, %v13857_v19  ;;  %v13880_v31 = vpop.f32.mrf.mxu0  ;;  %v3469_v10 = vsel %vm97_vm12, %v3445_v22, 0 }
 0x1ff   :  { %v4575_v32 = vsel %vm16342_vm8, %v4574_v44, %v4555_v63  ;;  %v3427_v1 = vpop.permute.xlu0 %3426  ;;  %3650 = vmatprep.mubr.bf16.mxu0 %v16348_v0  ;;  %v765_v11 = vpop.f32.mrf.mxu1 }
 0x200   :  { %v4589_v12 = vmul.bf16 %v4575_v32, %v12986_v59  ;;  %v3429_v60 = vpop.permute.xlu1 %3428  ;;  %v3446_v9 = vsel %vm16343_vm7, %v3425_v42, %v3427_v1  ;;  %v805_v55 = vpop.f32.mrf.mxu0 }
 0x201   :  { %11582 = vmatprep.subr.msk.bf16.mxu1 %vm97_vm12, %v3446_v9  ;;  %v13888_v27 = vpop.f32.mrf.mxu1  ;;  %v3447_v28 = vsel %vm16343_vm7, %v3427_v1, %v3429_v60 }
 0x202   :  { %v11656_v54 = vcombine.low %v4589_v12, %v4589_v12  ;;  %v11657_v7 = vcombine.high %v4589_v12, %v4589_v12  ;;  %3592 = vmatpush1.bf16.msra.mxu1 %v3469_v10  ;;  %v806_v37 = vpop.f32.mrf.mxu0  ;;  %v3475_v30 = vsel %vm97_vm12, %v3447_v28, 0 }
 0x203   :  { %v3431_v53 = vpop.permute.xlu0 %3430  ;;  %v13891_v15 = vpop.f32.mrf.mxu1 }
 0x204   :  { %v4557_v2 = vpop.permute.xlu1 %4556  ;;  %4648 = vrot.lane.b32.xlu1 %v11657_v7, %s12476_s9  ;;  %4646 = vrot.lane.b32.xlu0 %v11656_v54, %s12476_s9  ;;  %v3448_v48 = vsel %vm16343_vm7, %v3429_v60, %v3431_v53  ;;  %v13896_v46 = vpop.f32.mrf.mxu0 }
 0x205   :  { %v4576_v62 = vsel %vm16342_vm8, %v4563_v41, %v4557_v2  ;;  %11583 = vmatmul.mubr.msk.bf16.vlgmr.msra.gmra.mxu1 %vm641_vm0, %v13857_v19  ;;  %11584 = vmatprep.subr.msk.bf16.mxu0 %vm97_vm12, %v3448_v48  ;;  %v846_v52 = vpop.f32.mrf.mxu1  ;;  %vm16345_vm8 = vcmask 498688  }
 0x206   :  { %v4590_v49 = vmul.bf16 %v13522_v34, %v4576_v62  ;;  %3633 = vmatpush1.bf16.msra.mxu0 %v3475_v30  ;;  %3691 = vmatprep.mubr.bf16.mxu1 %v16348_v0  ;;  %v13905_v38 = vpop.f32.mrf.mxu0 }
 0x207   :  { %v3433_v33 = vpop.permute.xlu0 %3432  ;;  %v847_v40 = vpop.f32.mrf.mxu1 }
 0x208   :  { %v11658_v21 = vcombine.low %v4590_v49, %v4590_v49  ;;  %v3449_v47 = vsel %vm16343_vm7, %v3431_v53, %v3433_v33  ;;  %v3435_v50 = vpop.permute.xlu1 %3434  ;;  %v887_v6 = vpop.f32.mrf.mxu0 }
 0x209   :  { %11585 = vmatmul.mubr.msk.bf16.vlgmr.msra.gmra.mxu0 %vm641_vm0, %v13857_v19  ;;  %v3450_v8 = vsel %vm16343_vm7, %v3433_v33, %v3435_v50  ;;  %v3481_v13 = vsel %vm97_vm12, %v3449_v47, 0  ;;  %v13912_v34 = vpop.f32.mrf.mxu1 }
 0x20a   :  { %4650 = vrot.lane.b32.xlu0 %v11658_v21, %s12476_s9  ;;  %11586 = vmatprep.subr.msk.bf16.mxu1 %vm97_vm12, %v3450_v8  ;;  %v888_v16 = vpop.f32.mrf.mxu0 }
 0x20b   :  { %3674 = vmatpush1.bf16.msra.mxu1 %v3481_v13  ;;  %v5171_v26 = vpop.permute.xlu0 %5170  ;;  %3732 = vmatprep.mubr.bf16.mxu0 %v16348_v0  ;;  %v13917_v14 = vpop.f32.mrf.mxu1 }
 0x20c   :  { %v5184_v3 = vrot.slane %v5171_v26, 4  ;;  %v5173_v43 = vpop.permute.xlu1 %5172  ;;  %12183 = vmatprep.subr.bf16.mxu1 %v16346_v51  ;;  %v13920_v63 = vpop.f32.mrf.mxu0 }
 0x20d   :  { %v5185_v41 = vrot.slane %v5173_v43, 4  ;;  %v928_v42 = vpop.f32.mrf.mxu1 }
 0x20e   :  { %v5191_v56 = vsel %vm16345_vm8, %v5184_v3, %v5171_v26  ;;  %11587 = vmatmul.mubr.msk.bf16.vlgmr.msra.gmra.mxu1 %vm641_vm0, %v13857_v19  ;;  %v12157_v44 = vpop.f32.mrf.mxu0 }
 0x20f   :  { %v5210_v22 = vmul.bf16 %v13555_v20, %v5191_v56  ;;  %v5192_v32 = vsel %vm97_vm12, %v5184_v3, %v5185_v41  ;;  %v3437_v1 = vpop.permute.xlu0 %3436  ;;  %12185 = vmatprep.mubr.msk.bf16.mxu1 %vm12471_vm2, %v16346_v51  ;;  %v929_v11 = vpop.f32.mrf.mxu1 }
 0x210   :  { %v5193_v12 = vsel %vm16345_vm8, %v5192_v32, %v5173_v43  ;;  %v3451_v60 = vsel %vm16343_vm7, %v3435_v50, %v3437_v1  ;;  %v3439_v9 = vpop.permute.xlu1 %3438  ;;  %v968_v55 = vpop.f32.mrf.mxu0 }
 0x211   :  { %v11693_v10 = vcombine.low %v5210_v22, %v5210_v22  ;;  %v11694_v54 = vcombine.high %v5210_v22, %v5210_v22  ;;  %v5211_v7 = vmul.bf16 %v5193_v12, %v12943_v29  ;;  %v3452_v28 = vsel %vm16343_vm7, %v3437_v1, %v3439_v9  ;;  %v1119_v20 = vpop.f32.mrf.mxu1 }
 0x212   :  { %11588 = vmatprep.subr.msk.bf16.mxu0 %vm97_vm12, %v3452_v28  ;;  %v3493_v37 = vsel %vm97_vm12, %v3439_v9, 0  ;;  %v3487_v53 = vsel %vm97_vm12, %v3451_v60, 0  ;;  %v12158_v2 = vpop.f32.mrf.mxu0  ;;  %v13937_v48 = vadd.f32 %v1119_v20, %v13845_v18  ;;  %vm16344_vm7 = vcmask 564224   ;;  %v13982_v20 = vld [vmem:[%s16332_s2 + $0x18] sm:$0xf] }
 0x213   :  { %12184 = vmatpush3.bf16.msra.mxu1 %v3493_v37  ;;  %5254 = vrot.lane.b32.xlu0 %v11694_v54, %s12477_s13  ;;  %v5175_v62 = vpop.permute.xlu0 %5174  ;;  %v1121_v30 = vpop.f32.mrf.mxu1  ;;  %v11696_v40 = vcombine.high %v5211_v7, %v5211_v7  ;;  %v11695_v50 = vcombine.low %v5211_v7, %v5211_v7 }
 0x214   :  { %5252 = vrot.lane.b32.xlu1 %v11693_v10, %s12477_s13  ;;  %3715 = vmatpush1.bf16.msra.mxu0 %v3487_v53  ;;  %v5186_v29 = vrot.slane %v5175_v62, 4  ;;  %v5177_v52 = vpop.permute.xlu1 %5176  ;;  %v1160_v49 = vpop.f32.mrf.mxu0  ;;  %v13942_v33 = vadd.f32 %v1121_v30, %v13851_v57 }
 0x215   :  { %v5187_v21 = vrot.slane %v5177_v52, 4  ;;  %v13945_v18 = vadd.f32 %v1160_v49, %v13864_v24  ;;  %v1123_v47 = vpop.f32.mrf.mxu1 }
 0x216   :  { %v5194_v6 = vsel %vm97_vm12, %v5185_v41, %v5186_v29  ;;  %12186 = vmatmul.mubr.msk.bf16.vlgmr.msra.gmra.mxu1 %vm641_vm0, %v13857_v19  ;;  %v1162_v8 = vpop.f32.mrf.mxu0 }
 0x217   :  { %v5195_v13 = vsel %vm16345_vm8, %v5194_v6, %v5175_v62  ;;  %v5196_v16 = vsel %vm97_vm12, %v5186_v29, %v5187_v21  ;;  %11589 = vmatmul.mubr.msk.bf16.vlgmr.msra.gmra.mxu0 %vm641_vm0, %v13857_v19  ;;  %5258 = vrot.lane.b32.xlu0 %v11696_v40, %s12477_s13  ;;  %v4041_v57 = vpop.permute.xlu0 %4040  ;;  %v13956_v24 = vadd.f32 %v1162_v8, %v13870_v45  ;;  %v1124_v26 = vpop.f32.mrf.mxu1 }
 0x218   :  { %v5212_v3 = vmul.bf16 %v5195_v13, %v12947_v61  ;;  %v5197_v43 = vsel %vm16345_vm8, %v5196_v16, %v5177_v52  ;;  %5256 = vrot.lane.b32.xlu1 %v11695_v50, %s12477_s13  ;;  %v4043_v41 = vpop.permute.xlu1 %4042  ;;  %4153 = vmatprep.mubr.bf16.mxu0 %v16348_v0  ;;  %v1164_v42 = vpop.f32.mrf.mxu0 }
 0x219   :  { %v5213_v19 = vmul.bf16 %v13615_v39, %v5197_v43  ;;  %4194 = vmatprep.mubr.bf16.mxu1 %v16348_v0  ;;  %v1201_v56 = vpop.f32.mrf.mxu1  ;;  %v4067_v45 = vsel %vm16344_vm7, %v4041_v57, %v4043_v41 }
 0x21a   :  { %v11697_v44 = vcombine.low %v5212_v3, %v5212_v3  ;;  %v11698_v22 = vcombine.high %v5212_v3, %v5212_v3  ;;  %v1165_v32 = vpop.f32.mrf.mxu0  ;;  %v13966_v61 = vadd.f32 %v1201_v56, %v13872_v35  ;;  %v4083_v10 = vsel %vm97_vm12, %v4067_v45, 0 }
 0x21b   :  { %v4045_v1 = vpop.permute.xlu0 %4044  ;;  %v1203_v11 = vpop.f32.mrf.mxu1  ;;  %v11699_v7 = vcombine.low %v5213_v19, %v5213_v19  ;;  %v11700_v28 = vcombine.high %v5213_v19, %v5213_v19 }
 0x21c   :  { %v5179_v12 = vpop.permute.xlu1 %5178  ;;  %5262 = vrot.lane.b32.xlu0 %v11698_v22, %s12477_s13  ;;  %5260 = vrot.lane.b32.xlu1 %v11697_v44, %s12477_s13  ;;  %v4068_v39 = vsel %vm16344_vm7, %v4043_v41, %v4045_v1  ;;  %v1242_v60 = vpop.f32.mrf.mxu0  ;;  %v13972_v9 = vadd.f32 %v1203_v11, %v13880_v31 }
 0x21d   :  { %v5188_v55 = vrot.slane %v5179_v12, 4  ;;  %11625 = vmatprep.subr.msk.bf16.mxu0 %vm97_vm12, %v4068_v39  ;;  %v13977_v35 = vadd.f32 %v1242_v60, %v13888_v27  ;;  %v1205_v54 = vpop.f32.mrf.mxu1 }
 0x21e   :  { %4136 = vmatpush1.bf16.msra.mxu0 %v4083_v10  ;;  %v1244_v37 = vpop.f32.mrf.mxu0 }
 0x21f   :  { %v5198_v31 = vsel %vm97_vm12, %v5187_v21, %v5188_v55  ;;  %v4047_v53 = vpop.permute.xlu0 %4046  ;;  %v13986_v2 = vadd.f32 %v1244_v37, %v13891_v15  ;;  %v1206_v62 = vpop.f32.mrf.mxu1 }
 0x220   :  { %v5199_v27 = vsel %vm16345_vm8, %v5198_v31, %v5179_v12  ;;  %v4069_v30 = vsel %vm16344_vm7, %v4045_v1, %v4047_v53  ;;  %v4049_v29 = vpop.permute.xlu1 %4048  ;;  %5266 = vrot.lane.b32.xlu0 %v11700_v28, %s12477_s13  ;;  %5264 = vrot.lane.b32.xlu1 %v11699_v7, %s12477_s13  ;;  %v1246_v52 = vpop.f32.mrf.mxu0 }
 0x221   :  { %v5214_v49 = vmul.bf16 %v5199_v27, %v12982_v58  ;;  %11626 = vmatmul.mubr.msk.bf16.vlgmr.msra.gmra.mxu0 %vm641_vm0, %v13982_v20  ;;  %v4070_v40 = vsel %vm16344_vm7, %v4047_v53, %v4049_v29  ;;  %v4089_v15 = vsel %vm97_vm12, %v4069_v30, 0  ;;  %v1283_v21 = vpop.f32.mrf.mxu1  ;;  %v12422_v27 = vld [vmem:[#allocation2 + $0x30] sm:$0xf] }
 0x222   :  { %11627 = vmatprep.subr.msk.bf16.mxu1 %vm97_vm12, %v4070_v40  ;;  %4235 = vmatprep.mubr.bf16.mxu0 %v16348_v0  ;;  %v1247_v47 = vpop.f32.mrf.mxu0  ;;  %v14000_v50 = vadd.f32 %v1283_v21, %v13896_v46 }
 0x223   :  { %v11701_v6 = vcombine.low %v5214_v49, %v5214_v49  ;;  %v11702_v8 = vcombine.high %v5214_v49, %v5214_v49  ;;  %4177 = vmatpush1.bf16.msra.mxu1 %v4089_v15  ;;  %v5181_v58 = vpop.permute.xlu0 %5180  ;;  %v1285_v13 = vpop.f32.mrf.mxu1 }
 0x224   :  { %v5189_v16 = vrot.slane %v5181_v58, 4  ;;  %v4051_v57 = vpop.permute.xlu1 %4050  ;;  %v1324_v26 = vpop.f32.mrf.mxu0  ;;  %v14003_v3 = vadd.f32 %v1285_v13, %v13905_v38 }
 0x225   :  { %5270 = vrot.lane.b32.xlu0 %v11702_v8, %s12477_s13  ;;  %5268 = vrot.lane.b32.xlu1 %v11701_v6, %s12477_s13  ;;  %v14008_v43 = vadd.f32 %v1324_v26, %v13912_v34  ;;  %v1287_v46 = vpop.f32.mrf.mxu1  ;;  %v4071_v42 = vsel %vm16344_vm7, %v4049_v29, %v4051_v57 }
 0x226   :  { %v5200_v41 = vsel %vm97_vm12, %v5188_v55, %v5189_v16  ;;  %11628 = vmatmul.mubr.msk.bf16.vlgmr.msra.gmra.mxu1 %vm641_vm0, %v13982_v20  ;;  %v1326_v19 = vpop.f32.mrf.mxu0  ;;  %v4095_v11 = vsel %vm97_vm12, %v4071_v42, 0 }
 0x227   :  { %v5201_v56 = vsel %vm16345_vm8, %v5200_v41, %v5181_v58  ;;  %v4053_v38 = vpop.permute.xlu0 %4052  ;;  %4276 = vmatprep.mubr.bf16.mxu1 %v16348_v0  ;;  %v14017_v44 = vadd.f32 %v1326_v19, %v13917_v14  ;;  %v1288_v22 = vpop.f32.mrf.mxu1 }
 0x228   :  { %v5215_v34 = vmul.bf16 %v5201_v56, %v12986_v59  ;;  %v4055_v45 = vpop.permute.xlu1 %4054  ;;  %v4072_v32 = vsel %vm16344_vm7, %v4051_v57, %v4053_v38  ;;  %v1328_v1 = vpop.f32.mrf.mxu0 }
 0x229   :  { %11629 = vmatprep.subr.msk.bf16.mxu0 %vm97_vm12, %v4072_v32  ;;  %v1365_v12 = vpop.f32.mrf.mxu1  ;;  %v4073_v55 = vsel %vm16344_vm7, %v4053_v38, %v4055_v45 }
 0x22a   :  { %v11703_v39 = vcombine.low %v5215_v34, %v5215_v34  ;;  %v11704_v60 = vcombine.high %v5215_v34, %v5215_v34  ;;  %4218 = vmatpush1.bf16.msra.mxu0 %v4095_v11  ;;  %v1329_v10 = vpop.f32.mrf.mxu0  ;;  %v14025_v14 = vadd.f32 %v1365_v12, %v13920_v63  ;;  %v4101_v63 = vsel %vm97_vm12, %v4073_v55, 0 }
 0x22b   :  { %v4057_v54 = vpop.permute.xlu0 %4056  ;;  %v12163_v59 = vpop.f32.mrf.mxu1 }
 0x22c   :  { %v5183_v7 = vpop.permute.xlu1 %5182  ;;  %5274 = vrot.lane.b32.xlu0 %v11704_v60, %s12477_s13  ;;  %5272 = vrot.lane.b32.xlu1 %v11703_v39, %s12477_s13  ;;  %v4074_v28 = vsel %vm16344_vm7, %v4055_v45, %v4057_v54  ;;  %v1732_v37 = vpop.f32.mrf.mxu0 }
 0x22d   :  { %v5202_v31 = vsel %vm16345_vm8, %v5189_v16, %v5183_v7  ;;  %11630 = vmatmul.mubr.msk.bf16.vlgmr.msra.gmra.mxu0 %vm641_vm0, %v13982_v20  ;;  %11631 = vmatprep.subr.msk.bf16.mxu1 %vm97_vm12, %v4074_v28  ;;  %v14036_v53 = vadd.f32 %v1732_v37, %v13937_v48  ;;  %v1368_v62 = vpop.f32.mrf.mxu1  ;;  %vm5278_vm8 = vcmask 547840  }
 0x22e   :  { %v5216_v30 = vmul.bf16 %v12422_v27, %v5202_v31  ;;  %4259 = vmatpush1.bf16.msra.mxu1 %v4101_v63  ;;  %4317 = vmatprep.mubr.bf16.mxu0 %v16348_v0  ;;  %v1734_v29 = vpop.f32.mrf.mxu0 }
 0x22f   :  { %v4059_v52 = vpop.permute.xlu0 %4058  ;;  %v14040_v49 = vadd.f32 %v1734_v29, %v13942_v33  ;;  %v12164_v40 = vpop.f32.mrf.mxu1 }
 0x230   :  { %v11705_v15 = vcombine.low %v5216_v30, %v5216_v30  ;;  %v4075_v21 = vsel %vm16344_vm7, %v4057_v54, %v4059_v52  ;;  %v4061_v47 = vpop.permute.xlu1 %4060  ;;  %v1736_v6 = vpop.f32.mrf.mxu0 }
 0x231   :  { %11632 = vmatmul.mubr.msk.bf16.vlgmr.msra.gmra.mxu1 %vm641_vm0, %v13982_v20  ;;  %v4076_v48 = vsel %vm16344_vm7, %v4059_v52, %v4061_v47  ;;  %v4107_v8 = vsel %vm97_vm12, %v4075_v21, 0  ;;  %v1773_v58 = vpop.f32.mrf.mxu1 }
 0x232   :  { %5276 = vrot.lane.b32.xlu1 %v11705_v15, %s12477_s13  ;;  %11633 = vmatprep.subr.msk.bf16.mxu0 %vm97_vm12, %v4076_v48  ;;  %v1737_v33 = vpop.f32.mrf.mxu0  ;;  %v1986_v13 = vadd.f32 %v1773_v58, %v13945_v18 }
 0x233   :  { %4300 = vmatpush1.bf16.msra.mxu0 %v4107_v8  ;;  %v4063_v16 = vpop.permute.xlu0 %4062  ;;  %4358 = vmatprep.mubr.bf16.mxu1 %v16348_v0  ;;  %v1775_v57 = vpop.f32.mrf.mxu1 }
 0x234   :  { %v4077_v26 = vsel %vm16344_vm7, %v4061_v47, %v4063_v16  ;;  %v4065_v46 = vpop.permute.xlu1 %4064  ;;  %12189 = vmatprep.subr.bf16.mxu0 %v16346_v51  ;;  %v1814_v41 = vpop.f32.mrf.mxu0  ;;  %v1987_v42 = vadd.f32 %v1775_v57, %v13956_v24 }
 0x235   :  { %v4078_v19 = vsel %vm16344_vm7, %v4063_v16, %v4065_v46  ;;  %v4113_v56 = vsel %vm97_vm12, %v4077_v26, 0  ;;  %v4119_v38 = vsel %vm97_vm12, %v4065_v46, 0  ;;  %v1988_v18 = vadd.f32 %v1814_v41, %v13966_v61  ;;  %v1777_v22 = vpop.f32.mrf.mxu1 }
 0x236   :  { %11634 = vmatmul.mubr.msk.bf16.vlgmr.msra.gmra.mxu0 %vm641_vm0, %v13982_v20  ;;  %11635 = vmatprep.subr.msk.bf16.mxu1 %vm97_vm12, %v4078_v19  ;;  %v1816_v34 = vpop.f32.mrf.mxu0  ;;  %vm4652_vm7 = vcmask 556032  }
 0x237   :  { %4341 = vmatpush1.bf16.msra.mxu1 %v4113_v56  ;;  %12190 = vmatpush3.bf16.msra.mxu0 %v4119_v38  ;;  %v1989_v45 = vadd.f32 %v1816_v34, %v13972_v9  ;;  %v1778_v24 = vpop.f32.mrf.mxu1 }
 0x238   :  { %12191 = vmatprep.mubr.msk.bf16.mxu0 %vm12471_vm2, %v16346_v51  ;;  %v1818_v32 = vpop.f32.mrf.mxu0 }
 0x239   :  { %v1855_v1 = vpop.f32.mrf.mxu1 }
 0x23a   :  { %11636 = vmatmul.mubr.msk.bf16.vlgmr.msra.gmra.mxu1 %vm641_vm0, %v13982_v20  ;;  %v1819_v61 = vpop.f32.mrf.mxu0  ;;  %v1990_v11 = vadd.f32 %v1855_v1, %v13977_v35 }
 0x23b   :  { %v1857_v12 = vpop.f32.mrf.mxu1  ;;  %4739 = vmatprep.mubr.bf16.mxu1 %v16348_v0 }
 0x23c   :  { %v1896_v39 = vpop.f32.mrf.mxu0  ;;  %v1991_v60 = vadd.f32 %v1857_v12, %v13986_v2  ;;  %v14117_v12 = vld [vmem:[%s16332_s2 + $0x1c] sm:$0xf] }
 0x23d   :  { %v1992_v9 = vadd.f32 %v1896_v39, %v14000_v50  ;;  %v1859_v55 = vpop.f32.mrf.mxu1 }
 0x23e   :  { %12192 = vmatmul.mubr.msk.bf16.vlgmr.msra.gmra.mxu0 %vm641_vm0, %v13982_v20  ;;  %v1898_v10 = vpop.f32.mrf.mxu0 }
 0x23f   :  { %v1993_v54 = vadd.f32 %v1898_v10, %v14003_v3  ;;  %4780 = vmatprep.mubr.bf16.mxu0 %v16348_v0  ;;  %v1860_v7 = vpop.f32.mrf.mxu1  ;;  %v4627_v57 = vpop.permute.xlu0 %4626 }
 0x240   :  { %v1900_v59 = vpop.f32.mrf.mxu0 }
 0x241   :  { %v1937_v28 = vpop.f32.mrf.mxu1 }
 0x242   :  { %v1901_v35 = vpop.f32.mrf.mxu0  ;;  %v14075_v37 = vadd.f32 %v1937_v28, %v14008_v43 }
 0x243   :  { %v1939_v2 = vpop.f32.mrf.mxu1 }
 0x244   :  { %v1978_v31 = vpop.f32.mrf.mxu0  ;;  %v14081_v63 = vadd.f32 %v1939_v2, %v14017_v44 }
 0x245   :  { %v14078_v50 = vadd.f32 %v1978_v31, %v14025_v14  ;;  %v1941_v62 = vpop.f32.mrf.mxu1 }
 0x246   :  { %v12169_v20 = vpop.f32.mrf.mxu0 }
 0x247   :  { %v1942_v27 = vpop.f32.mrf.mxu1 }
 0x248   :  { %v1981_v3 = vpop.f32.mrf.mxu0 }
 0x24a   :  { %v12170_v30 = vpop.f32.mrf.mxu0 }
 0x24b   :  { %v2318_v29 = vpop.f32.mrf.mxu1 }
 0x24c   :  { %v14084_v52 = vadd.f32 %v2318_v29, %v14036_v53  ;;  %v5632_v53 = vld [vmem:[%s16333_s3] sm:$0xff] }
 0x24d   :  { %v2320_v40 = vpop.f32.mrf.mxu1  ;;  %5635 = vperm.xlu0 %12287, %v5632_v53  }
 0x24e   :  { %v14087_v43 = vadd.f32 %v2320_v40, %v14040_v49  ;;  %v4629_v49 = vpop.permute.xlu1 %4628 }
 0x24f   :  { %v2359_v15 = vpop.f32.mrf.mxu0  ;;  %v2322_v21 = vpop.f32.mrf.mxu1  ;;  %v4653_v38 = vsel %vm4652_vm7, %v4627_v57, %v4629_v49 }
 0x250   :  { %v14089_v14 = vadd.f32 %v2359_v15, %v1986_v13  ;;  %v5651_v13 = vld [vmem:[%s16334_s4] sm:$0xff]  ;;  %v4669_v1 = vsel %vm97_vm12, %v4653_v38, 0 }
 0x251   :  { %v2361_v47 = vpop.f32.mrf.mxu0  ;;  %v2323_v44 = vpop.f32.mrf.mxu1  ;;  %5654 = vperm.xlu1 %12288, %v5651_v13  }
 0x252   :  { %v14091_v6 = vadd.f32 %v2361_v47, %v1987_v42 }
 0x253   :  { %v2363_v48 = vpop.f32.mrf.mxu0 }
 0x255   :  { %v2364_v8 = vpop.f32.mrf.mxu0 }
 0x257   :  { %v2400_v58 = vpop.f32.mrf.mxu1 }
 0x258   :  { %v14093_v33 = vadd.f32 %v2400_v58, %v1988_v18 }
 0x259   :  { %v2402_v16 = vpop.f32.mrf.mxu1 }
 0x25a   :  { %v14098_v26 = vadd.f32 %v2402_v16, %v1989_v45 }
 0x25b   :  { %v2441_v46 = vpop.f32.mrf.mxu0  ;;  %v2404_v41 = vpop.f32.mrf.mxu1 }
 0x25c   :  { %v14103_v42 = vadd.f32 %v2441_v46, %v1990_v11 }
 0x25d   :  { %v2443_v19 = vpop.f32.mrf.mxu0  ;;  %v2405_v56 = vpop.f32.mrf.mxu1 }
 0x25e   :  { %v14106_v18 = vadd.f32 %v2443_v19, %v1991_v60 }
 0x25f   :  { %v4633_v22 = vpop.permute.xlu1 %4632  ;;  %v4631_v34 = vpop.permute.xlu0 %4630 }
 0x260   :  { %v4654_v45 = vsel %vm4652_vm7, %v4629_v49, %v4631_v34  ;;  %v2445_v24 = vpop.f32.mrf.mxu0  ;;  %v2482_v32 = vpop.f32.mrf.mxu1  ;;  %v4655_v11 = vsel %vm4652_vm7, %v4631_v34, %v4633_v22 }
 0x261   :  { %11659 = vmatprep.subr.msk.bf16.mxu1 %vm97_vm12, %v4654_v45  ;;  %v14111_v61 = vadd.f32 %v2482_v32, %v1992_v9  ;;  %v4675_v9 = vsel %vm97_vm12, %v4655_v11, 0 }
 0x262   :  { %4722 = vmatpush1.bf16.msra.mxu1 %v4669_v1  ;;  %v2446_v39 = vpop.f32.mrf.mxu0  ;;  %v2484_v60 = vpop.f32.mrf.mxu1 }
 0x263   :  { %v4637_v55 = vpop.permute.xlu1 %4636  ;;  %v4635_v10 = vpop.permute.xlu0 %4634  ;;  %v14119_v59 = vadd.f32 %v2484_v60, %v1993_v54 }
 0x264   :  { %v4656_v7 = vsel %vm4652_vm7, %v4633_v22, %v4635_v10  ;;  %v2486_v35 = vpop.f32.mrf.mxu1  ;;  %v4657_v28 = vsel %vm4652_vm7, %v4635_v10, %v4637_v55  ;;  %v5770_v10 = vld [vmem:[#allocation3 + $0x8] sm:$0x11] }
 0x265   :  { %11660 = vmatmul.mubr.msk.bf16.vlgmr.msra.gmra.mxu1 %vm641_vm0, %v14117_v12  ;;  %11661 = vmatprep.subr.msk.bf16.mxu0 %vm97_vm12, %v4656_v7  ;;  %v4681_v3 = vsel %vm97_vm12, %v4657_v28, 0  ;;  %v5769_v7 = vld [vmem:[#allocation3] sm:$0x11]  ;;  %v5771_v35 = vld [vmem:[#allocation3 + $0x10] sm:$0x11]  ;;  %v14182_v28 = vcombine.low %v5770_v10, %v5770_v10 }
 0x266   :  { %4763 = vmatpush1.bf16.msra.mxu0 %v4675_v9  ;;  %4821 = vmatprep.mubr.bf16.mxu1 %v16348_v0  ;;  %v2487_v31 = vpop.f32.mrf.mxu1 }
 0x267   :  { %v4639_v2 = vpop.permute.xlu0 %4638  ;;  %v2523_v20 = vpop.f32.mrf.mxu0  ;;  %v14184_v31 = vcombine.high %v5770_v10, %v5770_v10 }
 0x268   :  { %v4658_v54 = vsel %vm4652_vm7, %v4637_v55, %v4639_v2  ;;  %v2564_v62 = vpop.f32.mrf.mxu1  ;;  %v14134_v27 = vadd.f32 %v2523_v20, %v14075_v37  ;;  %v4641_v15 = vpop.permute.xlu1 %4640 }
 0x269   :  { %11662 = vmatmul.mubr.msk.bf16.vlgmr.msra.gmra.mxu0 %vm641_vm0, %v14117_v12  ;;  %11663 = vmatprep.subr.msk.bf16.mxu1 %vm97_vm12, %v4658_v54  ;;  %v14137_v30 = vadd.f32 %v2564_v62, %v14078_v50  ;;  %v2525_v29 = vpop.f32.mrf.mxu0  ;;  %v4659_v37 = vsel %vm4652_vm7, %v4639_v2, %v4641_v15  ;;  %v14186_v2 = vcombine.low %v5769_v7, %v5769_v7  ;;  %v5773_v54 = vld [vmem:[#allocation3 + $0x20] sm:$0x11] }
 0x26a   :  { %4804 = vmatpush1.bf16.msra.mxu1 %v4681_v3  ;;  %4862 = vmatprep.mubr.bf16.mxu0 %v16348_v0  ;;  %v12175_v40 = vpop.f32.mrf.mxu1  ;;  %v14141_v21 = vadd.f32 %v2525_v29, %v14081_v63  ;;  %v4687_v53 = vsel %vm97_vm12, %v4659_v37, 0  ;;  %v14188_v62 = vcombine.high %v5769_v7, %v5769_v7  ;;  %v14190_v3 = vcombine.low %v5771_v35, %v5771_v35 }
 0x26b   :  { %v2527_v47 = vpop.f32.mrf.mxu0  ;;  %v14192_v29 = vcombine.high %v5771_v35, %v5771_v35  ;;  %v14194_v40 = vcombine.low %v5773_v54, %v5773_v54 }
 0x26c   :  { %v2567_v44 = vpop.f32.mrf.mxu1  ;;  %v6001_v47 = vshrl.u32 %v14184_v31, 16 }
 0x26d   :  { %11664 = vmatmul.mubr.msk.bf16.vlgmr.msra.gmra.mxu1 %vm641_vm0, %v14117_v12  ;;  %v2528_v48 = vpop.f32.mrf.mxu0  ;;  %v5980_v44 = vshrl.u32 %v14186_v2, 16 }
 0x26e   :  { %4903 = vmatprep.mubr.bf16.mxu1 %v16348_v0  ;;  %v12176_v50 = vpop.f32.mrf.mxu1 }
 0x26f   :  { %v4643_v8 = vpop.permute.xlu0 %4642  ;;  %v4645_v63 = vpop.permute.xlu1 %4644  ;;  %v5987_v50 = vshrl.u32 %v14188_v62, 16 }
 0x270   :  { %v4660_v58 = vsel %vm4652_vm7, %v4641_v15, %v4643_v8  ;;  %v4661_v57 = vsel %vm4652_vm7, %v4643_v8, %v4645_v63  ;;  %v6008_v8 = vshrl.u32 %v14190_v3, 16 }
 0x271   :  { %11665 = vmatprep.subr.msk.bf16.mxu0 %vm97_vm12, %v4660_v58  ;;  %v14208_v58 = vcombine.high %v5773_v54, %v5773_v54 }
 0x272   :  { %4845 = vmatpush1.bf16.msra.mxu0 %v4687_v53 }
 0x273   :  { %v2943_v16 = vpop.f32.mrf.mxu0 }
 0x274   :  { %v14151_v49 = vadd.f32 %v2943_v16, %v14084_v52  ;;  %v4693_v52 = vsel %vm97_vm12, %v4661_v57, 0  ;;  %v6002_v16 = vpack.i.b16 %v6001_v47, %v6001_v47  ;;  %v5981_v57 = vpack.i.b16 %v5980_v44, %v5980_v44 }
 0x275   :  { %v2945_v13 = vpop.f32.mrf.mxu0  ;;  %11666 = vmatmul.mubr.msk.bf16.vlgmr.msra.gmra.mxu0 %vm641_vm0, %v14117_v12 }
 0x276   :  { %v14157_v46 = vadd.f32 %v2945_v13, %v14087_v43  ;;  %v4647_v41 = vpop.permute.xlu0 %4646  ;;  %4944 = vmatprep.mubr.bf16.mxu0 %v16348_v0  ;;  %v4649_v22 = vpop.permute.xlu1 %4648 }
 0x277   :  { %v4662_v19 = vsel %vm4652_vm7, %v4645_v63, %v4647_v41  ;;  %v2947_v56 = vpop.f32.mrf.mxu0  ;;  %v2984_v38 = vpop.f32.mrf.mxu1  ;;  %v4663_v32 = vsel %vm4652_vm7, %v4647_v41, %v4649_v22 }
 0x278   :  { %11667 = vmatprep.subr.msk.bf16.mxu1 %vm97_vm12, %v4662_v19  ;;  %v14164_v34 = vadd.f32 %v2984_v38, %v14089_v14  ;;  %v5988_v19 = vpack.i.b16 %v5987_v50, %v5987_v50  ;;  %v6009_v56 = vpack.i.b16 %v6008_v8, %v6008_v8 }
 0x279   :  { %4886 = vmatpush1.bf16.msra.mxu1 %v4693_v52  ;;  %v2948_v45 = vpop.f32.mrf.mxu0  ;;  %v2986_v24 = vpop.f32.mrf.mxu1 }
 0x27a   :  { %12195 = vmatprep.subr.bf16.mxu1 %v16346_v51  ;;  %v14168_v43 = vadd.f32 %v2986_v24, %v14091_v6  ;;  %v4699_v6 = vsel %vm97_vm12, %v4663_v32, 0  ;;  %v6007_v24 = vrot.slane %v6002_v16, %v12577_v23  ;;  %v5986_v32 = vrot.slane %v5981_v57, %v12577_v23 }
 0x27b   :  { %v2988_v1 = vpop.f32.mrf.mxu1 }
 0x27c   :  { %11668 = vmatmul.mubr.msk.bf16.vlgmr.msra.gmra.mxu1 %vm641_vm0, %v14117_v12  ;;  %v4651_v11 = vpop.permute.xlu0 %4650  ;;  %v5772_v1 = vld [vmem:[#allocation3 + $0x18] sm:$0x11] }
 0x27d   :  { %v4664_v39 = vsel %vm4652_vm7, %v4649_v22, %v4651_v11  ;;  %v4705_v14 = vsel %vm97_vm12, %v4651_v11, 0  ;;  %12197 = vmatprep.mubr.msk.bf16.mxu1 %vm12471_vm2, %v16346_v51  ;;  %v2989_v60 = vpop.f32.mrf.mxu1  ;;  %v6036_v22 = vshrl.u32 %v14194_v40, 16 }
 0x27e   :  { %11669 = vmatprep.subr.msk.bf16.mxu0 %vm97_vm12, %v4664_v39  ;;  %12196 = vmatpush3.bf16.msra.mxu1 %v4705_v14  ;;  %v5993_v39 = vrot.slane %v5988_v19, %v12577_v23  ;;  %v6014_v14 = vrot.slane %v6009_v56, %v12577_v23 }
 0x27f   :  { %v3025_v55 = vpop.f32.mrf.mxu0  ;;  %4927 = vmatpush1.bf16.msra.mxu0 %v4699_v6 }
 0x280   :  { %v14180_v9 = vadd.f32 %v3025_v55, %v14093_v33  ;;  %v5994_v33 = vshrl.u32 %v14182_v28, 16  ;;  %v6037_v55 = vpack.i.b16 %v6036_v22, %v6036_v22  ;;  %v11746_v54 = vcombine.low %v5986_v32, %v5993_v39 }
 0x281   :  { %v3027_v20 = vpop.f32.mrf.mxu0 }
 0x282   :  { %v14197_v15 = vadd.f32 %v3027_v20, %v14098_v26  ;;  %11670 = vmatmul.mubr.msk.bf16.vlgmr.msra.gmra.mxu0 %vm641_vm0, %v14117_v12  ;;  %v6015_v26 = vshrl.u32 %v14192_v29, 16  ;;  %v5995_v63 = vpack.i.b16 %v5994_v33, %v5994_v33  ;;  %v14228_v20 = vcombine.low %v5772_v1, %v5772_v1  ;;  %6104 = vrot.lane.b32.xlu1 %v11746_v54, %s12459_s16 }
 0x283   :  { %v3066_v37 = vpop.f32.mrf.mxu1  ;;  %5365 = vmatprep.mubr.bf16.mxu0 %v16348_v0  ;;  %v3029_v48 = vpop.f32.mrf.mxu0  ;;  %v14230_v33 = vcombine.high %v5772_v1, %v5772_v1 }
 0x284   :  { %12198 = vmatmul.mubr.msk.bf16.vlgmr.msra.gmra.mxu1 %vm641_vm0, %v14117_v12  ;;  %v14213_v53 = vadd.f32 %v3066_v37, %v14103_v42  ;;  %v6016_v38 = vpack.i.b16 %v6015_v26, %v6015_v26  ;;  %v6000_v42 = vrot.slane %v5995_v63, %v12577_v23  ;;  %v6042_v37 = vrot.slane %v6037_v55, %v12577_v23 }
 0x285   :  { %v5255_v13 = vpop.permute.xlu0 %5254  ;;  %v3068_v41 = vpop.f32.mrf.mxu1  ;;  %5406 = vmatprep.mubr.bf16.mxu1 %v16348_v0  ;;  %v6022_v8 = vshrl.u32 %v14228_v20, 16  ;;  %v6029_v26 = vshrl.u32 %v14230_v33, 16 }
 0x286   :  { %v5253_v52 = vpop.permute.xlu1 %5252  ;;  %v14218_v45 = vadd.f32 %v3068_v41, %v14106_v18  ;;  %v3030_v12 = vpop.f32.mrf.mxu0  ;;  %v6021_v60 = vrot.slane %v6016_v38, %v12577_v23  ;;  %v11747_v6 = vcombine.low %v6000_v42, %v6007_v24  ;;  %v6043_v18 = vshrl.u32 %v14208_v58, 16  ;;  %v14245_v41 = vld [vmem:[%s16332_s2 + $0x20] sm:$0xf] }
 0x287   :  { %v3070_v11 = vpop.f32.mrf.mxu1  ;;  %v5279_v10 = vsel %vm5278_vm8, %v5253_v52, %v5255_v13  ;;  %v6030_v19 = vpack.i.b16 %v6029_v26, %v6029_v26 }
 0x288   :  { %6106 = vrot.lane.b32.xlu0 %v11747_v6, %s12459_s16  ;;  %v11748_v44 = vcombine.low %v6014_v14, %v6021_v60  ;;  %v6044_v48 = vpack.i.b16 %v6043_v18, %v6043_v18  ;;  %v5295_v63 = vsel %vm97_vm12, %v5279_v10, 0 }
 0x289   :  { %v5259_v7 = vpop.permute.xlu0 %5258  ;;  %v3071_v35 = vpop.f32.mrf.mxu1  ;;  %v6035_v42 = vrot.slane %v6030_v19, %v12577_v23  ;;  %v14287_v19 = vld [vmem:[#allocation3 + $0x30] ss:$0 sps:$4 sm:$0x11]  }
 0x28a   :  { %v5257_v47 = vpop.permute.xlu1 %5256  ;;  %v6049_v16 = vrot.slane %v6044_v48, %v12577_v23 }
 0x28b   :  { %v5280_v50 = vsel %vm5278_vm8, %v5255_v13, %v5257_v47  ;;  %v5281_v57 = vsel %vm5278_vm8, %v5257_v47, %v5259_v7  ;;  %v6023_v13 = vpack.i.b16 %v6022_v8, %v6022_v8  ;;  %v5774_v47 = vld [vmem:[#allocation3 + $0x28] sm:$0x11] }
 0x28c   :  { %11706 = vmatprep.subr.msk.bf16.mxu0 %vm97_vm12, %v5280_v50  ;;  %6108 = vrot.lane.b32.xlu0 %v11748_v44, %s12459_s16  ;;  %v11750_v22 = vcombine.low %v6042_v37, %v6049_v16  ;;  %v5301_v24 = vsel %vm97_vm12, %v5281_v57, 0  ;;  %v14277_v37 = vcombine.low %v5774_v47, %v5774_v47  ;;  %v14279_v48 = vcombine.high %v5774_v47, %v5774_v47 }
 0x28d   :  { %5348 = vmatpush1.bf16.msra.mxu0 %v5295_v63  ;;  %v6028_v12 = vrot.slane %v6023_v13, %v12577_v23 }
 0x28e   :  { %v5261_v56 = vpop.permute.xlu1 %5260  ;;  %v5263_v38 = vpop.permute.xlu0 %5262  ;;  %6112 = vrot.lane.b32.xlu1 %v11750_v22, %s12459_s16  ;;  %v6050_v26 = vshrl.u32 %v14277_v37, 16  ;;  %v6057_v63 = vshrl.u32 %v14279_v48, 16 }
 0x28f   :  { %v5282_v52 = vsel %vm5278_vm8, %v5259_v7, %v5261_v56  ;;  %v5283_v32 = vsel %vm5278_vm8, %v5261_v56, %v5263_v38  ;;  %v11749_v1 = vcombine.low %v6028_v12, %v6035_v42 }
 0x290   :  { %11707 = vmatmul.mubr.msk.bf16.vlgmr.msra.gmra.mxu0 %vm641_vm0, %v14245_v41  ;;  %11708 = vmatprep.subr.msk.bf16.mxu1 %vm97_vm12, %v5282_v52  ;;  %v5307_v60 = vsel %vm97_vm12, %v5283_v32, 0  ;;  %v6051_v57 = vpack.i.b16 %v6050_v26, %v6050_v26  ;;  %v6058_v13 = vpack.i.b16 %v6057_v63, %v6057_v63  ;;  %v6064_v32 = vshrl.u32 %v14287_v19, 16 }
 0x291   :  { %5389 = vmatpush1.bf16.msra.mxu1 %v5301_v24  ;;  %5447 = vmatprep.mubr.bf16.mxu0 %v16348_v0 }
 0x292   :  { %v5265_v11 = vpop.permute.xlu1 %5264  ;;  %v5267_v39 = vpop.permute.xlu0 %5266  ;;  %6110 = vrot.lane.b32.xlu0 %v11749_v1, %s12459_s16  ;;  %v6056_v52 = vrot.slane %v6051_v57, %v12577_v23  ;;  %v6063_v12 = vrot.slane %v6058_v13, %v12577_v23 }
 0x293   :  { %v5284_v14 = vsel %vm5278_vm8, %v5263_v38, %v5265_v11  ;;  %v5285_v6 = vsel %vm5278_vm8, %v5265_v11, %v5267_v39 }
 0x294   :  { %11709 = vmatmul.mubr.msk.bf16.vlgmr.msra.gmra.mxu1 %vm641_vm0, %v14245_v41  ;;  %11710 = vmatprep.subr.msk.bf16.mxu0 %vm97_vm12, %v5284_v14  ;;  %v5313_v10 = vsel %vm97_vm12, %v5285_v6, 0  ;;  %v11751_v11 = vcombine.low %v6056_v52, %v6063_v12  ;;  %v5817_v14 = vpack.i.b16 %v14188_v62, %v14188_v62  ;;  %v6065_v6 = vpack.i.b16 %v6064_v32, %v6064_v32 }
 0x295   :  { %5430 = vmatpush1.bf16.msra.mxu0 %v5307_v60  ;;  %5488 = vmatprep.mubr.bf16.mxu1 %v16348_v0  ;;  %v5824_v62 = vpack.i.b16 %v14182_v28, %v14182_v28 }
 0x296   :  { %6114 = vrot.lane.b32.xlu1 %v11751_v11, %s12459_s16 }
 0x297   :  { %v5269_v55 = vpop.permute.xlu1 %5268  ;;  %v5271_v7 = vpop.permute.xlu0 %5270  ;;  %v5829_v28 = vrot.slane %v5824_v62, %v12577_v23 }
 0x298   :  { %11711 = vmatmul.mubr.msk.bf16.vlgmr.msra.gmra.mxu0 %vm641_vm0, %v14245_v41  ;;  %v5286_v18 = vsel %vm5278_vm8, %v5267_v39, %v5269_v55  ;;  %v5287_v35 = vsel %vm5278_vm8, %v5269_v55, %v5271_v7  ;;  %v5810_v39 = vpack.i.b16 %v14186_v2, %v14186_v2  ;;  %v6070_v2 = vrot.slane %v6065_v6, %v12577_v23  ;;  %v6951_v6 = vld [vmem:[#allocation3 + $0x8] sm:$0x22] }
 0x299   :  { %11712 = vmatprep.subr.msk.bf16.mxu1 %vm97_vm12, %v5286_v18  ;;  %5529 = vmatprep.mubr.bf16.mxu0 %v16348_v0  ;;  %v5319_v8 = vsel %vm97_vm12, %v5287_v35, 0  ;;  %v5838_v35 = vpack.i.b16 %v14190_v3, %v14190_v3 }
 0x29a   :  { %5471 = vmatpush1.bf16.msra.mxu1 %v5313_v10  ;;  %v5815_v18 = vrot.slane %v5810_v39, %v12577_v23  ;;  %v11752_v47 = vcombine.low %v6070_v2, %v6070_v2 }
 0x29c   :  { %6116 = vrot.lane.b32.xlu0 %v11752_v47, %s12459_s16 }
 0x29d   :  { %11713 = vmatmul.mubr.msk.bf16.vlgmr.msra.gmra.mxu1 %vm641_vm0, %v14245_v41 }
 0x29e   :  { %v5273_v54 = vpop.permute.xlu1 %5272  ;;  %5570 = vmatprep.mubr.bf16.mxu1 %v16348_v0  ;;  %v5275_v50 = vpop.permute.xlu0 %5274 }
 0x29f   :  { %v5288_v44 = vsel %vm5278_vm8, %v5271_v7, %v5273_v54  ;;  %v5289_v16 = vsel %vm5278_vm8, %v5273_v54, %v5275_v50 }
 0x2a0   :  { %11714 = vmatprep.subr.msk.bf16.mxu0 %vm97_vm12, %v5288_v44  ;;  %v5325_v24 = vsel %vm97_vm12, %v5289_v16, 0  ;;  %v5845_v44 = vpack.i.b16 %v14192_v29, %v14192_v29  ;;  %v5852_v16 = vpack.i.b16 %v14228_v20, %v14228_v20 }
 0x2a1   :  { %5512 = vmatpush1.bf16.msra.mxu0 %v5319_v8 }
 0x2a2   :  { %12201 = vmatprep.subr.bf16.mxu0 %v16346_v51 }
 0x2a4   :  { %v5277_v56 = vpop.permute.xlu1 %5276  ;;  %11715 = vmatmul.mubr.msk.bf16.vlgmr.msra.gmra.mxu0 %vm641_vm0, %v14245_v41 }
 0x2a5   :  { %v5290_v38 = vsel %vm5278_vm8, %v5275_v50, %v5277_v56  ;;  %v5331_v22 = vsel %vm97_vm12, %v5277_v56, 0  ;;  %12203 = vmatprep.mubr.msk.bf16.mxu0 %vm12471_vm2, %v16346_v51 }
 0x2a6   :  { %v3107_v42 = vpop.f32.mrf.mxu0  ;;  %11716 = vmatprep.subr.msk.bf16.mxu1 %vm97_vm12, %v5290_v38  ;;  %12202 = vmatpush3.bf16.msra.mxu0 %v5331_v22  ;;  %v5859_v38 = vpack.i.b16 %v14230_v33, %v14230_v33  ;;  %v5866_v22 = vpack.i.b16 %v14194_v40, %v14194_v40 }
 0x2a7   :  { %v14301_v1 = vadd.f32 %v3107_v42, %v14111_v61  ;;  %5553 = vmatpush1.bf16.msra.mxu1 %v5325_v24  ;;  %v5822_v61 = vrot.slane %v5817_v14, %v12577_v23  ;;  %v5894_v24 = vpack.i.b16 %v14287_v19, %v14287_v19  ;;  %v14374_v19 = vcombine.high %v6951_v6, %v6951_v6 }
 0x2a8   :  { %v3109_v60 = vpop.f32.mrf.mxu0  ;;  %v5864_v20 = vrot.slane %v5859_v38, %v12577_v23  ;;  %v5871_v33 = vrot.slane %v5866_v22, %v12577_v23 }
 0x2a9   :  { %v14308_v55 = vadd.f32 %v3109_v60, %v14119_v59  ;;  %v11739_v7 = vcombine.low %v5815_v18, %v5822_v61  ;;  %v5831_v59 = vpack.i.b16 %v14184_v31, %v14184_v31  ;;  %v5843_v31 = vrot.slane %v5838_v35, %v12577_v23  ;;  %v6950_v60 = vld [vmem:[#allocation3] sm:$0x22] }
 0x2aa   :  { %v3111_v10 = vpop.f32.mrf.mxu0  ;;  %11717 = vmatmul.mubr.msk.bf16.vlgmr.msra.gmra.mxu1 %vm641_vm0, %v14245_v41  ;;  %v14366_v2 = vcombine.low %v6950_v60, %v6950_v60  ;;  %v7012_v47 = vpack.i.b16 %v14374_v19, %v14374_v19 }
 0x2ab   :  { %6297 = vmatprep.mubr.bf16.mxu1 %v16348_v0  ;;  %5933 = vrot.lane.b32.xlu1 %v11739_v7, %s12460_s0  ;;  %v5836_v50 = vrot.slane %v5831_v59, %v12577_v23  ;;  %v5899_v10 = vrot.slane %v5894_v24, %v12577_v23 }
 0x2ac   :  { %v3112_v54 = vpop.f32.mrf.mxu0  ;;  %12204 = vmatmul.mubr.msk.bf16.vlgmr.msra.gmra.mxu0 %vm641_vm0, %v14245_v41  ;;  %v5850_v41 = vrot.slane %v5845_v44, %v12577_v23  ;;  %v6991_v59 = vpack.i.b16 %v14366_v2, %v14366_v2  ;;  %v6952_v44 = vld [vmem:[#allocation3 + $0x10] sm:$0x22] }
 0x2ad   :  { %6338 = vmatprep.mubr.bf16.mxu0 %v16348_v0  ;;  %v11740_v63 = vcombine.low %v5829_v28, %v5836_v50  ;;  %v11745_v62 = vcombine.low %v5899_v10, %v5899_v10  ;;  %v6953_v28 = vld [vmem:[#allocation3 + $0x18] sm:$0x22] }
 0x2ae   :  { %v3148_v3 = vpop.f32.mrf.mxu1  ;;  %v3189_v8 = vpop.f32.mrf.mxu0  ;;  %v11741_v56 = vcombine.low %v5843_v31, %v5850_v41  ;;  %v6996_v50 = vrot.slane %v6991_v59, %v12694_v4  ;;  %v14385_v31 = vcombine.low %v6952_v44, %v6952_v44  ;;  %v14403_v22 = vcombine.high %v6953_v28, %v6953_v28 }
 0x2af   :  { %v14335_v26 = vadd.f32 %v3148_v3, %v14134_v27  ;;  %v14338_v29 = vadd.f32 %v3189_v8, %v14137_v30  ;;  %v5873_v27 = vpack.i.b16 %v14208_v58, %v14208_v58  ;;  %v5857_v30 = vrot.slane %v5852_v16, %v12577_v23  ;;  %5935 = vrot.lane.b32.xlu0 %v11740_v63, %s12460_s0 }
 0x2b0   :  { %v3150_v57 = vpop.f32.mrf.mxu1  ;;  %v12181_v13 = vpop.f32.mrf.mxu0  ;;  %5937 = vrot.lane.b32.xlu1 %v11741_v56, %s12460_s0  ;;  %v5880_v58 = vpack.i.b16 %v14277_v37, %v14277_v37  ;;  %v14370_v37 = vcombine.high %v6950_v60, %v6950_v60  ;;  %v14387_v3 = vcombine.high %v6952_v44, %v6952_v44  ;;  %v14389_v8 = vcombine.low %v6953_v28, %v6953_v28 }
 0x2b1   :  { %v14349_v52 = vadd.f32 %v3150_v57, %v14141_v21  ;;  %v5878_v40 = vrot.slane %v5873_v27, %v12577_v23  ;;  %v5887_v21 = vpack.i.b16 %v14279_v48, %v14279_v48  ;;  %v11742_v39 = vcombine.low %v5857_v30, %v5864_v20  ;;  %v6954_v20 = vld [vmem:[#allocation3 + $0x20] sm:$0x22] }
 0x2b2   :  { %v3152_v12 = vpop.f32.mrf.mxu1  ;;  %v3192_v42 = vpop.f32.mrf.mxu0  ;;  %v5885_v18 = vrot.slane %v5880_v58, %v12577_v23  ;;  %v14372_v48 = vcombine.low %v6951_v6, %v6951_v6  ;;  %v6998_v35 = vpack.i.b16 %v14370_v37, %v14370_v37  ;;  %v7017_v57 = vrot.slane %v7012_v47, %v12694_v4 }
 0x2b3   :  { %v11743_v14 = vcombine.low %v5871_v33, %v5878_v40  ;;  %v5892_v61 = vrot.slane %v5887_v21, %v12577_v23  ;;  %5939 = vrot.lane.b32.xlu0 %v11742_v39, %s12460_s0  ;;  %v7019_v56 = vpack.i.b16 %v14385_v31, %v14385_v31  ;;  %v7026_v38 = vpack.i.b16 %v14387_v3, %v14387_v3 }
 0x2b4   :  { %v3153_v32 = vpop.f32.mrf.mxu1  ;;  %v12182_v11 = vpop.f32.mrf.mxu0  ;;  %v7005_v54 = vpack.i.b16 %v14372_v48, %v14372_v48  ;;  %v7003_v63 = vrot.slane %v6998_v35, %v12694_v4  ;;  %v7033_v42 = vpack.i.b16 %v14389_v8, %v14389_v8  ;;  %v7040_v58 = vpack.i.b16 %v14403_v22, %v14403_v22 }
 0x2b5   :  { %5941 = vrot.lane.b32.xlu1 %v11743_v14, %s12460_s0  ;;  %v11744_v7 = vcombine.low %v5885_v18, %v5892_v61  ;;  %v7031_v40 = vrot.slane %v7026_v38, %v12694_v4  ;;  %v14417_v11 = vcombine.low %v6954_v20, %v6954_v20  ;;  %v14419_v39 = vcombine.high %v6954_v20, %v6954_v20 }
 0x2b6   :  { %v7010_v16 = vrot.slane %v7005_v54, %v12694_v4  ;;  %v11819_v30 = vcombine.low %v6996_v50, %v7003_v63  ;;  %v7038_v32 = vrot.slane %v7033_v42, %v12694_v4  ;;  %v7045_v60 = vrot.slane %v7040_v58, %v12694_v4  ;;  %v14436_v54 = vld [vmem:[#allocation3 + $0x30] ss:$0 sps:$4 sm:$0x22]  }
 0x2b7   :  { %5943 = vrot.lane.b32.xlu0 %v11744_v7, %s12460_s0  ;;  %v7047_v61 = vpack.i.b16 %v14417_v11, %v14417_v11  ;;  %v7054_v10 = vpack.i.b16 %v14419_v39, %v14419_v39  ;;  %v6955_v7 = vld [vmem:[#allocation3 + $0x28] sm:$0x22]  ;;  %v7581_v42 = vshrl.u32 %v14370_v37, 16  ;;  %v7588_v20 = vshrl.u32 %v14372_v48, 16 }
 0x2b8   :  { %v11820_v12 = vcombine.low %v7010_v16, %v7017_v57  ;;  %v11822_v59 = vcombine.low %v7038_v32, %v7045_v60  ;;  %v14432_v35 = vcombine.low %v6955_v7, %v6955_v7  ;;  %v7602_v48 = vshrl.u32 %v14385_v31, 16 }
 0x2b9   :  { %5945 = vrot.lane.b32.xlu1 %v11745_v62, %s12460_s0  ;;  %v7052_v44 = vrot.slane %v7047_v61, %v12694_v4  ;;  %v7059_v28 = vrot.slane %v7054_v10, %v12694_v4 }
 0x2ba   :  { %v3529_v41 = vpop.f32.mrf.mxu1 }
 0x2bb   :  { %v14397_v13 = vadd.f32 %v3529_v41, %v14151_v49  ;;  %v7024_v49 = vrot.slane %v7019_v56, %v12694_v4  ;;  %7114 = vrot.lane.b32.xlu0 %v11819_v30, %s12461_s19  ;;  %v7075_v41 = vpack.i.b16 %v14436_v54, %v14436_v54  ;;  %v11823_v16 = vcombine.low %v7052_v44, %v7059_v28 }
 0x2bc   :  { %v3531_v27 = vpop.f32.mrf.mxu1  ;;  %v7574_v30 = vshrl.u32 %v14366_v2, 16  ;;  %v7589_v2 = vpack.i.b16 %v7588_v20, %v7588_v20  ;;  %v7603_v44 = vpack.i.b16 %v7602_v48, %v7602_v48 }
 0x2bd   :  { %v14408_v33 = vadd.f32 %v3531_v27, %v14157_v46  ;;  %7116 = vrot.lane.b32.xlu1 %v11820_v12, %s12461_s19  ;;  %v11821_v14 = vcombine.low %v7024_v49, %v7031_v40  ;;  %v7080_v27 = vrot.slane %v7075_v41, %v12694_v4  ;;  %v7595_v49 = vshrl.u32 %v14374_v19, 16 }
 0x2be   :  { %v3570_v21 = vpop.f32.mrf.mxu0  ;;  %v3533_v24 = vpop.f32.mrf.mxu1  ;;  %v7609_v19 = vshrl.u32 %v14387_v3, 16  ;;  %v7594_v10 = vrot.slane %v7589_v2, %v12694_v4  ;;  %v7623_v3 = vshrl.u32 %v14403_v22, 16  ;;  %v7608_v41 = vrot.slane %v7603_v44, %v12694_v4 }
 0x2bf   :  { %v14422_v46 = vadd.f32 %v3570_v21, %v14164_v34  ;;  %v14434_v34 = vcombine.high %v6955_v7, %v6955_v7  ;;  %7118 = vrot.lane.b32.xlu0 %v11821_v14, %s12461_s19  ;;  %v11825_v21 = vcombine.low %v7080_v27, %v7080_v27  ;;  %v7575_v24 = vpack.i.b16 %v7574_v30, %v7574_v30 }
 0x2c0   :  { %v3572_v6 = vpop.f32.mrf.mxu0  ;;  %v3534_v18 = vpop.f32.mrf.mxu1  ;;  %v7582_v14 = vpack.i.b16 %v7581_v42, %v7581_v42  ;;  %v7596_v60 = vpack.i.b16 %v7595_v49, %v7595_v49  ;;  %v7610_v28 = vpack.i.b16 %v7609_v19, %v7609_v19  ;;  %v7637_v22 = vshrl.u32 %v14419_v39, 16 }
 0x2c1   :  { %v14430_v62 = vadd.f32 %v3572_v6, %v14168_v43  ;;  %7120 = vrot.lane.b32.xlu1 %v11822_v59, %s12461_s19  ;;  %v7061_v43 = vpack.i.b16 %v14432_v35, %v14432_v35  ;;  %v7068_v50 = vpack.i.b16 %v14434_v34, %v14434_v34  ;;  %v7580_v37 = vrot.slane %v7575_v24, %v12694_v4 }
 0x2c2   :  { %v3574_v47 = vpop.f32.mrf.mxu0  ;;  %v7616_v18 = vshrl.u32 %v14389_v8, 16  ;;  %v7601_v7 = vrot.slane %v7596_v60, %v12694_v4  ;;  %v7644_v24 = vshrl.u32 %v14432_v35, 16 }
 0x2c3   :  { %v7066_v56 = vrot.slane %v7061_v43, %v12694_v4  ;;  %v7073_v38 = vrot.slane %v7068_v50, %v12694_v4 }
 0x2c4   :  { %v3575_v63 = vpop.f32.mrf.mxu0  ;;  %v7617_v31 = vpack.i.b16 %v7616_v18, %v7616_v18  ;;  %v11854_v43 = vcombine.low %v7594_v10, %v7601_v7  ;;  %v7645_v2 = vpack.i.b16 %v7644_v24, %v7644_v24 }
 0x2c5   :  { %v3611_v57 = vpop.f32.mrf.mxu1  ;;  %7122 = vrot.lane.b32.xlu1 %v11823_v16, %s12461_s19  ;;  %v11824_v58 = vcombine.low %v7066_v56, %v7073_v38  ;;  %v7615_v63 = vrot.slane %v7610_v28, %v12694_v4  ;;  %v7630_v38 = vshrl.u32 %v14417_v11, 16  ;;  %v7651_v11 = vshrl.u32 %v14434_v34, 16 }
 0x2c6   :  { %v14453_v12 = vadd.f32 %v3611_v57, %v14180_v9  ;;  %v7622_v16 = vrot.slane %v7617_v31, %v12694_v4  ;;  %v7624_v57 = vpack.i.b16 %v7623_v3, %v7623_v3 }
 0x2c7   :  { %v3613_v40 = vpop.f32.mrf.mxu1  ;;  %7124 = vrot.lane.b32.xlu0 %v11824_v58, %s12461_s19  ;;  %v11855_v30 = vcombine.low %v7608_v41, %v7615_v63  ;;  %v7631_v49 = vpack.i.b16 %v7630_v38, %v7630_v38  ;;  %v7652_v60 = vpack.i.b16 %v7651_v11, %v7651_v11 }
 0x2c8   :  { %v14460_v32 = vadd.f32 %v3613_v40, %v14197_v15  ;;  %v7587_v15 = vrot.slane %v7582_v14, %v12694_v4  ;;  %v7629_v42 = vrot.slane %v7624_v57, %v12694_v4  ;;  %v7638_v40 = vpack.i.b16 %v7637_v22, %v7637_v22 }
 0x2c9   :  { %v3652_v9 = vpop.f32.mrf.mxu0  ;;  %v3615_v6 = vpop.f32.mrf.mxu1  ;;  %7126 = vrot.lane.b32.xlu1 %v11825_v21, %s12461_s19 }
 0x2ca   :  { %v14468_v61 = vadd.f32 %v3652_v9, %v14213_v53  ;;  %v11853_v53 = vcombine.low %v7580_v37, %v7587_v15  ;;  %v11856_v21 = vcombine.low %v7622_v16, %v7629_v42  ;;  %v7643_v39 = vrot.slane %v7638_v40, %v12694_v4 }
 0x2cb   :  { %v3654_v59 = vpop.f32.mrf.mxu0  ;;  %v3616_v47 = vpop.f32.mrf.mxu1  ;;  %v7657_v37 = vrot.slane %v7652_v60, %v12694_v4 }
 0x2cc   :  { %v14476_v8 = vadd.f32 %v3654_v59, %v14218_v45  ;;  %7698 = vrot.lane.b32.xlu0 %v11853_v53, %s12462_s20 }
 0x2cd   :  { %v3656_v50 = vpop.f32.mrf.mxu0  ;;  %7700 = vrot.lane.b32.xlu1 %v11854_v43, %s12462_s20 }
 0x2ce   :  { %v3693_v56 = vpop.f32.mrf.mxu1 }
 0x2cf   :  { %v3789_v45 = vadd.f32 %v3693_v56, %v14301_v1  ;;  %v3657_v27 = vpop.f32.mrf.mxu0  ;;  %v7636_v1 = vrot.slane %v7631_v49, %v12694_v4 }
 0x2d0   :  { %v3695_v20 = vpop.f32.mrf.mxu1  ;;  %7702 = vrot.lane.b32.xlu0 %v11855_v30, %s12462_s20 }
 0x2d1   :  { %v3790_v58 = vadd.f32 %v3695_v20, %v14308_v55  ;;  %7704 = vrot.lane.b32.xlu1 %v11856_v21, %s12462_s20  ;;  %v11857_v6 = vcombine.low %v7636_v1, %v7643_v39  ;;  %v7650_v55 = vrot.slane %v7645_v2, %v12694_v4 }
 0x2d2   :  { %v3697_v14 = vpop.f32.mrf.mxu1 }
 0x2d3   :  { %v11858_v19 = vcombine.low %v7650_v55, %v7657_v37 }
 0x2d4   :  { %v3698_v9 = vpop.f32.mrf.mxu1 }
 0x2d5   :  { %7706 = vrot.lane.b32.xlu1 %v11857_v6, %s12462_s20  ;;  %7708 = vrot.lane.b32.xlu0 %v11858_v19, %s12462_s20 }
 0x2d6   :  { %v3775_v35 = vpop.f32.mrf.mxu1 }
 0x2d7   :  { %v3734_v48 = vpop.f32.mrf.mxu0  ;;  %v3793_v34 = vadd.f32 %v3775_v35, %v14338_v29 }
 0x2d8   :  { %v3791_v18 = vadd.f32 %v3734_v48, %v14335_v26  ;;  %v12187_v15 = vpop.f32.mrf.mxu1 }
 0x2d9   :  { %v3736_v10 = vpop.f32.mrf.mxu0 }
 0x2da   :  { %v3792_v7 = vadd.f32 %v3736_v10, %v14349_v52  ;;  %v3778_v59 = vpop.f32.mrf.mxu1 }
 0x2db   :  { %v3738_v47 = vpop.f32.mrf.mxu0 }
 0x2dc   :  { %v12188_v44 = vpop.f32.mrf.mxu1 }
 0x2dd   :  { %v3739_v28 = vpop.f32.mrf.mxu0 }
 0x2e1   :  { %v4155_v31 = vpop.f32.mrf.mxu0 }
 0x2e2   :  { %v14502_v3 = vadd.f32 %v4155_v31, %v14397_v13 }
 0x2e3   :  { %v4157_v29 = vpop.f32.mrf.mxu0 }
 0x2e4   :  { %v14505_v53 = vadd.f32 %v4157_v29, %v14408_v33 }
 0x2e5   :  { %v4159_v43 = vpop.f32.mrf.mxu0 }
 0x2e6   :  { %v4196_v26 = vpop.f32.mrf.mxu1 }
 0x2e7   :  { %v14508_v50 = vadd.f32 %v4196_v26, %v14422_v46  ;;  %v4160_v41 = vpop.f32.mrf.mxu0 }
 0x2e8   :  { %v4198_v63 = vpop.f32.mrf.mxu1 }
 0x2e9   :  { %v14511_v52 = vadd.f32 %v4198_v63, %v14430_v62 }
 0x2ea   :  { %v4200_v16 = vpop.f32.mrf.mxu1 }
 0x2ec   :  { %v4201_v57 = vpop.f32.mrf.mxu1 }
 0x2ed   :  { %v4237_v56 = vpop.f32.mrf.mxu0 }
 0x2ee   :  { %v14514_v13 = vadd.f32 %v4237_v56, %v14453_v12 }
 0x2ef   :  { %v4239_v38 = vpop.f32.mrf.mxu0 }
 0x2f0   :  { %v14517_v33 = vadd.f32 %v4239_v38, %v14460_v32 }
 0x2f1   :  { %v4278_v22 = vpop.f32.mrf.mxu1  ;;  %v4241_v27 = vpop.f32.mrf.mxu0 }
 0x2f2   :  { %v14520_v46 = vadd.f32 %v4278_v22, %v14468_v61 }
 0x2f3   :  { %v4280_v30 = vpop.f32.mrf.mxu1  ;;  %v4242_v42 = vpop.f32.mrf.mxu0 }
 0x2f4   :  { %v14523_v62 = vadd.f32 %v4280_v30, %v14476_v8 }
 0x2f5   :  { %v4282_v20 = vpop.f32.mrf.mxu1 }
 0x2f6   :  { %v4319_v49 = vpop.f32.mrf.mxu0 }
 0x2f7   :  { %v14525_v40 = vadd.f32 %v4319_v49, %v3789_v45  ;;  %v4283_v12 = vpop.f32.mrf.mxu1  ;;  %v8158_v49 = vld [vmem:[#allocation3] sm:$0x44] }
 0x2f8   :  { %v4321_v21 = vpop.f32.mrf.mxu0 }
 0x2f9   :  { %v14527_v24 = vadd.f32 %v4321_v21, %v3790_v58  ;;  %v14548_v21 = vpop.permute.xlu0 %5635 }
 0x2fa   :  { %v4323_v32 = vpop.f32.mrf.mxu0  ;;  %v4360_v11 = vpop.f32.mrf.mxu1 }
 0x2fb   :  { %v14529_v14 = vadd.f32 %v4360_v11, %v3791_v18 }
 0x2fc   :  { %v4324_v1 = vpop.f32.mrf.mxu0  ;;  %v4362_v61 = vpop.f32.mrf.mxu1 }
 0x2fd   :  { %v14531_v39 = vadd.f32 %v4362_v61, %v3792_v7  ;;  %v14551_v61 = vcombine.low %v8158_v49, %v8158_v49 }
 0x2fe   :  { %v4401_v2 = vpop.f32.mrf.mxu0  ;;  %v4364_v60 = vpop.f32.mrf.mxu1 }
 0x2ff   :  { %v14533_v8 = vadd.f32 %v4401_v2, %v3793_v34  ;;  %v14553_v2 = vcombine.high %v8158_v49, %v8158_v49 }
 0x300   :  { %v4365_v9 = vpop.f32.mrf.mxu1  ;;  %v12193_v6 = vpop.f32.mrf.mxu0 }
 0x301   :  { %v14556_v6 = vpop.permute.xlu1 %5654 }
 0x302   :  { %v4404_v45 = vpop.f32.mrf.mxu0 }
 0x304   :  { %v12194_v55 = vpop.f32.mrf.mxu0 }
 0x325   :  { %v4741_v37 = vpop.f32.mrf.mxu1 }
 0x326   :  { %v4993_v20 = vadd.f32 %v4741_v37, %v14502_v3 }
 0x327   :  { %v4743_v35 = vpop.f32.mrf.mxu1 }
 0x328   :  { %v4994_v32 = vadd.f32 %v4743_v35, %v14505_v53 }
 0x329   :  { %v4745_v58 = vpop.f32.mrf.mxu1  ;;  %v4782_v48 = vpop.f32.mrf.mxu0 }
 0x32a   :  { %v4995_v60 = vadd.f32 %v4782_v48, %v14508_v50  ;;  %v8206_v50 = vpack.i.b16 %v14553_v2, %v14553_v2  ;;  %v7658_v48 = vshrl.u32 %v14436_v54, 16 }
 0x32b   :  { %v4746_v19 = vpop.f32.mrf.mxu1  ;;  %v4784_v15 = vpop.f32.mrf.mxu0 }
 0x32c   :  { %v4996_v37 = vadd.f32 %v4784_v15, %v14511_v52 }
 0x32d   :  { %v4823_v18 = vpop.f32.mrf.mxu1  ;;  %v4786_v10 = vpop.f32.mrf.mxu0 }
 0x32e   :  { %v4997_v35 = vadd.f32 %v4823_v18, %v14514_v13 }
 0x32f   :  { %v4825_v59 = vpop.f32.mrf.mxu1  ;;  %v4787_v47 = vpop.f32.mrf.mxu0 }
 0x330   :  { %v8199_v47 = vpack.i.b16 %v14551_v61, %v14551_v61  ;;  %v4998_v13 = vadd.f32 %v4825_v59, %v14517_v33 }
 0x331   :  { %v4827_v7 = vpop.f32.mrf.mxu1 }
 0x332   :  { %v8204_v54 = vrot.slane %v8199_v47, %v12771_v36 }
 0x333   :  { %v4828_v44 = vpop.f32.mrf.mxu1 }
 0x335   :  { %v4864_v28 = vpop.f32.mrf.mxu0 }
 0x336   :  { %v4999_v59 = vadd.f32 %v4864_v28, %v14520_v46 }
 0x337   :  { %v14535_v31 = vpop.f32.mrf.mxu0 }
 0x339   :  { %v4868_v34 = vpop.f32.mrf.mxu0 }
 0x33b   :  { %v4869_v29 = vpop.f32.mrf.mxu0 }
 0x33c   :  { %v14537_v43 = vpop.f32.mrf.mxu1 }
 0x33e   :  { %v14539_v26 = vpop.f32.mrf.mxu1 }
 0x340   :  { %v4909_v41 = vpop.f32.mrf.mxu1 }
 0x342   :  { %v4910_v63 = vpop.f32.mrf.mxu1  ;;  %v14541_v16 = vpop.f32.mrf.mxu0 }
 0x344   :  { %v14543_v57 = vpop.f32.mrf.mxu0  ;;  %v14545_v56 = vpop.f32.mrf.mxu1 }
 0x346   :  { %v4950_v38 = vpop.f32.mrf.mxu0  ;;  %v12199_v22 = vpop.f32.mrf.mxu1 }
 0x347   :  { %v8160_v38 = vld [vmem:[#allocation3 + $0x10] sm:$0x44] }
 0x348   :  { %v4951_v27 = vpop.f32.mrf.mxu0  ;;  %v4990_v30 = vpop.f32.mrf.mxu1 }
 0x349   :  { %v8211_v30 = vrot.slane %v8206_v50, %v12771_v36 }
 0x34a   :  { %v12200_v42 = vpop.f32.mrf.mxu1 }
 0x34b   :  { %v7659_v42 = vpack.i.b16 %v7658_v48, %v7658_v48 }
 0x34d   :  { %v7664_v47 = vrot.slane %v7659_v42, %v12694_v4  ;;  %v8782_v4 = vshrl.u32 %v14551_v61, 16 }
 0x350   :  { %v5367_v12 = vpop.f32.mrf.mxu0 }
 0x351   :  { %v5619_v11 = vadd.f32 %v5367_v12, %v4993_v20  ;;  %v8163_v20 = vld [vmem:[#allocation3 + $0x28] sm:$0x44] }
 0x352   :  { %v5369_v1 = vpop.f32.mrf.mxu0 }
 0x353   :  { %v5620_v9 = vadd.f32 %v5369_v1, %v4994_v32  ;;  %v5638_v45 = vmul.f32 %v14548_v21, %v5619_v11  ;;  %v14579_v1 = vcombine.low %v8160_v38, %v8160_v38 }
 0x354   :  { %v5371_v3 = vpop.f32.mrf.mxu0  ;;  %v5408_v55 = vpop.f32.mrf.mxu1 }
 0x355   :  { %v5621_v58 = vadd.f32 %v5408_v55, %v4995_v60  ;;  %v5639_v53 = vmul.f32 %v14548_v21, %v5620_v9  ;;  %v5657_v52 = vadd.f32 %v14556_v6, %v5638_v45  ;;  %v14581_v60 = vcombine.high %v8160_v38, %v8160_v38 }
 0x356   :  { %v5372_v19 = vpop.f32.mrf.mxu0  ;;  %v5410_v10 = vpop.f32.mrf.mxu1  ;;  %v14584_v55 = vcombine.low %v8163_v20, %v8163_v20 }
 0x357   :  { %v5640_v7 = vmul.f32 %v14548_v21, %v5621_v58  ;;  %v5622_v44 = vadd.f32 %v5410_v10, %v4996_v37  ;;  %v5658_v15 = vadd.f32 %v14556_v6, %v5639_v53  ;;  %v5000_v37 = vadd.f32 %v14535_v31, %v14523_v62 }
 0x358   :  { %v5412_v34 = vpop.f32.mrf.mxu1  ;;  %v5449_v29 = vpop.f32.mrf.mxu0  ;;  %v11900_v10 = vcombine.low %v8204_v54, %v8211_v30  ;;  %v8227_v62 = vpack.i.b16 %v14579_v1, %v14579_v1  ;;  %v8234_v31 = vpack.i.b16 %v14581_v60, %v14581_v60 }
 0x359   :  { %v5641_v18 = vmul.f32 %v14548_v21, %v5622_v44  ;;  %v5623_v41 = vadd.f32 %v5449_v29, %v4997_v35  ;;  %v12110_v63 = vpack.c.bf16 %v5658_v15, %v5657_v52  ;;  %v5659_v49 = vadd.f32 %v14556_v6, %v5640_v7 }
 0x35a   :  { %v5413_v22 = vpop.f32.mrf.mxu1  ;;  %v5451_v27 = vpop.f32.mrf.mxu0  ;;  %v14588_v35 = vcombine.high %v8163_v20, %v8163_v20  ;;  %v8269_v52 = vpack.i.b16 %v14584_v55, %v14584_v55  ;;  %v8789_v29 = vshrl.u32 %v14553_v2, 16  ;;  %v8239_v61 = vrot.slane %v8234_v31, %v12771_v36 }
 0x35b   :  { %v5660_v12 = vadd.f32 %v14556_v6, %v5641_v18  ;;  %v5642_v32 = vmul.f32 %v14548_v21, %v5623_v41  ;;  %v5624_v33 = vadd.f32 %v5451_v27, %v4998_v13  ;;  %5716 = vrot.lane.b32.xlu1 %v12110_v63, %s12457_s29  ;;  %v5001_v13 = vadd.f32 %v14537_v43, %v14525_v40  ;;  %v8159_v43 = vld [vmem:[#allocation3 + $0x8] sm:$0x44] }
 0x35c   :  { %v5453_v11 = vpop.f32.mrf.mxu0  ;;  %v8276_v34 = vpack.i.b16 %v14588_v35, %v14588_v35  ;;  %v11859_v18 = vcombine.low %v7664_v47, %v7664_v47  ;;  %v8232_v27 = vrot.slane %v8227_v62, %v12771_v36  ;;  %v5002_v2 = vadd.f32 %v14539_v26, %v14527_v24 }
 0x35d   :  { %v12111_v9 = vpack.c.bf16 %v5660_v12, %v5659_v49  ;;  %v5643_v45 = vmul.f32 %v14548_v21, %v5624_v33  ;;  %v5490_v3 = vpop.f32.mrf.mxu1  ;;  %v5661_v46 = vadd.f32 %v14556_v6, %v5642_v32  ;;  %v8274_v40 = vrot.slane %v8269_v52, %v12771_v36  ;;  %v8162_v52 = vld [vmem:[#allocation3 + $0x20] sm:$0x44] }
 0x35e   :  { %v5625_v58 = vadd.f32 %v5490_v3, %v4999_v59  ;;  %v5454_v53 = vpop.f32.mrf.mxu0  ;;  %v8281_v20 = vrot.slane %v8276_v34, %v12771_v36  ;;  %v8783_v49 = vpack.i.b16 %v8782_v4, %v8782_v4  ;;  %v8790_v12 = vpack.i.b16 %v8789_v29, %v8789_v29  ;;  %v8161_v3 = vld [vmem:[#allocation3 + $0x18] sm:$0x44] }
 0x35f   :  { %v5662_v28 = vadd.f32 %v14556_v6, %v5643_v45  ;;  %v5492_v19 = vpop.f32.mrf.mxu1  ;;  %5718 = vrot.lane.b32.xlu0 %v12111_v9, %s12457_s29  ;;  %v11902_v11 = vcombine.low %v8232_v27, %v8239_v61  ;;  %v14621_v24 = vcombine.low %v8159_v43, %v8159_v43  ;;  %v14623_v26 = vcombine.high %v8159_v43, %v8159_v43 }
 0x360   :  { %v5644_v50 = vmul.f32 %v14548_v21, %v5625_v58  ;;  %v5626_v48 = vadd.f32 %v5492_v19, %v5000_v37  ;;  %v5003_v9 = vadd.f32 %v14541_v16, %v14529_v14  ;;  %v5004_v37 = vadd.f32 %v14543_v57, %v14531_v39 }
 0x361   :  { %v12112_v7 = vpack.c.bf16 %v5662_v28, %v5661_v46  ;;  %v5494_v44 = vpop.f32.mrf.mxu1  ;;  %v11905_v46 = vcombine.low %v8274_v40, %v8281_v20  ;;  %v8788_v28 = vrot.slane %v8783_v49, %v12771_v36  ;;  %v8795_v19 = vrot.slane %v8790_v12, %v12771_v36 }
 0x362   :  { %v5645_v15 = vmul.f32 %v14548_v21, %v5626_v48  ;;  %v5663_v63 = vadd.f32 %v14556_v6, %v5644_v50  ;;  %v8213_v39 = vpack.i.b16 %v14621_v24, %v14621_v24  ;;  %v8220_v57 = vpack.i.b16 %v14623_v26, %v14623_v26 }
 0x363   :  { %8322 = vrot.lane.b32.xlu0 %v11900_v10, %s12457_s29  ;;  %5720 = vrot.lane.b32.xlu1 %v12112_v7, %s12457_s29  ;;  %v5495_v41 = vpop.f32.mrf.mxu1  ;;  %v5005_v10 = vadd.f32 %v14545_v56, %v14533_v8  ;;  %v14641_v62 = vcombine.low %v8161_v3, %v8161_v3  ;;  %v14643_v31 = vcombine.high %v8161_v3, %v8161_v3  ;;  %v14679_v3 = vpop.permute.xlu1 %6104 }
 0x364   :  { %v5664_v38 = vadd.f32 %v14556_v6, %v5645_v15  ;;  %v5531_v22 = vpop.f32.mrf.mxu0  ;;  %v8225_v41 = vrot.slane %v8220_v57, %v12771_v36 }
 0x365   :  { %v5627_v54 = vadd.f32 %v5531_v22, %v5001_v13  ;;  %v11934_v13 = vcombine.low %v8788_v28, %v8795_v19  ;;  %v14689_v19 = vpop.permute.xlu0 %6106 }
 0x366   :  { %v12113_v30 = vpack.c.bf16 %v5664_v38, %v5663_v63  ;;  %v5533_v42 = vpop.f32.mrf.mxu0  ;;  %v8241_v63 = vpack.i.b16 %v14641_v62, %v14641_v62  ;;  %v8248_v38 = vpack.i.b16 %v14643_v31, %v14643_v31 }
 0x367   :  { %v5646_v32 = vmul.f32 %v14548_v21, %v5627_v54  ;;  %v5628_v33 = vadd.f32 %v5533_v42, %v5002_v2  ;;  %7710 = vrot.lane.b32.xlu1 %v11859_v18, %s12462_s20  ;;  %v8218_v18 = vrot.slane %v8213_v39, %v12771_v36  ;;  %v14658_v2 = vcombine.low %v8162_v52, %v8162_v52 }
 0x368   :  { %v5535_v59 = vpop.f32.mrf.mxu0  ;;  %5722 = vrot.lane.b32.xlu0 %v12113_v30, %s12457_s29  ;;  %v14660_v54 = vcombine.high %v8162_v52, %v8162_v52  ;;  %v8246_v20 = vrot.slane %v8241_v63, %v12771_v36  ;;  %v8253_v49 = vrot.slane %v8248_v38, %v12771_v36 }
 0x369   :  { %v5647_v45 = vmul.f32 %v14548_v21, %v5628_v33  ;;  %v5665_v47 = vadd.f32 %v14556_v6, %v5646_v32  ;;  %v11901_v42 = vcombine.low %v8218_v18, %v8225_v41  ;;  %v8255_v12 = vpack.i.b16 %v14658_v2, %v14658_v2  ;;  %v14671_v33 = vld [vmem:[#allocation3 + $0x30] ss:$0 sps:$4 sm:$0x44]  }
 0x36a   :  { %v5536_v58 = vpop.f32.mrf.mxu0  ;;  %v5572_v53 = vpop.f32.mrf.mxu1  ;;  %v8262_v32 = vpack.i.b16 %v14660_v54, %v14660_v54  ;;  %v11903_v59 = vcombine.low %v8246_v20, %v8253_v49 }
 0x36b   :  { %v5666_v14 = vadd.f32 %v14556_v6, %v5647_v45  ;;  %v5629_v16 = vadd.f32 %v5572_v53, %v5003_v9  ;;  %v8283_v45 = vpack.i.b16 %v14671_v33, %v14671_v33 }
 0x36c   :  { %v5574_v50 = vpop.f32.mrf.mxu1  ;;  %v5613_v48 = vpop.f32.mrf.mxu0  ;;  %8326 = vrot.lane.b32.xlu0 %v11902_v11, %s12457_s29  ;;  %v8260_v11 = vrot.slane %v8255_v12, %v12771_v36  ;;  %v8267_v9 = vrot.slane %v8262_v32, %v12771_v36 }
 0x36d   :  { %v12114_v8 = vpack.c.bf16 %v5666_v14, %v5665_v47  ;;  %v5648_v56 = vmul.f32 %v14548_v21, %v5629_v16  ;;  %v5630_v7 = vadd.f32 %v5574_v50, %v5004_v37  ;;  %v5631_v44 = vadd.f32 %v5613_v48, %v5005_v10  ;;  %v14693_v47 = vpop.permute.xlu0 %6108 }
 0x36e   :  { %v5576_v15 = vpop.f32.mrf.mxu1  ;;  %v12205_v34 = vpop.f32.mrf.mxu0  ;;  %v11904_v37 = vcombine.low %v8260_v11, %v8267_v9  ;;  %v8288_v58 = vrot.slane %v8283_v45, %v12771_v36 }
 0x36f   :  { %v5649_v4 = vmul.f32 %v14548_v21, %v5630_v7  ;;  %v5650_v29 = vmul.f32 %v14548_v21, %v5631_v44  ;;  %5724 = vrot.lane.b32.xlu1 %v12114_v8, %s12457_s29  ;;  %v5667_v61 = vadd.f32 %v14556_v6, %v5648_v56 }
 0x370   :  { %8332 = vrot.lane.b32.xlu0 %v11905_v46, %s12457_s29  ;;  %v5577_v22 = vpop.f32.mrf.mxu1  ;;  %v5616_v27 = vpop.f32.mrf.mxu0  ;;  %v11906_v53 = vcombine.low %v8288_v58, %v8288_v58 }
 0x371   :  { %v5668_v21 = vadd.f32 %v14556_v6, %v5649_v4  ;;  %v5669_v40 = vadd.f32 %v14556_v6, %v5650_v29  ;;  %v14684_v46 = vpop.permute.xlu1 %6112  ;;  %v14697_v16 = vpop.permute.xlu0 %6110 }
 0x372   :  { %v12206_v43 = vpop.f32.mrf.mxu0 }
 0x373   :  { %v12115_v30 = vpack.c.bf16 %v5668_v21, %v5667_v61  ;;  %v12116_v6 = vpack.c.bf16 %v5669_v40, %v5669_v40 }
 0x374   :  { %8906 = vrot.lane.b32.xlu0 %v11934_v13, %s12466_s24 }
 0x375   :  { %5726 = vrot.lane.b32.xlu1 %v12115_v30, %s12457_s29  ;;  %v14687_v28 = vpop.permute.xlu1 %6114  ;;  %v14701_v48 = vpop.permute.xlu0 %6116  ;;  %v6118_v30 = vrot.slane %v14679_v3, 4 }
 0x377   :  { %v6124_v25 = vsel %vm540_vm9, %v6118_v30, %v14679_v3 }
 0x378   :  { %5728 = vrot.lane.b32.xlu0 %v12116_v6, %s12457_s29 }
 0x379   :  { %8324 = vrot.lane.b32.xlu1 %v11901_v42, %s12457_s29  ;;  %v14691_v10 = vpop.permute.xlu1 %5933  ;;  %v14705_v57 = vpop.permute.xlu0 %5935 }
 0x37a   :  { %v5947_v32 = vrot.slane %v14691_v10, 4  ;;  %v5948_v5 = vrot.slane %v14705_v57, 4 }
 0x37d   :  { %8328 = vrot.lane.b32.xlu1 %v11903_v59, %s12457_s29  ;;  %v14695_v14 = vpop.permute.xlu1 %5937  ;;  %v14709_v56 = vpop.permute.xlu0 %5939 }
 0x381   :  { %8330 = vrot.lane.b32.xlu1 %v11904_v37, %s12457_s29  ;;  %v14699_v50 = vpop.permute.xlu1 %5941  ;;  %v14713_v44 = vpop.permute.xlu0 %5943  ;;  %v5953_v37 = vsel %vm368_vm11, %v5947_v32, %v14691_v10 }
 0x385   :  { %8334 = vrot.lane.b32.xlu1 %v11906_v53, %s12457_s29  ;;  %v14703_v39 = vpop.permute.xlu1 %5945  ;;  %v14717_v15 = vpop.permute.xlu0 %7114  ;;  %v6120_v53 = vrot.slane %v14693_v47, 4 }
 0x389   :  { %v14707_v8 = vpop.permute.xlu1 %7116  ;;  %v14721_v4 = vpop.permute.xlu0 %7118 }
 0x38d   :  { %v14711_v7 = vpop.permute.xlu1 %7120  ;;  %v14723_v29 = vpop.permute.xlu0 %7124 }
 0x391   :  { %v14715_v52 = vpop.permute.xlu1 %7122  ;;  %v14727_v18 = vpop.permute.xlu0 %7698 }
 0x395   :  { %v14719_v34 = vpop.permute.xlu1 %7126  ;;  %v14731_v63 = vpop.permute.xlu0 %7702 }
 0x399   :  { %v14725_v13 = vpop.permute.xlu1 %7700  ;;  %v14735_v22 = vpop.permute.xlu0 %7708 }
 0x39d   :  { %v14729_v41 = vpop.permute.xlu1 %7704 }
 0x3a1   :  { %v14733_v38 = vpop.permute.xlu1 %7706 }
 0x3cd   :  { %v5717_v27 = vpop.permute.xlu1 %5716 }
 0x3ce   :  { %v5730_v61 = vrot.slane %v5717_v27, 4 }
 0x3d0   :  { %v5736_v21 = vsel %vm95_vm3, %v5730_v61, %v5717_v27 }
 0x3d1   :  { %5755 = vst.msk [vmem:[#allocation2] sm:$0xff] %vm12837_vm4, %v5736_v21  ;;  %v5719_v40 = vpop.permute.xlu0 %5718 }
 0x3d2   :  { %v5731_v43 = vrot.slane %v5719_v40, 4 }
 0x3d4   :  { %v5737_v42 = vsel %vm97_vm12, %v5730_v61, %v5731_v43 }
 0x3d5   :  { %v14743_v20 = vsel %vm95_vm3, %v5737_v42, %v5719_v40  ;;  %v5721_v49 = vpop.permute.xlu1 %5720  ;;  %v14745_v12 = vpop.permute.xlu0 %8322  ;;  %v6119_v40 = vrot.slane %v14689_v19, 4 }
 0x3d6   :  { %5756 = vst [vmem:[#allocation2 + $0x8] sm:$0xff] %v14743_v20  ;;  %v5732_v6 = vrot.slane %v5721_v49, 4 }
 0x3d8   :  { %v5739_v59 = vsel %vm97_vm12, %v5731_v43, %v5732_v6  ;;  %v14752_v11 = vld [vmem:[#allocation2] sm:$0xff]  ;;  %v16350_v43 = vrot.slane %v14717_v15, 4 }
 0x3d9   :  { %v14755_v9 = vsel %vm95_vm3, %v5739_v59, %v5721_v49  ;;  %v6143_v45 = vmul.bf16 %v6124_v25, %v14752_v11  ;;  %v14762_v27 = vpop.permute.xlu1 %7710  ;;  %v5972_v21 = vmul.bf16 %v5953_v37, %v14752_v11  ;;  %v6127_v37 = vsel %vm97_vm12, %v6119_v40, %v6120_v53 }
 0x3da   :  { %5757 = vst [vmem:[#allocation2 + $0x10] sm:$0xff] %v14755_v9  ;;  %v5723_v58 = vpop.permute.xlu0 %5722  ;;  %v7134_v10 = vsel %vm1555_vm13, %v16350_v43, %v14717_v15 }
 0x3db   :  { %v5733_v3 = vrot.slane %v5723_v58, 4  ;;  %v11755_v61 = vcombine.high %v6143_v45, %v6143_v45  ;;  %v11754_v42 = vcombine.low %v6143_v45, %v6143_v45  ;;  %v11781_v45 = vcombine.high %v5972_v21, %v5972_v21 }
 0x3dc   :  { %v11780_v51 = vcombine.low %v5972_v21, %v5972_v21 }
 0x3dd   :  { %v5741_v49 = vsel %vm97_vm12, %v5732_v6, %v5733_v3  ;;  %6187 = vrot.lane.b32.xlu1 %v11755_v61, %s12463_s21  ;;  %6185 = vrot.lane.b32.xlu0 %v11754_v42, %s12463_s21  ;;  %v7153_v6 = vmul.bf16 %v7134_v10, %v14752_v11  ;;  %v6125_v61 = vsel %vm97_vm12, %v6118_v30, %v6119_v40 }
 0x3de   :  { %v14774_v25 = vsel %vm95_vm3, %v5741_v49, %v5723_v58  ;;  %v14777_v59 = vpop.permute.xlu0 %8326  ;;  %v6128_v58 = vsel %vm540_vm9, %v6127_v37, %v14693_v47  ;;  %v6126_v43 = vsel %vm540_vm9, %v6125_v61, %v14689_v19  ;;  %v16354_v47 = vrot.slane %v14697_v16, 4 }
 0x3df   :  { %5758 = vst [vmem:[#allocation2 + $0x18] sm:$0xff] %v14774_v25  ;;  %v11828_v10 = vcombine.high %v7153_v6, %v7153_v6  ;;  %v6145_v30 = vmul.bf16 %v6128_v58, %v14755_v9  ;;  %v11827_v40 = vcombine.low %v7153_v6, %v7153_v6  ;;  %v5949_v37 = vrot.slane %v14695_v14, 4 }
 0x3e1   :  { %6586 = vrot.lane.b32.xlu1 %v11781_v45, %s12464_s22  ;;  %v5725_v0 = vpop.permute.xlu1 %5724  ;;  %6584 = vrot.lane.b32.xlu0 %v11780_v51, %s12464_s22  ;;  %v6144_v45 = vmul.bf16 %v6126_v43, %v14743_v20  ;;  %v5954_v43 = vsel %vm97_vm12, %v5947_v32, %v5948_v5  ;;  %v11758_v61 = vcombine.low %v6145_v30, %v6145_v30 }
 0x3e2   :  { %v5734_v42 = vrot.slane %v5725_v0, 4  ;;  %v14787_v49 = vpop.permute.xlu0 %8332 }
 0x3e3   :  { %v11756_v58 = vcombine.low %v6144_v45, %v6144_v45 }
 0x3e4   :  { %v5743_v21 = vsel %vm97_vm12, %v5733_v3, %v5734_v42  ;;  %v6129_v3 = vsel %vm97_vm12, %v6120_v53, %v16354_v47 }
 0x3e5   :  { %v14797_v51 = vsel %vm95_vm3, %v5743_v21, %v5725_v0  ;;  %7197 = vrot.lane.b32.xlu1 %v11828_v10, %s12465_s23  ;;  %7195 = vrot.lane.b32.xlu0 %v11827_v40, %s12465_s23  ;;  %v6130_v10 = vsel %vm540_vm9, %v6129_v3, %v14697_v16  ;;  %v5955_v21 = vsel %vm368_vm11, %v5954_v43, %v14705_v57  ;;  %v7129_v3 = vrot.slane %v14707_v8, 4 }
 0x3e6   :  { %5759 = vst [vmem:[#allocation2 + $0x20] sm:$0xff] %v14797_v51  ;;  %v14803_v19 = vpop.permute.xlu0 %8906  ;;  %v5956_v40 = vsel %vm97_vm12, %v5948_v5, %v5949_v37  ;;  %v11757_v5 = vcombine.high %v6144_v45, %v6144_v45  ;;  %v5973_v57 = vmul.bf16 %v5955_v21, %v14743_v20 }
 0x3e7   :  { %16360 = vst [vmem:[#allocation8_spill] sm:$0xff] %v14803_v19  ;;  %v5727_v6 = vpop.permute.xlu1 %5726  ;;  %v11759_v19 = vcombine.high %v6145_v30, %v6145_v30 }
 0x3e8   :  { %v5735_v0 = vrot.slane %v5727_v6, 4 }
 0x3e9   :  { %6193 = vrot.lane.b32.xlu1 %v11758_v61, %s12463_s21  ;;  %6189 = vrot.lane.b32.xlu0 %v11756_v58, %s12463_s21  ;;  %v6146_v61 = vmul.bf16 %v6130_v10, %v14774_v25  ;;  %v11783_v10 = vcombine.high %v5973_v57, %v5973_v57 }
 0x3ea   :  { %v5745_v23 = vsel %vm97_vm12, %v5734_v42, %v5735_v0  ;;  %v5729_v53 = vpop.permute.xlu0 %5728  ;;  %v5950_v42 = vrot.slane %v14709_v56, 4 }
 0x3eb   :  { %v14818_v32 = vsel %vm95_vm3, %v5745_v23, %v5727_v6  ;;  %v5747_v47 = vsel %vm95_vm3, %v5735_v0, %v5729_v53  ;;  %v5957_v23 = vsel %vm368_vm11, %v5956_v40, %v14695_v14  ;;  %v11761_v30 = vcombine.high %v6146_v61, %v6146_v61 }
 0x3ec   :  { %5760 = vst [vmem:[#allocation2 + $0x28] sm:$0xff] %v14818_v32  ;;  %5761 = vst.msk [vmem:[#allocation2 + $0x30] sm:$0xf] %vm175_vm10, %v5747_v47  ;;  %v5974_v43 = vmul.bf16 %v5957_v23, %v14755_v9  ;;  %v16361_v6 = vrot.slane %v14717_v15, 4  ;;  %v11782_v47 = vcombine.low %v5973_v57, %v5973_v57  ;;  %v5958_v14 = vsel %vm97_vm12, %v5949_v37, %v5950_v42 }
 0x3ed   :  { %6195 = vrot.lane.b32.xlu1 %v11759_v19, %s12463_s21  ;;  %6191 = vrot.lane.b32.xlu0 %v11757_v5, %s12463_s21  ;;  %v7130_v19 = vrot.slane %v14721_v4, 4  ;;  %v5959_v21 = vsel %vm368_vm11, %v5958_v14, %v14709_v56  ;;  %v7131_v57 = vrot.slane %v14711_v7, 4  ;;  %v16362_v14 = vrot.slane %v14697_v16, 4 }
 0x3ee   :  { %v7135_v0 = vsel %vm97_vm12, %v16361_v6, %v7129_v3  ;;  %v11784_v58 = vcombine.low %v5974_v43, %v5974_v43  ;;  %v11785_v53 = vcombine.high %v5974_v43, %v5974_v43  ;;  %v5975_v37 = vmul.bf16 %v5959_v21, %v14774_v25 }
 0x3ef   :  { %v7136_v45 = vsel %vm1555_vm13, %v7135_v0, %v14707_v8  ;;  %v7137_v40 = vsel %vm97_vm12, %v7129_v3, %v7130_v19  ;;  %v6122_v3 = vrot.slane %v14684_v46, 4  ;;  %v6123_v43 = vrot.slane %v14687_v28, 4 }
 0x3f0   :  { %v7154_v15 = vmul.bf16 %v7136_v45, %v14743_v20  ;;  %v7138_v8 = vsel %vm1555_vm13, %v7137_v40, %v14721_v4  ;;  %v11787_v23 = vcombine.high %v5975_v37, %v5975_v37  ;;  %v7139_v4 = vsel %vm97_vm12, %v7130_v19, %v7131_v57 }
 0x3f1   :  { %6199 = vrot.lane.b32.xlu1 %v11761_v30, %s12463_s21  ;;  %6588 = vrot.lane.b32.xlu0 %v11782_v47, %s12464_s22  ;;  %v7155_v30 = vmul.bf16 %v7138_v8, %v14755_v9  ;;  %v11760_v47 = vcombine.low %v6146_v61, %v6146_v61  ;;  %v6131_v45 = vsel %vm97_vm12, %v16362_v14, %v6122_v3  ;;  %v5951_v61 = vrot.slane %v14699_v50, 4 }
 0x3f2   :  { %v11829_v5 = vcombine.low %v7154_v15, %v7154_v15  ;;  %v11830_v6 = vcombine.high %v7154_v15, %v7154_v15  ;;  %v5952_v15 = vrot.slane %v14713_v44, 4  ;;  %v11786_v40 = vcombine.low %v5975_v37, %v5975_v37 }
 0x3f3   :  { %v11831_v0 = vcombine.low %v7155_v30, %v7155_v30  ;;  %v11832_v21 = vcombine.high %v7155_v30, %v7155_v30  ;;  %v6132_v16 = vsel %vm540_vm9, %v6131_v45, %v14684_v46  ;;  %v7133_v8 = vrot.slane %v14723_v29, 4 }
 0x3f4   :  { %v8796_v14 = vshrl.u32 %v14621_v24, 16  ;;  %v8803_v45 = vshrl.u32 %v14623_v26, 16 }
 0x3f5   :  { %6592 = vrot.lane.b32.xlu1 %v11784_v58, %s12464_s22  ;;  %6590 = vrot.lane.b32.xlu0 %v11783_v10, %s12464_s22  ;;  %v7140_v58 = vsel %vm1555_vm13, %v7139_v4, %v14711_v7  ;;  %v6133_v10 = vsel %vm97_vm12, %v6122_v3, %v6123_v43  ;;  %v7132_v3 = vrot.slane %v14715_v52, 4 }
 0x3f6   :  { %v7156_v19 = vmul.bf16 %v7140_v58, %v14774_v25  ;;  %v8804_v26 = vpack.i.b16 %v8803_v45, %v8803_v45 }
 0x3f7   :  { %v7141_v45 = vsel %vm97_vm12, %v7131_v57, %v7132_v3 }
 0x3f8   :  { %v11833_v30 = vcombine.low %v7156_v19, %v7156_v19 }
 0x3f9   :  { %6594 = vrot.lane.b32.xlu1 %v11785_v53, %s12464_s22  ;;  %7199 = vrot.lane.b32.xlu0 %v11829_v5, %s12465_s23  ;;  %v6134_v53 = vsel %vm540_vm9, %v6133_v10, %v14687_v28  ;;  %v5962_v5 = vsel %vm97_vm12, %v5951_v61, %v5952_v15  ;;  %v7143_v28 = vsel %vm97_vm12, %v7132_v3, %v7133_v8 }
 0x3fa   :  { %v6148_v37 = vmul.bf16 %v6134_v53, %v14818_v32  ;;  %v5963_v46 = vsel %vm368_vm11, %v5962_v5, %v14713_v44  ;;  %v7144_v58 = vsel %vm1555_vm13, %v7143_v28, %v14723_v29  ;;  %v8824_v53 = vshrl.u32 %v14641_v62, 16 }
 0x3fb   :  { %v8831_v5 = vshrl.u32 %v14643_v31, 16  ;;  %v8809_v31 = vrot.slane %v8804_v26, %v12771_v36  ;;  %v8859_v44 = vshrl.u32 %v14588_v35, 16 }
 0x3fc   :  { %v11764_v4 = vcombine.low %v6148_v37, %v6148_v37 }
 0x3fd   :  { %6598 = vrot.lane.b32.xlu1 %v11787_v23, %s12464_s22  ;;  %7201 = vrot.lane.b32.xlu0 %v11830_v6, %s12465_s23  ;;  %v11834_v23 = vcombine.high %v7156_v19, %v7156_v19  ;;  %v6147_v6 = vmul.bf16 %v6132_v16, %v14797_v51  ;;  %v5960_v19 = vsel %vm97_vm12, %v5950_v42, %v5951_v61 }
 0x3fe   :  { %v8797_v16 = vpack.i.b16 %v8796_v14, %v8796_v14  ;;  %v5961_v56 = vsel %vm368_vm11, %v5960_v19, %v14699_v50  ;;  %v8845_v14 = vshrl.u32 %v14660_v54, 16  ;;  %v7714_v54 = vrot.slane %v14731_v63, 4 }
 0x3ff   :  { %v11763_v24 = vcombine.high %v6147_v6, %v6147_v6 }
 0x400   :  { %v8802_v62 = vrot.slane %v8797_v16, %v12771_v36  ;;  %v8846_v16 = vpack.i.b16 %v8845_v14, %v8845_v14 }
 0x401   :  { %7203 = vrot.lane.b32.xlu1 %v11831_v0, %s12465_s23  ;;  %6197 = vrot.lane.b32.xlu0 %v11760_v47, %s12463_s21  ;;  %v5977_v0 = vmul.bf16 %v5963_v46, %v14818_v32  ;;  %v11762_v47 = vcombine.low %v6147_v6, %v6147_v6  ;;  %v5976_v6 = vmul.bf16 %v5961_v56, %v14797_v51 }
 0x402   :  { %v11935_v28 = vcombine.low %v8802_v62, %v8809_v31 }
 0x403   :  { %v11790_v10 = vcombine.low %v5977_v0, %v5977_v0  ;;  %v11788_v50 = vcombine.low %v5976_v6, %v5976_v6  ;;  %v11791_v57 = vcombine.high %v5977_v0, %v5977_v0 }
 0x405   :  { %7205 = vrot.lane.b32.xlu1 %v11832_v21, %s12465_s23  ;;  %6596 = vrot.lane.b32.xlu0 %v11786_v40, %s12464_s22  ;;  %v14902_v21 = vmul.bf16 %v7144_v58, %v14818_v32  ;;  %v14907_v40 = vld [vmem:[#allocation2 + $0x30] sm:$0xf]  ;;  %v7712_v58 = vrot.slane %v14727_v18, 4 }
 0x407   :  { %v11837_v42 = vcombine.low %v14902_v21, %v14902_v21  ;;  %v7718_v26 = vsel %vm2141_vm14, %v7712_v58, %v14727_v18  ;;  %v8851_v18 = vrot.slane %v8846_v16, %v12771_v36 }
 0x408   :  { %v7737_v7 = vmul.bf16 %v7718_v26, %v14752_v11 }
 0x409   :  { %7209 = vrot.lane.b32.xlu1 %v11834_v23, %s12465_s23  ;;  %7207 = vrot.lane.b32.xlu0 %v11833_v30, %s12465_s23  ;;  %v6135_v23 = vsel %vm540_vm9, %v6123_v43, %v14701_v48  ;;  %v11765_v30 = vcombine.high %v6148_v37, %v6148_v37  ;;  %v8825_v48 = vpack.i.b16 %v8824_v53, %v8824_v53  ;;  %v7713_v53 = vrot.slane %v14725_v13, 4 }
 0x40a   :  { %v6149_v61 = vmul.bf16 %v6135_v23, %v14907_v40  ;;  %v8832_v43 = vpack.i.b16 %v8831_v5, %v8831_v5  ;;  %v8810_v23 = vshrl.u32 %v14579_v1, 16  ;;  %v11861_v16 = vcombine.low %v7737_v7, %v7737_v7 }
 0x40b   :  { %v7721_v56 = vsel %vm97_vm12, %v7713_v53, %v7714_v54  ;;  %vm16369_vm9 = vcmask 482304  }
 0x40c   :  { %v11766_v46 = vcombine.low %v6149_v61, %v6149_v61  ;;  %v8837_v37 = vrot.slane %v8832_v43, %v12771_v36  ;;  %v7715_v43 = vrot.slane %v14729_v41, 4 }
 0x40d   :  { %6205 = vrot.lane.b32.xlu1 %v11764_v4, %s12463_s21  ;;  %6201 = vrot.lane.b32.xlu0 %v11762_v47, %s12463_s21  ;;  %v8830_v4 = vrot.slane %v8825_v48, %v12771_v36  ;;  %v8838_v47 = vshrl.u32 %v14658_v2, 16  ;;  %v7142_v2 = vsel %vm1555_vm13, %v7141_v45, %v14715_v52  ;;  %v8817_v52 = vshrl.u32 %v14581_v60, 16 }
 0x40e   :  { %v7157_v3 = vmul.bf16 %v7142_v2, %v14797_v51  ;;  %v7719_v45 = vsel %vm97_vm12, %v7712_v58, %v7713_v53  ;;  %v7716_v2 = vrot.slane %v14733_v38, 4 }
 0x40f   :  { %v11937_v19 = vcombine.low %v8830_v4, %v8837_v37  ;;  %v8818_v62 = vpack.i.b16 %v8817_v52, %v8817_v52  ;;  %v7723_v37 = vsel %vm97_vm12, %v7714_v54, %v7715_v43  ;;  %v8860_v54 = vpack.i.b16 %v8859_v44, %v8859_v44 }
 0x410   :  { %v11835_v0 = vcombine.low %v7157_v3, %v7157_v3  ;;  %v11836_v48 = vcombine.high %v7157_v3, %v7157_v3 }
 0x411   :  { %6604 = vrot.lane.b32.xlu1 %v11790_v10, %s12464_s22  ;;  %6203 = vrot.lane.b32.xlu0 %v11763_v24, %s12463_s21  ;;  %v11789_v10 = vcombine.high %v5976_v6, %v5976_v6  ;;  %v8839_v24 = vpack.i.b16 %v8838_v47, %v8838_v47  ;;  %v8811_v6 = vpack.i.b16 %v8810_v23, %v8810_v23 }
 0x412   :  { %v8823_v60 = vrot.slane %v8818_v62, %v12771_v36 }
 0x413   :  { %v8844_v5 = vrot.slane %v8839_v24, %v12771_v36  ;;  %v8816_v1 = vrot.slane %v8811_v6, %v12771_v36 }
 0x415   :  { %7215 = vrot.lane.b32.xlu1 %v11837_v42, %s12465_s23  ;;  %6207 = vrot.lane.b32.xlu0 %v11765_v30, %s12463_s21  ;;  %v11862_v42 = vcombine.high %v7737_v7, %v7737_v7  ;;  %v11938_v61 = vcombine.low %v8844_v5, %v8851_v18  ;;  %v7722_v30 = vsel %vm2141_vm14, %v7721_v56, %v14731_v63  ;;  %v14996_v18 = vpop.permute.xlu1 %8324 }
 0x416   :  { %v7739_v31 = vmul.bf16 %v7722_v30, %v14755_v9  ;;  %v11838_v63 = vcombine.high %v14902_v21, %v14902_v21  ;;  %v11936_v4 = vcombine.low %v8816_v1, %v8823_v60  ;;  %v8865_v30 = vrot.slane %v8860_v54, %v12771_v36 }
 0x418   :  { %v11866_v47 = vcombine.high %v7739_v31, %v7739_v31 }
 0x419   :  { %6209 = vrot.lane.b32.xlu1 %v11766_v46, %s12463_s21  ;;  %6600 = vrot.lane.b32.xlu0 %v11788_v50, %s12464_s22  ;;  %v11865_v46 = vcombine.low %v7739_v31, %v7739_v31  ;;  %v8866_v50 = vshrl.u32 %v14671_v33, 16  ;;  %v7724_v33 = vsel %vm2141_vm14, %v7723_v37, %v14729_v41 }
 0x41a   :  { %v7740_v58 = vmul.bf16 %v7724_v33, %v14774_v25  ;;  %v9370_v33 = vld [vmem:[#allocation3 + $0x20] sm:$0x88] }
 0x41b   :  { %v8867_v21 = vpack.i.b16 %v8866_v50, %v8866_v50  ;;  %v9366_v50 = vld [vmem:[#allocation3] sm:$0x88] }
 0x41c   :  { %v11868_v3 = vcombine.high %v7740_v58, %v7740_v58  ;;  %v11867_v44 = vcombine.low %v7740_v58, %v7740_v58 }
 0x41d   :  { %8908 = vrot.lane.b32.xlu1 %v11935_v28, %s12466_s24  ;;  %6602 = vrot.lane.b32.xlu0 %v11789_v10, %s12464_s22  ;;  %v5964_v28 = vsel %vm368_vm11, %v5952_v15, %v14703_v39  ;;  %v8852_v39 = vshrl.u32 %v14584_v55, 16  ;;  %v9367_v15 = vld [vmem:[#allocation3 + $0x8] sm:$0x88]  ;;  %v7720_v10 = vsel %vm2141_vm14, %v7719_v45, %v14725_v13  ;;  %v8872_v41 = vrot.slane %v8867_v21, %v12771_v36  ;;  %vm16371_vm11 = vmmov %vm16369_vm9 }
 0x41e   :  { %v5978_v14 = vmul.bf16 %v5964_v28, %v14907_v40  ;;  %v7738_v26 = vmul.bf16 %v7720_v10, %v14743_v20  ;;  %v14988_v55 = vcombine.low %v9367_v15, %v9367_v15  ;;  %v14990_v35 = vcombine.high %v9367_v15, %v9367_v15 }
 0x41f   :  { %v8853_v13 = vpack.i.b16 %v8852_v39, %v8852_v39  ;;  %v11940_v5 = vcombine.low %v8872_v41, %v8872_v41  ;;  %v7725_v28 = vsel %vm97_vm12, %v7715_v43, %v7716_v2  ;;  %v15033_v45 = vcombine.low %v9366_v50, %v9366_v50 }
 0x420   :  { %v11792_v24 = vcombine.low %v5978_v14, %v5978_v14  ;;  %v11863_v53 = vcombine.low %v7738_v26, %v7738_v26  ;;  %v9421_v23 = vpack.i.b16 %v14988_v55, %v14988_v55  ;;  %v9428_v52 = vpack.i.b16 %v14990_v35, %v14990_v35 }
 0x421   :  { %8912 = vrot.lane.b32.xlu1 %v11937_v19, %s12466_s24  ;;  %6606 = vrot.lane.b32.xlu0 %v11791_v57, %s12464_s22  ;;  %v7717_v19 = vrot.slane %v14735_v22, 4  ;;  %v9369_v57 = vld [vmem:[#allocation3 + $0x18] sm:$0x88]  ;;  %v11864_v62 = vcombine.high %v7738_v26, %v7738_v26  ;;  %v15035_v21 = vcombine.high %v9366_v50, %v9366_v50  ;;  %v7726_v39 = vsel %vm2141_vm14, %v7725_v28, %v14733_v38 }
 0x422   :  { %v15003_v56 = vcombine.low %v9369_v57, %v9369_v57  ;;  %v9426_v31 = vrot.slane %v9421_v23, %v13153_v17  ;;  %v7741_v15 = vmul.bf16 %v7726_v39, %v14797_v51  ;;  %v15049_v26 = vcombine.high %v9370_v33, %v9370_v33 }
 0x423   :  { %v7727_v7 = vsel %vm97_vm12, %v7716_v2, %v7717_v19  ;;  %v9407_v38 = vpack.i.b16 %v15033_v45, %v15033_v45  ;;  %v9414_v41 = vpack.i.b16 %v15035_v21, %v15035_v21  ;;  %v9368_v2 = vld [vmem:[#allocation3 + $0x10] sm:$0x88] }
 0x424   :  { %v9449_v1 = vpack.i.b16 %v15003_v56, %v15003_v56  ;;  %v11869_v54 = vcombine.low %v7741_v15, %v7741_v15 }
 0x425   :  { %7781 = vrot.lane.b32.xlu1 %v11862_v42, %s12467_s25  ;;  %7211 = vrot.lane.b32.xlu0 %v11835_v0, %s12465_s23  ;;  %v15005_v42 = vcombine.high %v9369_v57, %v9369_v57  ;;  %v7728_v0 = vsel %vm2141_vm14, %v7727_v7, %v14735_v22  ;;  %v8338_v57 = vrot.slane %v14777_v59, 4  ;;  %v8337_v7 = vrot.slane %v14996_v18, 4 }
 0x426   :  { %v15013_v6 = vmul.bf16 %v7728_v0, %v14818_v32  ;;  %v9419_v29 = vrot.slane %v9414_v41, %v13153_v17 }
 0x427   :  { %v9456_v60 = vpack.i.b16 %v15005_v42, %v15005_v42 }
 0x429   :  { %8914 = vrot.lane.b32.xlu1 %v11938_v61, %s12466_s24  ;;  %7213 = vrot.lane.b32.xlu0 %v11836_v48, %s12465_s23  ;;  %v8858_v61 = vrot.slane %v8853_v13, %v12771_v36  ;;  %v9433_v48 = vrot.slane %v9428_v52, %v13153_v17  ;;  %v15023_v36 = vpop.permute.xlu1 %8328  ;;  %v9461_v14 = vrot.slane %v9456_v60, %v13153_v17 }
 0x42a   :  { %v7145_v13 = vsel %vm1555_vm13, %v7133_v8, %v14719_v34  ;;  %v15073_v34 = vcombine.low %v9368_v2, %v9368_v2  ;;  %v15075_v8 = vcombine.high %v9368_v2, %v9368_v2 }
 0x42b   :  { %v11982_v37 = vcombine.low %v9426_v31, %v9433_v48  ;;  %v7159_v0 = vmul.bf16 %v7145_v13, %v14907_v40  ;;  %v9371_v13 = vld [vmem:[#allocation3 + $0x28] sm:$0x88] }
 0x42c   :  { %v9442_v60 = vpack.i.b16 %v15075_v8, %v15075_v8 }
 0x42d   :  { %7787 = vrot.lane.b32.xlu1 %v11865_v46, %s12467_s25  ;;  %7217 = vrot.lane.b32.xlu0 %v11838_v63, %s12465_s23  ;;  %v11939_v46 = vcombine.low %v8858_v61, %v8865_v30  ;;  %v11871_v63 = vcombine.low %v15013_v6, %v15013_v6  ;;  %v15044_v10 = vpop.permute.xlu1 %8330  ;;  %v11870_v61 = vcombine.high %v7741_v15, %v7741_v15 }
 0x42e   :  { %v8345_v30 = vsel %vm97_vm12, %v8337_v7, %v8338_v57 }
 0x42f   :  { %v8346_v50 = vsel %vm95_vm3, %v8345_v30, %v14777_v59  ;;  %v11872_v59 = vcombine.high %v15013_v6, %v15013_v6 }
 0x431   :  { %7789 = vrot.lane.b32.xlu1 %v11866_v47, %s12467_s25  ;;  %8910 = vrot.lane.b32.xlu0 %v11936_v4, %s12466_s24  ;;  %v8336_v4 = vrot.slane %v14745_v12, 4  ;;  %v9454_v47 = vrot.slane %v9449_v1, %v13153_v17  ;;  %v15079_v52 = vpop.permute.xlu1 %8334  ;;  %v9435_v1 = vpack.i.b16 %v15073_v34, %v15073_v34 }
 0x433   :  { %v8342_v43 = vsel %vm95_vm3, %v8336_v4, %v14745_v12  ;;  %v8340_v12 = vrot.slane %v15044_v10, 4 }
 0x434   :  { %v15057_v58 = vmul.bf16 %v8342_v43, %v14752_v11  ;;  %v8363_v43 = vmul.bf16 %v8346_v50, %v14755_v9 }
 0x435   :  { %6608 = vrot.lane.b32.xlu1 %v11792_v24, %s12464_s22  ;;  %7779 = vrot.lane.b32.xlu0 %v11861_v16, %s12467_s25  ;;  %v11984_v24 = vcombine.low %v9454_v47, %v9461_v14  ;;  %v15047_v16 = vcombine.low %v9370_v33, %v9370_v33  ;;  %v9440_v14 = vrot.slane %v9435_v1, %v13153_v17 }
 0x436   :  { %v11909_v23 = vcombine.high %v15057_v58, %v15057_v58  ;;  %v9447_v33 = vrot.slane %v9442_v60, %v13153_v17  ;;  %v11912_v2 = vcombine.low %v8363_v43, %v8363_v43 }
 0x438   :  { %v11983_v9 = vcombine.low %v9440_v14, %v9447_v33 }
 0x439   :  { %7793 = vrot.lane.b32.xlu1 %v11868_v3, %s12467_s25  ;;  %7783 = vrot.lane.b32.xlu0 %v11863_v53, %s12467_s25  ;;  %v9463_v3 = vpack.i.b16 %v15047_v16, %v15047_v16  ;;  %v9470_v53 = vpack.i.b16 %v15049_v26, %v15049_v26 }
 0x43b   :  { %v9475_v31 = vrot.slane %v9470_v53, %v13153_v17  ;;  %v15131_v53 = vcombine.high %v9371_v13, %v9371_v13 }
 0x43d   :  { %8918 = vrot.lane.b32.xlu1 %v11940_v5, %s12466_s24  ;;  %7785 = vrot.lane.b32.xlu0 %v11864_v62, %s12467_s25  ;;  %v9412_v5 = vrot.slane %v9407_v38, %v13153_v17  ;;  %v9468_v62 = vrot.slane %v9463_v3, %v13153_v17  ;;  %v8343_v38 = vsel %vm97_vm12, %v8336_v4, %v8337_v7 }
 0x43e   :  { %v8344_v3 = vsel %vm95_vm3, %v8343_v38, %v14996_v18  ;;  %v15129_v7 = vcombine.low %v9371_v13, %v9371_v13  ;;  %v11913_v18 = vcombine.high %v8363_v43, %v8363_v43 }
 0x43f   :  { %v11981_v48 = vcombine.low %v9412_v5, %v9419_v29  ;;  %v11985_v47 = vcombine.low %v9468_v62, %v9475_v31 }
 0x441   :  { %7799 = vrot.lane.b32.xlu1 %v11871_v63, %s12467_s25  ;;  %8916 = vrot.lane.b32.xlu0 %v11939_v46, %s12466_s24  ;;  %v11839_v63 = vcombine.low %v7159_v0, %v7159_v0  ;;  %v11908_v0 = vcombine.low %v15057_v58, %v15057_v58  ;;  %v9484_v58 = vpack.i.b16 %v15131_v53, %v15131_v53 }
 0x443   :  { %v9489_v38 = vrot.slane %v9484_v58, %v13153_v17 }
 0x445   :  { %9532 = vrot.lane.b32.xlu1 %v11982_v37, %s12468_s26  ;;  %7791 = vrot.lane.b32.xlu0 %v11867_v44, %s12467_s25  ;;  %v8339_v37 = vrot.slane %v15023_v36, 4 }
 0x447   :  { %v8347_v15 = vsel %vm97_vm12, %v8338_v57, %v8339_v37  ;;  %v8341_v57 = vrot.slane %v14787_v49, 4 }
 0x448   :  { %v8348_v6 = vsel %vm95_vm3, %v8347_v15, %v15023_v36 }
 0x449   :  { %9536 = vrot.lane.b32.xlu1 %v11984_v24, %s12468_s26  ;;  %7795 = vrot.lane.b32.xlu0 %v11869_v54, %s12467_s25  ;;  %v15109_v24 = vld [vmem:[#allocation3 + $0x30] ss:$0 sps:$4 sm:$0x88]   ;;  %v15134_v5 = vmul.bf16 %v8348_v6, %v14774_v25  ;;  %v8351_v62 = vsel %vm97_vm12, %v8340_v12, %v8341_v57  ;;  %v10032_v6 = vshrl.u32 %v15003_v56, 16 }
 0x44a   :  { %v9491_v4 = vpack.i.b16 %v15109_v24, %v15109_v24 }
 0x44b   :  { %v11915_v1 = vcombine.high %v15134_v5, %v15134_v5 }
 0x44c   :  { %v9496_v31 = vrot.slane %v9491_v4, %v13153_v17 }
 0x44d   :  { %8405 = vrot.lane.b32.xlu1 %v11909_v23, %s12469_s27  ;;  %7797 = vrot.lane.b32.xlu0 %v11870_v61, %s12467_s25  ;;  %v8362_v61 = vmul.bf16 %v8344_v3, %v14743_v20  ;;  %v9477_v20 = vpack.i.b16 %v15129_v7, %v15129_v7  ;;  %v16363_v3 = vmov 0  }
 0x44e   :  { %v11987_v43 = vcombine.low %v9496_v31, %v9496_v31 }
 0x44f   :  { %v6188_v46 = vpop.permute.xlu1 %6187  ;;  %v6186_v28 = vpop.permute.xlu0 %6185  ;;  %v9482_v15 = vrot.slane %v9477_v20, %v13153_v17  ;;  %v16364_v20 = vld [vmem:[#allocation8_spill] sm:$0xff] }
 0x450   :  { %v6211_v29 = vsel %vm628_vm15, %v6186_v28, %v6188_v46  ;;  %v10004_v28 = vshrl.u32 %v14988_v55, 16  ;;  %v8920_v58 = vrot.slane %v16364_v20, 4 }
 0x451   :  { %7219 = vrot.lane.b32.xlu1 %v11839_v63, %s12465_s23  ;;  %9530 = vrot.lane.b32.xlu0 %v11981_v48, %s12468_s26  ;;  %v6227_v48 = vsel %vm97_vm12, %v6211_v29, 0  ;;  %v8352_v63 = vsel %vm95_vm3, %v8351_v62, %v14787_v49  ;;  %v11986_v56 = vcombine.low %v9482_v15, %v9489_v38  ;;  %v9990_v62 = vshrl.u32 %v15033_v45, 16 }
 0x452   :  { %v10005_v4 = vpack.i.b16 %v10004_v28, %v10004_v28  ;;  %v10053_v28 = vshrl.u32 %v15049_v26, 16 }
 0x453   :  { %v15098_v39 = vpop.permute.xlu1 %6586  ;;  %v15101_v44 = vpop.permute.xlu0 %6584 }
 0x454   :  { %v10010_v36 = vrot.slane %v10005_v4, %v13153_v17  ;;  %v10054_v15 = vpack.i.b16 %v10053_v28, %v10053_v28 }
 0x455   :  { %9538 = vrot.lane.b32.xlu1 %v11985_v47, %s12468_s26  ;;  %7801 = vrot.lane.b32.xlu0 %v11872_v59, %s12467_s25  ;;  %v15165_v47 = vld [vmem:[%s16335_s5 + $0x2] sm:$0x3]  ;;  %v10011_v59 = vshrl.u32 %v14990_v35, 16  ;;  %v11911_v35 = vcombine.high %v8362_v61, %v8362_v61 }
 0x457   :  { %v15115_v41 = vpop.permute.xlu1 %7197  ;;  %v15119_v54 = vpop.permute.xlu0 %7195  ;;  %v10012_v29 = vpack.i.b16 %v10011_v59, %v10011_v59 }
 0x459   :  { %8411 = vrot.lane.b32.xlu1 %v11912_v2, %s12469_s27  ;;  %9534 = vrot.lane.b32.xlu0 %v11983_v9, %s12468_s26  ;;  %v15180_v2 = vmul.bf16 %v8352_v63, %v14818_v32  ;;  %v7729_v32 = vsel %vm2141_vm14, %v7717_v19, %v14762_v27  ;;  %v10033_v27 = vpack.i.b16 %v10032_v6, %v10032_v6  ;;  %v10025_v6 = vshrl.u32 %v15075_v8, 16 }
 0x45b   :  { %v15137_v23 = vpop.permute.xlu1 %6193  ;;  %v6190_v30 = vpop.permute.xlu0 %6189  ;;  %v10038_v63 = vrot.slane %v10033_v27, %v13153_v17 }
 0x45c   :  { %v6212_v25 = vsel %vm628_vm15, %v6188_v46, %v6190_v30  ;;  %v11910_v46 = vcombine.low %v8362_v61, %v8362_v61 }
 0x45d   :  { %8413 = vrot.lane.b32.xlu1 %v11913_v18, %s12469_s27  ;;  %8403 = vrot.lane.b32.xlu0 %v11908_v0, %s12469_s27  ;;  %v10039_v18 = vshrl.u32 %v15005_v42, 16  ;;  %v8349_v0 = vsel %vm97_vm12, %v8339_v37, %v8340_v12  ;;  %v11918_v42 = vcombine.low %v15180_v2, %v15180_v2  ;;  %v10017_v37 = vrot.slane %v10012_v29, %v13153_v17 }
 0x45e   :  { %11767 = vmatprep.subr.msk.bf16.mxu1 %vm97_vm12, %v6212_v25  ;;  %v8350_v19 = vsel %vm95_vm3, %v8349_v0, %v15044_v10  ;;  %v9997_v25 = vshrl.u32 %v15035_v21, 16  ;;  %v11914_v10 = vcombine.low %v15134_v5, %v15134_v5  ;;  %v10046_v21 = vshrl.u32 %v15047_v16, 16 }
 0x45f   :  { %6280 = vmatpush1.bf16.msra.mxu1 %v6227_v48  ;;  %v15157_v60 = vpop.permute.xlu1 %6195  ;;  %v6192_v50 = vpop.permute.xlu0 %6191  ;;  %v10040_v12 = vpack.i.b16 %v10039_v18, %v10039_v18 }
 0x460   :  { %v6213_v14 = vsel %vm628_vm15, %v6190_v30, %v6192_v50  ;;  %v6214_v33 = vsel %vm628_vm15, %v6192_v50, %v15137_v23  ;;  %v7743_v30 = vmul.bf16 %v7729_v32, %v14907_v40  ;;  %v12016_v50 = vcombine.low %v10010_v36, %v10017_v37 }
 0x461   :  { %8417 = vrot.lane.b32.xlu1 %v11915_v1, %s12469_s27  ;;  %8407 = vrot.lane.b32.xlu0 %v11910_v46, %s12469_s27  ;;  %v6233_v55 = vsel %vm97_vm12, %v6213_v14, 0  ;;  %v8365_v1 = vmul.bf16 %v8350_v19, %v14797_v51  ;;  %v10045_v45 = vrot.slane %v10040_v12, %v13153_v17  ;;  %v9991_v14 = vpack.i.b16 %v9990_v62, %v9990_v62 }
 0x462   :  { %11769 = vmatprep.subr.msk.bf16.mxu0 %vm97_vm12, %v6214_v33  ;;  %11768 = vmatmul.mubr.msk.bf16.vlgmr.msra.gmra.mxu1 %vm641_vm0, %v15165_v47  ;;  %v11873_v48 = vcombine.low %v7743_v30, %v7743_v30  ;;  %v9998_v33 = vpack.i.b16 %v9997_v25, %v9997_v25  ;;  %v8926_v51 = vsel %vm3352_vm6, %v8920_v58, %v16364_v20 }
 0x463   :  { %6321 = vmatpush1.bf16.msra.mxu0 %v6233_v55  ;;  %v15177_v9 = vpop.permute.xlu1 %6199  ;;  %v15184_v13 = vpop.permute.xlu0 %6588  ;;  %6379 = vmatprep.mubr.bf16.mxu1 %v16363_v3  ;;  %v12018_v55 = vcombine.low %v10038_v63, %v10045_v45  ;;  %v10047_v16 = vpack.i.b16 %v10046_v21, %v10046_v21  ;;  %v9996_v26 = vrot.slane %v9991_v14, %v13153_v17 }
 0x464   :  { %v10003_v38 = vrot.slane %v9998_v33, %v13153_v17  ;;  %v8945_v4 = vmul.bf16 %v8926_v51, %v14752_v11  ;;  %v6215_v29 = vsel %vm628_vm15, %v15137_v23, %v15157_v60  ;;  %v11917_v32 = vcombine.high %v8365_v1, %v8365_v1 }
 0x465   :  { %9542 = vrot.lane.b32.xlu1 %v11987_v43, %s12468_s26  ;;  %8409 = vrot.lane.b32.xlu0 %v11911_v35, %s12469_s27  ;;  %v11916_v43 = vcombine.low %v8365_v1, %v8365_v1  ;;  %v10018_v35 = vshrl.u32 %v15073_v34, 16  ;;  %v10059_v34 = vrot.slane %v10054_v15, %v13153_v17  ;;  %v6239_v11 = vsel %vm97_vm12, %v6215_v29, 0 }
 0x466   :  { %11770 = vmatmul.mubr.msk.bf16.vlgmr.msra.gmra.mxu0 %vm641_vm0, %v15165_v47  ;;  %v12015_v8 = vcombine.low %v9996_v26, %v10003_v38  ;;  %v10026_v30 = vpack.i.b16 %v10025_v6, %v10025_v6  ;;  %v11943_v27 = vcombine.high %v8945_v4, %v8945_v4  ;;  %v11942_v28 = vcombine.low %v8945_v4, %v8945_v4 }
 0x467   :  { %v15200_v61 = vpop.permute.xlu1 %6592  ;;  %6420 = vmatprep.mubr.bf16.mxu0 %v16363_v3  ;;  %v15206_v22 = vpop.permute.xlu0 %6590  ;;  %v10019_v23 = vpack.i.b16 %v10018_v35, %v10018_v35 }
 0x468   :  { %v10031_v12 = vrot.slane %v10026_v30, %v13153_v17  ;;  %v6613_v29 = vsel %vm1030_vm1, %v15206_v22, %v15200_v61 }
 0x469   :  { %8423 = vrot.lane.b32.xlu1 %v11918_v42, %s12469_s27  ;;  %9540 = vrot.lane.b32.xlu0 %v11986_v56, %s12468_s26  ;;  %v10052_v42 = vrot.slane %v10047_v16, %v13153_v17  ;;  %v10024_v37 = vrot.slane %v10019_v23, %v13153_v17  ;;  %v16365_v16 = vmov 0.0  }
 0x46b   :  { %v15216_v31 = vpop.permute.xlu1 %6594  ;;  %v15222_v46 = vpop.permute.xlu0 %7199 }
 0x46d   :  { %7803 = vrot.lane.b32.xlu1 %v11873_v48, %s12467_s25  ;;  %8415 = vrot.lane.b32.xlu0 %v11914_v10, %s12469_s27  ;;  %v11919_v48 = vcombine.high %v15180_v2, %v15180_v2  ;;  %v12017_v10 = vcombine.low %v10024_v37, %v10031_v12  ;;  %v6614_v37 = vsel %vm1030_vm1, %v15200_v61, %v15216_v31 }
 0x46f   :  { %v15230_v5 = vpop.permute.xlu1 %6598  ;;  %v15236_v59 = vpop.permute.xlu0 %7201 }
 0x471   :  { %10116 = vrot.lane.b32.xlu1 %v12016_v50, %s12472_s11  ;;  %8419 = vrot.lane.b32.xlu0 %v11916_v43, %s12469_s27 }
 0x473   :  { %v15248_v18 = vpop.permute.xlu1 %7203  ;;  %v6198_v0 = vpop.permute.xlu0 %6197 }
 0x474   :  { %v6216_v56 = vsel %vm628_vm15, %v15157_v60, %v6198_v0  ;;  %v12019_v60 = vcombine.low %v10052_v42, %v10059_v34  ;;  %v6217_v1 = vsel %vm628_vm15, %v6198_v0, %v15177_v9  ;;  %v6611_v0 = vsel %vm1030_vm1, %v15098_v39, %v15184_v13 }
 0x475   :  { %10120 = vrot.lane.b32.xlu1 %v12018_v55, %s12472_s11  ;;  %8421 = vrot.lane.b32.xlu0 %v11917_v32, %s12469_s27  ;;  %v6245_v21 = vsel %vm97_vm12, %v6217_v1, 0  ;;  %v6610_v32 = vsel %vm1030_vm1, %v15101_v44, %v15098_v39  ;;  %v10060_v44 = vshrl.u32 %v15129_v7, 16 }
 0x476   :  { %11771 = vmatprep.subr.msk.bf16.mxu1 %vm97_vm12, %v6216_v56  ;;  %v6612_v56 = vsel %vm1030_vm1, %v15184_v13, %v15206_v22  ;;  %v6626_v23 = vsel %vm97_vm12, %v6610_v32, 0  ;;  %v8353_v32 = vsel %vm95_vm3, %v8341_v57, %v15079_v52  ;;  %vm16367_vm3 = vcmask 793600  }
 0x477   :  { %6362 = vmatpush1.bf16.msra.mxu1 %v6239_v11  ;;  %v15258_v19 = vpop.permute.xlu1 %7205  ;;  %v15260_v36 = vpop.permute.xlu0 %6596  ;;  %v6632_v13 = vsel %vm97_vm12, %v6612_v56, 0  ;;  %vm16368_vm4 = vmmov %vm16367_vm3 }
 0x478   :  { %v6615_v7 = vsel %vm1030_vm1, %v15216_v31, %v15260_v36  ;;  %v6638_v31 = vsel %vm97_vm12, %v6614_v37, 0  ;;  %vm16370_vm10 = vmmov %vm16367_vm3 }
 0x479   :  { %8989 = vrot.lane.b32.xlu1 %v11943_v27, %s12473_s1  ;;  %10114 = vrot.lane.b32.xlu0 %v12015_v8, %s12472_s11  ;;  %v10067_v8 = vshrl.u32 %v15131_v53, 16  ;;  %v10061_v27 = vpack.i.b16 %v10060_v44, %v10060_v44  ;;  %vm16372_vm13 = vmmov %vm16367_vm3 }
 0x47a   :  { %11772 = vmatmul.mubr.msk.bf16.vlgmr.msra.gmra.mxu1 %vm641_vm0, %v15165_v47  ;;  %vm16373_vm14 = vmmov %vm16367_vm3 }
 0x47b   :  { %v15268_v62 = vpop.permute.xlu1 %7209  ;;  %6461 = vmatprep.mubr.bf16.mxu1 %v16363_v3  ;;  %v15271_v25 = vpop.permute.xlu0 %7207 }
 0x47d   :  { %10122 = vrot.lane.b32.xlu1 %v12019_v60, %s12472_s11  ;;  %8425 = vrot.lane.b32.xlu0 %v11919_v48, %s12469_s27  ;;  %v10068_v60 = vpack.i.b16 %v10067_v8, %v10067_v8  ;;  %v15359_v48 = vld [vmem:[%s16335_s5] sm:$0x3] }
 0x47f   :  { %v6206_v63 = vpop.permute.xlu1 %6205  ;;  %v6202_v50 = vpop.permute.xlu0 %6201  ;;  %v10073_v61 = vrot.slane %v10068_v60, %v13153_v17  ;;  %v15448_v60 = vld [vmem:[#allocation2 + $0x20] sm:$0xff] }
 0x480   :  { %v6218_v45 = vsel %vm628_vm15, %v15177_v9, %v6202_v50 }
 0x481   :  { %10118 = vrot.lane.b32.xlu0 %v12017_v10, %s12472_s11  ;;  %11773 = vmatprep.subr.msk.bf16.mxu0 %vm97_vm12, %v6218_v45  ;;  %v6616_v10 = vsel %vm1030_vm1, %v15260_v36, %v15230_v5 }
 0x482   :  { %6403 = vmatpush1.bf16.msra.mxu0 %v6245_v21 }
 0x483   :  { %v15284_v2 = vpop.permute.xlu1 %6604  ;;  %v6204_v14 = vpop.permute.xlu0 %6203 }
 0x484   :  { %v6219_v33 = vsel %vm628_vm15, %v6202_v50, %v6204_v14  ;;  %v6220_v51 = vsel %vm628_vm15, %v6204_v14, %v6206_v63  ;;  %v10066_v50 = vrot.slane %v10061_v27, %v13153_v17  ;;  %v10074_v27 = vshrl.u32 %v15109_v24, 16 }
 0x485   :  { %8987 = vrot.lane.b32.xlu0 %v11942_v28, %s12473_s1  ;;  %11775 = vmatprep.subr.msk.bf16.mxu1 %vm97_vm12, %v6220_v51  ;;  %v6251_v9 = vsel %vm97_vm12, %v6219_v33, 0 }
 0x486   :  { %6444 = vmatpush1.bf16.msra.mxu1 %v6251_v9  ;;  %11774 = vmatmul.mubr.msk.bf16.vlgmr.msra.gmra.mxu0 %vm641_vm0, %v15165_v47  ;;  %v12020_v14 = vcombine.low %v10066_v50, %v10073_v61  ;;  %v8367_v61 = vmul.bf16 %v8353_v32, %v14907_v40  ;;  %v7226_v40 = vsel %vm1643_vm5, %v15258_v19, %v15271_v25 }
 0x487   :  { %v15291_v43 = vpop.permute.xlu1 %7215  ;;  %v6208_v55 = vpop.permute.xlu0 %6207  ;;  %12207 = vmatprep.subr.bf16.mxu1 %v16365_v16  ;;  %6502 = vmatprep.mubr.bf16.mxu0 %v16363_v3 }
 0x488   :  { %v6221_v15 = vsel %vm628_vm15, %v6206_v63, %v6208_v55  ;;  %v11920_v32 = vcombine.low %v8367_v61, %v8367_v61 }
 0x489   :  { %11776 = vmatmul.mubr.msk.bf16.vlgmr.msra.gmra.mxu1 %vm641_vm0, %v15165_v47  ;;  %v6257_v4 = vsel %vm97_vm12, %v6221_v15, 0 }
 0x48a   :  { %12209 = vmatprep.mubr.msk.bf16.mxu1 %vm12471_vm2, %v16365_v16 }
 0x48b   :  { %v6210_v26 = vpop.permute.xlu1 %6209  ;;  %v15302_v38 = vpop.permute.xlu0 %6600 }
 0x48c   :  { %v6222_v35 = vsel %vm628_vm15, %v6208_v55, %v6210_v26  ;;  %v6263_v6 = vsel %vm97_vm12, %v6210_v26, 0  ;;  %v6617_v22 = vsel %vm1030_vm1, %v15230_v5, %v15302_v38  ;;  %v6644_v5 = vsel %vm97_vm12, %v6616_v10, 0  ;;  %vm16374_vm15 = vmmov %vm16367_vm3 }
 0x48d   :  { %11777 = vmatprep.subr.msk.bf16.mxu0 %vm97_vm12, %v6222_v35  ;;  %12208 = vmatpush3.bf16.msra.mxu1 %v6263_v6 }
 0x48e   :  { %6485 = vmatpush1.bf16.msra.mxu0 %v6257_v4  ;;  %11795 = vmatprep.subr.msk.bf16.mxu1 %vm97_vm12, %v6613_v29  ;;  %v10574_v4 = vld [vmem:[#allocation3 + $0x34] sm:$0x11] }
 0x48f   :  { %v15321_v42 = vpop.permute.xlu1 %8908  ;;  %11793 = vmatprep.subr.msk.bf16.mxu0 %vm97_vm12, %v6611_v0  ;;  %v6603_v11 = vpop.permute.xlu0 %6602 }
 0x490   :  { %v8921_v34 = vrot.slane %v15321_v42, 4  ;;  %v6619_v36 = vsel %vm1030_vm1, %v6603_v11, %v15284_v2  ;;  %v6618_v33 = vsel %vm1030_vm1, %v15302_v38, %v6603_v11 }
 0x491   :  { %11778 = vmatmul.mubr.msk.bf16.vlgmr.msra.gmra.mxu0 %vm641_vm0, %v15165_v47  ;;  %12210 = vmatmul.mubr.msk.bf16.vlgmr.msra.gmra.mxu1 %vm641_vm0, %v15165_v47  ;;  %v6650_v26 = vsel %vm97_vm12, %v6618_v33, 0 }
 0x492   :  { %v8927_v39 = vsel %vm97_vm12, %v8920_v58, %v8921_v34  ;;  %6679 = vmatpush1.bf16.msra.mxu0 %v6626_v23  ;;  %6720 = vmatpush1.bf16.msra.mxu1 %v6632_v13  ;;  %v15347_v58 = vld [vmem:[#allocation2 + $0x8] sm:$0xff]  ;;  %v12049_v23 = vcombine.low %v10574_v4, %v10574_v4 }
 0x493   :  { %v8928_v53 = vsel %vm3352_vm6, %v8927_v39, %v15321_v42  ;;  %v8913_v20 = vpop.permute.xlu1 %8912  ;;  %11797 = vmatprep.subr.msk.bf16.mxu0 %vm97_vm12, %v6615_v7  ;;  %11799 = vmatprep.subr.msk.bf16.mxu1 %vm97_vm12, %v6617_v22  ;;  %v6607_v30 = vpop.permute.xlu0 %6606  ;;  %v15433_v7 = vld [vmem:[#allocation2 + $0x18] sm:$0xff]  ;;  %v12050_v22 = vcombine.high %v10574_v4, %v10574_v4 }
 0x494   :  { %v8946_v47 = vmul.bf16 %v15347_v58, %v8928_v53  ;;  %6696 = vmatprep.mubr.bf16.mxu0 %v16363_v3  ;;  %6737 = vmatprep.mubr.bf16.mxu1 %v16363_v3  ;;  %v8923_v9 = vrot.slane %v8913_v20, 4  ;;  %v6620_v0 = vsel %vm1030_vm1, %v15284_v2, %v6607_v30  ;;  %v15426_v2 = vld [vmem:[#allocation2 + $0x10] sm:$0xff]  ;;  %v10615_v24 = vpack.i.b16 %v12049_v23, %v12049_v23 }
 0x496   :  { %v11944_v12 = vcombine.low %v8946_v47, %v8946_v47  ;;  %v11945_v45 = vcombine.high %v8946_v47, %v8946_v47  ;;  %v7224_v47 = vsel %vm1643_vm5, %v15236_v59, %v15248_v18 }
 0x497   :  { %v15364_v1 = vpop.permute.xlu1 %7781  ;;  %v15366_v63 = vpop.permute.xlu0 %7211 }
 0x498   :  { %8991 = vrot.lane.b32.xlu0 %v11944_v12, %s12473_s1  ;;  %v7228_v23 = vsel %vm1643_vm5, %v15268_v62, %v15366_v63 }
 0x499   :  { %11794 = vmatmul.mubr.msk.bf16.vlgmr.msra.gmra.mxu0 %vm641_vm0, %v15359_v48  ;;  %11796 = vmatmul.mubr.msk.bf16.vlgmr.msra.gmra.mxu1 %vm641_vm0, %v15359_v48 }
 0x49a   :  { %6761 = vmatpush1.bf16.msra.mxu0 %v6638_v31  ;;  %6802 = vmatpush1.bf16.msra.mxu1 %v6644_v5  ;;  %v10075_v5 = vpack.i.b16 %v10074_v27, %v10074_v27 }
 0x49b   :  { %11801 = vmatprep.subr.msk.bf16.mxu0 %vm97_vm12, %v6619_v36  ;;  %v15380_v21 = vpop.permute.xlu1 %8914  ;;  %v15382_v28 = vpop.permute.xlu0 %7213  ;;  %6778 = vmatprep.mubr.bf16.mxu0 %v16363_v3  ;;  %v10576_v36 = vld [vmem:[#allocation3 + $0x44] sm:$0x11] }
 0x49c   :  { %8993 = vrot.lane.b32.xlu0 %v11945_v45, %s12473_s1  ;;  %6819 = vmatprep.mubr.bf16.mxu1 %v16363_v3  ;;  %v8924_v55 = vrot.slane %v15380_v21, 4  ;;  %v7223_v45 = vsel %vm1643_vm5, %v15222_v46, %v15236_v59  ;;  %v16366_v59 = vld [vmem:[#allocation7_spill] sm:$0xff]  ;;  %v12053_v4 = vcombine.low %v10576_v36, %v10576_v36  ;;  %v7230_v27 = vsel %vm1643_vm5, %v15382_v28, %v15291_v43 }
 0x49e   :  { %v8933_v38 = vsel %vm97_vm12, %v8923_v9, %v8924_v55 }
 0x49f   :  { %v15389_v51 = vpop.permute.xlu1 %7787  ;;  %v15392_v15 = vpop.permute.xlu0 %7217  ;;  %v8934_v56 = vsel %vm3352_vm6, %v8933_v38, %v15380_v21  ;;  %v10620_v38 = vrot.slane %v10615_v24, %v16366_v59  ;;  %v15531_v24 = vld [vmem:[#allocation2 + $0x28] sm:$0xff] }
 0x4a0   :  { %10124 = vrot.lane.b32.xlu0 %v12020_v14, %s12472_s11  ;;  %v8949_v37 = vmul.bf16 %v15448_v60, %v8934_v56  ;;  %v10080_v56 = vrot.slane %v10075_v5, %v13153_v17 }
 0x4a1   :  { %11798 = vmatmul.mubr.msk.bf16.vlgmr.msra.gmra.mxu0 %vm641_vm0, %v15359_v48  ;;  %11800 = vmatmul.mubr.msk.bf16.vlgmr.msra.gmra.mxu1 %vm641_vm0, %v15359_v48 }
 0x4a2   :  { %6843 = vmatpush1.bf16.msra.mxu0 %v6650_v26  ;;  %6860 = vmatprep.mubr.bf16.mxu0 %v16363_v3  ;;  %v11950_v14 = vcombine.low %v8949_v37, %v8949_v37  ;;  %v10575_v26 = vld [vmem:[#allocation3 + $0x3c] sm:$0x11] }
 0x4a3   :  { %v15400_v35 = vpop.permute.xlu1 %7789  ;;  %12213 = vmatprep.subr.bf16.mxu0 %v16365_v16  ;;  %v8911_v6 = vpop.permute.xlu0 %8910  ;;  %6901 = vmatprep.mubr.bf16.mxu1 %v16363_v3 }
 0x4a4   :  { %v8922_v29 = vrot.slane %v8911_v6, 4 }
 0x4a6   :  { %v8929_v11 = vsel %vm97_vm12, %v8921_v34, %v8922_v29  ;;  %v8931_v44 = vsel %vm97_vm12, %v8922_v29, %v8923_v9  ;;  %v6656_v34 = vsel %vm97_vm12, %v6620_v0, 0  ;;  %v12054_v29 = vcombine.high %v10576_v36, %v10576_v36 }
 0x4a7   :  { %v6609_v8 = vpop.permute.xlu1 %6608  ;;  %v8930_v39 = vsel %vm3352_vm6, %v8929_v11, %v8911_v6  ;;  %v8932_v49 = vsel %vm3352_vm6, %v8931_v44, %v8913_v20  ;;  %v15422_v13 = vpop.permute.xlu0 %7779  ;;  %v7221_v20 = vsel %vm1643_vm5, %v15119_v54, %v15115_v41  ;;  %v7243_v0 = vsel %vm97_vm12, %v7223_v45, 0 }
 0x4a8   :  { %v6621_v52 = vsel %vm1030_vm1, %v6607_v30, %v6609_v8  ;;  %v6662_v57 = vsel %vm97_vm12, %v6609_v8, 0  ;;  %v8947_v42 = vmul.bf16 %v15426_v2, %v8930_v39  ;;  %v15436_v53 = vmul.bf16 %v15433_v7, %v8932_v49  ;;  %vm16375_vm1 = vmmov %vm16367_vm3 }
 0x4a9   :  { %11802 = vmatmul.mubr.msk.bf16.vlgmr.msra.gmra.mxu0 %vm641_vm0, %v15359_v48  ;;  %11803 = vmatprep.subr.msk.bf16.mxu1 %vm97_vm12, %v6621_v52  ;;  %v7222_v30 = vsel %vm1643_vm5, %v15115_v41, %v15222_v46  ;;  %v10622_v41 = vpack.i.b16 %v12050_v22, %v12050_v22  ;;  %v7237_v31 = vsel %vm97_vm12, %v7221_v20, 0  ;;  %v12051_v11 = vcombine.low %v10575_v26, %v10575_v26 }
 0x4aa   :  { %12214 = vmatpush3.bf16.msra.mxu0 %v6662_v57  ;;  %6884 = vmatpush1.bf16.msra.mxu1 %v6656_v34  ;;  %v11946_v12 = vcombine.low %v8947_v42, %v8947_v42  ;;  %v11948_v10 = vcombine.low %v15436_v53, %v15436_v53  ;;  %v11947_v33 = vcombine.high %v8947_v42, %v8947_v42  ;;  %v10577_v42 = vld [vmem:[#allocation3 + $0x4c] sm:$0x11] }
 0x4ab   :  { %11842 = vmatprep.subr.msk.bf16.mxu0 %vm97_vm12, %v7224_v47  ;;  %v15452_v54 = vpop.permute.xlu1 %7793  ;;  %11840 = vmatprep.subr.msk.bf16.mxu1 %vm97_vm12, %v7222_v30  ;;  %v15457_v50 = vpop.permute.xlu0 %7783  ;;  %v10627_v6 = vrot.slane %v10622_v41, %v16366_v59  ;;  %v7225_v44 = vsel %vm1643_vm5, %v15248_v18, %v15258_v19  ;;  %v11951_v8 = vcombine.high %v8949_v37, %v8949_v37 }
 0x4ac   :  { %12215 = vmatprep.mubr.msk.bf16.mxu0 %vm12471_vm2, %v16365_v16  ;;  %8999 = vrot.lane.b32.xlu0 %v11948_v10, %s12473_s1  ;;  %v12052_v18 = vcombine.high %v10575_v26, %v10575_v26  ;;  %v10643_v52 = vpack.i.b16 %v12053_v4, %v12053_v4  ;;  %v10650_v57 = vpack.i.b16 %v12054_v29, %v12054_v29  ;;  %v7249_v22 = vsel %vm97_vm12, %v7225_v44, 0 }
 0x4ad   :  { %8995 = vrot.lane.b32.xlu1 %v11946_v12, %s12473_s1  ;;  %11804 = vmatmul.mubr.msk.bf16.vlgmr.msra.gmra.mxu1 %vm641_vm0, %v15359_v48  ;;  %v12062_v49 = vcombine.low %v10620_v38, %v10627_v6  ;;  %v7227_v34 = vsel %vm1643_vm5, %v15271_v25, %v15268_v62  ;;  %v12021_v20 = vcombine.low %v10080_v56, %v10080_v56 }
 0x4ae   :  { %7290 = vmatpush1.bf16.msra.mxu1 %v7237_v31  ;;  %7307 = vmatprep.mubr.bf16.mxu1 %v16363_v3  ;;  %v10629_v47 = vpack.i.b16 %v12051_v11, %v12051_v11  ;;  %v11949_v62 = vcombine.high %v15436_v53, %v15436_v53  ;;  %v12055_v12 = vcombine.low %v10577_v42, %v10577_v42  ;;  %v7255_v31 = vsel %vm97_vm12, %v7227_v34, 0  ;;  %v10578_v11 = vld [vmem:[#allocation3 + $0x54] sm:$0x11] }
 0x4af   :  { %v15470_v9 = vpop.permute.xlu1 %8918  ;;  %11844 = vmatprep.subr.msk.bf16.mxu1 %vm97_vm12, %v7226_v40  ;;  %v15477_v46 = vpop.permute.xlu0 %7785  ;;  %v12056_v10 = vcombine.high %v10577_v42, %v10577_v42  ;;  %v10648_v53 = vrot.slane %v10643_v52, %v16366_v59  ;;  %v10655_v61 = vrot.slane %v10650_v57, %v16366_v59  ;;  %v7229_v45 = vsel %vm1643_vm5, %v15366_v63, %v15382_v28 }
 0x4b0   :  { %9003 = vrot.lane.b32.xlu0 %v11950_v14, %s12473_s1  ;;  %v10634_v38 = vrot.slane %v10629_v47, %v16366_v59  ;;  %v7261_v63 = vsel %vm97_vm12, %v7229_v45, 0  ;;  %v7231_v44 = vsel %vm1643_vm5, %v15291_v43, %v15392_v15  ;;  %v12057_v34 = vcombine.low %v10578_v11, %v10578_v11 }
 0x4b1   :  { %8997 = vrot.lane.b32.xlu1 %v11947_v33, %s12473_s1  ;;  %12216 = vmatmul.mubr.msk.bf16.vlgmr.msra.gmra.mxu0 %vm641_vm0, %v15359_v48  ;;  %v15498_v48 = vld [vmem:[%s16335_s5 + $0x4] sm:$0x3]  ;;  %v10657_v33 = vpack.i.b16 %v12055_v12, %v12055_v12  ;;  %v10664_v40 = vpack.i.b16 %v12056_v10, %v12056_v10  ;;  %v12064_v26 = vcombine.low %v10648_v53, %v10655_v61  ;;  %v7267_v43 = vsel %vm97_vm12, %v7231_v44, 0 }
 0x4b2   :  { %7331 = vmatpush1.bf16.msra.mxu0 %v7243_v0  ;;  %7348 = vmatprep.mubr.bf16.mxu0 %v16363_v3  ;;  %v15603_v10 = vld [vmem:[#allocation2] sm:$0xff]  ;;  %v10671_v61 = vpack.i.b16 %v12057_v34, %v12057_v34 }
 0x4b3   :  { %v15493_v39 = vpop.permute.xlu1 %7799  ;;  %11846 = vmatprep.subr.msk.bf16.mxu0 %vm97_vm12, %v7228_v23  ;;  %v15502_v17 = vpop.permute.xlu0 %8916  ;;  %v10669_v0 = vrot.slane %v10664_v40, %v16366_v59  ;;  %v15619_v40 = vld [vmem:[#allocation2 + $0x30] sm:$0xf] }
 0x4b4   :  { %v8925_v19 = vrot.slane %v15502_v17, 4  ;;  %9005 = vrot.lane.b32.xlu0 %v11951_v8, %s12473_s1  ;;  %v10579_v8 = vld [vmem:[#allocation3 + $0x5c] sm:$0x11] }
 0x4b5   :  { %8427 = vrot.lane.b32.xlu1 %v11920_v32, %s12469_s27  ;;  %11841 = vmatmul.mubr.msk.bf16.vlgmr.msra.gmra.mxu1 %vm641_vm0, %v15498_v48  ;;  %v10662_v32 = vrot.slane %v10657_v33, %v16366_v59  ;;  %v12059_v47 = vcombine.low %v10579_v8, %v10579_v8  ;;  %v7807_v33 = vsel %vm16372_vm13, %v15457_v50, %v15477_v46 }
 0x4b6   :  { %v8935_v30 = vsel %vm97_vm12, %v8924_v55, %v8925_v19  ;;  %7372 = vmatpush1.bf16.msra.mxu1 %v7249_v22  ;;  %7389 = vmatprep.mubr.bf16.mxu1 %v16363_v3  ;;  %v10636_v55 = vpack.i.b16 %v12052_v18, %v12052_v18  ;;  %v7827_v44 = vsel %vm97_vm12, %v7807_v33, 0 }
 0x4b7   :  { %v15521_v37 = vpop.permute.xlu1 %9532  ;;  %v8936_v25 = vsel %vm3352_vm6, %v8935_v30, %v15502_v17  ;;  %11848 = vmatprep.subr.msk.bf16.mxu1 %vm97_vm12, %v7230_v27  ;;  %v15529_v21 = vpop.permute.xlu0 %7791  ;;  %v12065_v42 = vcombine.low %v10662_v32, %v10669_v0  ;;  %v7805_v30 = vsel %vm16367_vm3, %v15422_v13, %v15364_v1  ;;  %v12060_v27 = vcombine.high %v10579_v8, %v10579_v8  ;;  %vm16378_vm3 = vmmov %vm16375_vm1 }
 0x4b8   :  { %v8950_v41 = vmul.bf16 %v15531_v24, %v8936_v25  ;;  %10738 = vrot.lane.b32.xlu0 %v12062_v49, %s12474_s17  ;;  %v10641_v6 = vrot.slane %v10636_v55, %v16366_v59  ;;  %v9545_v23 = vrot.slane %v15521_v37, 4  ;;  %v7808_v13 = vsel %vm16370_vm10, %v15477_v46, %v15389_v51 }
 0x4b9   :  { %9001 = vrot.lane.b32.xlu1 %v11949_v62, %s12473_s1  ;;  %11843 = vmatmul.mubr.msk.bf16.vlgmr.msra.gmra.mxu0 %vm641_vm0, %v15498_v48  ;;  %v10676_v46 = vrot.slane %v10671_v61, %v16366_v59 }
 0x4ba   :  { %v11953_v5 = vcombine.high %v8950_v41, %v8950_v41  ;;  %7413 = vmatpush1.bf16.msra.mxu0 %v7255_v31  ;;  %7430 = vmatprep.mubr.bf16.mxu0 %v16363_v3  ;;  %v11952_v28 = vcombine.low %v8950_v41, %v8950_v41  ;;  %v12063_v56 = vcombine.low %v10634_v38, %v10641_v6 }
 0x4bb   :  { %v15544_v36 = vpop.permute.xlu1 %9536  ;;  %v15547_v14 = vpop.permute.xlu0 %7795  ;;  %v10685_v31 = vpack.i.b16 %v12059_v47, %v12059_v47  ;;  %v7810_v38 = vsel %vm16373_vm14, %v15400_v35, %v15529_v21  ;;  %vm16384_vm14 = vmmov %vm16375_vm1 }
 0x4bc   :  { %9009 = vrot.lane.b32.xlu0 %v11953_v5, %s12473_s1 }
 0x4bd   :  { %10126 = vrot.lane.b32.xlu1 %v12021_v20, %s12472_s11  ;;  %11845 = vmatmul.mubr.msk.bf16.vlgmr.msra.gmra.mxu1 %vm641_vm0, %v15498_v48  ;;  %v12058_v20 = vcombine.high %v10578_v11, %v10578_v11  ;;  %v10690_v0 = vrot.slane %v10685_v31, %v16366_v59  ;;  %v9547_v11 = vrot.slane %v15544_v36, 4 }
 0x4be   :  { %7454 = vmatpush1.bf16.msra.mxu1 %v7261_v63  ;;  %7471 = vmatprep.mubr.bf16.mxu1 %v16363_v3 }
 0x4bf   :  { %v15556_v4 = vpop.permute.xlu1 %8405  ;;  %v15559_v29 = vpop.permute.xlu0 %7797  ;;  %12219 = vmatprep.subr.bf16.mxu1 %v16365_v16  ;;  %v10678_v17 = vpack.i.b16 %v12058_v20, %v12058_v20 }
 0x4c0   :  { %10742 = vrot.lane.b32.xlu0 %v12064_v26, %s12474_s17  ;;  %v7814_v47 = vsel %vm16378_vm3, %v15559_v29, %v15493_v39 }
 0x4c1   :  { %9007 = vrot.lane.b32.xlu1 %v11952_v28, %s12473_s1  ;;  %11847 = vmatmul.mubr.msk.bf16.vlgmr.msra.gmra.mxu0 %vm641_vm0, %v15498_v48  ;;  %v10692_v28 = vpack.i.b16 %v12060_v27, %v12060_v27  ;;  %v10683_v32 = vrot.slane %v10678_v17, %v16366_v59 }
 0x4c2   :  { %7512 = vmatprep.mubr.bf16.mxu0 %v16363_v3 }
 0x4c3   :  { %v7220_v18 = vpop.permute.xlu1 %7219  ;;  %v9531_v57 = vpop.permute.xlu0 %9530  ;;  %v12066_v34 = vcombine.low %v10676_v46, %v10683_v32 }
 0x4c4   :  { %v7232_v49 = vsel %vm1643_vm5, %v15392_v15, %v7220_v18  ;;  %v7273_v52 = vsel %vm97_vm12, %v7220_v18, 0  ;;  %v9544_v22 = vrot.slane %v9531_v57, 4  ;;  %v7806_v15 = vsel %vm16368_vm4, %v15364_v1, %v15457_v50  ;;  %vm16376_vm5 = vmmov %vm16369_vm9 }
 0x4c5   :  { %10740 = vrot.lane.b32.xlu1 %v12063_v56, %s12474_s17  ;;  %11850 = vmatprep.subr.msk.bf16.mxu0 %vm97_vm12, %v7232_v49  ;;  %v8937_v1 = vsel %vm3352_vm6, %v8925_v19, %v15470_v9  ;;  %v7821_v9 = vsel %vm97_vm12, %v7805_v30, 0  ;;  %v7809_v56 = vsel %vm16374_vm15, %v15389_v51, %v15400_v35  ;;  %v7812_v18 = vsel %vm16375_vm1, %v15452_v54, %v15547_v14  ;;  %v15652_v35 = vld [vmem:[%s16335_s5 + $0x6] sm:$0x3]  ;;  %vm16377_vm6 = vmmov %vm16375_vm1 }
 0x4c6   :  { %11849 = vmatmul.mubr.msk.bf16.vlgmr.msra.gmra.mxu1 %vm641_vm0, %v15498_v48  ;;  %7495 = vmatpush1.bf16.msra.mxu0 %v7267_v43  ;;  %v9550_v62 = vsel %vm16369_vm9, %v9544_v22, %v9531_v57  ;;  %v9551_v25 = vsel %vm97_vm12, %v9544_v22, %v9545_v23  ;;  %v8951_v26 = vmul.bf16 %v15619_v40, %v8937_v1  ;;  %v7833_v43 = vsel %vm97_vm12, %v7809_v56, 0  ;;  %vm16379_vm4 = vmmov %vm16376_vm5 }
 0x4c7   :  { %12220 = vmatpush3.bf16.msra.mxu1 %v7273_v52  ;;  %v15594_v55 = vpop.permute.xlu1 %9538  ;;  %11874 = vmatprep.subr.msk.bf16.mxu0 %vm97_vm12, %v7806_v15  ;;  %v9552_v12 = vsel %vm16371_vm11, %v9551_v25, %v15521_v37  ;;  %v9569_v41 = vmul.bf16 %v15603_v10, %v9550_v62  ;;  %v15607_v53 = vpop.permute.xlu0 %7801  ;;  %v7811_v22 = vsel %vm16377_vm6, %v15529_v21, %v15452_v54  ;;  %v12418_v25 = vld [vmem:[#allocation3 + $0x64] ss:$0 sps:$4 sm:$0x11]   ;;  %vm16380_vm9 = vmmov %vm16375_vm1  ;;  %vm16385_vm15 = vcmask 785408  }
 0x4c8   :  { %11876 = vmatprep.subr.msk.bf16.mxu1 %vm97_vm12, %v7808_v13  ;;  %12221 = vmatprep.mubr.msk.bf16.mxu1 %vm12471_vm2, %v16365_v16  ;;  %v9570_v5 = vmul.bf16 %v15347_v58, %v9552_v12  ;;  %v11954_v51 = vcombine.low %v8951_v26, %v8951_v26  ;;  %v7813_v1 = vsel %vm16380_vm9, %v15547_v14, %v15559_v29  ;;  %vm16381_vm10 = vmmov %vm16379_vm4 }
 0x4c9   :  { %10744 = vrot.lane.b32.xlu1 %v12065_v42, %s12474_s17  ;;  %v11989_v19 = vcombine.low %v9569_v41, %v9569_v41  ;;  %v11990_v45 = vcombine.high %v9569_v41, %v9569_v41  ;;  %11851 = vmatmul.mubr.msk.bf16.vlgmr.msra.gmra.mxu0 %vm641_vm0, %v15498_v48  ;;  %v10699_v31 = vpack.i.b16 %v12418_v25, %v12418_v25  ;;  %vm16382_vm11 = vmmov %vm16375_vm1 }
 0x4ca   :  { %7874 = vmatpush1.bf16.msra.mxu0 %v7821_v9  ;;  %7891 = vmatprep.mubr.bf16.mxu0 %v16363_v3  ;;  %v11991_v8 = vcombine.low %v9570_v5, %v9570_v5  ;;  %v11992_v20 = vcombine.high %v9570_v5, %v9570_v5  ;;  %v7845_v9 = vsel %vm97_vm12, %v7813_v1, 0  ;;  %vm16383_vm13 = vmmov %vm16379_vm4 }
 0x4cb   :  { %v15625_v6 = vpop.permute.xlu1 %8411  ;;  %11878 = vmatprep.subr.msk.bf16.mxu0 %vm97_vm12, %v7810_v38  ;;  %9611 = vrot.lane.b32.xlu0 %v11989_v19, %s12475_s18  ;;  %v9535_v63 = vpop.permute.xlu0 %9534  ;;  %v10704_v33 = vrot.slane %v10699_v31, %v16366_v59  ;;  %v7815_v38 = vsel %vm16382_vm11, %v15493_v39, %v15607_v53  ;;  %vm16386_vm1 = vmmov %vm16385_vm15 }
 0x4cc   :  { %v9546_v50 = vrot.slane %v9535_v63, 4  ;;  %v7851_v39 = vsel %vm97_vm12, %v7815_v38, 0  ;;  %vm16388_vm6 = vmmov %vm16379_vm4 }
 0x4cd   :  { %9613 = vrot.lane.b32.xlu1 %v11990_v45, %s12475_s18  ;;  %v12068_v56 = vcombine.low %v10704_v33, %v10704_v33  ;;  %vm16389_vm3 = vmmov %vm16386_vm1 }
 0x4ce   :  { %12222 = vmatmul.mubr.msk.bf16.vlgmr.msra.gmra.mxu1 %vm641_vm0, %v15498_v48  ;;  %v9553_v49 = vsel %vm97_vm12, %v9545_v23, %v9546_v50  ;;  %v9548_v48 = vrot.slane %v15594_v55, 4  ;;  %v9555_v42 = vsel %vm97_vm12, %v9546_v50, %v9547_v11  ;;  %v10697_v23 = vrot.slane %v10692_v28, %v16366_v59  ;;  %vm16391_vm9 = vmmov %vm16386_vm1 }
 0x4cf   :  { %7915 = vmatpush1.bf16.msra.mxu1 %v7827_v44  ;;  %v15647_v52 = vpop.permute.xlu1 %8413  ;;  %7932 = vmatprep.mubr.bf16.mxu1 %v16363_v3  ;;  %v9554_v57 = vsel %vm16376_vm5, %v9553_v49, %v9535_v63  ;;  %v15660_v37 = vpop.permute.xlu0 %8403  ;;  %v9556_v30 = vsel %vm16379_vm4, %v9555_v42, %v15544_v36  ;;  %v7839_v36 = vsel %vm97_vm12, %v7811_v22, 0  ;;  %vm16387_vm5 = vmmov %vm16386_vm1 }
 0x4d0   :  { %11880 = vmatprep.subr.msk.bf16.mxu1 %vm97_vm12, %v7812_v18  ;;  %9615 = vrot.lane.b32.xlu0 %v11991_v8, %s12475_s18  ;;  %v9571_v15 = vmul.bf16 %v15426_v2, %v9554_v57  ;;  %v9557_v54 = vsel %vm97_vm12, %v9547_v11, %v9548_v48  ;;  %v12067_v62 = vcombine.low %v10690_v0, %v10697_v23  ;;  %vm16390_vm4 = vmmov %vm16386_vm1 }
 0x4d1   :  { %9011 = vrot.lane.b32.xlu1 %v11954_v51, %s12473_s1  ;;  %11875 = vmatmul.mubr.msk.bf16.vlgmr.msra.gmra.mxu0 %vm641_vm0, %v15652_v35  ;;  %v9572_v13 = vmul.bf16 %v15433_v7, %v9556_v30  ;;  %v9558_v12 = vsel %vm16381_vm10, %v9557_v54, %v15594_v55  ;;  %vm16392_vm10 = vmmov %vm16386_vm1 }
 0x4d2   :  { %7956 = vmatpush1.bf16.msra.mxu0 %v7833_v43  ;;  %7973 = vmatprep.mubr.bf16.mxu0 %v16363_v3  ;;  %v11993_v41 = vcombine.low %v9571_v15, %v9571_v15  ;;  %v9573_v19 = vmul.bf16 %v15448_v60, %v9558_v12  ;;  %v11994_v29 = vcombine.high %v9571_v15, %v9571_v15  ;;  %vm16393_vm11 = vmmov %vm16386_vm1 }
 0x4d3   :  { %v15676_v27 = vpop.permute.xlu1 %8417  ;;  %11882 = vmatprep.subr.msk.bf16.mxu0 %vm97_vm12, %v7814_v47  ;;  %v15682_v21 = vpop.permute.xlu0 %8407  ;;  %v11995_v14 = vcombine.low %v9572_v13, %v9572_v13  ;;  %v11996_v50 = vcombine.high %v9572_v13, %v9572_v13  ;;  %v8433_v47 = vsel %vm16391_vm9, %v15625_v6, %v15647_v52  ;;  %vm16401_vm9 = vmmov %vm16386_vm1 }
 0x4d4   :  { %9617 = vrot.lane.b32.xlu0 %v11992_v20, %s12475_s18  ;;  %v11997_v26 = vcombine.low %v9573_v19, %v9573_v19  ;;  %v11998_v11 = vcombine.high %v9573_v19, %v9573_v19  ;;  %v8430_v44 = vsel %vm16385_vm15, %v15556_v4, %v15682_v21 }
 0x4d5   :  { %10746 = vrot.lane.b32.xlu1 %v12066_v34, %s12474_s17 }
 0x4d6   :  { %11877 = vmatmul.mubr.msk.bf16.vlgmr.msra.gmra.mxu1 %vm641_vm0, %v15652_v35 }
 0x4d7   :  { %7997 = vmatpush1.bf16.msra.mxu1 %v7839_v36  ;;  %v9543_v61 = vpop.permute.xlu1 %9542  ;;  %8014 = vmatprep.mubr.bf16.mxu1 %v16363_v3  ;;  %v8410_v17 = vpop.permute.xlu0 %8409 }
 0x4d8   :  { %10748 = vrot.lane.b32.xlu0 %v12067_v62, %s12474_s17  ;;  %v8432_v18 = vsel %vm16387_vm5, %v8410_v17, %v15625_v6  ;;  %v8431_v57 = vsel %vm16389_vm3, %v15682_v21, %v8410_v17  ;;  %v15767_v21 = vld [vmem:[%s16335_s5 + $0x8] sm:$0x3] }
 0x4d9   :  { %9619 = vrot.lane.b32.xlu1 %v11993_v41, %s12475_s18  ;;  %11879 = vmatmul.mubr.msk.bf16.vlgmr.msra.gmra.mxu0 %vm641_vm0, %v15652_v35  ;;  %v8451_v20 = vsel %vm97_vm12, %v8431_v57, 0 }
 0x4da   :  { %8038 = vmatpush1.bf16.msra.mxu0 %v7845_v9  ;;  %8055 = vmatprep.mubr.bf16.mxu0 %v16363_v3 }
 0x4db   :  { %v15701_v55 = vpop.permute.xlu1 %8423  ;;  %v9541_v45 = vpop.permute.xlu0 %9540  ;;  %12225 = vmatprep.subr.bf16.mxu0 %v16365_v16 }
 0x4dc   :  { %9623 = vrot.lane.b32.xlu0 %v11995_v14, %s12475_s18  ;;  %v9549_v5 = vrot.slane %v9541_v45, 4 }
 0x4dd   :  { %9621 = vrot.lane.b32.xlu1 %v11994_v29, %s12475_s18 }
 0x4de   :  { %11881 = vmatmul.mubr.msk.bf16.vlgmr.msra.gmra.mxu1 %vm641_vm0, %v15652_v35  ;;  %v9559_v63 = vsel %vm97_vm12, %v9548_v48, %v9549_v5  ;;  %v9561_v51 = vsel %vm16388_vm6, %v9549_v5, %v9543_v61 }
 0x4df   :  { %v7804_v28 = vpop.permute.xlu1 %7803  ;;  %8096 = vmatprep.mubr.bf16.mxu1 %v16363_v3  ;;  %v9560_v46 = vsel %vm16383_vm13, %v9559_v63, %v9541_v45  ;;  %v8416_v0 = vpop.permute.xlu0 %8415  ;;  %vm16394_vm13 = vmmov %vm16386_vm1 }
 0x4e0   :  { %v7816_v32 = vsel %vm16384_vm14, %v15607_v53, %v7804_v28  ;;  %v7857_v59 = vsel %vm97_vm12, %v7804_v28, 0  ;;  %9627 = vrot.lane.b32.xlu0 %v11997_v26, %s12475_s18  ;;  %v9574_v8 = vmul.bf16 %v15531_v24, %v9560_v46  ;;  %v8429_v53 = vsel %vm16386_vm1, %v15660_v37, %v15556_v4 }
 0x4e1   :  { %9625 = vrot.lane.b32.xlu1 %v11996_v50, %s12475_s18  ;;  %11884 = vmatprep.subr.msk.bf16.mxu1 %vm97_vm12, %v7816_v32  ;;  %v8445_v4 = vsel %vm97_vm12, %v8429_v53, 0  ;;  %v9575_v37 = vmul.bf16 %v15619_v40, %v9561_v51  ;;  %v8434_v34 = vsel %vm16390_vm4, %v15647_v52, %v8416_v0  ;;  %v8457_v52 = vsel %vm97_vm12, %v8433_v47, 0 }
 0x4e2   :  { %11883 = vmatmul.mubr.msk.bf16.vlgmr.msra.gmra.mxu0 %vm641_vm0, %v15652_v35  ;;  %8079 = vmatpush1.bf16.msra.mxu1 %v7851_v39  ;;  %v12000_v42 = vcombine.high %v9574_v8, %v9574_v8  ;;  %v11999_v23 = vcombine.low %v9574_v8, %v9574_v8  ;;  %v8435_v25 = vsel %vm16393_vm11, %v8416_v0, %v15676_v27  ;;  %vm16395_vm14 = vcmask 490496  }
 0x4e3   :  { %12226 = vmatpush3.bf16.msra.mxu0 %v7857_v59  ;;  %v15734_v49 = vpop.permute.xlu1 %10116  ;;  %11921 = vmatprep.subr.msk.bf16.mxu1 %vm97_vm12, %v8430_v44  ;;  %v8420_v48 = vpop.permute.xlu0 %8419  ;;  %v12001_v54 = vcombine.low %v9575_v37, %v9575_v37  ;;  %vm16396_vm15 = vmmov %vm16395_vm14  ;;  %v8463_v61 = vsel %vm97_vm12, %v8435_v25, 0  ;;  %vm16403_vm11 = vcmask 777216  }
 0x4e4   :  { %11923 = vmatprep.subr.msk.bf16.mxu0 %vm97_vm12, %v8432_v18  ;;  %9629 = vrot.lane.b32.xlu0 %v11998_v11, %s12475_s18  ;;  %v10129_v30 = vrot.slane %v15734_v49, 4  ;;  %v8436_v15 = vsel %vm16392_vm10, %v15676_v27, %v8420_v48  ;;  %vm16397_vm5 = vmmov %vm16395_vm14 }
 0x4e5   :  { %10750 = vrot.lane.b32.xlu1 %v12068_v56, %s12474_s17  ;;  %12227 = vmatprep.mubr.msk.bf16.mxu0 %vm12471_vm2, %v16365_v16  ;;  %vm16398_vm6 = vmmov %vm16397_vm5 }
 0x4e6   :  { %11885 = vmatmul.mubr.msk.bf16.vlgmr.msra.gmra.mxu1 %vm641_vm0, %v15652_v35  ;;  %vm16399_vm3 = vmmov %vm16397_vm5 }
 0x4e7   :  { %8498 = vmatpush1.bf16.msra.mxu1 %v8445_v4  ;;  %v10121_v22 = vpop.permute.xlu1 %10120  ;;  %8515 = vmatprep.mubr.bf16.mxu1 %v16363_v3  ;;  %v8422_v43 = vpop.permute.xlu0 %8421  ;;  %vm16400_vm4 = vmmov %vm16399_vm3 }
 0x4e8   :  { %9633 = vrot.lane.b32.xlu0 %v12000_v42, %s12475_s18  ;;  %11925 = vmatprep.subr.msk.bf16.mxu1 %vm97_vm12, %v8434_v34  ;;  %v8438_v36 = vsel %vm16394_vm13, %v8422_v43, %v15701_v55  ;;  %v8437_v14 = vsel %vm16386_vm1, %v8420_v48, %v8422_v43  ;;  %v10131_v45 = vrot.slane %v10121_v22, 4  ;;  %vm16402_vm10 = vmmov %vm16386_vm1 }
 0x4e9   :  { %9631 = vrot.lane.b32.xlu1 %v11999_v23, %s12475_s18  ;;  %v8469_v26 = vsel %vm97_vm12, %v8437_v14, 0  ;;  %vm16404_vm13 = vmmov %vm16403_vm11 }
 0x4ea   :  { %12228 = vmatmul.mubr.msk.bf16.vlgmr.msra.gmra.mxu0 %vm641_vm0, %v15652_v35  ;;  %vm16407_vm1 = vmmov %vm16403_vm11 }
 0x4eb   :  { %8539 = vmatpush1.bf16.msra.mxu0 %v8451_v20  ;;  %8556 = vmatprep.mubr.bf16.mxu0 %v16363_v3  ;;  %v15771_v35 = vpop.permute.xlu1 %8989  ;;  %v10115_v62 = vpop.permute.xlu0 %10114 }
 0x4ec   :  { %11927 = vmatprep.subr.msk.bf16.mxu0 %vm97_vm12, %v8436_v15  ;;  %v10128_v6 = vrot.slane %v10115_v62, 4 }
 0x4ed   :  { %9635 = vrot.lane.b32.xlu1 %v12001_v54, %s12475_s18 }
 0x4ee   :  { %11922 = vmatmul.mubr.msk.bf16.vlgmr.msra.gmra.mxu1 %vm641_vm0, %v15767_v21  ;;  %v10134_v13 = vsel %vm16395_vm14, %v10128_v6, %v10115_v62  ;;  %v10135_v1 = vsel %vm97_vm12, %v10128_v6, %v10129_v30  ;;  %vm16405_vm14 = vmmov %vm16403_vm11 }
 0x4ef   :  { %8580 = vmatpush1.bf16.msra.mxu1 %v8457_v52  ;;  %8597 = vmatprep.mubr.bf16.mxu1 %v16363_v3  ;;  %v10136_v12 = vsel %vm16396_vm15, %v10135_v1, %v15734_v49  ;;  %v10153_v41 = vmul.bf16 %v15603_v10, %v10134_v13  ;;  %v15788_v27 = vpop.permute.xlu0 %8425  ;;  %v10123_v9 = vpop.permute.xlu1 %10122  ;;  %vm16406_vm15 = vmmov %vm16403_vm11 }
 0x4f0   :  { %11929 = vmatprep.subr.msk.bf16.mxu1 %vm97_vm12, %v8438_v36  ;;  %v10154_v19 = vmul.bf16 %v15347_v58, %v10136_v12  ;;  %v10132_v5 = vrot.slane %v10123_v9, 4  ;;  %v8439_v62 = vsel %vm16401_vm9, %v15701_v55, %v15788_v27  ;;  %vm16411_vm9 = vmmov %vm16407_vm1 }
 0x4f1   :  { %v12023_v17 = vcombine.low %v10153_v41, %v10153_v41  ;;  %v12024_v31 = vcombine.high %v10153_v41, %v10153_v41 }
 0x4f2   :  { %11924 = vmatmul.mubr.msk.bf16.vlgmr.msra.gmra.mxu0 %vm641_vm0, %v15767_v21  ;;  %v12026_v38 = vcombine.high %v10154_v19, %v10154_v19  ;;  %v12025_v58 = vcombine.low %v10154_v19, %v10154_v19  ;;  %v10141_v32 = vsel %vm97_vm12, %v10131_v45, %v10132_v5 }
 0x4f3   :  { %8621 = vmatpush1.bf16.msra.mxu0 %v8463_v61  ;;  %8638 = vmatprep.mubr.bf16.mxu0 %v16363_v3  ;;  %v10119_v29 = vpop.permute.xlu0 %10118  ;;  %v10142_v11 = vsel %vm16399_vm3, %v10141_v32, %v10123_v9  ;;  %v8475_v61 = vsel %vm97_vm12, %v8439_v62, 0 }
 0x4f4   :  { %10197 = vrot.lane.b32.xlu1 %v12024_v31, %s12476_s9  ;;  %10195 = vrot.lane.b32.xlu0 %v12023_v17, %s12476_s9  ;;  %v10130_v33 = vrot.slane %v10119_v29, 4  ;;  %v10157_v44 = vmul.bf16 %v15448_v60, %v10142_v11 }
 0x4f6   :  { %11926 = vmatmul.mubr.msk.bf16.vlgmr.msra.gmra.mxu1 %vm641_vm0, %v15767_v21  ;;  %v10137_v63 = vsel %vm97_vm12, %v10129_v30, %v10130_v33  ;;  %v10139_v28 = vsel %vm97_vm12, %v10130_v33, %v10131_v45  ;;  %v12031_v18 = vcombine.low %v10157_v44, %v10157_v44  ;;  %v12032_v49 = vcombine.high %v10157_v44, %v10157_v44 }
 0x4f7   :  { %8662 = vmatpush1.bf16.msra.mxu1 %v8469_v26  ;;  %8679 = vmatprep.mubr.bf16.mxu1 %v16363_v3  ;;  %v10138_v50 = vsel %vm16397_vm5, %v10137_v63, %v10119_v29  ;;  %v10140_v46 = vsel %vm16398_vm6, %v10139_v28, %v10121_v22  ;;  %v8988_v51 = vpop.permute.xlu0 %8987  ;;  %vm16408_vm5 = vmmov %vm16407_vm1  ;;  %vm16409_vm6 = vcmask 498688  }
 0x4f8   :  { %10201 = vrot.lane.b32.xlu1 %v12026_v38, %s12476_s9  ;;  %10199 = vrot.lane.b32.xlu0 %v12025_v58, %s12476_s9  ;;  %v10155_v59 = vmul.bf16 %v15426_v2, %v10138_v50  ;;  %v10156_v56 = vmul.bf16 %v15433_v7, %v10140_v46  ;;  %v9013_v31 = vsel %vm16405_vm14, %v8988_v51, %v15771_v35  ;;  %vm16415_vm14 = vmmov %vm16409_vm6 }
 0x4f9   :  { %12231 = vmatprep.subr.bf16.mxu1 %v16365_v16 }
 0x4fa   :  { %11928 = vmatmul.mubr.msk.bf16.vlgmr.msra.gmra.mxu0 %vm641_vm0, %v15767_v21  ;;  %v12027_v0 = vcombine.low %v10155_v59, %v10155_v59  ;;  %v12028_v39 = vcombine.high %v10155_v59, %v10155_v59  ;;  %v12030_v8 = vcombine.high %v10156_v56, %v10156_v56  ;;  %v12029_v53 = vcombine.low %v10156_v56, %v10156_v56 }
 0x4fb   :  { %8720 = vmatprep.mubr.bf16.mxu0 %v16363_v3 }
 0x4fc   :  { %10205 = vrot.lane.b32.xlu1 %v12028_v39, %s12476_s9  ;;  %10203 = vrot.lane.b32.xlu0 %v12027_v0, %s12476_s9 }
 0x4fe   :  { %11930 = vmatmul.mubr.msk.bf16.vlgmr.msra.gmra.mxu1 %vm641_vm0, %v15767_v21 }
 0x4ff   :  { %12233 = vmatprep.mubr.msk.bf16.mxu1 %vm12471_vm2, %v16365_v16 }
 0x500   :  { %10209 = vrot.lane.b32.xlu1 %v12030_v8, %s12476_s9  ;;  %10207 = vrot.lane.b32.xlu0 %v12029_v53, %s12476_s9 }
 0x504   :  { %10213 = vrot.lane.b32.xlu1 %v12032_v49, %s12476_s9  ;;  %10211 = vrot.lane.b32.xlu0 %v12031_v18, %s12476_s9 }
 0x50a   :  { %v8992_v48 = vpop.permute.xlu0 %8991 }
 0x50e   :  { %v8994_v4 = vpop.permute.xlu0 %8993 }
 0x50f   :  { %v9015_v17 = vsel %vm16403_vm11, %v8992_v48, %v8994_v4  ;;  %vm16413_vm11 = vmmov %vm16407_vm1 }
 0x510   :  { %v9035_v45 = vsel %vm97_vm12, %v9015_v17, 0 }
 0x512   :  { %v10125_v57 = vpop.permute.xlu0 %10124 }
 0x513   :  { %v10133_v42 = vrot.slane %v10125_v57, 4 }
 0x515   :  { %v10143_v37 = vsel %vm97_vm12, %v10132_v5, %v10133_v42 }
 0x516   :  { %v10144_v23 = vsel %vm16400_vm4, %v10143_v37, %v10125_v57  ;;  %vm16410_vm4 = vmmov %vm16407_vm1 }
 0x517   :  { %v10158_v34 = vmul.bf16 %v15531_v24, %v10144_v23 }
 0x519   :  { %v12033_v22 = vcombine.low %v10158_v34, %v10158_v34  ;;  %v12034_v43 = vcombine.high %v10158_v34, %v10158_v34 }
 0x51b   :  { %10217 = vrot.lane.b32.xlu1 %v12034_v43, %s12476_s9  ;;  %10215 = vrot.lane.b32.xlu0 %v12033_v22, %s12476_s9  ;;  %v12430_v43 = vld [vmem:[#allocation2 + $0x8] sm:$0xff] }
 0x51e   :  { %v9000_v47 = vpop.permute.xlu0 %8999 }
 0x51f   :  { %v8996_v20 = vpop.permute.xlu1 %8995 }
 0x520   :  { %v9016_v55 = vsel %vm16404_vm13, %v8994_v4, %v8996_v20  ;;  %vm16414_vm13 = vmmov %vm16409_vm6 }
 0x522   :  { %v15832_v15 = vpop.permute.xlu0 %9003  ;;  %v15834_v54 = vpop.f32.mrf.mxu1 }
 0x523   :  { %v8998_v30 = vpop.permute.xlu1 %8997 }
 0x524   :  { %v15839_v6 = vpop.f32.mrf.mxu1  ;;  %v9018_v38 = vsel %vm16408_vm5, %v8998_v30, %v9000_v47  ;;  %v9017_v0 = vsel %vm16411_vm9, %v8996_v20, %v8998_v30  ;;  %vm16417_vm5 = vmmov %vm16407_vm1 }
 0x525   :  { %v9041_v53 = vsel %vm97_vm12, %v9017_v0, 0  ;;  %vm16421_vm9 = vmmov %vm16414_vm13 }
 0x526   :  { %v15841_v52 = vpop.f32.mrf.mxu0  ;;  %v15843_v36 = vpop.permute.xlu0 %9005 }
 0x527   :  { %v8428_v25 = vpop.permute.xlu1 %8427  ;;  %v6303_v12 = vpop.f32.mrf.mxu1  ;;  %v9021_v4 = vsel %vm16413_vm11, %v15832_v15, %v15843_v36  ;;  %vm16423_vm11 = vmmov %vm16421_vm9 }
 0x528   :  { %v8440_v13 = vsel %vm16402_vm10, %v15788_v27, %v8428_v25  ;;  %v8481_v1 = vsel %vm97_vm12, %v8428_v25, 0  ;;  %v15848_v41 = vpop.f32.mrf.mxu0  ;;  %v9014_v27 = vsel %vm16406_vm15, %v15771_v35, %v8992_v48  ;;  %v9029_v35 = vsel %vm97_vm12, %v9013_v31, 0  ;;  %vm16412_vm10 = vmmov %vm16407_vm1 }
 0x529   :  { %11931 = vmatprep.subr.msk.bf16.mxu0 %vm97_vm12, %v8440_v13  ;;  %12232 = vmatpush3.bf16.msra.mxu1 %v8481_v1  ;;  %v6304_v9 = vpop.f32.mrf.mxu1  ;;  %vm16416_vm15 = vmmov %vm16409_vm6 }
 0x52a   :  { %8703 = vmatpush1.bf16.msra.mxu0 %v8475_v61  ;;  %11957 = vmatprep.subr.msk.bf16.mxu1 %vm97_vm12, %v9016_v55  ;;  %v6344_v19 = vpop.f32.mrf.mxu0  ;;  %v10739_v29 = vpop.permute.xlu0 %10738 }
 0x52b   :  { %v9002_v14 = vpop.permute.xlu1 %9001  ;;  %11955 = vmatprep.subr.msk.bf16.mxu0 %vm97_vm12, %v9014_v27  ;;  %v10752_v33 = vrot.slane %v10739_v29, 4 }
 0x52c   :  { %v9020_v5 = vsel %vm16407_vm1, %v9002_v14, %v15832_v15  ;;  %12234 = vmatmul.mubr.msk.bf16.vlgmr.msra.gmra.mxu1 %vm641_vm0, %v15767_v21  ;;  %v6345_v26 = vpop.f32.mrf.mxu0  ;;  %v9053_v15 = vsel %vm97_vm12, %v9021_v4, 0 }
 0x52d   :  { %11932 = vmatmul.mubr.msk.bf16.vlgmr.msra.gmra.mxu0 %vm641_vm0, %v15767_v21  ;;  %9123 = vmatpush1.bf16.msra.mxu1 %v9035_v45  ;;  %v10758_v58 = vsel %vm16409_vm6, %v10752_v33, %v10739_v29  ;;  %v9019_v21 = vsel %vm16410_vm4, %v9000_v47, %v9002_v14  ;;  %vm16418_vm6 = vcmask 564224  }
 0x52e   :  { %9082 = vmatpush1.bf16.msra.mxu0 %v9029_v35  ;;  %11961 = vmatprep.subr.msk.bf16.mxu1 %vm97_vm12, %v9020_v5  ;;  %v10777_v63 = vmul.bf16 %v15603_v10, %v10758_v58  ;;  %v15873_v50 = vpop.permute.xlu0 %9009  ;;  %v15883_v10 = vld [vmem:[%s16335_s5 + $0xa] sm:$0x3]  ;;  %v9047_v44 = vsel %vm97_vm12, %v9019_v21, 0 }
 0x52f   :  { %v10127_v28 = vpop.permute.xlu1 %10126  ;;  %11959 = vmatprep.subr.msk.bf16.mxu0 %vm97_vm12, %v9018_v38  ;;  %9140 = vmatprep.mubr.bf16.mxu1 %v16363_v3 }
 0x530   :  { %v10145_v46 = vsel %vm16399_vm3, %v10133_v42, %v10127_v28  ;;  %9099 = vmatprep.mubr.bf16.mxu0 %v16363_v3  ;;  %v12070_v32 = vcombine.low %v10777_v63, %v10777_v63  ;;  %v12071_v51 = vcombine.high %v10777_v63, %v10777_v63  ;;  %vm16419_vm3 = vmmov %vm16418_vm6 }
 0x531   :  { %v10159_v59 = vmul.bf16 %v15619_v40, %v10145_v46  ;;  %vm16420_vm4 = vmmov %vm16419_vm3 }
 0x532   :  { %10819 = vrot.lane.b32.xlu1 %v12070_v32, %s12477_s13  ;;  %v10743_v11 = vpop.permute.xlu0 %10742 }
 0x533   :  { %v12035_v39 = vcombine.low %v10159_v59, %v10159_v59  ;;  %v9008_v56 = vpop.permute.xlu1 %9007  ;;  %v10754_v18 = vrot.slane %v10743_v11, 4 }
 0x534   :  { %v9022_v8 = vsel %vm16412_vm10, %v15843_v36, %v9008_v56  ;;  %11958 = vmatmul.mubr.msk.bf16.vlgmr.msra.gmra.mxu1 %vm641_vm0, %v15883_v10  ;;  %vm16422_vm10 = vmmov %vm16419_vm3 }
 0x535   :  { %9205 = vmatpush1.bf16.msra.mxu1 %v9047_v44  ;;  %11956 = vmatmul.mubr.msk.bf16.vlgmr.msra.gmra.mxu0 %vm641_vm0, %v15883_v10 }
 0x536   :  { %10219 = vrot.lane.b32.xlu0 %v12035_v39, %s12476_s9  ;;  %9164 = vmatpush1.bf16.msra.mxu0 %v9041_v53 }
 0x537   :  { %11963 = vmatprep.subr.msk.bf16.mxu0 %vm97_vm12, %v9022_v8  ;;  %v10741_v49 = vpop.permute.xlu1 %10740  ;;  %9222 = vmatprep.mubr.bf16.mxu1 %v16363_v3 }
 0x538   :  { %v10753_v48 = vrot.slane %v10741_v49, 4  ;;  %9181 = vmatprep.mubr.bf16.mxu0 %v16363_v3 }
 0x53a   :  { %v10759_v57 = vsel %vm97_vm12, %v10752_v33, %v10753_v48  ;;  %v10761_v42 = vsel %vm97_vm12, %v10753_v48, %v10754_v18  ;;  %10821 = vrot.lane.b32.xlu0 %v12071_v51, %s12477_s13  ;;  %v15905_v37 = vpop.f32.mrf.mxu1 }
 0x53b   :  { %v10760_v23 = vsel %vm16414_vm13, %v10759_v57, %v10741_v49  ;;  %v10762_v34 = vsel %vm16415_vm14, %v10761_v42, %v10743_v11  ;;  %v10745_v22 = vpop.permute.xlu1 %10744  ;;  %vm16424_vm13 = vmmov %vm16419_vm3 }
 0x53c   :  { %v10778_v20 = vmul.bf16 %v12430_v43, %v10760_v23  ;;  %v10755_v47 = vrot.slane %v10745_v22, 4  ;;  %11962 = vmatmul.mubr.msk.bf16.vlgmr.msra.gmra.mxu1 %vm641_vm0, %v15883_v10  ;;  %v15911_v30 = vpop.f32.mrf.mxu1  ;;  %v10779_v36 = vmul.bf16 %v15426_v2, %v10762_v34  ;;  %v9023_v2 = vsel %vm16407_vm1, %v9008_v56, %v15873_v50  ;;  %v15969_v23 = vld [vmem:[%s16335_s5 + $0xc] sm:$0x3]  ;;  %vm16425_vm14 = vmmov %vm16419_vm3 }
 0x53d   :  { %11960 = vmatmul.mubr.msk.bf16.vlgmr.msra.gmra.mxu0 %vm641_vm0, %v15883_v10  ;;  %9304 = vmatprep.mubr.bf16.mxu1 %v16363_v3  ;;  %v9612_v13 = vpop.permute.xlu0 %9611  ;;  %v9059_v5 = vsel %vm97_vm12, %v9023_v2, 0  ;;  %vm16427_vm1 = vmmov %vm16419_vm3 }
 0x53e   :  { %v12072_v62 = vcombine.low %v10778_v20, %v10778_v20  ;;  %v12073_v25 = vcombine.high %v10778_v20, %v10778_v20  ;;  %9246 = vmatpush1.bf16.msra.mxu0 %v9053_v15  ;;  %v6385_v1 = vpop.f32.mrf.mxu1  ;;  %v10763_v12 = vsel %vm97_vm12, %v10754_v18, %v10755_v47  ;;  %9263 = vmatprep.mubr.bf16.mxu0 %v16363_v3 }
 0x53f   :  { %v9614_v61 = vpop.permute.xlu1 %9613  ;;  %12237 = vmatprep.subr.bf16.mxu0 %v16365_v16  ;;  %v10764_v17 = vsel %vm16416_vm15, %v10763_v12, %v10745_v22  ;;  %v12074_v31 = vcombine.low %v10779_v36, %v10779_v36  ;;  %v12075_v27 = vcombine.high %v10779_v36, %v10779_v36  ;;  %vm16426_vm15 = vmmov %vm16419_vm3 }
 0x540   :  { %10825 = vrot.lane.b32.xlu0 %v12073_v25, %s12477_s13  ;;  %10823 = vrot.lane.b32.xlu1 %v12072_v62, %s12477_s13  ;;  %v6386_v55 = vpop.f32.mrf.mxu1  ;;  %v10780_v9 = vmul.bf16 %v15433_v7, %v10764_v17  ;;  %v9637_v33 = vsel %vm16418_vm6, %v9612_v13, %v9614_v61  ;;  %vm16429_vm6 = vmmov %vm16427_vm1 }
 0x542   :  { %v9616_v19 = vpop.permute.xlu0 %9615  ;;  %v12076_v7 = vcombine.low %v10780_v9, %v10780_v9  ;;  %v12077_v26 = vcombine.high %v10780_v9, %v10780_v9 }
 0x543   :  { %v9012_v14 = vpop.permute.xlu1 %9011  ;;  %v9638_v35 = vsel %vm16419_vm3, %v9614_v61, %v9616_v19  ;;  %vm16430_vm3 = vmmov %vm16427_vm1 }
 0x544   :  { %v9024_v29 = vsel %vm16417_vm5, %v15873_v50, %v9012_v14  ;;  %v9065_v45 = vsel %vm97_vm12, %v9012_v14, 0  ;;  %10829 = vrot.lane.b32.xlu0 %v12075_v27, %s12477_s13  ;;  %10827 = vrot.lane.b32.xlu1 %v12074_v31, %s12477_s13  ;;  %v9653_v50 = vsel %vm97_vm12, %v9637_v33, 0  ;;  %v11198_v27 = vld [vmem:[%s16336_s6] sm:$0xf]  ;;  %vm16428_vm5 = vmmov %vm16421_vm9 }
 0x545   :  { %11964 = vmatmul.mubr.msk.bf16.vlgmr.msra.gmra.mxu0 %vm641_vm0, %v15883_v10  ;;  %11965 = vmatprep.subr.msk.bf16.mxu1 %vm97_vm12, %v9024_v29 }
 0x546   :  { %12238 = vmatpush3.bf16.msra.mxu0 %v9065_v45  ;;  %9287 = vmatpush1.bf16.msra.mxu1 %v9059_v5  ;;  %v9618_v38 = vpop.permute.xlu0 %9617  ;;  %v15939_v63 = vpop.f32.mrf.mxu0 }
 0x547   :  { %v10747_v58 = vpop.permute.xlu1 %10746  ;;  %12002 = vmatprep.subr.msk.bf16.mxu1 %vm97_vm12, %v9638_v35  ;;  %12239 = vmatprep.mubr.msk.bf16.mxu0 %vm12471_vm2, %v16365_v16  ;;  %v9639_v21 = vsel %vm16420_vm4, %v9616_v19, %v9618_v38  ;;  %vm16431_vm4 = vmmov %vm16427_vm1 }
 0x548   :  { %v10756_v28 = vrot.slane %v10747_v58, 4  ;;  %10833 = vrot.lane.b32.xlu0 %v12077_v26, %s12477_s13  ;;  %10831 = vrot.lane.b32.xlu1 %v12076_v7, %s12477_s13  ;;  %v15948_v46 = vpop.f32.mrf.mxu0  ;;  %v9659_v49 = vsel %vm97_vm12, %v9639_v21, 0 }
 0x549   :  { %11966 = vmatmul.mubr.msk.bf16.vlgmr.msra.gmra.mxu1 %vm641_vm0, %v15883_v10  ;;  %v15952_v0 = vpop.f32.mrf.mxu1 }
 0x54a   :  { %v10765_v32 = vsel %vm97_vm12, %v10755_v47, %v10756_v28  ;;  %9706 = vmatpush1.bf16.msra.mxu1 %v9653_v50  ;;  %v10749_v59 = vpop.permute.xlu0 %10748  ;;  %9723 = vmatprep.mubr.bf16.mxu1 %v16363_v3  ;;  %v6426_v44 = vpop.f32.mrf.mxu0 }
 0x54b   :  { %v10766_v39 = vsel %vm16421_vm9, %v10765_v32, %v10747_v58  ;;  %v10757_v56 = vrot.slane %v10749_v59, 4  ;;  %v9620_v11 = vpop.permute.xlu1 %9619  ;;  %v15958_v18 = vpop.f32.mrf.mxu1  ;;  %vm16432_vm9 = vmmov %vm16427_vm1 }
 0x54c   :  { %v10781_v8 = vmul.bf16 %v15448_v60, %v10766_v39  ;;  %v9640_v53 = vsel %vm16422_vm10, %v9618_v38, %v9620_v11  ;;  %v6427_v48 = vpop.f32.mrf.mxu0 }
 0x54d   :  { %v10767_v51 = vsel %vm97_vm12, %v10756_v28, %v10757_v56  ;;  %12240 = vmatmul.mubr.msk.bf16.vlgmr.msra.gmra.mxu0 %vm641_vm0, %v15883_v10  ;;  %12004 = vmatprep.subr.msk.bf16.mxu0 %vm97_vm12, %v9640_v53  ;;  %v6467_v34 = vpop.f32.mrf.mxu1 }
 0x54e   :  { %v12078_v4 = vcombine.low %v10781_v8, %v10781_v8  ;;  %v12079_v57 = vcombine.high %v10781_v8, %v10781_v8  ;;  %v10768_v42 = vsel %vm16423_vm11, %v10767_v51, %v10749_v59  ;;  %9747 = vmatpush1.bf16.msra.mxu0 %v9659_v49  ;;  %v9624_v60 = vpop.permute.xlu0 %9623  ;;  %9764 = vmatprep.mubr.bf16.mxu0 %v16363_v3 }
 0x54f   :  { %v10782_v22 = vmul.bf16 %v15531_v24, %v10768_v42  ;;  %v9622_v10 = vpop.permute.xlu1 %9621  ;;  %v6468_v47 = vpop.f32.mrf.mxu1 }
 0x550   :  { %v9641_v43 = vsel %vm16424_vm13, %v9620_v11, %v9622_v10  ;;  %v9642_v20 = vsel %vm16425_vm14, %v9622_v10, %v9624_v60  ;;  %10837 = vrot.lane.b32.xlu0 %v12079_v57, %s12477_s13  ;;  %10835 = vrot.lane.b32.xlu1 %v12078_v4, %s12477_s13 }
 0x551   :  { %v12080_v15 = vcombine.low %v10782_v22, %v10782_v22  ;;  %v12081_v62 = vcombine.high %v10782_v22, %v10782_v22  ;;  %v9665_v25 = vsel %vm97_vm12, %v9641_v43, 0  ;;  %12003 = vmatmul.mubr.msk.bf16.vlgmr.msra.gmra.mxu1 %vm641_vm0, %v15969_v23  ;;  %12006 = vmatprep.subr.msk.bf16.mxu1 %vm97_vm12, %v9642_v20  ;;  %v15981_v24 = vpop.f32.mrf.mxu0  ;;  %v15983_v13 = vpop.f32.mrf.mxu1 }
 0x552   :  { %9788 = vmatpush1.bf16.msra.mxu1 %v9665_v25  ;;  %v9628_v36 = vpop.permute.xlu0 %9627  ;;  %9805 = vmatprep.mubr.bf16.mxu1 %v16363_v3 }
 0x553   :  { %v9626_v1 = vpop.permute.xlu1 %9625  ;;  %v15986_v12 = vpop.f32.mrf.mxu0 }
 0x554   :  { %v9643_v61 = vsel %vm16426_vm15, %v9624_v60, %v9626_v1  ;;  %v9644_v17 = vsel %vm16427_vm1, %v9626_v1, %v9628_v36  ;;  %10841 = vrot.lane.b32.xlu0 %v12081_v62, %s12477_s13  ;;  %10839 = vrot.lane.b32.xlu1 %v12080_v15, %s12477_s13  ;;  %v12211_v55 = vpop.f32.mrf.mxu1 }
 0x555   :  { %v9671_v2 = vsel %vm97_vm12, %v9643_v61, 0  ;;  %12005 = vmatmul.mubr.msk.bf16.vlgmr.msra.gmra.mxu0 %vm641_vm0, %v15969_v23  ;;  %12008 = vmatprep.subr.msk.bf16.mxu0 %vm97_vm12, %v9644_v17  ;;  %v6508_v31 = vpop.f32.mrf.mxu0 }
 0x556   :  { %9829 = vmatpush1.bf16.msra.mxu0 %v9671_v2  ;;  %v9630_v9 = vpop.permute.xlu0 %9629  ;;  %v6548_v19 = vpop.f32.mrf.mxu1  ;;  %9846 = vmatprep.mubr.bf16.mxu0 %v16363_v3 }
 0x557   :  { %v10751_v14 = vpop.permute.xlu1 %10750  ;;  %v6509_v29 = vpop.f32.mrf.mxu0  ;;  %v9645_v58 = vsel %vm16429_vm6, %v9628_v36, %v9630_v9 }
 0x558   :  { %v10769_v45 = vsel %vm16428_vm5, %v10757_v56, %v10751_v14  ;;  %11201 = vperm.xlu0 %12287, %v11198_v27   ;;  %v12212_v5 = vpop.f32.mrf.mxu1  ;;  %v9677_v11 = vsel %vm97_vm12, %v9645_v58, 0 }
 0x559   :  { %v10783_v33 = vmul.bf16 %v15619_v40, %v10769_v45  ;;  %12007 = vmatmul.mubr.msk.bf16.vlgmr.msra.gmra.mxu1 %vm641_vm0, %v15969_v23  ;;  %v6698_v7 = vpop.f32.mrf.mxu0 }
 0x55a   :  { %v16005_v26 = vadd.f32 %v6698_v7, %v15834_v54  ;;  %v9634_v35 = vpop.permute.xlu0 %9633  ;;  %v6739_v38 = vpop.f32.mrf.mxu1  ;;  %9887 = vmatprep.mubr.bf16.mxu1 %v16363_v3 }
 0x55b   :  { %v12082_v28 = vcombine.low %v10783_v33, %v10783_v33  ;;  %v9632_v50 = vpop.permute.xlu1 %9631  ;;  %v6700_v21 = vpop.f32.mrf.mxu0  ;;  %v16010_v32 = vadd.f32 %v6739_v38, %v15841_v52 }
 0x55c   :  { %v9646_v40 = vsel %vm16430_vm3, %v9630_v9, %v9632_v50  ;;  %v16014_v59 = vadd.f32 %v6700_v21, %v15839_v6  ;;  %v6741_v39 = vpop.f32.mrf.mxu1  ;;  %v9647_v52 = vsel %vm16431_vm4, %v9632_v50, %v9634_v35  ;;  %v11217_v6 = vld [vmem:[%s16337_s7] sm:$0xf] }
 0x55d   :  { %10843 = vrot.lane.b32.xlu1 %v12082_v28, %s12477_s13  ;;  %12009 = vmatmul.mubr.msk.bf16.vlgmr.msra.gmra.mxu0 %vm641_vm0, %v15969_v23  ;;  %v6702_v54 = vpop.f32.mrf.mxu0  ;;  %v16020_v56 = vadd.f32 %v6741_v39, %v15848_v41  ;;  %v9683_v48 = vsel %vm97_vm12, %v9647_v52, 0 }
 0x55e   :  { %12010 = vmatprep.subr.msk.bf16.mxu1 %vm97_vm12, %v9646_v40  ;;  %v6743_v44 = vpop.f32.mrf.mxu1  ;;  %9928 = vmatprep.mubr.bf16.mxu0 %v16363_v3 }
 0x55f   :  { %9870 = vmatpush1.bf16.msra.mxu1 %v9677_v11  ;;  %v9636_v8 = vpop.permute.xlu1 %9635  ;;  %v6703_v53 = vpop.f32.mrf.mxu0 }
 0x560   :  { %v9648_v49 = vsel %vm16432_vm9, %v9634_v35, %v9636_v8  ;;  %v9689_v41 = vsel %vm97_vm12, %v9636_v8, 0  ;;  %12243 = vmatprep.subr.bf16.mxu1 %v16365_v16  ;;  %v6744_v51 = vpop.f32.mrf.mxu1 }
 0x561   :  { %11220 = vperm.xlu1 %12288, %v11217_v6   ;;  %12012 = vmatprep.subr.msk.bf16.mxu0 %vm97_vm12, %v9648_v49  ;;  %v6780_v4 = vpop.f32.mrf.mxu0 }
 0x562   :  { %12011 = vmatmul.mubr.msk.bf16.vlgmr.msra.gmra.mxu1 %vm641_vm0, %v15969_v23  ;;  %v16037_v57 = vadd.f32 %v6780_v4, %v15905_v37  ;;  %9911 = vmatpush1.bf16.msra.mxu0 %v9683_v48  ;;  %v6821_v42 = vpop.f32.mrf.mxu1 }
 0x563   :  { %12244 = vmatpush3.bf16.msra.mxu1 %v9689_v41  ;;  %v6782_v60 = vpop.f32.mrf.mxu0  ;;  %v16040_v34 = vadd.f32 %v6821_v42, %v15939_v63  ;;  %12245 = vmatprep.mubr.msk.bf16.mxu1 %vm12471_vm2, %v16365_v16 }
 0x564   :  { %v16045_v22 = vadd.f32 %v6782_v60, %v15911_v30  ;;  %v6823_v10 = vpop.f32.mrf.mxu1 }
 0x565   :  { %12013 = vmatmul.mubr.msk.bf16.vlgmr.msra.gmra.mxu0 %vm641_vm0, %v15969_v23  ;;  %v6784_v43 = vpop.f32.mrf.mxu0  ;;  %v16050_v37 = vadd.f32 %v6823_v10, %v15948_v46 }
 0x566   :  { %v10198_v20 = vpop.permute.xlu1 %10197  ;;  %v10196_v47 = vpop.permute.xlu0 %10195  ;;  %10307 = vmatprep.mubr.bf16.mxu0 %v16363_v3 }
 0x567   :  { %v6785_v63 = vpop.f32.mrf.mxu0  ;;  %v6825_v15 = vpop.f32.mrf.mxu1  ;;  %v10221_v62 = vsel %vm4652_vm7, %v10196_v47, %v10198_v20 }
 0x568   :  { %v10237_v55 = vsel %vm97_vm12, %v10221_v62, 0 }
 0x569   :  { %v6862_v25 = vpop.f32.mrf.mxu0  ;;  %v6826_v36 = vpop.f32.mrf.mxu1 }
 0x56a   :  { %12246 = vmatmul.mubr.msk.bf16.vlgmr.msra.gmra.mxu1 %vm641_vm0, %v15969_v23  ;;  %v16057_v30 = vadd.f32 %v6862_v25, %v15952_v0  ;;  %v10202_v1 = vpop.permute.xlu1 %10201  ;;  %v10200_v61 = vpop.permute.xlu0 %10199  ;;  %v16069_v0 = vld [vmem:[%s16335_s5 + $0xe] sm:$0x3] }
 0x56b   :  { %v10222_v46 = vsel %vm4652_vm7, %v10198_v20, %v10200_v61  ;;  %v6864_v17 = vpop.f32.mrf.mxu0  ;;  %10348 = vmatprep.mubr.bf16.mxu1 %v16363_v3  ;;  %v10223_v23 = vsel %vm4652_vm7, %v10200_v61, %v10202_v1 }
 0x56c   :  { %v16063_v2 = vadd.f32 %v6864_v17, %v15958_v18  ;;  %12036 = vmatprep.subr.msk.bf16.mxu0 %vm97_vm12, %v10222_v46  ;;  %v10243_v5 = vsel %vm97_vm12, %v10223_v23, 0 }
 0x56d   :  { %10290 = vmatpush1.bf16.msra.mxu0 %v10237_v55  ;;  %v6866_v31 = vpop.f32.mrf.mxu0  ;;  %v6903_v27 = vpop.f32.mrf.mxu1 }
 0x56e   :  { %v16073_v9 = vadd.f32 %v6903_v27, %v15981_v24  ;;  %v10206_v19 = vpop.permute.xlu1 %10205  ;;  %v10204_v14 = vpop.permute.xlu0 %10203 }
 0x56f   :  { %v10224_v18 = vsel %vm4652_vm7, %v10202_v1, %v10204_v14  ;;  %v6867_v29 = vpop.f32.mrf.mxu0  ;;  %v6905_v45 = vpop.f32.mrf.mxu1  ;;  %v10225_v24 = vsel %vm4652_vm7, %v10204_v14, %v10206_v19 }
 0x570   :  { %12037 = vmatmul.mubr.msk.bf16.vlgmr.msra.gmra.mxu0 %vm641_vm0, %v16069_v0  ;;  %v16080_v33 = vadd.f32 %v6905_v45, %v15986_v12  ;;  %12038 = vmatprep.subr.msk.bf16.mxu1 %vm97_vm12, %v10224_v18  ;;  %v10249_v12 = vsel %vm97_vm12, %v10225_v24, 0 }
 0x571   :  { %10389 = vmatprep.mubr.bf16.mxu0 %v16363_v3  ;;  %v6907_v7 = vpop.f32.mrf.mxu1  ;;  %v6944_v35 = vpop.f32.mrf.mxu0  ;;  %10331 = vmatpush1.bf16.msra.mxu1 %v10243_v5 }
 0x572   :  { %v16086_v38 = vadd.f32 %v6944_v35, %v15983_v13  ;;  %v10210_v58 = vpop.permute.xlu1 %10209  ;;  %v10208_v28 = vpop.permute.xlu0 %10207 }
 0x573   :  { %v10226_v50 = vsel %vm4652_vm7, %v10206_v19, %v10208_v28  ;;  %v6908_v21 = vpop.f32.mrf.mxu1  ;;  %v12217_v40 = vpop.f32.mrf.mxu0  ;;  %v10227_v39 = vsel %vm4652_vm7, %v10208_v28, %v10210_v58 }
 0x574   :  { %12039 = vmatmul.mubr.msk.bf16.vlgmr.msra.gmra.mxu1 %vm641_vm0, %v16069_v0  ;;  %12040 = vmatprep.subr.msk.bf16.mxu0 %vm97_vm12, %v10226_v50  ;;  %v10255_v53 = vsel %vm97_vm12, %v10227_v39, 0 }
 0x575   :  { %v6947_v54 = vpop.f32.mrf.mxu0  ;;  %v7309_v11 = vpop.f32.mrf.mxu1  ;;  %10372 = vmatpush1.bf16.msra.mxu0 %v10249_v12  ;;  %10430 = vmatprep.mubr.bf16.mxu1 %v16363_v3 }
 0x576   :  { %v7561_v13 = vadd.f32 %v7309_v11, %v16005_v26  ;;  %v10212_v52 = vpop.permute.xlu0 %10211  ;;  %v10214_v55 = vpop.permute.xlu1 %10213 }
 0x577   :  { %v10228_v6 = vsel %vm4652_vm7, %v10210_v58, %v10212_v52  ;;  %v12218_v44 = vpop.f32.mrf.mxu0  ;;  %v7311_v8 = vpop.f32.mrf.mxu1  ;;  %v10229_v27 = vsel %vm4652_vm7, %v10212_v52, %v10214_v55 }
 0x578   :  { %v7562_v49 = vadd.f32 %v7311_v8, %v16014_v59  ;;  %12041 = vmatmul.mubr.msk.bf16.vlgmr.msra.gmra.mxu0 %vm641_vm0, %v16069_v0  ;;  %12042 = vmatprep.subr.msk.bf16.mxu1 %vm97_vm12, %v10228_v6  ;;  %v10261_v45 = vsel %vm97_vm12, %v10229_v27, 0 }
 0x579   :  { %v7313_v41 = vpop.f32.mrf.mxu1  ;;  %v7350_v51 = vpop.f32.mrf.mxu0  ;;  %10413 = vmatpush1.bf16.msra.mxu1 %v10255_v53  ;;  %10471 = vmatprep.mubr.bf16.mxu0 %v16363_v3 }
 0x57a   :  { %v7563_v26 = vadd.f32 %v7350_v51, %v16010_v32 }
 0x57b   :  { %v7314_v48 = vpop.f32.mrf.mxu1  ;;  %v7352_v4 = vpop.f32.mrf.mxu0 }
 0x57c   :  { %v7564_v42 = vadd.f32 %v7352_v4, %v16020_v56  ;;  %12043 = vmatmul.mubr.msk.bf16.vlgmr.msra.gmra.mxu1 %vm641_vm0, %v16069_v0 }
 0x57d   :  { %v7354_v59 = vpop.f32.mrf.mxu0  ;;  %v7391_v60 = vpop.f32.mrf.mxu1  ;;  %10512 = vmatprep.mubr.bf16.mxu1 %v16363_v3 }
 0x57e   :  { %v7565_v10 = vadd.f32 %v7391_v60, %v16037_v57 }
 0x57f   :  { %v7355_v43 = vpop.f32.mrf.mxu0  ;;  %v7393_v20 = vpop.f32.mrf.mxu1 }
 0x580   :  { %v7566_v47 = vadd.f32 %v7393_v20, %v16045_v22 }
 0x581   :  { %v7395_v63 = vpop.f32.mrf.mxu1  ;;  %v7432_v15 = vpop.f32.mrf.mxu0 }
 0x582   :  { %v7567_v32 = vadd.f32 %v7432_v15, %v16040_v34 }
 0x583   :  { %v7396_v62 = vpop.f32.mrf.mxu1  ;;  %v7434_v25 = vpop.f32.mrf.mxu0 }
 0x584   :  { %v7568_v56 = vadd.f32 %v7434_v25, %v16050_v37 }
 0x585   :  { %v7436_v36 = vpop.f32.mrf.mxu0 }
 0x586   :  { %v7473_v1 = vpop.f32.mrf.mxu1 }
 0x587   :  { %v7569_v61 = vadd.f32 %v7473_v1, %v16057_v30  ;;  %v7437_v46 = vpop.f32.mrf.mxu0 }
 0x588   :  { %v7475_v17 = vpop.f32.mrf.mxu1 }
 0x589   :  { %v7570_v57 = vadd.f32 %v7475_v17, %v16063_v2  ;;  %v7514_v23 = vpop.f32.mrf.mxu0 }
 0x58a   :  { %v7477_v31 = vpop.f32.mrf.mxu1  ;;  %v7571_v22 = vadd.f32 %v7514_v23, %v16073_v9 }
 0x58b   :  { %v7516_v19 = vpop.f32.mrf.mxu0 }
 0x58c   :  { %v7478_v34 = vpop.f32.mrf.mxu1  ;;  %v7572_v14 = vadd.f32 %v7516_v19, %v16080_v33 }
 0x58d   :  { %v10216_v37 = vpop.permute.xlu0 %10215  ;;  %v7518_v18 = vpop.f32.mrf.mxu0 }
 0x58e   :  { %v7555_v29 = vpop.f32.mrf.mxu1  ;;  %v10230_v30 = vsel %vm4652_vm7, %v10214_v55, %v10216_v37 }
 0x58f   :  { %v7573_v5 = vadd.f32 %v7555_v29, %v16086_v38  ;;  %12044 = vmatprep.subr.msk.bf16.mxu0 %vm97_vm12, %v10230_v30  ;;  %v7519_v2 = vpop.f32.mrf.mxu0 }
 0x590   :  { %v12223_v24 = vpop.f32.mrf.mxu1  ;;  %10454 = vmatpush1.bf16.msra.mxu0 %v10261_v45 }
 0x591   :  { %12249 = vmatprep.subr.bf16.mxu0 %v16365_v16  ;;  %v7893_v7 = vpop.f32.mrf.mxu0 }
 0x592   :  { %v7558_v9 = vpop.f32.mrf.mxu1  ;;  %v8145_v35 = vadd.f32 %v7893_v7, %v7561_v13 }
 0x593   :  { %12045 = vmatmul.mubr.msk.bf16.vlgmr.msra.gmra.mxu0 %vm641_vm0, %v16069_v0  ;;  %v7895_v58 = vpop.f32.mrf.mxu0 }
 0x594   :  { %v12224_v33 = vpop.f32.mrf.mxu1  ;;  %12251 = vmatprep.mubr.msk.bf16.mxu0 %vm12471_vm2, %v16365_v16  ;;  %v8146_v28 = vadd.f32 %v7895_v58, %v7562_v49 }
 0x595   :  { %v7897_v38 = vpop.f32.mrf.mxu0 }
 0x596   :  { %v7934_v50 = vpop.f32.mrf.mxu1 }
 0x597   :  { %v8147_v21 = vadd.f32 %v7934_v50, %v7563_v26  ;;  %v7898_v40 = vpop.f32.mrf.mxu0 }
 0x598   :  { %v7936_v12 = vpop.f32.mrf.mxu1 }
 0x599   :  { %v16126_v39 = vadd.f32 %v7936_v12, %v7564_v42  ;;  %v7975_v11 = vpop.f32.mrf.mxu0  ;;  %v10218_v42 = vpop.permute.xlu1 %10217 }
 0x59a   :  { %v7938_v54 = vpop.f32.mrf.mxu1  ;;  %v16128_v52 = vadd.f32 %v7975_v11, %v7565_v10  ;;  %v10231_v63 = vsel %vm4652_vm7, %v10216_v37, %v10218_v42 }
 0x59b   :  { %v7977_v6 = vpop.f32.mrf.mxu0  ;;  %v10267_v1 = vsel %vm97_vm12, %v10231_v63, 0 }
 0x59c   :  { %v7939_v13 = vpop.f32.mrf.mxu1  ;;  %v16130_v44 = vadd.f32 %v7977_v6, %v7566_v47 }
 0x59d   :  { %v7979_v8 = vpop.f32.mrf.mxu0 }
 0x59e   :  { %v8016_v53 = vpop.f32.mrf.mxu1 }
 0x59f   :  { %v16132_v41 = vadd.f32 %v8016_v53, %v7567_v32  ;;  %v7980_v49 = vpop.f32.mrf.mxu0 }
 0x5a0   :  { %v8018_v51 = vpop.f32.mrf.mxu1 }
 0x5a1   :  { %v16134_v48 = vadd.f32 %v8018_v51, %v7568_v56 }
 0x5a2   :  { %v8020_v26 = vpop.f32.mrf.mxu1  ;;  %v8057_v4 = vpop.f32.mrf.mxu0 }
 0x5a3   :  { %v16136_v59 = vadd.f32 %v8057_v4, %v7569_v61 }
 0x5a4   :  { %v8021_v60 = vpop.f32.mrf.mxu1  ;;  %v8059_v10 = vpop.f32.mrf.mxu0 }
 0x5a5   :  { %v16138_v43 = vadd.f32 %v8059_v10, %v7570_v57  ;;  %v10820_v31 = vpop.permute.xlu1 %10819 }
 0x5a6   :  { %v8061_v20 = vpop.f32.mrf.mxu0  ;;  %v8098_v47 = vpop.f32.mrf.mxu1 }
 0x5a7   :  { %v16141_v15 = vadd.f32 %v8098_v47, %v7571_v22 }
 0x5a8   :  { %v10220_v32 = vpop.permute.xlu0 %10219  ;;  %v8062_v62 = vpop.f32.mrf.mxu0 }
 0x5a9   :  { %v10232_v25 = vsel %vm4652_vm7, %v10218_v42, %v10220_v32  ;;  %v10273_v56 = vsel %vm97_vm12, %v10220_v32, 0  ;;  %v8100_v36 = vpop.f32.mrf.mxu1 }
 0x5aa   :  { %v16146_v61 = vadd.f32 %v8100_v36, %v7572_v14  ;;  %12046 = vmatprep.subr.msk.bf16.mxu1 %vm97_vm12, %v10232_v25  ;;  %12250 = vmatpush3.bf16.msra.mxu0 %v10273_v56  ;;  %v8139_v46 = vpop.f32.mrf.mxu0 }
 0x5ab   :  { %v8102_v17 = vpop.f32.mrf.mxu1  ;;  %v16149_v55 = vadd.f32 %v8139_v46, %v7573_v5  ;;  %10495 = vmatpush1.bf16.msra.mxu1 %v10267_v1 }
 0x5ac   :  { %v12229_v57 = vpop.f32.mrf.mxu0  ;;  %v10822_v22 = vpop.permute.xlu0 %10821 }
 0x5ad   :  { %v8103_v23 = vpop.f32.mrf.mxu1  ;;  %12252 = vmatmul.mubr.msk.bf16.vlgmr.msra.gmra.mxu0 %vm641_vm0, %v16069_v0  ;;  %v10845_v37 = vsel %vm5278_vm8, %v10820_v31, %v10822_v22 }
 0x5ae   :  { %12047 = vmatmul.mubr.msk.bf16.vlgmr.msra.gmra.mxu1 %vm641_vm0, %v16069_v0  ;;  %v8142_v27 = vpop.f32.mrf.mxu0  ;;  %10972 = vmatprep.mubr.bf16.mxu0 %v16363_v3  ;;  %v10861_v9 = vsel %vm97_vm12, %v10845_v37, 0 }
 0x5af   :  { %v8517_v34 = vpop.f32.mrf.mxu1  ;;  %10931 = vmatprep.mubr.bf16.mxu1 %v16363_v3 }
 0x5b0   :  { %v16157_v19 = vadd.f32 %v8517_v34, %v8145_v35  ;;  %v12230_v14 = vpop.f32.mrf.mxu0 }
 0x5b1   :  { %v8519_v18 = vpop.f32.mrf.mxu1 }
 0x5b2   :  { %v16160_v29 = vadd.f32 %v8519_v18, %v8146_v28  ;;  %v8558_v30 = vpop.f32.mrf.mxu0  ;;  %v10824_v45 = vpop.permute.xlu1 %10823  ;;  %v16174_v28 = vld [vmem:[%s16335_s5 + $0x10] sm:$0x3] }
 0x5b3   :  { %v8521_v5 = vpop.f32.mrf.mxu1  ;;  %v16162_v2 = vadd.f32 %v8558_v30, %v8147_v21  ;;  %v10846_v0 = vsel %vm5278_vm8, %v10822_v22, %v10824_v45  ;;  %v10826_v24 = vpop.permute.xlu0 %10825 }
 0x5b4   :  { %v8560_v7 = vpop.f32.mrf.mxu0  ;;  %12083 = vmatprep.subr.msk.bf16.mxu1 %vm97_vm12, %v10846_v0  ;;  %v10847_v35 = vsel %vm5278_vm8, %v10824_v45, %v10826_v24 }
 0x5b5   :  { %v8522_v33 = vpop.f32.mrf.mxu1  ;;  %v16169_v58 = vadd.f32 %v8560_v7, %v16126_v39  ;;  %10914 = vmatpush1.bf16.msra.mxu1 %v10861_v9  ;;  %v10867_v54 = vsel %vm97_vm12, %v10847_v35, 0 }
 0x5b6   :  { %v8562_v38 = vpop.f32.mrf.mxu0  ;;  %v10828_v50 = vpop.permute.xlu1 %10827 }
 0x5b7   :  { %v8599_v21 = vpop.f32.mrf.mxu1  ;;  %v10848_v40 = vsel %vm5278_vm8, %v10826_v24, %v10828_v50  ;;  %v10830_v12 = vpop.permute.xlu0 %10829 }
 0x5b8   :  { %v16179_v11 = vadd.f32 %v8599_v21, %v16128_v52  ;;  %v8563_v13 = vpop.f32.mrf.mxu0  ;;  %12084 = vmatmul.mubr.msk.bf16.vlgmr.msra.gmra.mxu1 %vm641_vm0, %v16174_v28  ;;  %12085 = vmatprep.subr.msk.bf16.mxu0 %vm97_vm12, %v10848_v40  ;;  %v10849_v39 = vsel %vm5278_vm8, %v10828_v50, %v10830_v12 }
 0x5b9   :  { %v8601_v6 = vpop.f32.mrf.mxu1  ;;  %10955 = vmatpush1.bf16.msra.mxu0 %v10867_v54  ;;  %11013 = vmatprep.mubr.bf16.mxu1 %v16363_v3  ;;  %v10873_v4 = vsel %vm97_vm12, %v10849_v39, 0 }
 0x5ba   :  { %v16187_v8 = vadd.f32 %v8601_v6, %v16130_v44  ;;  %v8640_v53 = vpop.f32.mrf.mxu0  ;;  %v10832_v49 = vpop.permute.xlu1 %10831 }
 0x5bb   :  { %v8603_v51 = vpop.f32.mrf.mxu1  ;;  %v16190_v52 = vadd.f32 %v8640_v53, %v16132_v41  ;;  %v10850_v26 = vsel %vm5278_vm8, %v10830_v12, %v10832_v49  ;;  %v10834_v10 = vpop.permute.xlu0 %10833 }
 0x5bc   :  { %v8642_v42 = vpop.f32.mrf.mxu0  ;;  %12086 = vmatmul.mubr.msk.bf16.vlgmr.msra.gmra.mxu0 %vm641_vm0, %v16174_v28  ;;  %12087 = vmatprep.subr.msk.bf16.mxu1 %vm97_vm12, %v10850_v26  ;;  %v10851_v32 = vsel %vm5278_vm8, %v10832_v49, %v10834_v10 }
 0x5bd   :  { %v8604_v60 = vpop.f32.mrf.mxu1  ;;  %v16198_v44 = vadd.f32 %v8642_v42, %v16134_v48  ;;  %10996 = vmatpush1.bf16.msra.mxu1 %v10873_v4  ;;  %11054 = vmatprep.mubr.bf16.mxu0 %v16363_v3 }
 0x5be   :  { %v8644_v41 = vpop.f32.mrf.mxu0 }
 0x5bf   :  { %v8681_v20 = vpop.f32.mrf.mxu1 }
 0x5c0   :  { %v16202_v47 = vadd.f32 %v8681_v20, %v16136_v59  ;;  %12088 = vmatmul.mubr.msk.bf16.vlgmr.msra.gmra.mxu1 %vm641_vm0, %v16174_v28  ;;  %v8645_v63 = vpop.f32.mrf.mxu0  ;;  %v10879_v59 = vsel %vm97_vm12, %v10851_v32, 0 }
 0x5c1   :  { %v8683_v62 = vpop.f32.mrf.mxu1  ;;  %11095 = vmatprep.mubr.bf16.mxu1 %v16363_v3 }
 0x5c2   :  { %v16209_v48 = vadd.f32 %v8683_v62, %v16138_v43  ;;  %v10836_v25 = vpop.permute.xlu1 %10835  ;;  %v10838_v56 = vpop.permute.xlu0 %10837 }
 0x5c3   :  { %v10852_v36 = vsel %vm5278_vm8, %v10834_v10, %v10836_v25  ;;  %v8685_v1 = vpop.f32.mrf.mxu1  ;;  %v10853_v46 = vsel %vm5278_vm8, %v10836_v25, %v10838_v56 }
 0x5c4   :  { %12089 = vmatprep.subr.msk.bf16.mxu0 %vm97_vm12, %v10852_v36  ;;  %v10885_v23 = vsel %vm97_vm12, %v10853_v46, 0 }
 0x5c5   :  { %11037 = vmatpush1.bf16.msra.mxu0 %v10879_v59  ;;  %v8686_v17 = vpop.f32.mrf.mxu1 }
 0x5c6   :  { %v10840_v57 = vpop.permute.xlu1 %10839  ;;  %v10842_v43 = vpop.permute.xlu0 %10841 }
 0x5c7   :  { %v10854_v31 = vsel %vm5278_vm8, %v10838_v56, %v10840_v57  ;;  %v10855_v22 = vsel %vm5278_vm8, %v10840_v57, %v10842_v43 }
 0x5c8   :  { %12090 = vmatmul.mubr.msk.bf16.vlgmr.msra.gmra.mxu0 %vm641_vm0, %v16174_v28  ;;  %12091 = vmatprep.subr.msk.bf16.mxu1 %vm97_vm12, %v10854_v31  ;;  %v10891_v37 = vsel %vm97_vm12, %v10855_v22, 0 }
 0x5c9   :  { %11078 = vmatpush1.bf16.msra.mxu1 %v10885_v23  ;;  %11136 = vmatprep.mubr.bf16.mxu0 %v16363_v3 }
 0x5ca   :  { %12255 = vmatprep.subr.bf16.mxu1 %v16365_v16 }
 0x5cc   :  { %12092 = vmatmul.mubr.msk.bf16.vlgmr.msra.gmra.mxu1 %vm641_vm0, %v16174_v28 }
 0x5cd   :  { %12257 = vmatprep.mubr.msk.bf16.mxu1 %vm12471_vm2, %v16365_v16 }
 0x5cf   :  { %v10844_v27 = vpop.permute.xlu1 %10843 }
 0x5d0   :  { %v10856_v34 = vsel %vm5278_vm8, %v10842_v43, %v10844_v27  ;;  %v10897_v14 = vsel %vm97_vm12, %v10844_v27, 0 }
 0x5d1   :  { %12093 = vmatprep.subr.msk.bf16.mxu0 %vm97_vm12, %v10856_v34  ;;  %12256 = vmatpush3.bf16.msra.mxu1 %v10897_v14  ;;  %vm11327_vm12 = vcmask 254976  }
 0x5d2   :  { %11119 = vmatpush1.bf16.msra.mxu0 %v10891_v37 }
 0x5d4   :  { %12258 = vmatmul.mubr.msk.bf16.vlgmr.msra.gmra.mxu1 %vm641_vm0, %v16174_v28 }
 0x5d5   :  { %12094 = vmatmul.mubr.msk.bf16.vlgmr.msra.gmra.mxu0 %vm641_vm0, %v16174_v28 }
 0x5ec   :  { %v8763_v3 = vpop.f32.mrf.mxu1 }
 0x5ed   :  { %v8781_v16 = vadd.f32 %v8763_v3, %v16149_v55  ;;  %v8722_v18 = vpop.f32.mrf.mxu0 }
 0x5ee   :  { %v8779_v30 = vadd.f32 %v8722_v18, %v16141_v15  ;;  %v12235_v45 = vpop.f32.mrf.mxu1 }
 0x5ef   :  { %v8724_v5 = vpop.f32.mrf.mxu0 }
 0x5f0   :  { %v8780_v0 = vadd.f32 %v8724_v5, %v16146_v61  ;;  %v8766_v24 = vpop.f32.mrf.mxu1 }
 0x5f1   :  { %v8726_v9 = vpop.f32.mrf.mxu0 }
 0x5f2   :  { %v12236_v7 = vpop.f32.mrf.mxu1 }
 0x5f3   :  { %v8727_v35 = vpop.f32.mrf.mxu0 }
 0x5f4   :  { %v9142_v33 = vpop.f32.mrf.mxu1 }
 0x5f5   :  { %v9355_v38 = vadd.f32 %v9142_v33, %v16162_v2  ;;  %v9101_v50 = vpop.f32.mrf.mxu0 }
 0x5f6   :  { %v9353_v28 = vadd.f32 %v9101_v50, %v16157_v19  ;;  %v9144_v21 = vpop.f32.mrf.mxu1 }
 0x5f7   :  { %v9356_v55 = vadd.f32 %v9144_v21, %v16169_v58  ;;  %v9103_v40 = vpop.f32.mrf.mxu0 }
 0x5f8   :  { %v9354_v15 = vadd.f32 %v9103_v40, %v16160_v29  ;;  %v9146_v12 = vpop.f32.mrf.mxu1 }
 0x5f9   :  { %v9105_v54 = vpop.f32.mrf.mxu0 }
 0x5fa   :  { %v9147_v13 = vpop.f32.mrf.mxu1 }
 0x5fb   :  { %v9106_v61 = vpop.f32.mrf.mxu0 }
 0x5fc   :  { %v9224_v39 = vpop.f32.mrf.mxu1 }
 0x5fd   :  { %v9359_v6 = vadd.f32 %v9224_v39, %v16190_v52  ;;  %v9183_v53 = vpop.f32.mrf.mxu0 }
 0x5fe   :  { %v9357_v49 = vadd.f32 %v9183_v53, %v16179_v11  ;;  %v9226_v2 = vpop.f32.mrf.mxu1 }
 0x5ff   :  { %v9360_v51 = vadd.f32 %v9226_v2, %v16198_v44  ;;  %v9185_v19 = vpop.f32.mrf.mxu0 }
 0x600   :  { %v9358_v26 = vadd.f32 %v9185_v19, %v16187_v8  ;;  %v9228_v58 = vpop.f32.mrf.mxu1 }
 0x601   :  { %v9187_v4 = vpop.f32.mrf.mxu0 }
 0x602   :  { %v9229_v42 = vpop.f32.mrf.mxu1 }
 0x603   :  { %v9188_v29 = vpop.f32.mrf.mxu0 }
 0x605   :  { %v9265_v60 = vpop.f32.mrf.mxu0 }
 0x606   :  { %v9361_v10 = vadd.f32 %v9265_v60, %v16202_v47 }
 0x607   :  { %v9267_v41 = vpop.f32.mrf.mxu0 }
 0x608   :  { %v9362_v20 = vadd.f32 %v9267_v41, %v16209_v48 }
 0x609   :  { %v9269_v52 = vpop.f32.mrf.mxu0  ;;  %v9306_v63 = vpop.f32.mrf.mxu1 }
 0x60a   :  { %v9363_v32 = vadd.f32 %v9306_v63, %v8779_v30 }
 0x60b   :  { %v9270_v11 = vpop.f32.mrf.mxu0  ;;  %v9308_v62 = vpop.f32.mrf.mxu1 }
 0x60c   :  { %v9364_v25 = vadd.f32 %v9308_v62, %v8780_v0 }
 0x60d   :  { %v9310_v44 = vpop.f32.mrf.mxu1  ;;  %v9347_v56 = vpop.f32.mrf.mxu0 }
 0x60e   :  { %v9365_v36 = vadd.f32 %v9347_v56, %v8781_v16 }
 0x60f   :  { %v9311_v8 = vpop.f32.mrf.mxu1  ;;  %v12241_v1 = vpop.f32.mrf.mxu0 }
 0x611   :  { %v9350_v59 = vpop.f32.mrf.mxu0  ;;  %v9725_v46 = vpop.f32.mrf.mxu1 }
 0x612   :  { %v9977_v17 = vadd.f32 %v9725_v46, %v9353_v28 }
 0x613   :  { %v12242_v57 = vpop.f32.mrf.mxu0  ;;  %v9727_v31 = vpop.f32.mrf.mxu1 }
 0x614   :  { %v9978_v47 = vadd.f32 %v9727_v31, %v9354_v15 }
 0x615   :  { %v9729_v23 = vpop.f32.mrf.mxu1  ;;  %v9766_v43 = vpop.f32.mrf.mxu0 }
 0x616   :  { %v9979_v48 = vadd.f32 %v9766_v43, %v9355_v38 }
 0x617   :  { %v9730_v22 = vpop.f32.mrf.mxu1  ;;  %v9768_v27 = vpop.f32.mrf.mxu0 }
 0x618   :  { %v9980_v34 = vadd.f32 %v9768_v27, %v9356_v55 }
 0x619   :  { %v9770_v14 = vpop.f32.mrf.mxu0  ;;  %v9807_v37 = vpop.f32.mrf.mxu1 }
 0x61a   :  { %v9981_v3 = vadd.f32 %v9807_v37, %v9357_v49 }
 0x61b   :  { %v9771_v18 = vpop.f32.mrf.mxu0  ;;  %v9809_v30 = vpop.f32.mrf.mxu1 }
 0x61c   :  { %v9982_v16 = vadd.f32 %v9809_v30, %v9358_v26 }
 0x61d   :  { %v9811_v45 = vpop.f32.mrf.mxu1  ;;  %v9848_v5 = vpop.f32.mrf.mxu0 }
 0x61e   :  { %v9983_v0 = vadd.f32 %v9848_v5, %v9359_v6  ;;  %v16268_v5 = vpop.permute.xlu0 %11201 }
 0x61f   :  { %v9812_v24 = vpop.f32.mrf.mxu1  ;;  %v9850_v9 = vpop.f32.mrf.mxu0 }
 0x620   :  { %v9984_v7 = vadd.f32 %v9850_v9, %v9360_v51  ;;  %v12478_v24 = vmov 1983009808  }
 0x621   :  { %v9852_v35 = vpop.f32.mrf.mxu0  ;;  %v11265_v9 = vunpack.c.l.s4 %v12478_v24 }
 0x622   :  { %v9889_v33 = vpop.f32.mrf.mxu1 }
 0x623   :  { %v9985_v50 = vadd.f32 %v9889_v33, %v9361_v10  ;;  %v9853_v28 = vpop.f32.mrf.mxu0 }
 0x624   :  { %v9891_v38 = vpop.f32.mrf.mxu1  ;;  %v16271_v28 = vpop.permute.xlu1 %11220 }
 0x625   :  { %v9986_v21 = vadd.f32 %v9891_v38, %v9362_v20  ;;  %v9930_v40 = vpop.f32.mrf.mxu0 }
 0x626   :  { %v9893_v55 = vpop.f32.mrf.mxu1  ;;  %v16248_v15 = vadd.f32 %v9930_v40, %v9363_v32  ;;  %v11266_v40 = vunpack.c.0.s8 %v11265_v9 }
 0x627   :  { %v9932_v12 = vpop.f32.mrf.mxu0 }
 0x628   :  { %v9894_v54 = vpop.f32.mrf.mxu1  ;;  %v16250_v13 = vadd.f32 %v9932_v12, %v9364_v25 }
 0x629   :  { %v9934_v61 = vpop.f32.mrf.mxu0 }
 0x62a   :  { %v9971_v39 = vpop.f32.mrf.mxu1 }
 0x62b   :  { %v16252_v6 = vadd.f32 %v9971_v39, %v9365_v36  ;;  %v9935_v53 = vpop.f32.mrf.mxu0 }
 0x62c   :  { %v12247_v49 = vpop.f32.mrf.mxu1 }
 0x62e   :  { %v9974_v2 = vpop.f32.mrf.mxu1 }
 0x630   :  { %v10309_v51 = vpop.f32.mrf.mxu0  ;;  %v12248_v19 = vpop.f32.mrf.mxu1 }
 0x631   :  { %v10561_v26 = vadd.f32 %v10309_v51, %v9977_v17 }
 0x632   :  { %v10311_v58 = vpop.f32.mrf.mxu0 }
 0x633   :  { %v10562_v4 = vadd.f32 %v10311_v58, %v9978_v47  ;;  %v16433_v58 = vld [vmem:[#allocation6_spill] sm:$0xff] }
 0x634   :  { %v10313_v42 = vpop.f32.mrf.mxu0  ;;  %v10350_v29 = vpop.f32.mrf.mxu1 }
 0x635   :  { %v10563_v60 = vadd.f32 %v10350_v29, %v9979_v48 }
 0x636   :  { %v10314_v10 = vpop.f32.mrf.mxu0  ;;  %v10352_v41 = vpop.f32.mrf.mxu1 }
 0x637   :  { %v10564_v20 = vadd.f32 %v10352_v41, %v9980_v34 }
 0x638   :  { %v10354_v52 = vpop.f32.mrf.mxu1  ;;  %v10391_v63 = vpop.f32.mrf.mxu0 }
 0x639   :  { %v10565_v32 = vadd.f32 %v10391_v63, %v9981_v3 }
 0x63a   :  { %v10355_v11 = vpop.f32.mrf.mxu1  ;;  %v10393_v62 = vpop.f32.mrf.mxu0 }
 0x63b   :  { %v10566_v25 = vadd.f32 %v10393_v62, %v9982_v16 }
 0x63c   :  { %v10432_v44 = vpop.f32.mrf.mxu1  ;;  %v10395_v56 = vpop.f32.mrf.mxu0 }
 0x63d   :  { %v16254_v36 = vadd.f32 %v10432_v44, %v9983_v0 }
 0x63e   :  { %v10434_v8 = vpop.f32.mrf.mxu1  ;;  %v10396_v1 = vpop.f32.mrf.mxu0 }
 0x63f   :  { %v16256_v59 = vadd.f32 %v10434_v8, %v9984_v7 }
 0x640   :  { %v10436_v46 = vpop.f32.mrf.mxu1 }
 0x642   :  { %v10437_v17 = vpop.f32.mrf.mxu1 }
 0x653   :  { %v10473_v57 = vpop.f32.mrf.mxu0 }
 0x654   :  { %v16258_v31 = vadd.f32 %v10473_v57, %v9985_v50 }
 0x655   :  { %v10475_v47 = vpop.f32.mrf.mxu0 }
 0x656   :  { %v16260_v23 = vadd.f32 %v10475_v47, %v9986_v21 }
 0x657   :  { %v10477_v43 = vpop.f32.mrf.mxu0 }
 0x659   :  { %v10478_v48 = vpop.f32.mrf.mxu0 }
 0x66d   :  { %v16262_v22 = vpop.f32.mrf.mxu0 }
 0x66e   :  { %v16264_v27 = vpop.f32.mrf.mxu1 }
 0x66f   :  { %v12253_v34 = vpop.f32.mrf.mxu0 }
 0x670   :  { %v16266_v14 = vpop.f32.mrf.mxu1 }
 0x671   :  { %v10558_v37 = vpop.f32.mrf.mxu0 }
 0x672   :  { %v10518_v3 = vpop.f32.mrf.mxu1 }
 0x673   :  { %v12254_v18 = vpop.f32.mrf.mxu0 }
 0x674   :  { %v10519_v30 = vpop.f32.mrf.mxu1 }
 0x678   :  { %v10933_v16 = vpop.f32.mrf.mxu1 }
 0x679   :  { %v11185_v45 = vadd.f32 %v10933_v16, %v10561_v26 }
 0x67a   :  { %v10935_v0 = vpop.f32.mrf.mxu1 }
 0x67b   :  { %v11204_v7 = vmul.f32 %v16268_v5, %v11185_v45  ;;  %v11186_v35 = vadd.f32 %v10935_v0, %v10562_v4  ;;  %v16279_v4 = vsub.s32 %v11266_v40, %v16433_v58 }
 0x67c   :  { %v10937_v33 = vpop.f32.mrf.mxu1  ;;  %v10974_v50 = vpop.f32.mrf.mxu0 }
 0x67d   :  { %v11205_v38 = vmul.f32 %v16268_v5, %v11186_v35  ;;  %v11187_v21 = vadd.f32 %v10974_v50, %v10563_v60  ;;  %v11223_v54 = vadd.f32 %v16271_v28, %v11204_v7  ;;  %v10573_v7 = vadd.f32 %v16262_v22, %v16252_v6 }
 0x67e   :  { %v10938_v55 = vpop.f32.mrf.mxu1  ;;  %v10976_v12 = vpop.f32.mrf.mxu0  ;;  %v10572_v6 = vadd.f32 %v16266_v14, %v16250_v13 }
 0x67f   :  { %v11224_v61 = vadd.f32 %v16271_v28, %v11205_v38  ;;  %v11206_v39 = vmul.f32 %v16268_v5, %v11187_v21  ;;  %v11188_v53 = vadd.f32 %v10976_v12, %v10564_v20  ;;  %v10571_v21 = vadd.f32 %v16264_v27, %v16248_v15 }
 0x680   :  { %v11015_v49 = vpop.f32.mrf.mxu1  ;;  %v10978_v2 = vpop.f32.mrf.mxu0 }
 0x681   :  { %v12096_v51 = vpack.c.bf16 %v11224_v61, %v11223_v54  ;;  %v11207_v19 = vmul.f32 %v16268_v5, %v11188_v53  ;;  %v11189_v26 = vadd.f32 %v11015_v49, %v10565_v32  ;;  %v11225_v60 = vadd.f32 %v16271_v28, %v11206_v39 }
 0x682   :  { %v11017_v42 = vpop.f32.mrf.mxu1  ;;  %v10979_v29 = vpop.f32.mrf.mxu0 }
 0x683   :  { %v11226_v10 = vadd.f32 %v16271_v28, %v11207_v19  ;;  %v11208_v41 = vmul.f32 %v16268_v5, %v11189_v26  ;;  %v11190_v52 = vadd.f32 %v11017_v42, %v10566_v25  ;;  %v11270_v44 = vrot.slane %v12096_v51, %v16279_v4 }
 0x684   :  { %v11019_v63 = vpop.f32.mrf.mxu1 }
 0x685   :  { %v12097_v20 = vpack.c.bf16 %v11226_v10, %v11225_v60  ;;  %v11209_v11 = vmul.f32 %v16268_v5, %v11190_v52  ;;  %v11227_v56 = vadd.f32 %v16271_v28, %v11208_v41 }
 0x686   :  { %v11020_v62 = vpop.f32.mrf.mxu1 }
 0x687   :  { %v11277_v32 = vrot.slane %v12097_v20, %v16279_v4  ;;  %v11228_v8 = vadd.f32 %v16271_v28, %v11209_v11 }
 0x688   :  { %v11056_v1 = vpop.f32.mrf.mxu0 }
 0x689   :  { %v11278_v46 = vcombine.low %v11270_v44, %v11277_v32  ;;  %v12098_v17 = vpack.c.bf16 %v11228_v8, %v11227_v56  ;;  %v11191_v57 = vadd.f32 %v11056_v1, %v16254_v36 }
 0x68a   :  { %v11058_v47 = vpop.f32.mrf.mxu0 }
 0x68b   :  { %11324 = vst [vmem:[%s16338_s8] sm:$0xff] %v11278_v46  ;;  %v11210_v25 = vmul.f32 %v16268_v5, %v11191_v57  ;;  %v11192_v43 = vadd.f32 %v11058_v47, %v16256_v59 }
 0x68c   :  { %v11097_v48 = vpop.f32.mrf.mxu1  ;;  %v11060_v34 = vpop.f32.mrf.mxu0 }
 0x68d   :  { %v11211_v37 = vmul.f32 %v16268_v5, %v11192_v43  ;;  %v11193_v3 = vadd.f32 %v11097_v48, %v16258_v31  ;;  %v11229_v16 = vadd.f32 %v16271_v28, %v11210_v25  ;;  %v11287_v31 = vrot.slane %v12098_v17, %v16279_v4 }
 0x68e   :  { %v11099_v18 = vpop.f32.mrf.mxu1  ;;  %v11061_v30 = vpop.f32.mrf.mxu0 }
 0x68f   :  { %v11230_v36 = vadd.f32 %v16271_v28, %v11211_v37  ;;  %v11212_v45 = vmul.f32 %v16268_v5, %v11193_v3  ;;  %v11194_v0 = vadd.f32 %v11099_v18, %v16260_v23 }
 0x690   :  { %v11101_v24 = vpop.f32.mrf.mxu1 }
 0x691   :  { %v12099_v9 = vpack.c.bf16 %v11230_v36, %v11229_v16  ;;  %v11213_v59 = vmul.f32 %v16268_v5, %v11194_v0  ;;  %v11231_v50 = vadd.f32 %v16271_v28, %v11212_v45 }
 0x692   :  { %v11102_v35 = vpop.f32.mrf.mxu1 }
 0x693   :  { %v11294_v33 = vrot.slane %v12099_v9, %v16279_v4  ;;  %v11232_v38 = vadd.f32 %v16271_v28, %v11213_v59 }
 0x694   :  { %v11179_v23 = vpop.f32.mrf.mxu1 }
 0x695   :  { %v11295_v40 = vcombine.low %v11287_v31, %v11294_v33  ;;  %v12100_v55 = vpack.c.bf16 %v11232_v38, %v11231_v50  ;;  %v11197_v12 = vadd.f32 %v11179_v23, %v10573_v7  ;;  %v11138_v54 = vpop.f32.mrf.mxu0 }
 0x696   :  { %v11195_v22 = vadd.f32 %v11138_v54, %v10571_v21  ;;  %v12259_v61 = vpop.f32.mrf.mxu1 }
 0x697   :  { %11325 = vst [vmem:[%s16338_s8 + $0x8] sm:$0xff] %v11295_v40  ;;  %v11216_v39 = vmul.f32 %v16268_v5, %v11197_v12  ;;  %v11140_v53 = vpop.f32.mrf.mxu0  ;;  %v11304_v10 = vrot.slane %v12100_v55, %v16279_v4 }
 0x698   :  { %v11214_v49 = vmul.f32 %v16268_v5, %v11195_v22  ;;  %v11196_v15 = vadd.f32 %v11140_v53, %v10572_v6  ;;  %v11182_v27 = vpop.f32.mrf.mxu1 }
 0x699   :  { %v11235_v2 = vadd.f32 %v16271_v28, %v11216_v39  ;;  %v11142_v51 = vpop.f32.mrf.mxu0 }
 0x69a   :  { %v11215_v19 = vmul.f32 %v16268_v5, %v11196_v15  ;;  %v12260_v26 = vpop.f32.mrf.mxu1  ;;  %v11233_v58 = vadd.f32 %v16271_v28, %v11214_v49 }
 0x69b   :  { %v11248_v13 = vpack.c.bf16 %v11235_v2, %v11235_v2  ;;  %v11143_v14 = vpop.f32.mrf.mxu0 }
 0x69c   :  { %v11234_v42 = vadd.f32 %v16271_v28, %v11215_v19 }
 0x69d   :  { %v11319_v29 = vrot.slane %v11248_v13, %v16279_v4 }
 0x69e   :  { %v12101_v60 = vpack.c.bf16 %v11234_v42, %v11233_v58 }
 0x69f   :  { %11328 = vst.msk [vmem:[%s16338_s8 + $0x18] sm:$0x3] %vm11327_vm12, %v11319_v29 }
 0x6a0   :  { %v11311_v41 = vrot.slane %v12101_v60, %v16279_v4 }
 0x6a2   :  { %v11312_v5 = vcombine.low %v11304_v10, %v11311_v41 }
 0x6a4   :  { %11326 = vst [vmem:[%s16338_s8 + $0x10] sm:$0xff] %v11312_v5 }
 0x6a5   :  { %11333 = vsyncpa [#allocation4], 1 }

</bundles_post_ra>
